<compile_context>
chip_gen: v7x
topology: tpu7x:2x2x1
jax: 0.10.0
libtpu: 0.0.40
codegen_flags: <defaults>
</compile_context>

<pallas_src>
import numpy as np
import jax
import jax.numpy as jnp
from jax import lax
from jax.experimental import pallas as pl
from jax.experimental.pallas import tpu as pltpu


# ----------------------------- device heuristics -----------------------------

def _device_kind():
    try:
        return jax.devices()[0].device_kind.lower()
    except Exception:
        return ""


def _default_compute_dtype():
    # bf16 VPU/EUP lanes exist from v6e (Trillium) onwards; keep f32 elementwise
    # math on v5e and older.
    kind = _device_kind()
    return jnp.bfloat16 if ("v6" in kind or "v7" in kind) else jnp.float32


def _choose_tb(B, HW, C, compute_itemsize):
    # Live per-sample bytes: double-buffered bf16 feature block + ~3 compute-dtype
    # sized intermediates (gated copies / transients).
    per_sample = HW * C * (2 * 2 + 3 * compute_itemsize)
    budget = 20 << 20                      # leaves room for weights within v7x's 64 MiB VMEM
    cap = int(max(1, min(32, B, budget // max(per_sample, 1))))
    if B >= 16:
        cap = min(cap, B // 2)             # >= 2 grid steps -> both v7x TensorCores get work
    divisors = [t for t in range(1, cap + 1) if B % t == 0]
    mult8 = [t for t in divisors if t % 8 == 0]
    return (mult8 or divisors)[-1]


# --------------------------------- the kernel ---------------------------------

def _make_head_kernel(compute_dtype):
    cdt = jnp.dtype(compute_dtype)

    def kernel(x_ref,                       # (TB, HW, C) bf16, NHWC (spatial flattened)
               ca_w1_ref, ca_b1_ref,        # (C, Ch) bf16, (1, Ch) f32
               ca_w2_ref, ca_b2_ref,        # (Ch, C) bf16, (1, C) f32
               m_cat_ref, conv_b_ref,       # (2*HW, HW) bf16 Toeplitz, (1, HW) f32 bias row
               w1_ref, b1_ref,              # (C, 512) bf16, (1, 512) f32
               w2_ref, b2_ref,              # (512, 256) bf16, (1, 256) f32
               w3_ref, b3_ref,              # (256, NCP) bf16, (1, NCP) f32  (lane-padded)
               out_ref):                    # (TB, NCP) f32
        x = x_ref[...]                                      # (tb, hw, c) bf16
        tb, hw, c = x.shape
        inv_hw = 1.0 / float(hw)
        inv_c = 1.0 / float(c)

        # Per-sample "sum over HW" as a bf16 MXU matmul with f32 accumulation:
        # avoids an f32 copy of the feature block and moves both big reductions
        # (channel avg-pool and the final GAP) onto the mostly idle MXU.
        r = lax.broadcasted_iota(jnp.int32, (tb, tb * hw), 0)
        j = lax.broadcasted_iota(jnp.int32, (tb, tb * hw), 1)
        d = j - r * hw
        pool_hw = jnp.where((d >= 0) & (d < hw), 1.0, 0.0).astype(jnp.bfloat16)  # (tb, tb*hw)

        x2d = x.reshape(tb * hw, c)                          # hw % 8 == 0 -> tile-preserving

        # ---------------- ChannelAttention ----------------
        avg_c = jnp.dot(pool_hw, x2d, preferred_element_type=jnp.float32) * inv_hw   # (tb, c)
        max_c = jnp.max(x, axis=1).astype(jnp.float32)                               # exact in bf16
        # one shared-MLP pass over the stacked [avg; max] matrix (M = 2*TB)
        pooled = jnp.concatenate([avg_c, max_c], axis=0).astype(jnp.bfloat16)        # (2*tb, c)
        h = jnp.dot(pooled, ca_w1_ref[...], preferred_element_type=jnp.float32) + ca_b1_ref[...]
        h = jnp.maximum(h, 0.0).astype(jnp.bfloat16)
        mlp = jnp.dot(h, ca_w2_ref[...], preferred_element_type=jnp.float32) + ca_b2_ref[...]
        ca = jax.nn.sigmoid(mlp[:tb] + mlp[tb:])                                     # (tb, c) f32

        # Channel gating in the compute dtype (bf16 on v6e/v7x, f32 on v5e);
        # only one gated copy of the block is ever live.
        x1 = x.astype(cdt) * ca.astype(cdt)[:, None, :]                              # (tb, hw, c)

        # ---------------- SpatialAttention ----------------
        # mean over C: lane-axis reduction with f32 accumulation (the single
        # remaining f32 transient); max over C is exact in the compute dtype.
        avg_s = jnp.sum(x1.astype(jnp.float32), axis=2) * inv_c                      # (tb, hw)
        max_s = jnp.max(x1, axis=2).astype(jnp.float32)                              # (tb, hw)
        # fused 7x7 conv: one Toeplitz matmul over the stacked (avg|max) maps,
        # conv bias folded into a lane-dense bias row.
        pooled_s = jnp.concatenate([avg_s, max_s], axis=1).astype(jnp.bfloat16)      # (tb, 2*hw)
        conv = (jnp.dot(pooled_s, m_cat_ref[...], preferred_element_type=jnp.float32)
                + conv_b_ref[...])                                                   # (tb, hw)
        sa = jax.nn.sigmoid(conv)

        x2 = x1 * sa.astype(cdt)[:, :, None]                                         # (tb, hw, c)

        # ---------------- GAP + classifier (Dropout == identity in eval) ----------
        feat = (jnp.dot(pool_hw.astype(cdt), x2.reshape(tb * hw, c),
                        preferred_element_type=jnp.float32) * inv_hw)                # (tb, c) f32
        h1 = jnp.maximum(jnp.dot(feat.astype(jnp.bfloat16), w1_ref[...],
                                 preferred_element_type=jnp.float32) + b1_ref[...], 0.0)
        h2 = jnp.maximum(jnp.dot(h1.astype(jnp.bfloat16), w2_ref[...],
                                 preferred_element_type=jnp.float32) + b2_ref[...], 0.0)
        logits = (jnp.dot(h2.astype(jnp.bfloat16), w3_ref[...],
                          preferred_element_type=jnp.float32) + b3_ref[...])         # (tb, NCP)

        # ---------------- softmax over the 128-lane padded logits ----------------
        # padded lanes carry a -1e30 bias so exp underflows to exactly 0.
        m = jnp.max(logits, axis=-1, keepdims=True)
        e = jnp.exp(logits - m)
        inv_sum = pl.reciprocal(jnp.sum(e, axis=-1, keepdims=True), approx=True)
        out_ref[...] = (e * inv_sum).astype(out_ref.dtype)

    return kernel


# --------------------------------- the wrapper ---------------------------------

def cervical_head_forward(features, params, tb=None, compute_dtype=None):
    """Attention + classifier head on post-backbone features.

    features: (B, H, W, C) or (B, HW, C), ideally already bf16 NHWC (what a TPU
    backbone emits natively; C is the 128-aligned lane axis at production dims).
    Returns (B, num_classes) softmax probabilities in f32.
    """
    if features.ndim == 4:
        B, H, W, C = features.shape
        x = features.reshape(B, H * W, C)
    else:
        B, _, C = features.shape
        x = features
    HW = x.shape[1]

    if x.dtype != jnp.bfloat16:
        # TODO(synk): production backbones should emit bf16 features directly; this
        # cast is an extra HBM round trip kept only so the demo is self-contained.
        x = x.astype(jnp.bfloat16)

    if compute_dtype is None:
        compute_dtype = _default_compute_dtype()
    compute_dtype = jnp.dtype(compute_dtype)

    if tb is None:
        tb = _choose_tb(B, HW, C, compute_dtype.itemsize)
    assert B % tb == 0, "batch must be divisible by the per-step tile"

    NC = int(params["num_classes"])
    NCP = params["w3p"].shape[1]

    weight_arrays = (
        params["ca_w1t"], params["ca_b1"], params["ca_w2t"], params["ca_b2"],
        params["m_cat_t"], params["conv_brow"],
        params["w1t"], params["b1"], params["w2t"], params["b2"],
        params["w3p"], params["b3p"],
    )

    # VMEM budget: double-buffered bf16 feature block + a few compute-dtype sized
    # intermediates + (conservatively double-buffered) weights + headroom.
    block_bytes = tb * HW * C * 2
    inter_bytes = tb * HW * C * compute_dtype.itemsize
    weight_bytes = sum(int(a.size) * a.dtype.itemsize for a in weight_arrays)
    vmem_limit = int(2 * block_bytes + 4 * inter_bytes + 2 * weight_bytes) + (8 << 20)
    cap = (48 << 20) if "v7" in _device_kind() else (112 << 20)
    vmem_limit = int(max(32 << 20, min(vmem_limit, cap)))

    kernel = _make_head_kernel(compute_dtype)

    def _const_spec(arr, single_buffer):
        zeros = (0,) * arr.ndim
        if single_buffer:
            # grid-invariant operands: one VMEM buffer instead of two.
            return pl.BlockSpec(arr.shape, lambda b, _z=zeros: _z,
                                pipeline_mode=pl.Buffered(1))
        return pl.BlockSpec(arr.shape, lambda b, _z=zeros: _z)

    def _run(single_buffer_weights):
        in_specs = [pl.BlockSpec((tb, HW, C), lambda b: (b, 0, 0))]
        in_specs += [_const_spec(a, single_buffer_weights) for a in weight_arrays]
        return pl.pallas_call(
            kernel,
            out_shape=jax.ShapeDtypeStruct((B, NCP), jnp.float32),
            grid_spec=pltpu.PrefetchScalarGridSpec(
                num_scalar_prefetch=0,
                grid=(B // tb,),
                in_specs=in_specs,
                out_specs=pl.BlockSpec((tb, NCP), lambda b: (b, 0)),
            ),
            compiler_params=pltpu.CompilerParams(
                dimension_semantics=("parallel",),   # batch tiles split across v7x's two TCs
                vmem_limit_bytes=vmem_limit,
            ),
        )(x, *weight_arrays)

    try:
        out = jax.block_until_ready(_run(True))
    except Exception:
        # pl.Buffered(1) (single-buffered invariant weights) not supported on this
        # jax version -> fall back to default double buffering.
        out = _run(False)
    return out[:, :NC]


def cervical_lesion_classifier_forward(x_nchw, params, tb=None):
    """Mirrors CervicalLesionClassifier.forward starting from the post-backbone
    NCHW feature map. The NCHW->NHWC transpose + bf16 cast below belong inside the
    backbone on a real TPU pipeline (kept here so the demo is self-contained)."""
    B, C, H, W = x_nchw.shape
    feats = jnp.transpose(x_nchw, (0, 2, 3, 1))          # (B, H, W, C)
    return cervical_head_forward(feats, params, tb=tb)


# ----------------------- parameter construction (deterministic) -----------------------

def _linear_params(key, fan_in, fan_out):
    kw, kb = jax.random.split(key)
    bound = 1.0 / np.sqrt(fan_in)
    w = jax.random.uniform(kw, (fan_out, fan_in), jnp.float32, -bound, bound)  # torch (out,in)
    b = jax.random.uniform(kb, (fan_out,), jnp.float32, -bound, bound)
    return w, b


def _conv_toeplitz(weight_oihw, H, W):
    """Conv2d(2->1, k=7, pad=3) as per-input-channel (HW, HW) matrices."""
    K = weight_oihw.shape[-1]
    pad = K // 2
    w = np.asarray(weight_oihw)
    M = np.zeros((2, H * W, H * W), dtype=np.float32)
    for ci in range(2):
        for h in range(H):
            for ww in range(W):
                p = h * W + ww
                for kh in range(K):
                    for kw in range(K):
                        ih, iw = h + kh - pad, ww + kw - pad
                        if 0 <= ih < H and 0 <= iw < W:
                            M[ci, p, ih * W + iw] = w[0, ci, kh, kw]
    return M


def init_params(key, C=32, ratio=8, num_classes=5, H=8, W=8):
    ks = jax.random.split(key, 7)
    ch = max(1, C // ratio)
    ca_w1, ca_b1 = _linear_params(ks[0], C, ch)       # Linear(C, C//ratio)
    ca_w2, ca_b2 = _linear_params(ks[1], ch, C)       # Linear(C//ratio, C)
    fan_in = 2 * 7 * 7                                # Conv2d(2, 1, 7, padding=3)
    bound = 1.0 / np.sqrt(fan_in)
    conv_w = jax.random.uniform(ks[2], (1, 2, 7, 7), jnp.float32, -bound, bound)
    conv_b = jax.random.uniform(ks[3], (1,), jnp.float32, -bound, bound)
    w1, b1 = _linear_params(ks[4], C, 512)            # classifier
    w2, b2 = _linear_params(ks[5], 512, 256)
    w3, b3 = _linear_params(ks[6], 256, num_classes)

    HW = H * W
    # bf16 weight quantization is applied once here; the pure-JAX reference consumes
    # the same rounded values so the test isolates kernel structure / accumulation.
    conv_w_b = conv_w.astype(jnp.bfloat16).astype(jnp.float32)
    M = _conv_toeplitz(np.asarray(conv_w_b), H, W)
    m_cat_t = np.concatenate([M[0].T, M[1].T], axis=0)          # (2*HW, HW), [avg; max]

    # Lane-pad the final classifier layer to a 128-wide output so the kernel's
    # writeback is an unmasked, lane-dense store. Bias pad = -1e30 -> softmax 0.
    NCP = 128 * pl.cdiv(num_classes, 128)
    w3p = np.zeros((256, NCP), np.float32)
    w3p[:, :num_classes] = np.asarray(w3).T
    b3p = np.full((1, NCP), -1e30, np.float32)
    b3p[0, :num_classes] = np.asarray(b3)

    bf = lambda a: jnp.asarray(a, jnp.bfloat16)
    f32 = lambda a: jnp.asarray(a, jnp.float32)
    return dict(
        # kernel operands (weights bf16, biases f32)
        ca_w1t=bf(ca_w1.T), ca_b1=f32(ca_b1.reshape(1, -1)),
        ca_w2t=bf(ca_w2.T), ca_b2=f32(ca_b2.reshape(1, -1)),
        m_cat_t=bf(m_cat_t),
        conv_brow=jnp.full((1, HW), float(conv_b[0]), jnp.float32),
        w1t=bf(w1.T), b1=f32(b1.reshape(1, -1)),
        w2t=bf(w2.T), b2=f32(b2.reshape(1, -1)),
        w3p=bf(w3p), b3p=f32(b3p),
        # reference-only views (same bf16-rounded conv weights, raw bias)
        conv_w=f32(conv_w_b), conv_b=f32(conv_b),
        num_classes=num_classes,
    )


# -------------- pure-JAX reference (mirrors the PyTorch forward, NCHW) --------------

def reference_forward(x_nchw, params):
    relu = lambda v: jnp.maximum(v, 0.0)
    f = lambda name: params[name].astype(jnp.float32)
    nc = int(params["num_classes"])
    # ChannelAttention
    avg = jnp.mean(x_nchw, axis=(2, 3))
    mx = jnp.max(x_nchw, axis=(2, 3))
    mlp = lambda v: relu(v @ f("ca_w1t") + params["ca_b1"]) @ f("ca_w2t") + params["ca_b2"]
    ca = jax.nn.sigmoid(mlp(avg) + mlp(mx))
    x1 = x_nchw * ca[:, :, None, None]
    # SpatialAttention
    avg_s = jnp.mean(x1, axis=1, keepdims=True)
    max_s = jnp.max(x1, axis=1, keepdims=True)
    cat = jnp.concatenate([avg_s, max_s], axis=1)
    conv = lax.conv_general_dilated(cat, params["conv_w"], (1, 1), ((3, 3), (3, 3)),
                                    dimension_numbers=("NCHW", "OIHW", "NCHW"))
    conv = conv + params["conv_b"].reshape(1, 1, 1, 1)
    x2 = x1 * jax.nn.sigmoid(conv)
    # GAP + classifier + softmax
    feat = jnp.mean(x2, axis=(2, 3))
    h1 = relu(feat @ f("w1t") + params["b1"])
    h2 = relu(h1 @ f("w2t") + params["b2"])
    logits = h2 @ f("w3p")[:, :nc] + params["b3p"][:, :nc]
    return jax.nn.softmax(logits, axis=-1)


if __name__ == "__main__":
    B, C, H, W = 16, 32, 8, 8          # small stand-in for EfficientNet-B4 features (1792, 12, 12)
    num_classes = 5
    key = jax.random.PRNGKey(0)
    kx, kp = jax.random.split(key)
    x = jax.random.normal(kx, (B, C, H, W), jnp.float32)
    params = init_params(kp, C=C, ratio=8, num_classes=num_classes, H=H, W=W)

    probs = jax.block_until_ready(cervical_lesion_classifier_forward(x, params))

    # The reference consumes the same bf16-rounded features and bf16-rounded weights
    # the kernel uses, so the comparison isolates kernel structure / accumulation
    # order (tolerance also covers bf16 gating math and the approx softmax reciprocal).
    x_ref_in = x.astype(jnp.bfloat16).astype(jnp.float32)
    ref = jax.block_until_ready(reference_forward(x_ref_in, params))

    assert probs.shape == (B, num_classes)
    np.testing.assert_allclose(np.asarray(probs), np.asarray(ref), rtol=1.5e-2, atol=1.5e-3)
    print("KERNEL_OK")
</pallas_src>

<mosaic_0001>
module attributes {stable_mosaic.version = 11 : i64} {
  func.func @kernel(%arg0: i32, %arg1: memref<8x64x32xbf16, #tpu.memory_space<vmem>>, %arg2: memref<32x4xbf16, #tpu.memory_space<vmem>>, %arg3: memref<1x4xf32, #tpu.memory_space<vmem>>, %arg4: memref<4x32xbf16, #tpu.memory_space<vmem>>, %arg5: memref<1x32xf32, #tpu.memory_space<vmem>>, %arg6: memref<128x64xbf16, #tpu.memory_space<vmem>>, %arg7: memref<1x64xf32, #tpu.memory_space<vmem>>, %arg8: memref<32x512xbf16, #tpu.memory_space<vmem>>, %arg9: memref<1x512xf32, #tpu.memory_space<vmem>>, %arg10: memref<512x256xbf16, #tpu.memory_space<vmem>>, %arg11: memref<1x256xf32, #tpu.memory_space<vmem>>, %arg12: memref<256x128xbf16, #tpu.memory_space<vmem>>, %arg13: memref<1x128xf32, #tpu.memory_space<vmem>>, %arg14: memref<8x128xf32, #tpu.memory_space<vmem>>) attributes {dimension_semantics = [#tpu.dimension_semantics<parallel>], iteration_bounds = array<i64: 2>, scalar_prefetch = 0 : i64, scratch_operands = 0 : i64, tpu.core_type = #tpu.core_type<tc>, window_params = [{transform_indices = @transform_0, window_bounds = array<i64: 8, 64, 32>}, {pipeline_mode = #tpu.pipeline_mode<synchronous>, transform_indices = @transform_1, window_bounds = array<i64: 32, 4>}, {pipeline_mode = #tpu.pipeline_mode<synchronous>, transform_indices = @transform_2, window_bounds = array<i64: 1, 4>}, {pipeline_mode = #tpu.pipeline_mode<synchronous>, transform_indices = @transform_3, window_bounds = array<i64: 4, 32>}, {pipeline_mode = #tpu.pipeline_mode<synchronous>, transform_indices = @transform_4, window_bounds = array<i64: 1, 32>}, {pipeline_mode = #tpu.pipeline_mode<synchronous>, transform_indices = @transform_5, window_bounds = array<i64: 128, 64>}, {pipeline_mode = #tpu.pipeline_mode<synchronous>, transform_indices = @transform_6, window_bounds = array<i64: 1, 64>}, {pipeline_mode = #tpu.pipeline_mode<synchronous>, transform_indices = @transform_7, window_bounds = array<i64: 32, 512>}, {pipeline_mode = #tpu.pipeline_mode<synchronous>, transform_indices = @transform_8, window_bounds = array<i64: 1, 512>}, {pipeline_mode = #tpu.pipeline_mode<synchronous>, transform_indices = @transform_9, window_bounds = array<i64: 512, 256>}, {pipeline_mode = #tpu.pipeline_mode<synchronous>, transform_indices = @transform_10, window_bounds = array<i64: 1, 256>}, {pipeline_mode = #tpu.pipeline_mode<synchronous>, transform_indices = @transform_11, window_bounds = array<i64: 256, 128>}, {pipeline_mode = #tpu.pipeline_mode<synchronous>, transform_indices = @transform_12, window_bounds = array<i64: 1, 128>}, {transform_indices = @transform_13, window_bounds = array<i64: 8, 128>}]} {
    %c0 = arith.constant 0 : index
    %c0_0 = arith.constant 0 : index
    %c0_1 = arith.constant 0 : index
    %0 = vector.load %arg1[%c0, %c0_0, %c0_1] : memref<8x64x32xbf16, #tpu.memory_space<vmem>>, vector<8x64x32xbf16>
    %1 = tpu.iota {dimensions = array<i32: 0>} : vector<8x512xi32>
    %2 = tpu.iota {dimensions = array<i32: 1>} : vector<8x512xi32>
    %c64_i32 = arith.constant 64 : i32
    %3 = vector.broadcast %c64_i32 : i32 to vector<8x512xi32>
    %4 = arith.muli %1, %3 : vector<8x512xi32>
    %5 = arith.subi %2, %4 : vector<8x512xi32>
    %c0_i32 = arith.constant 0 : i32
    %6 = vector.broadcast %c0_i32 : i32 to vector<8x512xi32>
    %7 = arith.cmpi sge, %5, %6 : vector<8x512xi32>
    %c64_i32_2 = arith.constant 64 : i32
    %8 = vector.broadcast %c64_i32_2 : i32 to vector<8x512xi32>
    %9 = arith.cmpi slt, %5, %8 : vector<8x512xi32>
    %10 = arith.andi %7, %9 : vector<8x512xi1>
    %cst = arith.constant 1.000000e+00 : f32
    %cst_3 = arith.constant 0.000000e+00 : f32
    %11 = vector.broadcast %cst : f32 to vector<8x512xf32>
    %12 = vector.broadcast %cst_3 : f32 to vector<8x512xf32>
    %13 = arith.select %10, %11, %12 : vector<8x512xi1>, vector<8x512xf32>
    %14 = arith.truncf %13 : vector<8x512xf32> to vector<8x512xbf16>
    %15 = vector.shape_cast %0 : vector<8x64x32xbf16> to vector<512x32xbf16>
    %cst_4 = arith.constant dense<0.000000e+00> : vector<8x32xf32>
    %16 = tpu.matmul %14, %15, %cst_4 {dimension_numbers = #tpu.dot_dimension_numbers<[1], [0], [0], [1], [0, 0, 1, 1], [], []>} : vector<8x512xbf16>, vector<512x32xbf16>, vector<8x32xf32> -> vector<8x32xf32>
    %cst_5 = arith.constant 1.562500e-02 : f32
    %17 = vector.broadcast %cst_5 : f32 to vector<8x32xf32>
    %18 = arith.mulf %16, %17 : vector<8x32xf32>
    %cst_6 = arith.constant dense<0xFF80> : vector<8x32xbf16>
    %19 = vector.multi_reduction <maximumf>, %0, %cst_6 [1] : vector<8x64x32xbf16> to vector<8x32xbf16>
    %20 = arith.extf %19 : vector<8x32xbf16> to vector<8x32xf32>
    %21 = tpu.concatenate %18, %20 in 0 : vector<8x32xf32>, vector<8x32xf32> -> vector<16x32xf32>
    %22 = arith.truncf %21 : vector<16x32xf32> to vector<16x32xbf16>
    %c0_7 = arith.constant 0 : index
    %c0_8 = arith.constant 0 : index
    %23 = vector.load %arg2[%c0_7, %c0_8] : memref<32x4xbf16, #tpu.memory_space<vmem>>, vector<32x4xbf16>
    %cst_9 = arith.constant dense<0.000000e+00> : vector<16x4xf32>
    %24 = tpu.matmul %22, %23, %cst_9 {dimension_numbers = #tpu.dot_dimension_numbers<[1], [0], [0], [1], [0, 0, 1, 1], [], []>} : vector<16x32xbf16>, vector<32x4xbf16>, vector<16x4xf32> -> vector<16x4xf32>
    %c0_10 = arith.constant 0 : index
    %c0_11 = arith.constant 0 : index
    %25 = vector.load %arg3[%c0_10, %c0_11] : memref<1x4xf32, #tpu.memory_space<vmem>>, vector<1x4xf32>
    %26 = vector.broadcast %25 : vector<1x4xf32> to vector<16x4xf32>
    %27 = arith.addf %24, %26 : vector<16x4xf32>
    %cst_12 = arith.constant 0.000000e+00 : f32
    %28 = vector.broadcast %cst_12 : f32 to vector<16x4xf32>
    %29 = arith.maximumf %27, %28 : vector<16x4xf32>
    %30 = arith.truncf %29 : vector<16x4xf32> to vector<16x4xbf16>
    %c0_13 = arith.constant 0 : index
    %c0_14 = arith.constant 0 : index
    %31 = vector.load %arg4[%c0_13, %c0_14] : memref<4x32xbf16, #tpu.memory_space<vmem>>, vector<4x32xbf16>
    %cst_15 = arith.constant dense<0.000000e+00> : vector<16x32xf32>
    %32 = tpu.matmul %30, %31, %cst_15 {dimension_numbers = #tpu.dot_dimension_numbers<[1], [0], [0], [1], [0, 0, 1, 1], [], []>} : vector<16x4xbf16>, vector<4x32xbf16>, vector<16x32xf32> -> vector<16x32xf32>
    %c0_16 = arith.constant 0 : index
    %c0_17 = arith.constant 0 : index
    %33 = vector.load %arg5[%c0_16, %c0_17] : memref<1x32xf32, #tpu.memory_space<vmem>>, vector<1x32xf32>
    %34 = vector.broadcast %33 : vector<1x32xf32> to vector<16x32xf32>
    %35 = arith.addf %32, %34 : vector<16x32xf32>
    %36 = vector.extract_strided_slice %35 {offsets = [0, 0], sizes = [8, 32], strides = [1, 1]} : vector<16x32xf32> to vector<8x32xf32>
    %37 = vector.extract_strided_slice %35 {offsets = [8, 0], sizes = [8, 32], strides = [1, 1]} : vector<16x32xf32> to vector<8x32xf32>
    %38 = arith.addf %36, %37 : vector<8x32xf32>
    %39 = arith.negf %38 : vector<8x32xf32>
    %40 = math.exp %39 : vector<8x32xf32>
    %cst_18 = arith.constant 1.000000e+00 : f32
    %41 = vector.broadcast %cst_18 : f32 to vector<8x32xf32>
    %42 = arith.addf %41, %40 : vector<8x32xf32>
    %43 = arith.divf %41, %42 : vector<8x32xf32>
    %44 = arith.extf %0 : vector<8x64x32xbf16> to vector<8x64x32xf32>
    %45 = vector.shape_cast %43 : vector<8x32xf32> to vector<8x1x32xf32>
    %46 = vector.broadcast %45 : vector<8x1x32xf32> to vector<8x64x32xf32>
    %47 = arith.mulf %44, %46 : vector<8x64x32xf32>
    %cst_19 = arith.constant dense<0.000000e+00> : vector<8x64xf32>
    %48 = vector.multi_reduction <add>, %47, %cst_19 [2] : vector<8x64x32xf32> to vector<8x64xf32>
    %cst_20 = arith.constant 3.125000e-02 : f32
    %49 = vector.broadcast %cst_20 : f32 to vector<8x64xf32>
    %50 = arith.mulf %48, %49 : vector<8x64xf32>
    %cst_21 = arith.constant dense<0xFF800000> : vector<8x64xf32>
    %51 = vector.multi_reduction <maximumf>, %47, %cst_21 [2] : vector<8x64x32xf32> to vector<8x64xf32>
    %52 = tpu.concatenate %50, %51 in 1 : vector<8x64xf32>, vector<8x64xf32> -> vector<8x128xf32>
    %53 = arith.truncf %52 : vector<8x128xf32> to vector<8x128xbf16>
    %c0_22 = arith.constant 0 : index
    %c0_23 = arith.constant 0 : index
    %54 = vector.load %arg6[%c0_22, %c0_23] : memref<128x64xbf16, #tpu.memory_space<vmem>>, vector<128x64xbf16>
    %cst_24 = arith.constant dense<0.000000e+00> : vector<8x64xf32>
    %55 = tpu.matmul %53, %54, %cst_24 {dimension_numbers = #tpu.dot_dimension_numbers<[1], [0], [0], [1], [0, 0, 1, 1], [], []>} : vector<8x128xbf16>, vector<128x64xbf16>, vector<8x64xf32> -> vector<8x64xf32>
    %c0_25 = arith.constant 0 : index
    %c0_26 = arith.constant 0 : index
    %56 = vector.load %arg7[%c0_25, %c0_26] : memref<1x64xf32, #tpu.memory_space<vmem>>, vector<1x64xf32>
    %57 = vector.broadcast %56 : vector<1x64xf32> to vector<8x64xf32>
    %58 = arith.addf %55, %57 : vector<8x64xf32>
    %59 = arith.negf %58 : vector<8x64xf32>
    %60 = math.exp %59 : vector<8x64xf32>
    %cst_27 = arith.constant 1.000000e+00 : f32
    %61 = vector.broadcast %cst_27 : f32 to vector<8x64xf32>
    %62 = arith.addf %61, %60 : vector<8x64xf32>
    %63 = arith.divf %61, %62 : vector<8x64xf32>
    %64 = vector.shape_cast %63 : vector<8x64xf32> to vector<8x64x1xf32>
    %65 = vector.broadcast %64 : vector<8x64x1xf32> to vector<8x64x32xf32>
    %66 = arith.mulf %47, %65 : vector<8x64x32xf32>
    %67 = arith.extf %14 : vector<8x512xbf16> to vector<8x512xf32>
    %68 = vector.shape_cast %66 : vector<8x64x32xf32> to vector<512x32xf32>
    %cst_28 = arith.constant dense<0.000000e+00> : vector<8x32xf32>
    %69 = tpu.matmul %67, %68, %cst_28 {dimension_numbers = #tpu.dot_dimension_numbers<[1], [0], [0], [1], [0, 0, 1, 1], [], []>} : vector<8x512xf32>, vector<512x32xf32>, vector<8x32xf32> -> vector<8x32xf32>
    %cst_29 = arith.constant 1.562500e-02 : f32
    %70 = vector.broadcast %cst_29 : f32 to vector<8x32xf32>
    %71 = arith.mulf %69, %70 : vector<8x32xf32>
    %72 = arith.truncf %71 : vector<8x32xf32> to vector<8x32xbf16>
    %c0_30 = arith.constant 0 : index
    %c0_31 = arith.constant 0 : index
    %73 = vector.load %arg8[%c0_30, %c0_31] : memref<32x512xbf16, #tpu.memory_space<vmem>>, vector<32x512xbf16>
    %cst_32 = arith.constant dense<0.000000e+00> : vector<8x512xf32>
    %74 = tpu.matmul %72, %73, %cst_32 {dimension_numbers = #tpu.dot_dimension_numbers<[1], [0], [0], [1], [0, 0, 1, 1], [], []>} : vector<8x32xbf16>, vector<32x512xbf16>, vector<8x512xf32> -> vector<8x512xf32>
    %c0_33 = arith.constant 0 : index
    %c0_34 = arith.constant 0 : index
    %75 = vector.load %arg9[%c0_33, %c0_34] : memref<1x512xf32, #tpu.memory_space<vmem>>, vector<1x512xf32>
    %76 = vector.broadcast %75 : vector<1x512xf32> to vector<8x512xf32>
    %77 = arith.addf %74, %76 : vector<8x512xf32>
    %cst_35 = arith.constant 0.000000e+00 : f32
    %78 = vector.broadcast %cst_35 : f32 to vector<8x512xf32>
    %79 = arith.maximumf %77, %78 : vector<8x512xf32>
    %80 = arith.truncf %79 : vector<8x512xf32> to vector<8x512xbf16>
    %c0_36 = arith.constant 0 : index
    %c0_37 = arith.constant 0 : index
    %81 = vector.load %arg10[%c0_36, %c0_37] : memref<512x256xbf16, #tpu.memory_space<vmem>>, vector<512x256xbf16>
    %cst_38 = arith.constant dense<0.000000e+00> : vector<8x256xf32>
    %82 = tpu.matmul %80, %81, %cst_38 {dimension_numbers = #tpu.dot_dimension_numbers<[1], [0], [0], [1], [0, 0, 1, 1], [], []>} : vector<8x512xbf16>, vector<512x256xbf16>, vector<8x256xf32> -> vector<8x256xf32>
    %c0_39 = arith.constant 0 : index
    %c0_40 = arith.constant 0 : index
    %83 = vector.load %arg11[%c0_39, %c0_40] : memref<1x256xf32, #tpu.memory_space<vmem>>, vector<1x256xf32>
    %84 = vector.broadcast %83 : vector<1x256xf32> to vector<8x256xf32>
    %85 = arith.addf %82, %84 : vector<8x256xf32>
    %cst_41 = arith.constant 0.000000e+00 : f32
    %86 = vector.broadcast %cst_41 : f32 to vector<8x256xf32>
    %87 = arith.maximumf %85, %86 : vector<8x256xf32>
    %88 = arith.truncf %87 : vector<8x256xf32> to vector<8x256xbf16>
    %c0_42 = arith.constant 0 : index
    %c0_43 = arith.constant 0 : index
    %89 = vector.load %arg12[%c0_42, %c0_43] : memref<256x128xbf16, #tpu.memory_space<vmem>>, vector<256x128xbf16>
    %cst_44 = arith.constant dense<0.000000e+00> : vector<8x128xf32>
    %90 = tpu.matmul %88, %89, %cst_44 {dimension_numbers = #tpu.dot_dimension_numbers<[1], [0], [0], [1], [0, 0, 1, 1], [], []>} : vector<8x256xbf16>, vector<256x128xbf16>, vector<8x128xf32> -> vector<8x128xf32>
    %c0_45 = arith.constant 0 : index
    %c0_46 = arith.constant 0 : index
    %91 = vector.load %arg13[%c0_45, %c0_46] : memref<1x128xf32, #tpu.memory_space<vmem>>, vector<1x128xf32>
    %92 = vector.broadcast %91 : vector<1x128xf32> to vector<8x128xf32>
    %93 = arith.addf %90, %92 : vector<8x128xf32>
    %cst_47 = arith.constant dense<0xFF800000> : vector<8xf32>
    %94 = vector.multi_reduction <maximumf>, %93, %cst_47 [1] : vector<8x128xf32> to vector<8xf32>
    %95 = vector.shape_cast %94 : vector<8xf32> to vector<8x1xf32>
    %96 = vector.broadcast %95 : vector<8x1xf32> to vector<8x128xf32>
    %97 = arith.subf %93, %96 : vector<8x128xf32>
    %98 = math.exp %97 : vector<8x128xf32>
    %cst_48 = arith.constant dense<0.000000e+00> : vector<8xf32>
    %99 = vector.multi_reduction <add>, %98, %cst_48 [1] : vector<8x128xf32> to vector<8xf32>
    %100 = vector.shape_cast %99 : vector<8xf32> to vector<8x1xf32>
    %101 = tpu.reciprocal %100 {approx = true} : vector<8x1xf32> -> vector<8x1xf32>
    %102 = vector.broadcast %101 : vector<8x1xf32> to vector<8x128xf32>
    %103 = arith.mulf %98, %102 : vector<8x128xf32>
    %c0_49 = arith.constant 0 : index
    %c0_50 = arith.constant 0 : index
    %104 = vector.load %arg14[%c0_49, %c0_50] : memref<8x128xf32, #tpu.memory_space<vmem>>, vector<8x128xf32>
    tpu.vector_store %arg14[%c0_49, %c0_50], %103 {strides = array<i32>} : memref<8x128xf32, #tpu.memory_space<vmem>>, vector<8x128xf32>,
    return
  }
  func.func @transform_0(%arg0: i32) -> (i32, i32, i32) {
    %c0_i32 = arith.constant 0 : i32
    %c0_i32_0 = arith.constant 0 : i32
    %c0_i32_1 = arith.constant 0 : i32
    return %arg0, %c0_i32, %c0_i32_0 : i32, i32, i32
  }
  func.func @transform_1(%arg0: i32) -> (i32, i32) {
    %c0_i32 = arith.constant 0 : i32
    %c0_i32_0 = arith.constant 0 : i32
    %c0_i32_1 = arith.constant 0 : i32
    return %c0_i32, %c0_i32_0 : i32, i32
  }
  func.func @transform_2(%arg0: i32) -> (i32, i32) {
    %c0_i32 = arith.constant 0 : i32
    %c0_i32_0 = arith.constant 0 : i32
    %c0_i32_1 = arith.constant 0 : i32
    return %c0_i32, %c0_i32_0 : i32, i32
  }
  func.func @transform_3(%arg0: i32) -> (i32, i32) {
    %c0_i32 = arith.constant 0 : i32
    %c0_i32_0 = arith.constant 0 : i32
    %c0_i32_1 = arith.constant 0 : i32
    return %c0_i32, %c0_i32_0 : i32, i32
  }
  func.func @transform_4(%arg0: i32) -> (i32, i32) {
    %c0_i32 = arith.constant 0 : i32
    %c0_i32_0 = arith.constant 0 : i32
    %c0_i32_1 = arith.constant 0 : i32
    return %c0_i32, %c0_i32_0 : i32, i32
  }
  func.func @transform_5(%arg0: i32) -> (i32, i32) {
    %c0_i32 = arith.constant 0 : i32
    %c0_i32_0 = arith.constant 0 : i32
    %c0_i32_1 = arith.constant 0 : i32
    return %c0_i32, %c0_i32_0 : i32, i32
  }
  func.func @transform_6(%arg0: i32) -> (i32, i32) {
    %c0_i32 = arith.constant 0 : i32
    %c0_i32_0 = arith.constant 0 : i32
    %c0_i32_1 = arith.constant 0 : i32
    return %c0_i32, %c0_i32_0 : i32, i32
  }
  func.func @transform_7(%arg0: i32) -> (i32, i32) {
    %c0_i32 = arith.constant 0 : i32
    %c0_i32_0 = arith.constant 0 : i32
    %c0_i32_1 = arith.constant 0 : i32
    return %c0_i32, %c0_i32_0 : i32, i32
  }
  func.func @transform_8(%arg0: i32) -> (i32, i32) {
    %c0_i32 = arith.constant 0 : i32
    %c0_i32_0 = arith.constant 0 : i32
    %c0_i32_1 = arith.constant 0 : i32
    return %c0_i32, %c0_i32_0 : i32, i32
  }
  func.func @transform_9(%arg0: i32) -> (i32, i32) {
    %c0_i32 = arith.constant 0 : i32
    %c0_i32_0 = arith.constant 0 : i32
    %c0_i32_1 = arith.constant 0 : i32
    return %c0_i32, %c0_i32_0 : i32, i32
  }
  func.func @transform_10(%arg0: i32) -> (i32, i32) {
    %c0_i32 = arith.constant 0 : i32
    %c0_i32_0 = arith.constant 0 : i32
    %c0_i32_1 = arith.constant 0 : i32
    return %c0_i32, %c0_i32_0 : i32, i32
  }
  func.func @transform_11(%arg0: i32) -> (i32, i32) {
    %c0_i32 = arith.constant 0 : i32
    %c0_i32_0 = arith.constant 0 : i32
    %c0_i32_1 = arith.constant 0 : i32
    return %c0_i32, %c0_i32_0 : i32, i32
  }
  func.func @transform_12(%arg0: i32) -> (i32, i32) {
    %c0_i32 = arith.constant 0 : i32
    %c0_i32_0 = arith.constant 0 : i32
    %c0_i32_1 = arith.constant 0 : i32
    return %c0_i32, %c0_i32_0 : i32, i32
  }
  func.func @transform_13(%arg0: i32) -> (i32, i32) {
    %c0_i32 = arith.constant 0 : i32
    %c0_i32_0 = arith.constant 0 : i32
    return %arg0, %c0_i32 : i32, i32
  }
}

module attributes {stable_mosaic.version = 11 : i64} {
  func.func @kernel(%arg0: i32, %arg1: memref<8x64x32xbf16, #tpu.memory_space<vmem>>, %arg2: memref<32x4xbf16, #tpu.memory_space<vmem>>, %arg3: memref<1x4xf32, #tpu.memory_space<vmem>>, %arg4: memref<4x32xbf16, #tpu.memory_space<vmem>>, %arg5: memref<1x32xf32, #tpu.memory_space<vmem>>, %arg6: memref<128x64xbf16, #tpu.memory_space<vmem>>, %arg7: memref<1x64xf32, #tpu.memory_space<vmem>>, %arg8: memref<32x512xbf16, #tpu.memory_space<vmem>>, %arg9: memref<1x512xf32, #tpu.memory_space<vmem>>, %arg10: memref<512x256xbf16, #tpu.memory_space<vmem>>, %arg11: memref<1x256xf32, #tpu.memory_space<vmem>>, %arg12: memref<256x128xbf16, #tpu.memory_space<vmem>>, %arg13: memref<1x128xf32, #tpu.memory_space<vmem>>, %arg14: memref<8x128xf32, #tpu.memory_space<vmem>>) attributes {dimension_semantics = [#tpu.dimension_semantics<parallel>], iteration_bounds = array<i64: 2>, scalar_prefetch = 0 : i64, scratch_operands = 0 : i64, tpu.core_type = #tpu.core_type<tc>, window_params = [{transform_indices = @transform_0, window_bounds = array<i64: 8, 64, 32>}, {pipeline_mode = #tpu.pipeline_mode<synchronous>, transform_indices = @transform_1, window_bounds = array<i64: 32, 4>}, {pipeline_mode = #tpu.pipeline_mode<synchronous>, transform_indices = @transform_2, window_bounds = array<i64: 1, 4>}, {pipeline_mode = #tpu.pipeline_mode<synchronous>, transform_indices = @transform_3, window_bounds = array<i64: 4, 32>}, {pipeline_mode = #tpu.pipeline_mode<synchronous>, transform_indices = @transform_4, window_bounds = array<i64: 1, 32>}, {pipeline_mode = #tpu.pipeline_mode<synchronous>, transform_indices = @transform_5, window_bounds = array<i64: 128, 64>}, {pipeline_mode = #tpu.pipeline_mode<synchronous>, transform_indices = @transform_6, window_bounds = array<i64: 1, 64>}, {pipeline_mode = #tpu.pipeline_mode<synchronous>, transform_indices = @transform_7, window_bounds = array<i64: 32, 512>}, {pipeline_mode = #tpu.pipeline_mode<synchronous>, transform_indices = @transform_8, window_bounds = array<i64: 1, 512>}, {pipeline_mode = #tpu.pipeline_mode<synchronous>, transform_indices = @transform_9, window_bounds = array<i64: 512, 256>}, {pipeline_mode = #tpu.pipeline_mode<synchronous>, transform_indices = @transform_10, window_bounds = array<i64: 1, 256>}, {pipeline_mode = #tpu.pipeline_mode<synchronous>, transform_indices = @transform_11, window_bounds = array<i64: 256, 128>}, {pipeline_mode = #tpu.pipeline_mode<synchronous>, transform_indices = @transform_12, window_bounds = array<i64: 1, 128>}, {transform_indices = @transform_13, window_bounds = array<i64: 8, 128>}]} {
    %c0 = arith.constant 0 : index
    %c0_0 = arith.constant 0 : index
    %c0_1 = arith.constant 0 : index
    %0 = vector.load %arg1[%c0, %c0_0, %c0_1] : memref<8x64x32xbf16, #tpu.memory_space<vmem>>, vector<8x64x32xbf16>
    %1 = tpu.iota {dimensions = array<i32: 0>} : vector<8x512xi32>
    %2 = tpu.iota {dimensions = array<i32: 1>} : vector<8x512xi32>
    %c64_i32 = arith.constant 64 : i32
    %3 = vector.broadcast %c64_i32 : i32 to vector<8x512xi32>
    %4 = arith.muli %1, %3 : vector<8x512xi32>
    %5 = arith.subi %2, %4 : vector<8x512xi32>
    %c0_i32 = arith.constant 0 : i32
    %6 = vector.broadcast %c0_i32 : i32 to vector<8x512xi32>
    %7 = arith.cmpi sge, %5, %6 : vector<8x512xi32>
    %c64_i32_2 = arith.constant 64 : i32
    %8 = vector.broadcast %c64_i32_2 : i32 to vector<8x512xi32>
    %9 = arith.cmpi slt, %5, %8 : vector<8x512xi32>
    %10 = arith.andi %7, %9 : vector<8x512xi1>
    %cst = arith.constant 1.000000e+00 : f32
    %cst_3 = arith.constant 0.000000e+00 : f32
    %11 = vector.broadcast %cst : f32 to vector<8x512xf32>
    %12 = vector.broadcast %cst_3 : f32 to vector<8x512xf32>
    %13 = arith.select %10, %11, %12 : vector<8x512xi1>, vector<8x512xf32>
    %14 = arith.truncf %13 : vector<8x512xf32> to vector<8x512xbf16>
    %15 = vector.shape_cast %0 : vector<8x64x32xbf16> to vector<512x32xbf16>
    %cst_4 = arith.constant dense<0.000000e+00> : vector<8x32xf32>
    %16 = tpu.matmul %14, %15, %cst_4 {dimension_numbers = #tpu.dot_dimension_numbers<[1], [0], [0], [1], [0, 0, 1, 1], [], []>} : vector<8x512xbf16>, vector<512x32xbf16>, vector<8x32xf32> -> vector<8x32xf32>
    %cst_5 = arith.constant 1.562500e-02 : f32
    %17 = vector.broadcast %cst_5 : f32 to vector<8x32xf32>
    %18 = arith.mulf %16, %17 : vector<8x32xf32>
    %cst_6 = arith.constant dense<0xFF80> : vector<8x32xbf16>
    %19 = vector.multi_reduction <maximumf>, %0, %cst_6 [1] : vector<8x64x32xbf16> to vector<8x32xbf16>
    %20 = arith.extf %19 : vector<8x32xbf16> to vector<8x32xf32>
    %21 = tpu.concatenate %18, %20 in 0 : vector<8x32xf32>, vector<8x32xf32> -> vector<16x32xf32>
    %22 = arith.truncf %21 : vector<16x32xf32> to vector<16x32xbf16>
    %c0_7 = arith.constant 0 : index
    %c0_8 = arith.constant 0 : index
    %23 = vector.load %arg2[%c0_7, %c0_8] : memref<32x4xbf16, #tpu.memory_space<vmem>>, vector<32x4xbf16>
    %cst_9 = arith.constant dense<0.000000e+00> : vector<16x4xf32>
    %24 = tpu.matmul %22, %23, %cst_9 {dimension_numbers = #tpu.dot_dimension_numbers<[1], [0], [0], [1], [0, 0, 1, 1], [], []>} : vector<16x32xbf16>, vector<32x4xbf16>, vector<16x4xf32> -> vector<16x4xf32>
    %c0_10 = arith.constant 0 : index
    %c0_11 = arith.constant 0 : index
    %25 = vector.load %arg3[%c0_10, %c0_11] : memref<1x4xf32, #tpu.memory_space<vmem>>, vector<1x4xf32>
    %26 = vector.broadcast %25 : vector<1x4xf32> to vector<16x4xf32>
    %27 = arith.addf %24, %26 : vector<16x4xf32>
    %cst_12 = arith.constant 0.000000e+00 : f32
    %28 = vector.broadcast %cst_12 : f32 to vector<16x4xf32>
    %29 = arith.maximumf %27, %28 : vector<16x4xf32>
    %30 = arith.truncf %29 : vector<16x4xf32> to vector<16x4xbf16>
    %c0_13 = arith.constant 0 : index
    %c0_14 = arith.constant 0 : index
    %31 = vector.load %arg4[%c0_13, %c0_14] : memref<4x32xbf16, #tpu.memory_space<vmem>>, vector<4x32xbf16>
    %cst_15 = arith.constant dense<0.000000e+00> : vector<16x32xf32>
    %32 = tpu.matmul %30, %31, %cst_15 {dimension_numbers = #tpu.dot_dimension_numbers<[1], [0], [0], [1], [0, 0, 1, 1], [], []>} : vector<16x4xbf16>, vector<4x32xbf16>, vector<16x32xf32> -> vector<16x32xf32>
    %c0_16 = arith.constant 0 : index
    %c0_17 = arith.constant 0 : index
    %33 = vector.load %arg5[%c0_16, %c0_17] : memref<1x32xf32, #tpu.memory_space<vmem>>, vector<1x32xf32>
    %34 = vector.broadcast %33 : vector<1x32xf32> to vector<16x32xf32>
    %35 = arith.addf %32, %34 : vector<16x32xf32>
    %36 = vector.extract_strided_slice %35 {offsets = [0, 0], sizes = [8, 32], strides = [1, 1]} : vector<16x32xf32> to vector<8x32xf32>
    %37 = vector.extract_strided_slice %35 {offsets = [8, 0], sizes = [8, 32], strides = [1, 1]} : vector<16x32xf32> to vector<8x32xf32>
    %38 = arith.addf %36, %37 : vector<8x32xf32>
    %39 = arith.negf %38 : vector<8x32xf32>
    %40 = math.exp %39 : vector<8x32xf32>
    %cst_18 = arith.constant 1.000000e+00 : f32
    %41 = vector.broadcast %cst_18 : f32 to vector<8x32xf32>
    %42 = arith.addf %41, %40 : vector<8x32xf32>
    %43 = arith.divf %41, %42 : vector<8x32xf32>
    %44 = arith.extf %0 : vector<8x64x32xbf16> to vector<8x64x32xf32>
    %45 = vector.shape_cast %43 : vector<8x32xf32> to vector<8x1x32xf32>
    %46 = vector.broadcast %45 : vector<8x1x32xf32> to vector<8x64x32xf32>
    %47 = arith.mulf %44, %46 : vector<8x64x32xf32>
    %cst_19 = arith.constant dense<0.000000e+00> : vector<8x64xf32>
    %48 = vector.multi_reduction <add>, %47, %cst_19 [2] : vector<8x64x32xf32> to vector<8x64xf32>
    %cst_20 = arith.constant 3.125000e-02 : f32
    %49 = vector.broadcast %cst_20 : f32 to vector<8x64xf32>
    %50 = arith.mulf %48, %49 : vector<8x64xf32>
    %cst_21 = arith.constant dense<0xFF800000> : vector<8x64xf32>
    %51 = vector.multi_reduction <maximumf>, %47, %cst_21 [2] : vector<8x64x32xf32> to vector<8x64xf32>
    %52 = tpu.concatenate %50, %51 in 1 : vector<8x64xf32>, vector<8x64xf32> -> vector<8x128xf32>
    %53 = arith.truncf %52 : vector<8x128xf32> to vector<8x128xbf16>
    %c0_22 = arith.constant 0 : index
    %c0_23 = arith.constant 0 : index
    %54 = vector.load %arg6[%c0_22, %c0_23] : memref<128x64xbf16, #tpu.memory_space<vmem>>, vector<128x64xbf16>
    %cst_24 = arith.constant dense<0.000000e+00> : vector<8x64xf32>
    %55 = tpu.matmul %53, %54, %cst_24 {dimension_numbers = #tpu.dot_dimension_numbers<[1], [0], [0], [1], [0, 0, 1, 1], [], []>} : vector<8x128xbf16>, vector<128x64xbf16>, vector<8x64xf32> -> vector<8x64xf32>
    %c0_25 = arith.constant 0 : index
    %c0_26 = arith.constant 0 : index
    %56 = vector.load %arg7[%c0_25, %c0_26] : memref<1x64xf32, #tpu.memory_space<vmem>>, vector<1x64xf32>
    %57 = vector.broadcast %56 : vector<1x64xf32> to vector<8x64xf32>
    %58 = arith.addf %55, %57 : vector<8x64xf32>
    %59 = arith.negf %58 : vector<8x64xf32>
    %60 = math.exp %59 : vector<8x64xf32>
    %cst_27 = arith.constant 1.000000e+00 : f32
    %61 = vector.broadcast %cst_27 : f32 to vector<8x64xf32>
    %62 = arith.addf %61, %60 : vector<8x64xf32>
    %63 = arith.divf %61, %62 : vector<8x64xf32>
    %64 = vector.shape_cast %63 : vector<8x64xf32> to vector<8x64x1xf32>
    %65 = vector.broadcast %64 : vector<8x64x1xf32> to vector<8x64x32xf32>
    %66 = arith.mulf %47, %65 : vector<8x64x32xf32>
    %67 = arith.extf %14 : vector<8x512xbf16> to vector<8x512xf32>
    %68 = vector.shape_cast %66 : vector<8x64x32xf32> to vector<512x32xf32>
    %cst_28 = arith.constant dense<0.000000e+00> : vector<8x32xf32>
    %69 = tpu.matmul %67, %68, %cst_28 {dimension_numbers = #tpu.dot_dimension_numbers<[1], [0], [0], [1], [0, 0, 1, 1], [], []>} : vector<8x512xf32>, vector<512x32xf32>, vector<8x32xf32> -> vector<8x32xf32>
    %cst_29 = arith.constant 1.562500e-02 : f32
    %70 = vector.broadcast %cst_29 : f32 to vector<8x32xf32>
    %71 = arith.mulf %69, %70 : vector<8x32xf32>
    %72 = arith.truncf %71 : vector<8x32xf32> to vector<8x32xbf16>
    %c0_30 = arith.constant 0 : index
    %c0_31 = arith.constant 0 : index
    %73 = vector.load %arg8[%c0_30, %c0_31] : memref<32x512xbf16, #tpu.memory_space<vmem>>, vector<32x512xbf16>
    %cst_32 = arith.constant dense<0.000000e+00> : vector<8x512xf32>
    %74 = tpu.matmul %72, %73, %cst_32 {dimension_numbers = #tpu.dot_dimension_numbers<[1], [0], [0], [1], [0, 0, 1, 1], [], []>} : vector<8x32xbf16>, vector<32x512xbf16>, vector<8x512xf32> -> vector<8x512xf32>
    %c0_33 = arith.constant 0 : index
    %c0_34 = arith.constant 0 : index
    %75 = vector.load %arg9[%c0_33, %c0_34] : memref<1x512xf32, #tpu.memory_space<vmem>>, vector<1x512xf32>
    %76 = vector.broadcast %75 : vector<1x512xf32> to vector<8x512xf32>
    %77 = arith.addf %74, %76 : vector<8x512xf32>
    %cst_35 = arith.constant 0.000000e+00 : f32
    %78 = vector.broadcast %cst_35 : f32 to vector<8x512xf32>
    %79 = arith.maximumf %77, %78 : vector<8x512xf32>
    %80 = arith.truncf %79 : vector<8x512xf32> to vector<8x512xbf16>
    %c0_36 = arith.constant 0 : index
    %c0_37 = arith.constant 0 : index
    %81 = vector.load %arg10[%c0_36, %c0_37] : memref<512x256xbf16, #tpu.memory_space<vmem>>, vector<512x256xbf16>
    %cst_38 = arith.constant dense<0.000000e+00> : vector<8x256xf32>
    %82 = tpu.matmul %80, %81, %cst_38 {dimension_numbers = #tpu.dot_dimension_numbers<[1], [0], [0], [1], [0, 0, 1, 1], [], []>} : vector<8x512xbf16>, vector<512x256xbf16>, vector<8x256xf32> -> vector<8x256xf32>
    %c0_39 = arith.constant 0 : index
    %c0_40 = arith.constant 0 : index
    %83 = vector.load %arg11[%c0_39, %c0_40] : memref<1x256xf32, #tpu.memory_space<vmem>>, vector<1x256xf32>
    %84 = vector.broadcast %83 : vector<1x256xf32> to vector<8x256xf32>
    %85 = arith.addf %82, %84 : vector<8x256xf32>
    %cst_41 = arith.constant 0.000000e+00 : f32
    %86 = vector.broadcast %cst_41 : f32 to vector<8x256xf32>
    %87 = arith.maximumf %85, %86 : vector<8x256xf32>
    %88 = arith.truncf %87 : vector<8x256xf32> to vector<8x256xbf16>
    %c0_42 = arith.constant 0 : index
    %c0_43 = arith.constant 0 : index
    %89 = vector.load %arg12[%c0_42, %c0_43] : memref<256x128xbf16, #tpu.memory_space<vmem>>, vector<256x128xbf16>
    %cst_44 = arith.constant dense<0.000000e+00> : vector<8x128xf32>
    %90 = tpu.matmul %88, %89, %cst_44 {dimension_numbers = #tpu.dot_dimension_numbers<[1], [0], [0], [1], [0, 0, 1, 1], [], []>} : vector<8x256xbf16>, vector<256x128xbf16>, vector<8x128xf32> -> vector<8x128xf32>
    %c0_45 = arith.constant 0 : index
    %c0_46 = arith.constant 0 : index
    %91 = vector.load %arg13[%c0_45, %c0_46] : memref<1x128xf32, #tpu.memory_space<vmem>>, vector<1x128xf32>
    %92 = vector.broadcast %91 : vector<1x128xf32> to vector<8x128xf32>
    %93 = arith.addf %90, %92 : vector<8x128xf32>
    %cst_47 = arith.constant dense<0xFF800000> : vector<8xf32>
    %94 = vector.multi_reduction <maximumf>, %93, %cst_47 [1] : vector<8x128xf32> to vector<8xf32>
    %95 = vector.shape_cast %94 : vector<8xf32> to vector<8x1xf32>
    %96 = vector.broadcast %95 : vector<8x1xf32> to vector<8x128xf32>
    %97 = arith.subf %93, %96 : vector<8x128xf32>
    %98 = math.exp %97 : vector<8x128xf32>
    %cst_48 = arith.constant dense<0.000000e+00> : vector<8xf32>
    %99 = vector.multi_reduction <add>, %98, %cst_48 [1] : vector<8x128xf32> to vector<8xf32>
    %100 = vector.shape_cast %99 : vector<8xf32> to vector<8x1xf32>
    %101 = tpu.reciprocal %100 {approx = true} : vector<8x1xf32> -> vector<8x1xf32>
    %102 = vector.broadcast %101 : vector<8x1xf32> to vector<8x128xf32>
    %103 = arith.mulf %98, %102 : vector<8x128xf32>
    %c0_49 = arith.constant 0 : index
    %c0_50 = arith.constant 0 : index
    %104 = vector.load %arg14[%c0_49, %c0_50] : memref<8x128xf32, #tpu.memory_space<vmem>>, vector<8x128xf32>
    tpu.vector_store %arg14[%c0_49, %c0_50], %103 {strides = array<i32>} : memref<8x128xf32, #tpu.memory_space<vmem>>, vector<8x128xf32>,
    return
  }
  func.func @transform_0(%arg0: i32) -> (i32, i32, i32) {
    %c0_i32 = arith.constant 0 : i32
    %c0_i32_0 = arith.constant 0 : i32
    %c0_i32_1 = arith.constant 0 : i32
    return %arg0, %c0_i32, %c0_i32_0 : i32, i32, i32
  }
  func.func @transform_1(%arg0: i32) -> (i32, i32) {
    %c0_i32 = arith.constant 0 : i32
    %c0_i32_0 = arith.constant 0 : i32
    %c0_i32_1 = arith.constant 0 : i32
    return %c0_i32, %c0_i32_0 : i32, i32
  }
  func.func @transform_2(%arg0: i32) -> (i32, i32) {
    %c0_i32 = arith.constant 0 : i32
    %c0_i32_0 = arith.constant 0 : i32
    %c0_i32_1 = arith.constant 0 : i32
    return %c0_i32, %c0_i32_0 : i32, i32
  }
  func.func @transform_3(%arg0: i32) -> (i32, i32) {
    %c0_i32 = arith.constant 0 : i32
    %c0_i32_0 = arith.constant 0 : i32
    %c0_i32_1 = arith.constant 0 : i32
    return %c0_i32, %c0_i32_0 : i32, i32
  }
  func.func @transform_4(%arg0: i32) -> (i32, i32) {
    %c0_i32 = arith.constant 0 : i32
    %c0_i32_0 = arith.constant 0 : i32
    %c0_i32_1 = arith.constant 0 : i32
    return %c0_i32, %c0_i32_0 : i32, i32
  }
  func.func @transform_5(%arg0: i32) -> (i32, i32) {
    %c0_i32 = arith.constant 0 : i32
    %c0_i32_0 = arith.constant 0 : i32
    %c0_i32_1 = arith.constant 0 : i32
    return %c0_i32, %c0_i32_0 : i32, i32
  }
  func.func @transform_6(%arg0: i32) -> (i32, i32) {
    %c0_i32 = arith.constant 0 : i32
    %c0_i32_0 = arith.constant 0 : i32
    %c0_i32_1 = arith.constant 0 : i32
    return %c0_i32, %c0_i32_0 : i32, i32
  }
  func.func @transform_7(%arg0: i32) -> (i32, i32) {
    %c0_i32 = arith.constant 0 : i32
    %c0_i32_0 = arith.constant 0 : i32
    %c0_i32_1 = arith.constant 0 : i32
    return %c0_i32, %c0_i32_0 : i32, i32
  }
  func.func @transform_8(%arg0: i32) -> (i32, i32) {
    %c0_i32 = arith.constant 0 : i32
    %c0_i32_0 = arith.constant 0 : i32
    %c0_i32_1 = arith.constant 0 : i32
    return %c0_i32, %c0_i32_0 : i32, i32
  }
  func.func @transform_9(%arg0: i32) -> (i32, i32) {
    %c0_i32 = arith.constant 0 : i32
    %c0_i32_0 = arith.constant 0 : i32
    %c0_i32_1 = arith.constant 0 : i32
    return %c0_i32, %c0_i32_0 : i32, i32
  }
  func.func @transform_10(%arg0: i32) -> (i32, i32) {
    %c0_i32 = arith.constant 0 : i32
    %c0_i32_0 = arith.constant 0 : i32
    %c0_i32_1 = arith.constant 0 : i32
    return %c0_i32, %c0_i32_0 : i32, i32
  }
  func.func @transform_11(%arg0: i32) -> (i32, i32) {
    %c0_i32 = arith.constant 0 : i32
    %c0_i32_0 = arith.constant 0 : i32
    %c0_i32_1 = arith.constant 0 : i32
    return %c0_i32, %c0_i32_0 : i32, i32
  }
  func.func @transform_12(%arg0: i32) -> (i32, i32) {
    %c0_i32 = arith.constant 0 : i32
    %c0_i32_0 = arith.constant 0 : i32
    %c0_i32_1 = arith.constant 0 : i32
    return %c0_i32, %c0_i32_0 : i32, i32
  }
  func.func @transform_13(%arg0: i32) -> (i32, i32) {
    %c0_i32 = arith.constant 0 : i32
    %c0_i32_0 = arith.constant 0 : i32
    return %arg0, %c0_i32 : i32, i32
  }
}

</mosaic_0001>

<bundles_post_ra>
// kernel: tpu_custom_call.1
= control target key start
LH: loop header
LB: loop body
LE: loop exit
PB: predicated region body
PF: predicated region fallthrough
CT: control target
= control target key end

     0   :  { %s6877_s0 = inlined_call_operand.vmem [shape: bf16[16,64,32], index: 0, kind: input, shape index: {}]   ;;  %s6878_s1 = inlined_call_operand.vmem [shape: bf16[32,4], index: 1, kind: input, shape index: {}]   ;;  %s6879_s2 = inlined_call_operand.vmem [shape: f32[1,4], index: 2, kind: input, shape index: {}]   ;;  %s6880_s3 = inlined_call_operand.vmem [shape: bf16[4,32], index: 3, kind: input, shape index: {}]   ;;  %s6881_s4 = inlined_call_operand.vmem [shape: f32[1,32], index: 4, kind: input, shape index: {}]   ;;  %s6882_s5 = inlined_call_operand.vmem [shape: bf16[128,64], index: 5, kind: input, shape index: {}]   ;;  %s6883_s6 = inlined_call_operand.vmem [shape: f32[1,64], index: 6, kind: input, shape index: {}]   ;;  %s6884_s7 = inlined_call_operand.vmem [shape: bf16[32,512], index: 7, kind: input, shape index: {}]   ;;  %s6885_s8 = inlined_call_operand.vmem [shape: f32[1,512], index: 8, kind: input, shape index: {}]   ;;  %s6886_s9 = inlined_call_operand.vmem [shape: bf16[512,256], index: 9, kind: input, shape index: {}]   ;;  %s6887_s10 = inlined_call_operand.vmem [shape: f32[1,256], index: 10, kind: input, shape index: {}]   ;;  %s6888_s11 = inlined_call_operand.vmem [shape: bf16[256,128], index: 11, kind: input, shape index: {}]   ;;  %s6889_s12 = inlined_call_operand.vmem [shape: f32[1,128], index: 12, kind: input, shape index: {}]   ;;  %s6890_s13 = inlined_call_operand.hbm [shape: f32[16,128], index: 13, kind: output, shape index: {}]  }
   0x1   :  { %6979 = sst [smem:[#allocation84_spill]] %s6877_s0 }
   0x2   :  { %6980 = sst [smem:[#allocation85_spill]] %s6878_s1 }
   0x3   :  { %6981 = sst [smem:[#allocation86_spill]] %s6879_s2 }
   0x4   :  { %18 = vsyncpa [#allocation3], 0 }
   0x5   :  { %20 = vsyncpa [#allocation3 + $0x1], 0  ;;  %s4983_s25 = smov 0   ;;  %s4985_s26 = smov 0  }
   0x6   :  { %s4987_s27 = smov 0   ;;  %s4989_s28 = smov 0  }
   0x7 LB: > { %s5004_s29 = sadd.s32 4294967295, %s4904_s28   ;;  %s4159_s30 = sadd.s32 4294967294, %s4904_s28   ;;  %s4904_s28 = sphi %s4989_s28, %s7203_s28   ;;  %s4900_s27 = sphi %s4987_s27, %s7202_s27   ;;  %s4896_s26 = sphi %s4985_s26, %s7201_s26   ;;  %s4892_s25 = sphi %s4983_s25, %s7200_s25  }
   0x8   : > { %s5008_s14 = sadd.s32 1, %s4904_s28   ;;  %s311_s15 = sadd.s32 1, %s4900_s27 }
   0x9   : > { %s308_s16 = ssub.s32 %s4904_s28, %s5008_s14  ;;  %p321_p0 = scmp.ne.s32.totalorder %s4900_s27, %s4896_s26 }
   0xa   : > { %p309_p1 = scmp.eq.s32.totalorder %s308_s16, 0  ;;  %p322_p2 = scmp.eq.s32.totalorder %s5004_s29, 1 }
   0xb   : > { %p327_p3 = scmp.ne.s32.totalorder %s4896_s26, %s4892_s25  ;;  %p328_p4 = scmp.eq.s32.totalorder %s4159_s30, 1 }
   0xc   : > { %s5019_s17 = scalar_select %p309_p1, %s4900_s27, %s311_s15  }
   0xd   : > { %p5021_p5 = por %p322_p2, %p321_p0  ;;  %p5025_p6 = por %p328_p4, %p327_p3 }
   0xe   : > { %p4162_p7 = scmp.ge.s32.totalorder %s4904_s28, 1  ;;  %p392_p8 = scmp.lt.s32.totalorder %s4904_s28, 3 }
  0x10   : > { %p393_p9 = pnand %p4162_p7, %p392_p8 }
  0x12   : > { %396 = sbr.rel (%p393_p9) target bundleno = 2953 (0xb89), region = 72 }
  0x19   : > { %s4164_s20 = sshll.u32 %s5004_s29, 3  ;;  %s6984_s0 = sld [smem:[#allocation84_spill]]  ;;  %vm6977_vm0 = vcmask 261120   ;;  %v510_v5 = vlaneseq  ;;  %v6986_v53 = vmov 0  ;;  %v4906_v55 = vmov 1.0|1.0  }
  0x1a   : > { %p438_p10 = scmp.lt.s32.totalorder %s4164_s20, 15  ;;  %v6989_v56 = vmov 0  ;;  %s6998_s1 = sld [smem:[#allocation85_spill]] }
  0x1b   : > { %v5077_v17 = vand.u32 127, %v510_v5  ;;  %v5098_v27 = vshrl.u32 %v510_v5, 7  ;;  %s6999_s2 = sld [smem:[#allocation86_spill]]  ;;  %s434_s15 = sand.u32 1, %s4896_s26  }
  0x1c   : > { %s7205_s20 = smov (!%p438_p10, %s4164_s20), 15  ;;  %s4320_s16 = sshll.u32 %s5004_s29, 7 }
  0x1d   : > { %s4323_s21 = sshll.u32 %s7205_s20, 5  ;;  %6985 = vst [vmem:[#allocation5_spill] sm:$0xff] %v5098_v27  ;;  %v514_v28 = vadd.s32 128, %v5077_v17  ;;  %v5121_v36 = vmul.u32 64, %v5098_v27  ;;  %s6835_s23 = scalar_lea.hbm %s6890_s13, %s4320_s16 }
  0x1e   : > { %s4912_s29 = smov [#allocation2]  }
  0x1f   : > { %s5035_s24 = scalar_lea.vmem %s6984_s0, %s4323_s21  ;;  %v519_v42 = vsub.s32 %v514_v28, %v5121_v36  ;;  %v518_v45 = vsub.s32 %v5077_v17, %v5121_v36  ;;  %s4163_s0 = sshll.u32 %s434_s15, 3 }
  0x20   : > { %v5038_v0 = vld [vmem:[%s5035_s24 + $0x40] sm:$0xff]   ;;  %v5044_v2 = vld [vmem:[%s5035_s24 + $0x48] sm:$0xff]   ;;  %v5050_v4 = vld [vmem:[%s5035_s24 + $0x50] sm:$0xff]  }
  0x21   : > { %v5041_v1 = vld [vmem:[%s5035_s24] sm:$0xff]   ;;  %v5047_v3 = vld [vmem:[%s5035_s24 + $0x8] sm:$0xff]   ;;  %4324 = vmatprep.subr.bf16.mxu0 %v5038_v0  ;;  %v868_v6 = vsel %vm6977_vm0, %v5038_v0, 4286644096  ;;  %v5058_v8 = vld [vmem:[%s5035_s24 + $0x10] sm:$0xff]   ;;  %vm523_vm1 = vcmp.ge.s32.totalorder %v519_v42, 0 }
  0x22   : > { %v818_v7 = vsel %vm6977_vm0, %v5041_v1, 4286644096  ;;  %4325 = vmatpush3.bf16.msra.mxu0 %v5041_v1  ;;  %v871_v9 = vsel %vm6977_vm0, %v5044_v2, 4286644096  ;;  %v5064_v10 = vld [vmem:[%s5035_s24 + $0x58] sm:$0xff]   ;;  %v5075_v16 = vld [vmem:[%s5035_s24 + $0x60] sm:$0xff]  }
  0x23   : > { %4326 = vmatprep.subr.bf16.mxu0 %v5044_v2  ;;  %v873_v11 = vmax.bf16 %v871_v9, %v868_v6  ;;  %v821_v12 = vsel %vm6977_vm0, %v5047_v3, 4286644096  ;;  %v5070_v13 = vld [vmem:[%s5035_s24 + $0x18] sm:$0xff]   ;;  %v875_v15 = vsel %vm6977_vm0, %v5050_v4, 4286644096  ;;  %v5083_v20 = vld [vmem:[%s5035_s24 + $0x20] sm:$0xff]  }
  0x24   : > { %v823_v14 = vmax.bf16 %v821_v12, %v818_v7  ;;  %v825_v19 = vsel %vm6977_vm0, %v5058_v8, 4286644096  ;;  %v879_v22 = vsel %vm6977_vm0, %v5064_v10, 4286644096  ;;  %v5089_v23 = vld [vmem:[%s5035_s24 + $0x68] sm:$0xff]   ;;  %v5106_v31 = vld [vmem:[%s5035_s24 + $0x70] sm:$0xff]  }
  0x25   : > { %v877_v18 = vmax.bf16 %v875_v15, %v873_v11  ;;  %v829_v25 = vsel %vm6977_vm0, %v5070_v13, 4286644096  ;;  %v5096_v26 = vld [vmem:[%s5035_s24 + $0x28] sm:$0xff]   ;;  %v893_v30 = vsel %vm6977_vm0, %v5075_v16, 4286644096  ;;  %v5110_v32 = vld [vmem:[%s5035_s24 + $0x30] sm:$0xff]  }
  0x26   : > { %4327 = vmatpush3.bf16.msra.mxu0 %v5047_v3  ;;  %v827_v21 = vmax.bf16 %v825_v19, %v823_v14  ;;  %v843_v33 = vsel %vm6977_vm0, %v5083_v20, 4286644096  ;;  %v896_v34 = vsel %vm6977_vm0, %v5089_v23, 4286644096  ;;  %v5118_v35 = vld [vmem:[%s5035_s24 + $0x78] sm:$0xff]   ;;  %v5142_v48 = vld [vmem:[%s5035_s24 + $0xc0] sm:$0xff]  }
  0x27   : > { %4328 = vmatprep.subr.bf16.mxu0 %v5050_v4  ;;  %v5091_v24 = vmax.bf16 %v879_v22, %v877_v18  ;;  %v898_v37 = vmax.bf16 %v896_v34, %v893_v30  ;;  %v846_v38 = vsel %vm6977_vm0, %v5096_v26, 4286644096  ;;  %v5127_v39 = vld [vmem:[%s5035_s24 + $0x38] sm:$0xff]   ;;  %v900_v41 = vsel %vm6977_vm0, %v5106_v31, 4286644096  ;;  %v5149_v51 = vld [vmem:[%s5035_s24 + $0xc8] sm:$0xff]  }
  0x28   : > { %v5101_v29 = vmax.bf16 %v829_v25, %v827_v21  ;;  %v848_v40 = vmax.bf16 %v846_v38, %v843_v33  ;;  %v850_v44 = vsel %vm6977_vm0, %v5110_v32, 4286644096  ;;  %v904_v47 = vsel %vm6977_vm0, %v5118_v35, 4286644096  ;;  %v5159_v54 = vld [vmem:[%s5035_s24 + $0x80] sm:$0xff]   ;;  %v5171_v57 = vld [vmem:[%s5035_s24 + $0x88] sm:$0xff]  }
  0x29   : > { %v902_v43 = vmax.bf16 %v900_v41, %v898_v37  ;;  %v854_v50 = vsel %vm6977_vm0, %v5127_v39, 4286644096  ;;  %vm527_vm2 = vcmp.lt.s32.totalorder %v519_v42, 64  ;;  %vm522_vm3 = vcmp.ge.s32.totalorder %v518_v45, 0  ;;  %v5174_v58 = vld [vmem:[%s5035_s24 + $0xd0] sm:$0xff]   ;;  %v5184_v61 = vld [vmem:[%s5035_s24 + $0xd8] sm:$0xff]  }
  0x2a   : > { %4329 = vmatpush3.bf16.msra.mxu0 %v5058_v8  ;;  %v852_v46 = vmax.bf16 %v850_v44, %v848_v40  ;;  %vm5154_vm4 = vmand %vm523_vm1, %vm527_vm2  ;;  %vm526_vm6 = vcmp.lt.s32.totalorder %v518_v45, 64  ;;  %v968_v59 = vsel %vm6977_vm0, %v5142_v48, 4286644096  ;;  %v482_v60 = vld [vmem:[%s5035_s24 + $0x90] sm:$0xff]   ;;  %v971_v62 = vsel %vm6977_vm0, %v5149_v51, 4286644096 }
  0x2b   : > { %4330 = vmatprep.subr.bf16.mxu0 %v5064_v10  ;;  %v5144_v49 = vmax.bf16 %v904_v47, %v902_v43  ;;  %v6987_v53 = vsel %vm5154_vm4, 4294967295, %v6986_v53  ;;  %vm4199_vm5 = vmpackc.low %vm5154_vm4, %vm5154_vm4  ;;  %v918_v63 = vsel %vm6977_vm0, %v5159_v54, 4286644096  ;;  %v973_v5 = vmax.bf16 %v971_v62, %v968_v59  ;;  %v5193_v6 = vld [vmem:[%s5035_s24 + $0x98] sm:$0xff]   ;;  %v5196_v7 = vld [vmem:[%s5035_s24 + $0xe0] sm:$0xff]  }
  0x2c   : > { %v5152_v52 = vmax.bf16 %v854_v50, %v852_v46  ;;  %6988 = vst [vmem:[#allocation6_spill] sm:$0xff] %v6987_v53  ;;  %4200 = vmatprep.mubr.msk.bf16.mxu0 %vm4199_vm5, %v4906_v55  ;;  %vm5166_vm7 = vmand %vm522_vm3, %vm526_vm6  ;;  %v921_v9 = vsel %vm6977_vm0, %v5171_v57, 4286644096  ;;  %v975_v11 = vsel %vm6977_vm0, %v5174_v58, 4286644096  ;;  %v5204_v15 = vld [vmem:[%s5035_s24 + $0xe8] sm:$0xff]  }
  0x2d   : > { %v6990_v56 = vsel %vm5166_vm7, 4294967295, %v6989_v56  ;;  %vm4201_vm8 = vmpackc.low %vm5166_vm7, %vm5166_vm7  ;;  %v923_v12 = vmax.bf16 %v921_v9, %v918_v63  ;;  %v977_v14 = vmax.bf16 %v975_v11, %v973_v5  ;;  %v925_v18 = vsel %vm6977_vm0, %v482_v60, 4286644096  ;;  %v486_v21 = vld [vmem:[%s5035_s24 + $0xa0] sm:$0xff]   ;;  %v488_v28 = vld [vmem:[%s5035_s24 + $0xa8] sm:$0xff]  }
  0x2e   : > { %4331 = vmatpush3.bf16.msra.mxu0 %v5070_v13  ;;  %6991 = vst [vmem:[#allocation7_spill] sm:$0xff] %v6990_v56  ;;  %v979_v19 = vsel %vm6977_vm0, %v5184_v61, 4286644096  ;;  %v516_v30 = vadd.s32 384, %v5077_v17  ;;  %v929_v33 = vsel %vm6977_vm0, %v5193_v6, 4286644096 }
  0x2f   : > { %4332 = vmatprep.subr.bf16.mxu0 %v5075_v16  ;;  %v927_v22 = vmax.bf16 %v925_v18, %v923_v12  ;;  %v5217_v25 = vmax.bf16 %v979_v19, %v977_v14  ;;  %v993_v34 = vsel %vm6977_vm0, %v5196_v7, 4286644096  ;;  %v5227_v37 = vld [vmem:[%s5035_s24 + $0xf0] sm:$0xff]   ;;  %v996_v40 = vsel %vm6977_vm0, %v5204_v15, 4286644096  ;;  %v5237_v42 = vld [vmem:[%s5035_s24 + $0xf8] sm:$0xff]  }
  0x30   : > { %v490_v41 = vld [vmem:[%s5035_s24 + $0xb0] sm:$0xff]   ;;  %v943_v43 = vsel %vm6977_vm0, %v486_v21, 4286644096  ;;  %v998_v44 = vmax.bf16 %v996_v40, %v993_v34  ;;  %v492_v45 = vld [vmem:[%s5035_s24 + $0xb8] sm:$0xff]   ;;  %v946_v46 = vsel %vm6977_vm0, %v488_v28, 4286644096  ;;  %v521_v50 = vsub.s32 %v516_v30, %v5121_v36 }
  0x31   : > { %v5230_v38 = vmax.bf16 %v929_v33, %v927_v22  ;;  %v1000_v47 = vsel %vm6977_vm0, %v5227_v37, 4286644096  ;;  %v948_v59 = vmax.bf16 %v946_v46, %v943_v43  ;;  %v950_v63 = vsel %vm6977_vm0, %v490_v41, 4286644096 }
  0x32   : > { %4333 = vmatpush3.bf16.msra.mxu0 %v5083_v20  ;;  %v1002_v62 = vmax.bf16 %v1000_v47, %v998_v44  ;;  %v1004_v9 = vsel %vm6977_vm0, %v5237_v42, 4286644096  ;;  %vm525_vm9 = vcmp.ge.s32.totalorder %v521_v50, 0  ;;  %vm529_vm10 = vcmp.lt.s32.totalorder %v521_v50, 64 }
  0x33   : > { %4334 = vmatprep.subr.bf16.mxu0 %v5089_v23  ;;  %v952_v5 = vmax.bf16 %v950_v63, %v948_v59  ;;  %v954_v11 = vsel %vm6977_vm0, %v492_v45, 4286644096  ;;  %vm5252_vm11 = vmand %vm525_vm9, %vm529_vm10  ;;  %v6992_v12 = vmov 0  ;;  %v515_v14 = vadd.s32 256, %v5077_v17 }
  0x34   : > { %v6993_v12 = vsel %vm5252_vm11, 4294967295, %v6992_v12  ;;  %vm4203_vm12 = vmpackc.low %vm5252_vm11, %vm5252_vm11  ;;  %v6995_v22 = vmov 0  ;;  %v858_v30 = vunpack.i.h.bf16 %v5152_v52  ;;  %v882_v33 = vunpack.i.l.bf16 %v5091_v24 }
  0x35   : > { %6994 = vst [vmem:[#allocation8_spill] sm:$0xff] %v6993_v12  ;;  %v956_v18 = vmax.bf16 %v954_v11, %v952_v5  ;;  %v520_v19 = vsub.s32 %v515_v14, %v5121_v36  ;;  %v832_v36 = vunpack.i.l.bf16 %v5101_v29  ;;  %v883_v34 = vunpack.i.h.bf16 %v5091_v24 }
  0x36   : > { %4335 = vmatpush3.bf16.msra.mxu0 %v5096_v26  ;;  %v907_v40 = vunpack.i.l.bf16 %v5144_v49  ;;  %v932_v59 = vunpack.i.l.bf16 %v5230_v38  ;;  %v982_v24 = vunpack.i.l.bf16 %v5217_v25  ;;  %vm6937_vm2 = vcmask 1041409  }
  0x37   : > { %4336 = vmatprep.subr.bf16.mxu0 %v5106_v31  ;;  %vm524_vm13 = vcmp.ge.s32.totalorder %v520_v19, 0  ;;  %vm528_vm14 = vcmp.lt.s32.totalorder %v520_v19, 64  ;;  %v957_v11 = vunpack.i.l.bf16 %v956_v18  ;;  %v958_v14 = vunpack.i.h.bf16 %v956_v18 }
  0x38   : > { %vm5265_vm15 = vmand %vm524_vm13, %vm528_vm14  ;;  %vm6936_vm3 = vcmask 1042434   ;;  %vm6933_vm5 = vcmask 1043459   ;;  %vm6930_vm6 = vcmask 1044484   ;;  %vm6925_vm9 = vcmask 1046534  }
  0x39   : > { %v6996_v22 = vsel %vm5265_vm15, 4294967295, %v6995_v22  ;;  %vm4205_vm1 = vmpackc.low %vm5265_vm15, %vm5265_vm15  ;;  %vm6924_vm10 = vcmask 1047559   ;;  %vm1131_vm13 = vcmask 1041408   ;;  %vm1127_vm14 = vcmask 31744  }
  0x3a   : > { %4337 = vmatpush3.bf16.msra.mxu0 %v5110_v32  ;;  %6997 = vst [vmem:[#allocation9_spill] sm:$0xff] %v6996_v22 }
  0x3b   : > { %4338 = vmatprep.subr.bf16.mxu0 %v5118_v35 }
  0x3e   : > { %4339 = vmatpush3.bf16.msra.mxu0 %v5127_v39 }
  0x3f   : > { %4346 = vmatprep.subr.bf16.mxu0 %v5142_v48 }
  0x41   : > { %4202 = vmatmul.mubr.msk.bf16.vlgmr.msra.gmra.mrb[0].mxu0 %vm4201_vm8, %v4906_v55  ;;  %vm6928_vm8 = vcmask 1045509  }
  0x42   : > { %4347 = vmatpush3.bf16.msra.mxu0 %v5159_v54  ;;  %4204 = vmatprep.mubr.msk.bf16.mxu0 %vm4203_vm12, %v4906_v55  ;;  %vm4908_vm12 = vmmov 0  }
  0x43   : > { %4348 = vmatprep.subr.bf16.mxu0 %v5149_v51 }
  0x46   : > { %4349 = vmatpush3.bf16.msra.mxu0 %v5171_v57 }
  0x47   : > { %4350 = vmatprep.subr.bf16.mxu0 %v5174_v58 }
  0x4a   : > { %4351 = vmatpush3.bf16.msra.mxu0 %v482_v60  ;;  %v1006_v60 = vmax.bf16 %v1004_v9, %v1002_v62  ;;  %v983_v9 = vunpack.i.h.bf16 %v5217_v25 }
  0x4b   : > { %4352 = vmatprep.subr.bf16.mxu0 %v5184_v61 }
  0x4e   : > { %4353 = vmatpush3.bf16.msra.mxu0 %v5193_v6 }
  0x4f   : > { %4354 = vmatprep.subr.bf16.mxu0 %v5196_v7 }
  0x52   : > { %4355 = vmatpush3.bf16.msra.mxu0 %v486_v21  ;;  %v833_v21 = vunpack.i.h.bf16 %v5101_v29 }
  0x53   : > { %4356 = vmatprep.subr.bf16.mxu0 %v5204_v15 }
  0x54   : > { %v834_v43 = vmax.f32 %v832_v36, %v833_v21 }
  0x56   : > { %4357 = vmatpush3.bf16.msra.mxu0 %v488_v28  ;;  %v857_v28 = vunpack.i.l.bf16 %v5152_v52  ;;  %v835_v46 = vrot.slane %v834_v43, 4  ;;  %v933_v52 = vunpack.i.h.bf16 %v5230_v38 }
  0x57   : > { %4358 = vmatprep.subr.bf16.mxu0 %v5227_v37 }
  0x58   : > { %v859_v44 = vmax.f32 %v857_v28, %v858_v30  ;;  %v836_v62 = vmax.f32 %v834_v43, %v835_v46  ;;  %v934_v19 = vmax.f32 %v932_v59, %v933_v52  ;;  %v1007_v28 = vunpack.i.l.bf16 %v1006_v60 }
  0x59   : > { %v1008_v30 = vunpack.i.h.bf16 %v1006_v60 }
  0x5a   : > { %4359 = vmatpush3.bf16.msra.mxu0 %v490_v41  ;;  %v908_v41 = vunpack.i.h.bf16 %v5144_v49  ;;  %v860_v47 = vrot.slane %v859_v44, 4  ;;  %v837_v36 = vrot.slane %v836_v62, 2  ;;  %v935_v38 = vrot.slane %v934_v19, 4 }
  0x5b   : > { %4360 = vmatprep.subr.bf16.mxu0 %v5237_v42 }
  0x5c   : > { %v861_v63 = vmax.f32 %v859_v44, %v860_v47  ;;  %v838_v43 = vmax.f32 %v836_v62, %v837_v36 }
  0x5e   : > { %4361 = vmatpush3.bf16.msra.mxu0 %v492_v45  ;;  %v884_v45 = vmax.f32 %v882_v33, %v883_v34  ;;  %v862_v21 = vrot.slane %v861_v63, 2  ;;  %v984_v34 = vmax.f32 %v982_v24, %v983_v9 }
  0x60   : > { %v885_v50 = vrot.slane %v884_v45, 4  ;;  %v863_v44 = vmax.f32 %v861_v63, %v862_v21  ;;  %v985_v47 = vrot.slane %v984_v34, 4 }
  0x61   : > { %4206 = vmatmul.mubr.msk.bf16.vlgmr.msra.gmra.mrb[4].mxu0 %vm4205_vm1, %v4906_v55  ;;  %v909_v55 = vmax.f32 %v907_v40, %v908_v41  ;;  %v959_v41 = vmax.f32 %v957_v11, %v958_v14  ;;  %vm1922_vm1 = vcmask 130112  }
  0x62   : > { %v886_v5 = vmax.f32 %v884_v45, %v885_v50  ;;  %v1009_v45 = vmax.f32 %v1007_v28, %v1008_v30  ;;  %v864_v18 = vrot.slane %v863_v44, 1  ;;  %v986_v22 = vmax.f32 %v984_v34, %v985_v47 }
  0x63   : > { %v910_v29 = vrot.slane %v909_v55, 4  ;;  %v960_v25 = vrot.slane %v959_v41, 4 }
  0x64   : > { %v887_v33 = vrot.slane %v886_v5, 2  ;;  %v1010_v59 = vrot.slane %v1009_v45, 4  ;;  %v865_v9 = vmax.f32 %v863_v44, %v864_v18  ;;  %v987_v62 = vrot.slane %v986_v22, 2 }
  0x65   : > { %v911_v49 = vmax.f32 %v909_v55, %v910_v29  ;;  %v936_v55 = vmax.f32 %v934_v19, %v935_v38  ;;  %v839_v29 = vrot.slane %v838_v43, 1  ;;  %v961_v60 = vmax.f32 %v959_v41, %v960_v25 }
  0x66   : > { %v888_v46 = vmax.f32 %v886_v5, %v887_v33  ;;  %v1011_v11 = vmax.f32 %v1009_v45, %v1010_v59  ;;  %v988_v30 = vmax.f32 %v986_v22, %v987_v62 }
  0x67   : > { %v912_v40 = vrot.slane %v911_v49, 2  ;;  %v937_v12 = vrot.slane %v936_v55, 2  ;;  %v840_v24 = vmax.f32 %v838_v43, %v839_v29  ;;  %v962_v36 = vrot.slane %v961_v60, 2 }
  0x68   : > { %v889_v52 = vrot.slane %v888_v46, 1  ;;  %v1012_v28 = vrot.slane %v1011_v11, 2  ;;  %v989_v45 = vrot.slane %v988_v30, 1 }
  0x69   : > { %v913_v50 = vmax.f32 %v911_v49, %v912_v40  ;;  %v938_v5 = vmax.f32 %v936_v55, %v937_v12  ;;  %v841_v21 = vpack.i.bf16 %v840_v24, %v840_v24  ;;  %v866_v49 = vpack.i.bf16 %v865_v9, %v865_v9  ;;  %v4655_v24 = vld [vmem:[%s6998_s1] sm:$0xff]  }
  0x6a   : > { %v890_v14 = vmax.f32 %v888_v46, %v889_v52  ;;  %v963_v40 = vmax.f32 %v961_v60, %v962_v36  ;;  %v1013_v25 = vmax.f32 %v1011_v11, %v1012_v28  ;;  %v990_v12 = vmax.f32 %v988_v30, %v989_v45  ;;  %v4656_v28 = vld [vmem:[%s6998_s1 + $0x8] sm:$0xff]   ;;  %s4087_s1 = scalar_lea.sflag [#allocation3], %s434_s15 }
  0x6b   : > { %v914_v56 = vrot.slane %v913_v50, 1  ;;  %v939_v38 = vrot.slane %v938_v5, 1  ;;  %v1017_v34 = vunpack.c.l.bf16 %v841_v21  ;;  %v1018_v47 = vunpack.c.l.bf16 %v866_v49 }
  0x6c   : > { %v891_v19 = vpack.i.bf16 %v890_v14, %v890_v14  ;;  %v964_v41 = vrot.slane %v963_v40, 1  ;;  %v991_v59 = vpack.i.bf16 %v990_v12, %v990_v12  ;;  %v6894_v21 = vmov 0.0   ;;  %v4207_v12 = vld [vmem:[%s6999_s2] ss:$0 sm:$0xff] }
  0x6d   : > { %v915_v63 = vmax.f32 %v913_v50, %v914_v56  ;;  %v940_v44 = vmax.f32 %v938_v5, %v939_v38  ;;  %v1014_v56 = vrot.slane %v1013_v25, 1  ;;  %v1034_v22 = vsel %vm6937_vm2, %v1018_v47, %v1017_v34  ;;  %4474 = vmatprep.subr.bf16.mxu0 %v6894_v21  ;;  %4478 = vmatprep.mubr.msk.bf16.mxu0 %vm4908_vm12, %v6894_v21 }
  0x6e   : > { %v1019_v43 = vunpack.c.l.bf16 %v891_v19  ;;  %v965_v29 = vmax.f32 %v963_v40, %v964_v41  ;;  %v1023_v62 = vunpack.c.l.bf16 %v991_v59  ;;  %4475 = vmatpush3.bf16.msra.mxu0 %v4655_v24  ;;  %vm2349_vm2 = vcmask 917312  }
  0x6f   : > { %v916_v33 = vpack.i.bf16 %v915_v63, %v915_v63  ;;  %v941_v50 = vpack.i.bf16 %v940_v44, %v940_v44  ;;  %v1015_v18 = vmax.f32 %v1013_v25, %v1014_v56  ;;  %4476 = vmatprep.subr.bf16.mxu0 %v6894_v21  ;;  %v1119_v56 = vld [vmem:[%s6880_s3] sm:$0x3] }
  0x70   : > { %v966_v55 = vpack.i.bf16 %v965_v29, %v965_v29  ;;  %v1036_v60 = vsel %vm6936_vm3, %v1019_v43, %v1034_v22  ;;  %vm6939_vm3 = vcmask 851712  }
  0x71   : > { %v1020_v46 = vunpack.c.l.bf16 %v916_v33  ;;  %v1021_v52 = vunpack.c.l.bf16 %v941_v50  ;;  %v1016_v9 = vpack.i.bf16 %v1015_v18, %v1015_v18  ;;  %v1133_v50 = vsel %vm1131_vm13, %v1119_v56, 0 }
  0x72   : > { %v1022_v11 = vunpack.c.l.bf16 %v966_v55  ;;  %4477 = vmatpush3.bf16.msra.mxu0 %v4656_v28  ;;  %v1183_v56 = vunpack.c.l.bf16 %v5041_v1  ;;  %vm6953_vm13 = vcmask 261312  }
  0x73   : > { %v1038_v14 = vsel %vm6933_vm5, %v1020_v46, %v1036_v60  ;;  %v1024_v36 = vunpack.c.l.bf16 %v1016_v9  ;;  %4482 = vmatprep.subr.bf16.mxu0 %v6894_v21  ;;  %vm6938_vm5 = vcmask 786112  }
  0x74   : > { %v1040_v63 = vsel %vm6930_vm6, %v1021_v52, %v1038_v14  ;;  %v4211_v14 = vld [vmem:[%s6881_s4] ss:$0 sm:$0xff]  ;;  %vm2328_vm6 = vcmask 720512  }
  0x75   : > { %v1042_v5 = vsel %vm6928_vm8, %v1022_v11, %v1040_v63  ;;  %vm2321_vm8 = vcmask 654912  }
  0x76   : > { %v1044_v49 = vsel %vm6925_vm9, %v1023_v62, %v1042_v5  ;;  %vm6940_vm9 = vcmask 458112  }
  0x77   : > { %v1046_v19 = vsel %vm6924_vm10, %v1024_v36, %v1044_v49  ;;  %vm1950_vm10 = vcmask 392512  }
 0x114   : > { %v4340_v30 = vpop.f32.mrb[0].mxu0 }
 0x115   : > { %v4341_v33 = vpop.f32.mrb[1].mxu0 }
 0x116   : > { %v4342_v40 = vadd.f32 %v4341_v33, %v4340_v30  ;;  %v4343_v38 = vpop.f32.mrb[2].mxu0 }
 0x117   : > { %v4344_v34 = vpop.f32.mrb[3].mxu0  ;;  %v4909_v38 = vmov 1966171168  }
 0x118   : > { %v1250_v34 = vunpack.c.l.s4 %v4909_v38 }
 0x134   : > { %v4362_v47 = vpop.f32.mrb[4].mxu0 }
 0x135   : > { %v4363_v41 = vpop.f32.mrb[5].mxu0 }
 0x136   : > { %v4364_v25 = vadd.f32 %v4363_v41, %v4362_v47  ;;  %v4365_v43 = vpop.f32.mrb[6].mxu0  ;;  %v1251_v47 = vunpack.c.0.s8 %v1250_v34 }
 0x137   : > { %v4366_v44 = vpop.f32.mrb[7].mxu0 }
 0x138   : > { %v809_v45 = vadd.f32 %v4364_v25, %v4342_v40  ;;  %v5319_v41 = vsub.s32 %v1251_v47, %v5098_v27 }
 0x13a   : > { %v814_v46 = vmul.f32 0.015625, %v809_v45  ;;  %v5323_v45 = vsub.s32 0, %v5098_v27 }
 0x13c   : > { %v1048_v29 = vpack.c.bf16 %v1046_v19, %v814_v46  ;;  %7000 = vst [vmem:[#allocation10_spill] sm:$0xff] %v5323_v45 }
 0x13e   : > { %4479 = vmatmul.mubr.msk.bf16.vlgmr.msra.gmra.mrb[8].mxu0 %vm6977_vm0, %v1048_v29 }
 0x13f   : > { %4484 = vmatprep.mubr.msk.bf16.mxu0 %vm4908_vm12, %v6894_v21  ;;  %4483 = vmatpush3.bf16.msra.mxu0 %v1133_v50  ;;  %v1187_v50 = vunpack.c.l.bf16 %v5058_v8 }
 0x140   : > { %4488 = vmatprep.subr.bf16.mxu0 %v6894_v21 }
 0x211   : > { %v1109_v55 = vpop.f32.mrb[8].mxu0 }
 0x212   : > { %v1110_v18 = vadd.f32 %v4207_v12, %v1109_v55  ;;  %v4480_v22 = vpop.f32.mrb[9].mxu0 }
 0x213   : > { %v1112_v59 = vpop.f32.mrb[10].mxu0  ;;  %v1185_v22 = vunpack.c.l.bf16 %v5047_v3 }
 0x214   : > { %v1113_v52 = vadd.f32 %v4207_v12, %v1112_v59  ;;  %v4481_v60 = vpop.f32.mrb[11].mxu0  ;;  %v1116_v24 = vmax.f32 %v1110_v18, 0.0  ;;  %v1184_v18 = vunpack.c.h.bf16 %v5041_v1  ;;  %v1199_v1 = vunpack.c.l.bf16 %v5038_v0 }
 0x215   : > { %v1188_v60 = vunpack.c.h.bf16 %v5058_v8  ;;  %v1191_v8 = vunpack.c.l.bf16 %v5083_v20 }
 0x216   : > { %v1117_v9 = vmax.f32 %v1113_v52, 0.0  ;;  %v1186_v52 = vunpack.c.h.bf16 %v5047_v3  ;;  %v1190_v3 = vunpack.c.h.bf16 %v5070_v13 }
 0x218   : > { %v1118_v11 = vpack.c.bf16 %v1117_v9, %v1116_v24 }
 0x21a   : > { %4485 = vmatmul.mubr.msk.bf16.vlgmr.msra.gmra.mrb[12].mxu0 %vm1127_vm14, %v1118_v11  ;;  %v1189_v11 = vunpack.c.l.bf16 %v5070_v13  ;;  %v1193_v13 = vunpack.c.l.bf16 %v5096_v26  ;;  %vm6978_vm14 = vcmask 326912  }
 0x21b   : > { %4504 = vmatprep.mubr.msk.bf16.mxu0 %vm4908_vm12, %v6894_v21  ;;  %v1239_v21 = vunpack.c.l.bf16 %v5196_v7  ;;  %vm6954_vm12 = vcmask 195712  }
 0x2ed   : > { %v1169_v62 = vpop.f32.mrb[12].mxu0 }
 0x2ee   : > { %v4486_v63 = vpop.f32.mrb[13].mxu0  ;;  %v1170_v5 = vadd.f32 %v4211_v14, %v1169_v62 }
 0x2ef   : > { %v1172_v36 = vpop.f32.mrb[14].mxu0 }
 0x2f0   : > { %v1173_v49 = vadd.f32 %v4211_v14, %v1172_v36  ;;  %v4487_v28 = vpop.f32.mrb[15].mxu0  ;;  %v1201_v36 = vunpack.c.l.bf16 %v5044_v2 }
 0x2f2   : > { %v1176_v19 = vadd.f32 %v1173_v49, %v1170_v5 }
 0x2f4   : > { %v4213_v30 = vmul.f32 -1.442695, %v1176_v19  ;;  %v1192_v19 = vunpack.c.h.bf16 %v5083_v20  ;;  %v1194_v20 = vunpack.c.h.bf16 %v5096_v26 }
 0x2f6   : > { %4821 = vpow2.f32 %v4213_v30 }
 0x300   : > { %v4822_v33 = vpop.eup %4821 }
 0x301   : > { %v1180_v40 = vadd.f32 1.0, %v4822_v33 }
 0x303   : > { %4823 = vrcp.f32 %v1180_v40 }
 0x30d   : > { %v4824_v25 = vpop.eup %4823 }
 0x30e   : > { %v1248_v43 = vcombine.high %v4824_v25, %v4824_v25  ;;  %v1255_v44 = vrot.slane %v4824_v25, %v5319_v41  ;;  %v1200_v25 = vunpack.c.h.bf16 %v5038_v0 }
 0x310   : > { %v5326_v46 = vrot.slane %v1248_v43, %v5319_v41  ;;  %v1271_v29 = vrot.slane %v1255_v44, %v5319_v41  ;;  %v1263_v12 = vcombine.high %v1255_v44, %v1255_v44  ;;  %v1195_v43 = vunpack.c.l.bf16 %v5110_v32 }
 0x312   : > { %v1264_v55 = vcombine.high %v5326_v46, %v5326_v46  ;;  %v1300_v59 = vrot.slane %v1271_v29, %v5323_v45  ;;  %v1293_v9 = vcombine.high %v1271_v29, %v1271_v29  ;;  %v1285_v14 = vrot.slane %v1263_v12, %v5319_v41 }
 0x314   : > { %v5339_v24 = vrot.slane %v1264_v55, %v5319_v41  ;;  %v5343_v62 = vmul.f32 %v1300_v59, %v1183_v56  ;;  %v5345_v63 = vmul.f32 %v1300_v59, %v1187_v50  ;;  %v5355_v28 = vmul.f32 %v1300_v59, %v1184_v18 }
 0x315   : > { %v1308_v30 = vrot.slane %v1293_v9, %v5323_v45  ;;  %v5359_v33 = vmul.f32 %v1300_v59, %v1185_v22  ;;  %v5361_v40 = vmul.f32 %v1300_v59, %v1188_v60  ;;  %v1304_v38 = vrot.slane %v1285_v14, %v5323_v45 }
 0x316   : > { %7001 = vst [vmem:[#allocation11_spill] sm:$0xff] %v5343_v62  ;;  %7002 = vst [vmem:[#allocation12_spill] sm:$0xff] %v5345_v63  ;;  %v1657_v5 = vsel %vm6977_vm0, %v5343_v62, -inf  ;;  %v1401_v49 = vsel %vm6977_vm0, %v5343_v62, 0.0  ;;  %v5365_v34 = vmul.f32 %v1300_v59, %v1186_v52  ;;  %v5367_v47 = vmul.f32 %v1300_v59, %v1189_v11 }
 0x317   : > { %7003 = vst [vmem:[#allocation13_spill] sm:$0xff] %v5355_v28  ;;  %1658 = vmax.xlane.f32.xlu1 %v1657_v5  ;;  %1402 = vadd.xlane.f32.xlu0 %v1401_v49  ;;  %7004 = vst [vmem:[#allocation14_spill] sm:$0xff] %v5359_v33  ;;  %v5372_v44 = vmul.f32 %v1300_v59, %v1190_v3  ;;  %v1413_v29 = vsel %vm6977_vm0, %v5345_v63, 0.0  ;;  %v1404_v56 = vsel %vm6977_vm0, %v5355_v28, 0.0  ;;  %v1202_v50 = vunpack.c.h.bf16 %v5044_v2 }
 0x318   : > { %7005 = vst [vmem:[#allocation15_spill] sm:$0xff] %v5361_v40  ;;  %7006 = vst [vmem:[#allocation16_spill] sm:$0xff] %v5365_v34  ;;  %v5379_v12 = vmul.f32 %v1308_v30, %v1199_v1  ;;  %v5381_v55 = vmul.f32 %v1304_v38, %v1191_v8  ;;  %v5383_v0 = vmul.f32 %v1308_v30, %v1201_v36  ;;  %v1196_v22 = vunpack.c.h.bf16 %v5110_v32 }
 0x319   : > { %7007 = vst [vmem:[#allocation17_spill] sm:$0xff] %v5367_v47  ;;  %7008 = vst [vmem:[#allocation18_spill] sm:$0xff] %v5372_v44  ;;  %v5385_v26 = vmul.f32 %v1304_v38, %v1192_v19  ;;  %v5387_v18 = vmul.f32 %v1304_v38, %v1193_v13  ;;  %v5390_v59 = vmul.f32 %v1304_v38, %v1195_v43  ;;  %v1197_v2 = vunpack.c.l.bf16 %v5127_v39 }
 0x31a   : > { %7009 = vst [vmem:[#allocation19_spill] sm:$0xff] %v5379_v12  ;;  %7010 = vst [vmem:[#allocation20_spill] sm:$0xff] %v5381_v55  ;;  %v5392_v52 = vmul.f32 %v1308_v30, %v1200_v25  ;;  %v5394_v60 = vmul.f32 %v1304_v38, %v1194_v20  ;;  %v1663_v9 = vsel %vm6977_vm0, %v5359_v33, -inf  ;;  %v1407_v11 = vsel %vm6977_vm0, %v5359_v33, 0.0 }
 0x31b   : > { %1414 = vadd.xlane.f32.xlu1 %v1413_v29  ;;  %1405 = vadd.xlane.f32.xlu0 %v1404_v56  ;;  %7011 = vst [vmem:[#allocation21_spill] sm:$0xff] %v5383_v0  ;;  %7012 = vst [vmem:[#allocation22_spill] sm:$0xff] %v5385_v26  ;;  %v1203_v1 = vunpack.c.l.bf16 %v5050_v4  ;;  %v5402_v36 = vmul.f32 %v1308_v30, %v1202_v50  ;;  %v1204_v32 = vunpack.c.h.bf16 %v5050_v4  ;;  %v1198_v3 = vunpack.c.h.bf16 %v5127_v39 }
 0x31c   : > { %7013 = vst [vmem:[#allocation23_spill] sm:$0xff] %v5387_v18  ;;  %7014 = vst [vmem:[#allocation24_spill] sm:$0xff] %v5390_v59  ;;  %v1295_v8 = vcombine.high %v1285_v14, %v1285_v14  ;;  %v5406_v5 = vmul.f32 %v1304_v38, %v1196_v22  ;;  %v1416_v49 = vsel %vm6977_vm0, %v5361_v40, 0.0  ;;  %v1410_v19 = vsel %vm6977_vm0, %v5365_v34, 0.0 }
 0x31d   : > { %7015 = vst [vmem:[#allocation25_spill] sm:$0xff] %v5392_v52  ;;  %7016 = vst [vmem:[#allocation26_spill] sm:$0xff] %v5394_v60  ;;  %v5412_v13 = vmul.f32 %v1304_v38, %v1197_v2  ;;  %v5414_v25 = vmul.f32 %v1308_v30, %v1203_v1  ;;  %v1205_v20 = vunpack.c.l.bf16 %v5064_v10  ;;  %v1206_v4 = vunpack.c.h.bf16 %v5064_v10 }
 0x31e   : > { %7017 = vst [vmem:[#allocation27_spill] sm:$0xff] %v5402_v36  ;;  %7018 = vst [vmem:[#allocation28_spill] sm:$0xff] %v5406_v5  ;;  %v1208_v39 = vunpack.c.h.bf16 %v5075_v16  ;;  %v1278_v14 = vrot.slane %v5326_v46, %v5319_v41  ;;  %v1209_v43 = vunpack.c.l.bf16 %v5089_v23  ;;  %v5423_v29 = vrot.slane %v1295_v8, %v5323_v45 }
 0x31f   : > { %1664 = vmax.xlane.f32.xlu1 %v1663_v9  ;;  %1408 = vadd.xlane.f32.xlu0 %v1407_v11  ;;  %7019 = vst [vmem:[#allocation29_spill] sm:$0xff] %v5412_v13  ;;  %7020 = vst [vmem:[#allocation30_spill] sm:$0xff] %v5414_v25  ;;  %v5425_v56 = vmul.f32 %v1304_v38, %v1198_v3  ;;  %v5427_v50 = vmul.f32 %v1308_v30, %v1204_v32  ;;  %v1419_v22 = vsel %vm6977_vm0, %v5367_v47, 0.0 }
 0x320   : > { %v1660_v10 = vsel %vm6977_vm0, %v5355_v28, -inf  ;;  %v1210_v16 = vunpack.c.h.bf16 %v5089_v23  ;;  %v1294_v41 = vcombine.high %v1278_v14, %v1278_v14  ;;  %v5434_v46 = vmul.f32 %v1308_v30, %v1205_v20 }
 0x321   : > { %7021 = vst [vmem:[#allocation31_spill] sm:$0xff] %v5425_v56  ;;  %7022 = vst [vmem:[#allocation32_spill] sm:$0xff] %v5427_v50  ;;  %v5437_v2 = vmul.f32 %v5423_v29, %v1208_v39  ;;  %v5439_v38 = vmul.f32 %v1308_v30, %v1206_v4  ;;  %v5442_v9 = vmul.f32 %v5423_v29, %v1209_v43  ;;  %v1211_v11 = vunpack.c.l.bf16 %v5106_v31  ;;  %v4833_v4 = vld [vmem:[%s5035_s24 + $0x60] sm:$0xff]  }
 0x322   : > { %7023 = vst [vmem:[#allocation33_spill] sm:$0xff] %v5434_v46  ;;  %v1669_v1 = vsel %vm6977_vm0, %v5345_v63, -inf  ;;  %v1666_v23 = vsel %vm6977_vm0, %v5365_v34, -inf  ;;  %v1232_v32 = vunpack.c.h.bf16 %v5142_v48  ;;  %v5451_v3 = vrot.slane %v1294_v41, %v5323_v45 }
 0x323   : > { %1417 = vadd.xlane.f32.xlu1 %v1416_v49  ;;  %1411 = vadd.xlane.f32.xlu0 %v1410_v19  ;;  %7024 = vst [vmem:[#allocation34_spill] sm:$0xff] %v5437_v2  ;;  %7025 = vst [vmem:[#allocation35_spill] sm:$0xff] %v5439_v38  ;;  %v5454_v30 = vmul.f32 %v5423_v29, %v1210_v16  ;;  %v1212_v8 = vunpack.c.h.bf16 %v5106_v31  ;;  %v1422_v49 = vsel %vm6977_vm0, %v5372_v44, 0.0  ;;  %v1672_v19 = vsel %vm6977_vm0, %v5361_v40, -inf }
 0x324   : > { %7026 = vst [vmem:[#allocation36_spill] sm:$0xff] %v5442_v9  ;;  %v5462_v20 = vmul.f32 %v5423_v29, %v1211_v11  ;;  %v1207_v39 = vunpack.c.l.bf16 %v4833_v4  ;;  %v5466_v43 = vmul.f32 %v5451_v3, %v1232_v32  ;;  %v1678_v31 = vsel %vm6977_vm0, %v5372_v44, -inf }
 0x325   : > { %7027 = vst [vmem:[#allocation37_spill] sm:$0xff] %v5454_v30  ;;  %v1213_v41 = vunpack.c.l.bf16 %v5118_v35  ;;  %v1231_v11 = vunpack.c.l.bf16 %v5142_v48  ;;  %v1233_v32 = vunpack.c.l.bf16 %v5149_v51  ;;  %v1428_v35 = vsel %vm6977_vm0, %v5385_v26, 0.0 }
 0x326   : > { %7028 = vst [vmem:[#allocation38_spill] sm:$0xff] %v5462_v20  ;;  %7029 = vst [vmem:[#allocation39_spill] sm:$0xff] %v5466_v43  ;;  %v5476_v16 = vmul.f32 %v5423_v29, %v1207_v39  ;;  %v1235_v4 = vunpack.c.l.bf16 %v5174_v58  ;;  %v1241_v44 = vunpack.c.l.bf16 %v5204_v15 }
 0x327   : > { %1420 = vadd.xlane.f32.xlu1 %v1419_v22  ;;  %1661 = vmax.xlane.f32.xlu0 %v1660_v10  ;;  %v1675_v22 = vsel %vm6977_vm0, %v5367_v47, -inf  ;;  %v5473_v10 = vmul.f32 %v5423_v29, %v1212_v8  ;;  %v5486_v8 = vmul.f32 %v5423_v29, %v1213_v41  ;;  %v5493_v48 = vmul.f32 %v5451_v3, %v1231_v11 }
 0x328   : > { %7031 = vst [vmem:[#allocation41_spill] sm:$0xff] %v5476_v16  ;;  %v5498_v39 = vmul.f32 %v5451_v3, %v1233_v32  ;;  %v1431_v41 = vsel %vm6977_vm0, %v5387_v18, 0.0  ;;  %v1216_v11 = vunpack.c.h.bf16 %v5159_v54  ;;  %v5513_v32 = vmul.f32 %v5451_v3, %v1235_v4 }
 0x329   : > { %7030 = vst [vmem:[#allocation40_spill] sm:$0xff] %v5473_v10  ;;  %7032 = vst [vmem:[#allocation42_spill] sm:$0xff] %v5486_v8  ;;  %v1434_v47 = vsel %vm6977_vm0, %v5394_v60, 0.0 }
 0x32a   : > { %7033 = vst [vmem:[#allocation43_spill] sm:$0xff] %v5493_v48  ;;  %7034 = vst [vmem:[#allocation44_spill] sm:$0xff] %v5498_v39 }
 0x32b   : > { %1670 = vmax.xlane.f32.xlu1 %v1669_v1  ;;  %1667 = vmax.xlane.f32.xlu0 %v1666_v23  ;;  %v1449_v1 = vsel %vm6977_vm0, %v5379_v12, 0.0  ;;  %v1425_v23 = vsel %vm6977_vm0, %v5381_v55, 0.0  ;;  %7036 = vst [vmem:[#allocation46_spill] sm:$0xff] %v5513_v32 }
 0x32f   : > { %1423 = vadd.xlane.f32.xlu1 %v1422_v49  ;;  %1673 = vmax.xlane.f32.xlu0 %v1672_v19  ;;  %v1455_v49 = vsel %vm6977_vm0, %v5383_v0, 0.0  ;;  %v1234_v19 = vunpack.c.h.bf16 %v5149_v51 }
 0x333   : > { %1676 = vmax.xlane.f32.xlu1 %v1675_v22  ;;  %1679 = vmax.xlane.f32.xlu0 %v1678_v31  ;;  %v5501_v22 = vrot.slane %v1278_v14, %v5323_v45  ;;  %v1684_v31 = vsel %vm6977_vm0, %v5385_v26, -inf  ;;  %v1296_v14 = vcombine.high %v5339_v24, %v5339_v24 }
 0x335   : > { %v1328_v26 = vrot.slane %v1296_v14, %v5323_v45  ;;  %v1243_v14 = vunpack.c.l.bf16 %v5227_v37 }
 0x337   : > { %1450 = vadd.xlane.f32.xlu0 %v1449_v1  ;;  %1426 = vadd.xlane.f32.xlu1 %v1425_v23  ;;  %v4834_v1 = vld [vmem:[%s5035_s24 + $0x78] sm:$0xff]   ;;  %v5510_v23 = vmul.f32 %v5451_v3, %v1234_v19  ;;  %v1236_v19 = vunpack.c.h.bf16 %v5174_v58 }
 0x338   : > { %v1214_v51 = vunpack.c.h.bf16 %v4834_v1  ;;  %v1238_v1 = vunpack.c.h.bf16 %v5184_v61 }
 0x339   : > { %7035 = vst [vmem:[#allocation45_spill] sm:$0xff] %v5510_v23 }
 0x33a   : > { %v5527_v4 = vmul.f32 %v5423_v29, %v1214_v51  ;;  %v1240_v29 = vunpack.c.h.bf16 %v5196_v7  ;;  %v1242_v51 = vunpack.c.h.bf16 %v5204_v15  ;;  %v5549_v40 = vmul.f32 %v5451_v3, %v1238_v1 }
 0x33b   : > { %1456 = vadd.xlane.f32.xlu0 %v1455_v49  ;;  %1429 = vadd.xlane.f32.xlu1 %v1428_v35  ;;  %v1237_v49 = vunpack.c.l.bf16 %v5184_v61  ;;  %v1437_v35 = vsel %vm6977_vm0, %v5390_v59, 0.0  ;;  %v5542_v61 = vmul.f32 %v5451_v3, %v1236_v19  ;;  %v1681_v7 = vsel %vm6977_vm0, %v5381_v55, -inf }
 0x33c   : > { %7038 = vst [vmem:[#allocation48_spill] sm:$0xff] %v5527_v4  ;;  %7041 = vst [vmem:[#allocation51_spill] sm:$0xff] %v5549_v40  ;;  %v1215_v19 = vunpack.c.l.bf16 %v5159_v54  ;;  %v5558_v15 = vmul.f32 %v1328_v26, %v1241_v44  ;;  %v1458_v55 = vsel %vm6977_vm0, %v5402_v36, 0.0  ;;  %v1708_v54 = vsel %vm6977_vm0, %v5392_v52, -inf }
 0x33d   : > { %v5538_v58 = vmul.f32 %v5451_v3, %v1237_v49  ;;  %7040 = vst [vmem:[#allocation50_spill] sm:$0xff] %v5542_v61  ;;  %v5551_v49 = vmul.f32 %v1328_v26, %v1239_v21  ;;  %v5563_v3 = vmul.f32 %v1328_v26, %v1243_v14  ;;  %v5565_v21 = vmul.f32 %v1328_v26, %v1242_v51 }
 0x33e   : > { %7043 = vst [vmem:[#allocation53_spill] sm:$0xff] %v5558_v15  ;;  %v5574_v44 = vmul.f32 %v5501_v22, %v1215_v19  ;;  %v1440_v51 = vsel %vm6977_vm0, %v5406_v5, 0.0  ;;  %v1693_v19 = vsel %vm6977_vm0, %v5390_v59, -inf  ;;  %v1732_v59 = vsel %vm6977_vm0, %v5437_v2, -inf }
 0x33f   : > { %1685 = vmax.xlane.f32.xlu0 %v1684_v31  ;;  %1432 = vadd.xlane.f32.xlu1 %v1431_v41  ;;  %v1452_v31 = vsel %vm6977_vm0, %v5392_v52, 0.0  ;;  %v5523_v41 = vmul.f32 %v5501_v22, %v1216_v11  ;;  %7039 = vst [vmem:[#allocation49_spill] sm:$0xff] %v5538_v58  ;;  %7042 = vst [vmem:[#allocation52_spill] sm:$0xff] %v5551_v49 }
 0x340   : > { %7045 = vst [vmem:[#allocation55_spill] sm:$0xff] %v5563_v3  ;;  %7046 = vst [vmem:[#allocation56_spill] sm:$0xff] %v5565_v21  ;;  %v1497_v14 = vsel %vm6977_vm0, %v5574_v44, 0.0 }
 0x341   : > { %7037 = vst [vmem:[#allocation47_spill] sm:$0xff] %v5523_v41  ;;  %v1500_v11 = vsel %vm6977_vm0, %v5523_v41, 0.0  ;;  %7048 = vst [vmem:[#allocation58_spill] sm:$0xff] %v5574_v44 }
 0x343   : > { %1438 = vadd.xlane.f32.xlu0 %v1437_v35  ;;  %1453 = vadd.xlane.f32.xlu1 %v1452_v31  ;;  %v1244_v35 = vunpack.c.h.bf16 %v5227_v37  ;;  %v1245_v31 = vunpack.c.l.bf16 %v5237_v42  ;;  %v5561_v37 = vmul.f32 %v1328_v26, %v1240_v29 }
 0x345   : > { %7044 = vst [vmem:[#allocation54_spill] sm:$0xff] %v5561_v37  ;;  %v5567_v1 = vmul.f32 %v1328_v26, %v1245_v31  ;;  %v1711_v31 = vsel %vm6977_vm0, %v5383_v0, -inf }
 0x347   : > { %1435 = vadd.xlane.f32.xlu1 %v1434_v47  ;;  %1501 = vadd.xlane.f32.xlu0 %v1500_v11  ;;  %v1687_v47 = vsel %vm6977_vm0, %v5387_v18, -inf  ;;  %v1246_v11 = vunpack.c.h.bf16 %v5237_v42  ;;  %7047 = vst [vmem:[#allocation57_spill] sm:$0xff] %v5567_v1  ;;  %v5576_v42 = vmul.f32 %v1328_v26, %v1244_v35  ;;  %v1705_v35 = vsel %vm6977_vm0, %v5379_v12, -inf }
 0x349   : > { %7049 = vst [vmem:[#allocation59_spill] sm:$0xff] %v5576_v42  ;;  %v5578_v29 = vmul.f32 %v1328_v26, %v1246_v11  ;;  %v1443_v26 = vsel %vm6977_vm0, %v5412_v13, 0.0 }
 0x34b   : > { %1682 = vmax.xlane.f32.xlu1 %v1681_v7  ;;  %1688 = vmax.xlane.f32.xlu0 %v1687_v47  ;;  %7050 = vst [vmem:[#allocation60_spill] sm:$0xff] %v5578_v29  ;;  %v1461_v7 = vsel %vm6977_vm0, %v5414_v25, 0.0 }
 0x34f   : > { %1459 = vadd.xlane.f32.xlu1 %v1458_v55  ;;  %1709 = vmax.xlane.f32.xlu0 %v1708_v54  ;;  %v1217_v55 = vunpack.c.l.bf16 %v5171_v57  ;;  %v1756_v57 = vsel %vm6977_vm0, %v5523_v41, -inf  ;;  %v1690_v54 = vsel %vm6977_vm0, %v5394_v60, -inf }
 0x351   : > { %v5594_v47 = vmul.f32 %v5501_v22, %v1217_v55 }
 0x353   : > { %1441 = vadd.xlane.f32.xlu0 %v1440_v51  ;;  %1498 = vadd.xlane.f32.xlu1 %v1497_v14  ;;  %7051 = vst [vmem:[#allocation61_spill] sm:$0xff] %v5594_v47  ;;  %v1503_v11 = vsel %vm6977_vm0, %v5594_v47, 0.0  ;;  %v4835_v51 = vld [vmem:[%s5035_s24 + $0x88] sm:$0xff]  }
 0x354   : > { %v1218_v14 = vunpack.c.h.bf16 %v4835_v51  ;;  %v1753_v51 = vsel %vm6977_vm0, %v5574_v44, -inf }
 0x356   : > { %v5610_v55 = vmul.f32 %v5501_v22, %v1218_v14 }
 0x357   : > { %1712 = vmax.xlane.f32.xlu0 %v1711_v31  ;;  %1706 = vmax.xlane.f32.xlu1 %v1705_v35  ;;  %v1446_v31 = vsel %vm6977_vm0, %v5425_v56, 0.0  ;;  %v1464_v35 = vsel %vm6977_vm0, %v5427_v50, 0.0 }
 0x358   : > { %7052 = vst [vmem:[#allocation62_spill] sm:$0xff] %v5610_v55 }
 0x35b   : > { %1444 = vadd.xlane.f32.xlu0 %v1443_v26  ;;  %1462 = vadd.xlane.f32.xlu1 %v1461_v7  ;;  %v1717_v26 = vsel %vm6977_vm0, %v5414_v25, -inf  ;;  %v1506_v7 = vsel %vm6977_vm0, %v5610_v55, 0.0 }
 0x35f   : > { %1694 = vmax.xlane.f32.xlu0 %v1693_v19  ;;  %1504 = vadd.xlane.f32.xlu1 %v1503_v11  ;;  %v1759_v19 = vsel %vm6977_vm0, %v5594_v47, -inf  ;;  %v1714_v11 = vsel %vm6977_vm0, %v5402_v36, -inf }
 0x363   : > { %1757 = vmax.xlane.f32.xlu0 %v1756_v57  ;;  %1691 = vmax.xlane.f32.xlu1 %v1690_v54  ;;  %v1221_v57 = vunpack.c.l.bf16 %v5193_v6  ;;  %v1699_v54 = vsel %vm6977_vm0, %v5412_v13, -inf  ;;  %v1467_v6 = vsel %vm6977_vm0, %v5434_v46, 0.0 }
 0x365   : > { %v5626_v14 = vmul.f32 %v5501_v22, %v1221_v57 }
 0x367   : > { %1447 = vadd.xlane.f32.xlu0 %v1446_v31  ;;  %1465 = vadd.xlane.f32.xlu1 %v1464_v35  ;;  %7053 = vst [vmem:[#allocation63_spill] sm:$0xff] %v5626_v14  ;;  %v4836_v31 = vld [vmem:[%s5035_s24 + $0x90] sm:$0xff]  }
 0x368   : > { %v1219_v35 = vunpack.c.l.bf16 %v4836_v31 }
 0x36b   : > { %1718 = vmax.xlane.f32.xlu0 %v1717_v26  ;;  %1507 = vadd.xlane.f32.xlu1 %v1506_v7  ;;  %v1515_v26 = vsel %vm6977_vm0, %v5626_v14, 0.0  ;;  %v5634_v7 = vmul.f32 %v5501_v22, %v1219_v35  ;;  %v1476_v35 = vsel %vm6977_vm0, %v5437_v2, 0.0  ;;  %v1924_v2 = vadd.s32 4294967280, %v5077_v17 }
 0x36d   : > { %7054 = vst [vmem:[#allocation64_spill] sm:$0xff] %v5634_v7  ;;  %v1765_v57 = vsel %vm6977_vm0, %v5634_v7, -inf }
 0x36f   : > { %1760 = vmax.xlane.f32.xlu0 %v1759_v19  ;;  %1715 = vmax.xlane.f32.xlu1 %v1714_v11  ;;  %v1723_v19 = vsel %vm6977_vm0, %v5434_v46, -inf  ;;  %v1509_v11 = vsel %vm6977_vm0, %v5634_v7, 0.0  ;;  %v1945_v7 = vadd.s32 4294967256, %v5077_v17 }
 0x373   : > { %1700 = vmax.xlane.f32.xlu0 %v1699_v54  ;;  %1754 = vmax.xlane.f32.xlu1 %v1753_v51  ;;  %v1696_v54 = vsel %vm6977_vm0, %v5406_v5, -inf  ;;  %v1220_v51 = vunpack.c.h.bf16 %v4836_v31  ;;  %v1479_v31 = vsel %vm6977_vm0, %v5442_v9, 0.0 }
 0x377   : > { %1516 = vadd.xlane.f32.xlu0 %v1515_v26  ;;  %1468 = vadd.xlane.f32.xlu1 %v1467_v6  ;;  %v1470_v26 = vsel %vm6977_vm0, %v5439_v38, 0.0  ;;  %v5649_v6 = vmul.f32 %v5501_v22, %v1220_v51  ;;  %v1482_v51 = vsel %vm6977_vm0, %v5454_v30, 0.0 }
 0x379   : > { %7055 = vst [vmem:[#allocation65_spill] sm:$0xff] %v5649_v6 }
 0x37b   : > { %1724 = vmax.xlane.f32.xlu0 %v1723_v19  ;;  %1510 = vadd.xlane.f32.xlu1 %v1509_v11  ;;  %v5653_v19 = vrot.slane %v5339_v24, %v5323_v45  ;;  %v1512_v11 = vsel %vm6977_vm0, %v5649_v6, 0.0  ;;  %v1720_v24 = vsel %vm6977_vm0, %v5427_v50, -inf  ;;  %v1931_v50 = vadd.s32 4294967272, %v5077_v17 }
 0x37f   : > { %1766 = vmax.xlane.f32.xlu0 %v1765_v57  ;;  %1697 = vmax.xlane.f32.xlu1 %v1696_v54  ;;  %v5660_v57 = vld [vmem:[%s5035_s24 + $0xa0] sm:$0xff]  }
 0x380   : > { %v1223_v54 = vunpack.c.l.bf16 %v5660_v57 }
 0x383   : > { %1477 = vadd.xlane.f32.xlu0 %v1476_v35  ;;  %1471 = vadd.xlane.f32.xlu1 %v1470_v26  ;;  %v5668_v35 = vmul.f32 %v5653_v19, %v1223_v54  ;;  %v1762_v26 = vsel %vm6977_vm0, %v5610_v55, -inf }
 0x385   : > { %7056 = vst [vmem:[#allocation66_spill] sm:$0xff] %v5668_v35  ;;  %v1521_v13 = vsel %vm6977_vm0, %v5668_v35, 0.0 }
 0x387   : > { %1480 = vadd.xlane.f32.xlu0 %v1479_v31  ;;  %1513 = vadd.xlane.f32.xlu1 %v1512_v11  ;;  %v4838_v31 = vld [vmem:[%s5035_s24 + $0x98] sm:$0xff]   ;;  %v1702_v11 = vsel %vm6977_vm0, %v5425_v56, -inf  ;;  %v2311_v56 = vadd.s32 4294967232, %v5077_v17 }
 0x388   : > { %v1222_v5 = vunpack.c.h.bf16 %v4838_v31  ;;  %v1726_v31 = vsel %vm6977_vm0, %v5439_v38, -inf }
 0x38a   : > { %v5680_v54 = vmul.f32 %v5501_v22, %v1222_v5  ;;  %v1548_v22 = vsel %vm6977_vm0, %v5466_v43, 0.0 }
 0x38b   : > { %1483 = vadd.xlane.f32.xlu0 %v1482_v51  ;;  %1721 = vmax.xlane.f32.xlu1 %v1720_v24  ;;  %v4839_v51 = vld [vmem:[%s5035_s24 + $0xa8] sm:$0xff]  }
 0x38c   : > { %7057 = vst [vmem:[#allocation67_spill] sm:$0xff] %v5680_v54  ;;  %v1225_v24 = vunpack.c.l.bf16 %v4839_v51  ;;  %v1518_v60 = vsel %vm6977_vm0, %v5680_v54, 0.0 }
 0x38f   : > { %1763 = vmax.xlane.f32.xlu1 %v1762_v26  ;;  %1522 = vadd.xlane.f32.xlu0 %v1521_v13  ;;  %v1485_v26 = vsel %vm6977_vm0, %v5462_v20, 0.0  ;;  %v5688_v13 = vmul.f32 %v5653_v19, %v1225_v24  ;;  %v1226_v24 = vunpack.c.h.bf16 %v4839_v51  ;;  %v1224_v51 = vunpack.c.h.bf16 %v5660_v57 }
 0x390   : > { %v5725_v57 = vsub.s32 %v2311_v56, %v5098_v27 }
 0x391   : > { %7058 = vst [vmem:[#allocation68_spill] sm:$0xff] %v5688_v13  ;;  %v1527_v5 = vsel %vm6977_vm0, %v5688_v13, 0.0  ;;  %v5711_v18 = vmul.f32 %v5653_v19, %v1226_v24  ;;  %v2323_v24 = vadd.s32 4294967216, %v5077_v17 }
 0x393   : > { %1703 = vmax.xlane.f32.xlu1 %v1702_v11  ;;  %1733 = vmax.xlane.f32.xlu0 %v1732_v59  ;;  %v1768_v59 = vsel %vm6977_vm0, %v5649_v6, -inf  ;;  %v1735_v11 = vsel %vm6977_vm0, %v5442_v9, -inf  ;;  %7059 = vst [vmem:[#allocation69_spill] sm:$0xff] %v5711_v18  ;;  %v5728_v6 = vld [vmem:[%s5035_s24 + $0xb0] sm:$0xff]   ;;  %v5749_v55 = vsub.s32 %v2323_v24, %v5098_v27  ;;  %v1729_v24 = vsel %vm6977_vm0, %v5476_v16, -inf }
 0x397   : > { %1519 = vadd.xlane.f32.xlu1 %v1518_v60  ;;  %1486 = vadd.xlane.f32.xlu0 %v1485_v26  ;;  %v1771_v60 = vsel %vm6977_vm0, %v5626_v14, -inf  ;;  %v1917_v26 = vadd.s32 4294967288, %v5077_v17 }
 0x399   : > { %v5719_v9 = vsub.s32 %v1917_v26, %v5098_v27  ;;  %v1473_v26 = vsel %vm6977_vm0, %v5476_v16, 0.0  ;;  %v2330_v16 = vadd.s32 4294967208, %v5077_v17 }
 0x39b   : > { %1727 = vmax.xlane.f32.xlu1 %v1726_v31  ;;  %1528 = vadd.xlane.f32.xlu0 %v1527_v5 }
 0x39f   : > { %1769 = vmax.xlane.f32.xlu1 %v1768_v59  ;;  %1549 = vadd.xlane.f32.xlu0 %v1548_v22  ;;  %v1774_v59 = vsel %vm6977_vm0, %v5680_v54, -inf  ;;  %v1488_v22 = vsel %vm6977_vm0, %v5473_v10, 0.0  ;;  %v1938_v54 = vadd.s32 4294967264, %v5077_v17 }
 0x3a1   : > { %v5746_v25 = vsub.s32 %v1938_v54, %v5098_v27 }
 0x3a3   : > { %1772 = vmax.xlane.f32.xlu1 %v1771_v60  ;;  %1736 = vmax.xlane.f32.xlu0 %v1735_v11  ;;  %v5716_v60 = vsub.s32 %v5077_v17, %v5098_v27 }
 0x3a4   : > { %v5703_v31 = vpop.xlane.xlu1 %1658  ;;  %v1403_v5 = vpop.xlane.xlu0 %1402 }
 0x3a5   : > { %v1593_v11 = vmul.f32 0.03125, %v1403_v5  ;;  %v1227_v5 = vunpack.c.l.bf16 %v5728_v6 }
 0x3a7   : > { %1775 = vmax.xlane.f32.xlu1 %v1774_v59  ;;  %1489 = vadd.xlane.f32.xlu0 %v1488_v22  ;;  %v1530_v59 = vsel %vm6977_vm0, %v5711_v18, 0.0  ;;  %v5736_v22 = vmul.f32 %v5653_v19, %v1224_v51  ;;  %v1916_v56 = vrot.slane %v1593_v11, %v5716_v60 }
 0x3a8   : > { %v1415_v14 = vpop.xlane.xlu1 %1414  ;;  %v1406_v38 = vpop.xlane.xlu0 %1405 }
 0x3a9   : > { %v1594_v46 = vmul.f32 0.03125, %v1406_v38  ;;  %7060 = vst [vmem:[#allocation70_spill] sm:$0xff] %v5736_v22  ;;  %v5742_v38 = vsub.s32 %v1924_v2, %v5098_v27  ;;  %v1524_v2 = vsel %vm6977_vm0, %v5736_v22, 0.0  ;;  %v1780_v54 = vsel %vm6977_vm0, %v5736_v22, -inf }
 0x3aa   : > { %v1597_v33 = vmul.f32 0.03125, %v1415_v14  ;;  %v5779_v14 = vmul.f32 %v5653_v19, %v1227_v5  ;;  %v5791_v5 = vsub.s32 %v2330_v16, %v5098_v27 }
 0x3ab   : > { %v1921_v63 = vrot.slane %v1594_v46, %v5719_v9  ;;  %1474 = vadd.xlane.f32.xlu1 %v1473_v26  ;;  %1531 = vadd.xlane.f32.xlu0 %v1530_v59  ;;  %v2316_v26 = vadd.s32 4294967224, %v5077_v17  ;;  %v1952_v59 = vadd.s32 4294967248, %v5077_v17 }
 0x3ac   : > { %v1665_v51 = vpop.xlane.xlu1 %1664  ;;  %v1409_v47 = vpop.xlane.xlu0 %1408  ;;  %7061 = vst [vmem:[#allocation71_spill] sm:$0xff] %v5779_v14 }
 0x3ad   : > { %v1923_v11 = vsel %vm1922_vm1, %v1921_v63, %v1916_v56  ;;  %v1595_v46 = vmul.f32 0.03125, %v1409_v47  ;;  %v5762_v63 = vsub.s32 %v1945_v7, %v5098_v27  ;;  %v5765_v47 = vsub.s32 %v1931_v50, %v5098_v27 }
 0x3ae   : > { %v2337_v56 = vadd.s32 4294967200, %v5077_v17  ;;  %v1491_v50 = vsel %vm6977_vm0, %v5486_v8, 0.0  ;;  %v5776_v7 = vsub.s32 %v1952_v59, %v5098_v27  ;;  %v2327_v28 = vrot.slane %v1665_v51, %v5749_v55 }
 0x3af   : > { %v1928_v34 = vrot.slane %v1595_v46, %v5742_v38  ;;  %1525 = vadd.xlane.f32.xlu1 %v1524_v2  ;;  %1781 = vmax.xlane.f32.xlu0 %v1780_v54  ;;  %v5771_v54 = vsub.s32 %v2316_v26, %v5098_v27 }
 0x3b0   : > { %v1418_v36 = vpop.xlane.xlu1 %1417  ;;  %v1412_v22 = vpop.xlane.xlu0 %1411 }
 0x3b1   : > { %v1930_v0 = vsel %vm6954_vm12, %v1928_v34, %v1923_v11  ;;  %v1598_v46 = vmul.f32 0.03125, %v1418_v36  ;;  %v1596_v2 = vmul.f32 0.03125, %v1412_v22  ;;  %v1545_v34 = vsel %vm6977_vm0, %v5493_v48, 0.0 }
 0x3b2   : > { %v5785_v36 = vsub.s32 %v2337_v56, %v5098_v27  ;;  %v2315_v22 = vrot.slane %v5703_v31, %v5725_v57  ;;  %v1942_v11 = vrot.slane %v1597_v33, %v5746_v25  ;;  %v1533_v33 = vsel %vm6977_vm0, %v5779_v14, 0.0 }
 0x3b3   : > { %v1935_v41 = vrot.slane %v1596_v2, %v5765_v47  ;;  %1730 = vmax.xlane.f32.xlu1 %v1729_v24  ;;  %1492 = vadd.xlane.f32.xlu0 %v1491_v50  ;;  %v2344_v24 = vadd.s32 4294967192, %v5077_v17  ;;  %v1949_v2 = vrot.slane %v1598_v46, %v5762_v63 }
 0x3b4   : > { %v1421_v26 = vpop.xlane.xlu1 %1420  ;;  %v1662_v59 = vpop.xlane.xlu0 %1661 }
 0x3b5   : > { %v1937_v50 = vsel %vm6953_vm13, %v1935_v41, %v1930_v0  ;;  %v1599_v44 = vmul.f32 0.03125, %v1421_v26  ;;  %v2320_v56 = vrot.slane %v1662_v59, %v5771_v54  ;;  %v1959_v0 = vadd.s32 4294967240, %v5077_v17 }
 0x3b6   : > { %v1944_v31 = vsel %vm6978_vm14, %v1942_v11, %v1937_v50  ;;  %v5807_v11 = vsub.s32 %v2344_v24, %v5098_v27  ;;  %v2351_v26 = vadd.s32 4294967184, %v5077_v17 }
 0x3b7   : > { %v1951_v16 = vsel %vm1950_vm10, %v1949_v2, %v1944_v31  ;;  %v1956_v62 = vrot.slane %v1599_v44, %v5776_v7  ;;  %v2322_v53 = vsel %vm2321_vm8, %v2320_v56, %v2315_v22  ;;  %1546 = vadd.xlane.f32.xlu1 %v1545_v34  ;;  %1534 = vadd.xlane.f32.xlu0 %v1533_v33  ;;  %v2358_v34 = vadd.s32 4294967176, %v5077_v17 }
 0x3b8   : > { %v1671_v41 = vpop.xlane.xlu1 %1670  ;;  %v2329_v46 = vsel %vm2328_vm6, %v2327_v28, %v2322_v53  ;;  %v1668_v51 = vpop.xlane.xlu0 %1667  ;;  %v1551_v2 = vsel %vm6977_vm0, %v5498_v39, 0.0  ;;  %v1741_v53 = vsel %vm6977_vm0, %v5462_v20, -inf  ;;  %v5820_v24 = vsub.s32 %v1959_v0, %v5098_v27 }
 0x3b9   : > { %v1958_v59 = vsel %vm6940_vm9, %v1956_v62, %v1951_v16  ;;  %v2341_v44 = vrot.slane %v1671_v41, %v5785_v36  ;;  %v2334_v22 = vrot.slane %v1668_v51, %v5791_v5  ;;  %v5825_v33 = vsub.s32 %v2351_v26, %v5098_v27 }
 0x3ba   : > { %v5828_v16 = vsub.s32 %v2358_v34, %v5098_v27  ;;  %v1738_v41 = vsel %vm6977_vm0, %v5454_v30, -inf  ;;  %v1783_v0 = vsel %vm6977_vm0, %v5688_v13, -inf  ;;  %vm2363_vm9 = vcmask 1048512  }
 0x3bb   : > { %v2336_v28 = vsel %vm6938_vm5, %v2334_v22, %v2329_v46  ;;  %1552 = vadd.xlane.f32.xlu1 %v1551_v2  ;;  %1742 = vmax.xlane.f32.xlu0 %v1741_v53  ;;  %vm1964_vm5 = vcmask 523712   ;;  %v1777_v53 = vsel %vm6977_vm0, %v5668_v35, -inf  ;;  %v1494_v13 = vsel %vm6977_vm0, %v5527_v4, 0.0 }
 0x3bc   : > { %v1424_v62 = vpop.xlane.xlu1 %1423  ;;  %v2343_v50 = vsel %vm6939_vm3, %v2341_v44, %v2336_v28  ;;  %v1674_v56 = vpop.xlane.xlu0 %1673  ;;  %vm2356_vm3 = vcmask 982912   ;;  %v1804_v28 = vsel %vm6977_vm0, %v5466_v43, -inf  ;;  %v1747_v35 = vsel %vm6977_vm0, %v5486_v8, -inf }
 0x3bd   : > { %v1600_v31 = vmul.f32 0.03125, %v1424_v62  ;;  %v2348_v17 = vrot.slane %v1674_v56, %v5807_v11  ;;  %v1789_v8 = vsel %vm6977_vm0, %v5779_v14, -inf  ;;  %v1786_v14 = vsel %vm6977_vm0, %v5711_v18, -inf }
 0x3bf   : > { %v1963_v46 = vrot.slane %v1600_v31, %v5820_v24  ;;  %v2350_v51 = vsel %vm2349_vm2, %v2348_v17, %v2343_v50  ;;  %1739 = vmax.xlane.f32.xlu1 %v1738_v41  ;;  %1784 = vmax.xlane.f32.xlu0 %v1783_v0  ;;  %v1554_v31 = vsel %vm6977_vm0, %v5510_v23, 0.0  ;;  %v1557_v17 = vsel %vm6977_vm0, %v5513_v32, 0.0  ;;  %v5854_v41 = vld [vmem:[%s5035_s24 + $0xb8] sm:$0xff]   ;;  %s436_s24 = scalar_lea.vmem [#allocation2], %s4163_s0  ;;  %s4846_s0 = sshll.u32 %s4912_s29, 4  ;;  %s4847_s0 = int_to_ptr.vmem [resolvable:$false] %s4846_s0 }
 0x3c0   : > { %v1677_v44 = vpop.xlane.xlu1 %1676  ;;  %v1680_v26 = vpop.xlane.xlu0 %1679  ;;  %v1229_v0 = vunpack.c.l.bf16 %v5854_v41  ;;  %s4100_s20 = sshll.u32 %s436_s24, 4  ;;  %s4848_s2 = scalar_lea.vmem %s4847_s0, 256  ;;  %s6837_s20 = int_to_ptr.vmem [resolvable:$true] %s4100_s20 }
 0x3c1   : > { %v5837_v22 = vsel %vm1964_vm5, %v1963_v46, %v1958_v59  ;;  %v2355_v34 = vrot.slane %v1677_v44, %v5825_v33  ;;  %v2362_v2 = vrot.slane %v1680_v26, %v5828_v16  ;;  %s4842_s30 = scalar_lea.vmem %s6837_s20, 128  ;;  %p4849_p0 = scmp.lt.s32.totalorder %s6837_s20, %s4847_s0 }
 0x3c2   : > { %p4843_p11 = scmp.ne.s32.totalorder %s6837_s20, %s4842_s30  ;;  %p4850_p1 = scmp.lt.s32.totalorder %s4848_s2, %s4842_s30 }
 0x3c3   : > { %v2357_v62 = vsel %vm2356_vm3, %v2355_v34, %v2350_v51  ;;  %1778 = vmax.xlane.f32.xlu1 %v1777_v53  ;;  %1805 = vmax.xlane.f32.xlu0 %v1804_v28  ;;  %v1801_v34 = vsel %vm6977_vm0, %v5493_v48, -inf  ;;  %v5862_v53 = vmul.f32 %v5653_v19, %v1229_v0  ;;  %v1228_v28 = vunpack.c.h.bf16 %v5728_v6 }
 0x3c4   : > { %v5847_v50 = vsel %vm2363_vm9, %v2362_v2, %v2357_v62  ;;  %v1451_v59 = vpop.xlane.xlu0 %1450  ;;  %v1427_v56 = vpop.xlane.xlu1 %1426  ;;  %v1807_v2 = vsel %vm6977_vm0, %v5498_v39, -inf  ;;  %p4844_p12 = pnand %p4843_p11, %p5021_p5  ;;  %p4851_p2 = por %p4850_p1, %p4849_p0 }
 0x3c5   : > { %v1601_v46 = vmul.f32 0.03125, %v1427_v56  ;;  %7062 = vst [vmem:[#allocation72_spill] sm:$0xff] %v5862_v53  ;;  %v1539_v0 = vsel %vm6977_vm0, %v5862_v53, 0.0  ;;  %v5873_v30 = vmul.f32 %v5653_v19, %v1228_v28  ;;  %v1609_v6 = vmul.f32 0.03125, %v1451_v59 }
 0x3c6   : > { %p4845_p13 = pneg %p4844_p12 }
 0x3c7   : > { %1555 = vadd.xlane.f32.xlu1 %v1554_v31  ;;  %1558 = vadd.xlane.f32.xlu0 %v1557_v17  ;;  %v1969_v62 = vrot.slane %v1601_v46, %v5716_v60  ;;  %7063 = vst [vmem:[#allocation73_spill] sm:$0xff] %v5873_v30  ;;  %v2008_v28 = vrot.slane %v1609_v6, %v5716_v60 }
 0x3c8   : > { %v1457_v51 = vpop.xlane.xlu0 %1456  ;;  %v1430_v44 = vpop.xlane.xlu1 %1429  ;;  %p4852_p3 = pnand %p4851_p2, %p4845_p13 }
 0x3c9   : > { %v1602_v26 = vmul.f32 0.03125, %v1430_v44 }
 0x3cb   : > { %v1973_v56 = vrot.slane %v1602_v26, %v5719_v9  ;;  %1802 = vmax.xlane.f32.xlu1 %v1801_v34  ;;  %1808 = vmax.xlane.f32.xlu0 %v1807_v2  ;;  %v1611_v26 = vmul.f32 0.03125, %v1457_v51 }
 0x3cc   : > { %v1686_v31 = vpop.xlane.xlu0 %1685  ;;  %v1433_v17 = vpop.xlane.xlu1 %1432 }
 0x3cd   : > { %v1974_v44 = vsel %vm1922_vm1, %v1973_v56, %v1969_v62  ;;  %v1603_v20 = vmul.f32 0.03125, %v1433_v17  ;;  %v1536_v17 = vsel %vm6977_vm0, %v5873_v30, 0.0 }
 0x3cf   : > { %v1978_v46 = vrot.slane %v1603_v20, %v5742_v38  ;;  %1495 = vadd.xlane.f32.xlu1 %v1494_v13  ;;  %1540 = vadd.xlane.f32.xlu0 %v1539_v0  ;;  %v2017_v20 = vrot.slane %v1611_v26, %v5742_v38 }
 0x3d0   : > { %v1439_v34 = vpop.xlane.xlu0 %1438  ;;  %v1454_v2 = vpop.xlane.xlu1 %1453 }
 0x3d1   : > { %v1979_v62 = vsel %vm6954_vm12, %v1978_v46, %v1974_v44  ;;  %v1610_v56 = vmul.f32 0.03125, %v1454_v2  ;;  %v1605_v13 = vmul.f32 0.03125, %v1439_v34  ;;  %v1744_v2 = vsel %vm6977_vm0, %v5473_v10, -inf }
 0x3d3   : > { %v2012_v59 = vrot.slane %v1610_v56, %v5719_v9  ;;  %1537 = vadd.xlane.f32.xlu1 %v1536_v17  ;;  %1748 = vmax.xlane.f32.xlu0 %v1747_v35  ;;  %v1988_v35 = vrot.slane %v1605_v13, %v5746_v25  ;;  %v2372_v17 = vrot.slane %v1686_v31, %v5771_v54 }
 0x3d4   : > { %v1436_v51 = vpop.xlane.xlu1 %1435  ;;  %v5884_v0 = vpop.xlane.xlu0 %1501 }
 0x3d5   : > { %v2013_v44 = vsel %vm1922_vm1, %v2012_v59, %v2008_v28  ;;  %v1604_v46 = vmul.f32 0.03125, %v1436_v51 }
 0x3d6   : > { %v2018_v6 = vsel %vm6954_vm12, %v2017_v20, %v2013_v44  ;;  %v1563_v20 = vsel %vm6977_vm0, %v5538_v58, 0.0  ;;  %vm7066_vm12 = vcmask 1041409  }
 0x3d7   : > { %v1983_v56 = vrot.slane %v1604_v46, %v5765_v47  ;;  %1745 = vmax.xlane.f32.xlu1 %v1744_v2  ;;  %1790 = vmax.xlane.f32.xlu0 %v1789_v8  ;;  %v1560_v2 = vsel %vm6977_vm0, %v5542_v61, 0.0 }
 0x3d8   : > { %v1683_v26 = vpop.xlane.xlu1 %1682  ;;  %v1689_v34 = vpop.xlane.xlu0 %1688 }
 0x3d9   : > { %v1984_v28 = vsel %vm6953_vm13, %v1983_v56, %v1979_v62  ;;  %v2368_v59 = vrot.slane %v1683_v26, %v5725_v57  ;;  %v2377_v51 = vrot.slane %v1689_v34, %v5749_v55  ;;  %v1750_v56 = vsel %vm6977_vm0, %v5527_v4, -inf }
 0x3da   : > { %v1989_v8 = vsel %vm6978_vm14, %v1988_v35, %v1984_v28  ;;  %v1230_v26 = vunpack.c.h.bf16 %v5854_v41  ;;  %v1810_v28 = vsel %vm6977_vm0, %v5510_v23, -inf }
 0x3db   : > { %v2373_v13 = vsel %vm2321_vm8, %v2372_v17, %v2368_v59  ;;  %1787 = vmax.xlane.f32.xlu1 %v1786_v14  ;;  %1564 = vadd.xlane.f32.xlu0 %v1563_v20  ;;  %v1792_v59 = vsel %vm6977_vm0, %v5873_v30, -inf  ;;  %v1828_v30 = vsel %vm6977_vm0, %v5561_v37, -inf }
 0x3dc   : > { %v5905_v31 = vsel %vm2328_vm6, %v2377_v51, %v2373_v13  ;;  %v1460_v62 = vpop.xlane.xlu1 %1459  ;;  %v5907_v44 = vpop.xlane.xlu0 %1709  ;;  %v5925_v51 = vmul.f32 %v5653_v19, %v1230_v26  ;;  %v1813_v19 = vsel %vm6977_vm0, %v5513_v32, -inf }
 0x3dd   : > { %v1612_v46 = vmul.f32 0.03125, %v1460_v62 }
 0x3de   : > { %7064 = vst [vmem:[#allocation74_spill] sm:$0xff] %v5925_v51  ;;  %v1542_v13 = vsel %vm6977_vm0, %v5925_v51, 0.0 }
 0x3df   : > { %v2022_v35 = vrot.slane %v1612_v46, %v5765_v47  ;;  %1561 = vadd.xlane.f32.xlu1 %v1560_v2  ;;  %1751 = vmax.xlane.f32.xlu0 %v1750_v56  ;;  %v1798_v2 = vsel %vm6977_vm0, %v5925_v51, -inf }
 0x3e0   : > { %v1442_v14 = vpop.xlane.xlu0 %1441  ;;  %v5915_v34 = vpop.xlane.xlu1 %1498 }
 0x3e1   : > { %v5918_v17 = vsel %vm6953_vm13, %v2022_v35, %v2018_v6  ;;  %v1795_v6 = vsel %vm6977_vm0, %v5862_v53, -inf  ;;  %v1566_v35 = vsel %vm6977_vm0, %v5549_v40, 0.0  ;;  %vm7065_vm13 = vcmask 458112  }
 0x3e2   : > { %v1625_v27 = vmul.f32 0.03125, %v5915_v34 }
 0x3e3   : > { %1811 = vmax.xlane.f32.xlu1 %v1810_v28  ;;  %1793 = vmax.xlane.f32.xlu0 %v1792_v59  ;;  %v1569_v28 = vsel %vm6977_vm0, %v5551_v49, 0.0  ;;  %v1606_v59 = vmul.f32 0.03125, %v1442_v14 }
 0x3e4   : > { %v5927_v41 = vpop.xlane.xlu0 %1712  ;;  %v5929_v20 = vpop.xlane.xlu1 %1706  ;;  %v2086_v34 = vrot.slane %v1625_v27, %v5716_v60 }
 0x3e5   : > { %v1993_v51 = vrot.slane %v1606_v59, %v5762_v63 }
 0x3e7   : > { %1543 = vadd.xlane.f32.xlu1 %v1542_v13  ;;  %1796 = vmax.xlane.f32.xlu0 %v1795_v6  ;;  %v1994_v10 = vsel %vm1950_vm10, %v1993_v51, %v1989_v8  ;;  %v1581_v8 = vsel %vm6977_vm0, %v5563_v3, 0.0 }
 0x3e8   : > { %v1445_v62 = vpop.xlane.xlu0 %1444  ;;  %v1463_v46 = vpop.xlane.xlu1 %1462 }
 0x3e9   : > { %v1607_v13 = vmul.f32 0.03125, %v1445_v62  ;;  %v1819_v62 = vsel %vm6977_vm0, %v5538_v58, -inf  ;;  %v1822_v58 = vsel %vm6977_vm0, %v5549_v40, -inf }
 0x3eb   : > { %1814 = vmax.xlane.f32.xlu1 %v1813_v19  ;;  %1799 = vmax.xlane.f32.xlu0 %v1798_v2  ;;  %v1816_v19 = vsel %vm6977_vm0, %v5542_v61, -inf  ;;  %v1575_v2 = vsel %vm6977_vm0, %v5558_v15, 0.0  ;;  %v1998_v4 = vrot.slane %v1607_v13, %v5776_v7  ;;  %v1840_v61 = vsel %vm6977_vm0, %v5576_v42, -inf }
 0x3ec   : > { %v5939_v56 = vpop.xlane.xlu0 %1694  ;;  %v5941_v26 = vpop.xlane.xlu1 %1504 }
 0x3ed   : > { %v1999_v59 = vsel %vm7065_vm13, %v1998_v4, %v1994_v10  ;;  %v1572_v4 = vsel %vm6977_vm0, %v5561_v37, 0.0 }
 0x3ef   : > { %1567 = vadd.xlane.f32.xlu1 %v1566_v35  ;;  %1570 = vadd.xlane.f32.xlu0 %v1569_v28 }
 0x3f0   : > { %v5947_v6 = vpop.xlane.xlu0 %1757  ;;  %v5949_v53 = vpop.xlane.xlu1 %1691 }
 0x3f3   : > { %1817 = vmax.xlane.f32.xlu1 %v1816_v19  ;;  %1576 = vadd.xlane.f32.xlu0 %v1575_v2 }
 0x3f4   : > { %v1448_v14 = vpop.xlane.xlu0 %1447  ;;  %v1466_v35 = vpop.xlane.xlu1 %1465 }
 0x3f5   : > { %v1608_v28 = vmul.f32 0.03125, %v1448_v14 }
 0x3f7   : > { %v2003_v18 = vrot.slane %v1608_v28, %v5820_v24  ;;  %1820 = vmax.xlane.f32.xlu1 %v1819_v62  ;;  %1829 = vmax.xlane.f32.xlu0 %v1828_v30  ;;  %v1834_v28 = vsel %vm6977_vm0, %v5565_v21, -inf }
 0x3f8   : > { %v5964_v19 = vpop.xlane.xlu0 %1718  ;;  %v5966_v13 = vpop.xlane.xlu1 %1507 }
 0x3f9   : > { %v2004_v2 = vsel %vm1964_vm5, %v2003_v18, %v1999_v59  ;;  %v1831_v18 = vsel %vm6977_vm0, %v5558_v15, -inf  ;;  %v1613_v15 = vmul.f32 0.03125, %v1463_v46  ;;  %v1590_v46 = vsel %vm6977_vm0, %v5578_v29, 0.0 }
 0x3fa   : > { %v5971_v14 = vsel %vm7066_vm12, %v2004_v2, %v5837_v22  ;;  %v1825_v2 = vsel %vm6977_vm0, %v5551_v49, -inf  ;;  %vm7068_vm12 = vmmov %vm7065_vm13  ;;  %vm7069_vm13 = vcmask 1042434  }
 0x3fb   : > { %1823 = vmax.xlane.f32.xlu1 %v1822_v58  ;;  %1582 = vadd.xlane.f32.xlu0 %v1581_v8  ;;  %v1578_v58 = vsel %vm6977_vm0, %v5565_v21, 0.0  ;;  %v1587_v8 = vsel %vm6977_vm0, %v5567_v1, 0.0  ;;  %v1614_v21 = vmul.f32 0.03125, %v1466_v35 }
 0x3fc   : > { %v5977_v30 = vpop.xlane.xlu0 %1760  ;;  %v5979_v10 = vpop.xlane.xlu1 %1715 }
 0x3fd   : > { %v2032_v35 = vrot.slane %v1614_v21, %v5762_v63  ;;  %v1846_v21 = vsel %vm6977_vm0, %v5578_v29, -inf }
 0x3ff   : > { %1573 = vadd.xlane.f32.xlu1 %v1572_v4  ;;  %1832 = vmax.xlane.f32.xlu0 %v1831_v18 }
 0x400   : > { %v5985_v22 = vpop.xlane.xlu0 %1700  ;;  %v5987_v51 = vpop.xlane.xlu1 %1754 }
 0x403   : > { %1579 = vadd.xlane.f32.xlu1 %v1578_v58  ;;  %1835 = vmax.xlane.f32.xlu0 %v1834_v28  ;;  %v1584_v58 = vsel %vm6977_vm0, %v5576_v42, 0.0  ;;  %v1837_v28 = vsel %vm6977_vm0, %v5563_v3, -inf  ;;  %v7067_v3 = vmov 0.0  }
 0x404   : > { %v5993_v62 = vpop.xlane.xlu0 %1516  ;;  %v1469_v59 = vpop.xlane.xlu1 %1468 }
 0x405   : > { %v1615_v37 = vmul.f32 0.03125, %v1469_v59 }
 0x407   : > { %1826 = vmax.xlane.f32.xlu1 %v1825_v2  ;;  %1588 = vadd.xlane.f32.xlu0 %v1587_v8  ;;  %v4657_v2 = vld [vmem:[%s6882_s5] sm:$0xff]   ;;  %v2027_v8 = vrot.slane %v1613_v15, %v5746_v25  ;;  %v2037_v59 = vrot.slane %v1615_v37, %v5776_v7  ;;  %v4658_v15 = vld [vmem:[%s6882_s5 + $0x8] sm:$0xff]  }
 0x408   : > { %v5999_v4 = vpop.xlane.xlu0 %1724  ;;  %v6001_v18 = vpop.xlane.xlu1 %1510  ;;  %4489 = vmatpush3.bf16.msra.mxu0 %v4657_v2 }
 0x409   : > { %4490 = vmatprep.subr.bf16.mxu0 %v7067_v3  ;;  %v2028_v42 = vsel %vm6978_vm14, %v2027_v8, %v5918_v17  ;;  %v4659_v8 = vld [vmem:[%s6882_s5 + $0x10] sm:$0xff]  }
 0x40a   : > { %v2033_v37 = vsel %vm1950_vm10, %v2032_v35, %v2028_v42  ;;  %v2382_v42 = vrot.slane %v5949_v53, %v5791_v5  ;;  %v2387_v53 = vrot.slane %v5939_v56, %v5785_v36 }
 0x40b   : > { %1585 = vadd.xlane.f32.xlu1 %v1584_v58  ;;  %1838 = vmax.xlane.f32.xlu0 %v1837_v28 }
 0x40c   : > { %v6007_v49 = vpop.xlane.xlu0 %1766  ;;  %v1698_v40 = vpop.xlane.xlu1 %1697  ;;  %4491 = vmatpush3.bf16.msra.mxu0 %v4658_v15  ;;  %v4660_v15 = vld [vmem:[%s6882_s5 + $0x18] sm:$0xff]  }
 0x40d   : > { %4492 = vmatprep.subr.bf16.mxu0 %v7067_v3 }
 0x40f   : > { %1591 = vadd.xlane.f32.xlu1 %v1590_v46  ;;  %1841 = vmax.xlane.f32.xlu0 %v1840_v61  ;;  %v1843_v61 = vsel %vm6977_vm0, %v5567_v1, -inf  ;;  %v2038_v46 = vsel %vm7068_vm12, %v2037_v59, %v2033_v37  ;;  %vm7070_vm12 = vcmask 786112  }
 0x410   : > { %v6019_v58 = vpop.xlane.xlu0 %1477  ;;  %v1472_v28 = vpop.xlane.xlu1 %1471  ;;  %4493 = vmatpush3.bf16.msra.mxu0 %v4659_v8 }
 0x411   : > { %v1616_v32 = vmul.f32 0.03125, %v1472_v28  ;;  %4494 = vmatprep.subr.bf16.mxu0 %v7067_v3  ;;  %v1618_v39 = vmul.f32 0.03125, %v6019_v58  ;;  %v1626_v58 = vmul.f32 0.03125, %v5884_v0 }
 0x413   : > { %v2042_v2 = vrot.slane %v1616_v32, %v5820_v24  ;;  %1847 = vmax.xlane.f32.xlu1 %v1846_v21  ;;  %1844 = vmax.xlane.f32.xlu0 %v1843_v61  ;;  %v2407_v21 = vrot.slane %v5929_v20, %v5725_v57  ;;  %v2392_v61 = vrot.slane %v1698_v40, %v5807_v11  ;;  %v4661_v20 = vld [vmem:[%s6882_s5 + $0x20] sm:$0xff]  }
 0x414   : > { %v6034_v28 = vpop.xlane.xlu0 %1480  ;;  %v6036_v23 = vpop.xlane.xlu1 %1513  ;;  %4495 = vmatpush3.bf16.msra.mxu0 %v4660_v15  ;;  %v2416_v40 = vrot.slane %v5927_v41, %v5749_v55  ;;  %v2051_v45 = vrot.slane %v1618_v39, %v5719_v9  ;;  %v1629_v39 = vmul.f32 0.03125, %v6001_v18  ;;  %v2090_v0 = vrot.slane %v1626_v58, %v5719_v9 }
 0x415   : > { %v2043_v17 = vsel %vm1964_vm5, %v2042_v2, %v2038_v46  ;;  %v2411_v46 = vrot.slane %v5907_v44, %v5771_v54  ;;  %4496 = vmatprep.subr.bf16.mxu0 %v7067_v3  ;;  %v2397_v44 = vrot.slane %v5985_v22, %v5825_v33  ;;  %v1619_v48 = vmul.f32 0.03125, %v6034_v28 }
 0x416   : > { %v6045_v32 = vsel %vm7069_vm13, %v2043_v17, %v5971_v14  ;;  %v2383_v14 = vsel %vm7070_vm12, %v2382_v42, %v5905_v31  ;;  %vm7071_vm13 = vcmask 851712   ;;  %v2421_v17 = vrot.slane %v5979_v10, %v5791_v5  ;;  %v4662_v10 = vld [vmem:[%s6882_s5 + $0x28] sm:$0xff]  }
 0x417   : > { %v2388_v31 = vsel %vm7071_vm13, %v2387_v53, %v2383_v14  ;;  %v2412_v56 = vsel %vm2321_vm8, %v2411_v46, %v2407_v21  ;;  %v2426_v53 = vrot.slane %v5964_v19, %v5785_v36  ;;  %vm7072_vm13 = vcmask 1041409  }
 0x418   : > { %v6049_v35 = vpop.xlane.xlu0 %1483  ;;  %v1722_v59 = vpop.xlane.xlu1 %1721  ;;  %v2393_v8 = vsel %vm2349_vm2, %v2392_v61, %v2388_v31  ;;  %4497 = vmatpush3.bf16.msra.mxu0 %v4661_v20  ;;  %v2417_v41 = vsel %vm2328_vm6, %v2416_v40, %v2412_v56  ;;  %v4663_v31 = vld [vmem:[%s6882_s5 + $0x30] sm:$0xff]   ;;  %v2436_v19 = vrot.slane %v5999_v4, %v5825_v33  ;;  %v2056_v28 = vrot.slane %v1619_v48, %v5742_v38 }
 0x419   : > { %4498 = vmatprep.subr.bf16.mxu0 %v7067_v3  ;;  %v2398_v21 = vsel %vm2356_vm3, %v2397_v44, %v2393_v8  ;;  %v2422_v14 = vsel %vm7070_vm12, %v2421_v17, %v2417_v41  ;;  %v2431_v22 = vrot.slane %v1722_v59, %v5807_v11  ;;  %vm7073_vm12 = vcmask 851712  }
 0x41a   : > { %v2427_v59 = vsel %vm7073_vm12, %v2426_v53, %v2422_v14  ;;  %vm7082_vm12 = vcmask 195712   ;;  %v2105_v27 = vrot.slane %v1629_v39, %v5746_v25 }
 0x41c   : > { %v6062_v37 = vpop.xlane.xlu1 %1763  ;;  %v6064_v2 = vpop.xlane.xlu0 %1522  ;;  %4499 = vmatpush3.bf16.msra.mxu0 %v4662_v10 }
 0x41d   : > { %4500 = vmatprep.subr.bf16.mxu0 %v7067_v3 }
 0x420   : > { %v1704_v42 = vpop.xlane.xlu1 %1703  ;;  %v6081_v15 = vpop.xlane.xlu0 %1733  ;;  %4501 = vmatpush3.bf16.msra.mxu0 %v4663_v31 }
 0x421   : > { %v2402_v29 = vrot.slane %v1704_v42, %v5828_v16  ;;  %4502 = vmatprep.subr.bf16.mxu0 %v7067_v3 }
 0x423   : > { %v2403_v61 = vsel %vm2363_vm9, %v2402_v29, %v2398_v21  ;;  %v2432_v29 = vsel %vm2349_vm2, %v2431_v22, %v2427_v59 }
 0x424   : > { %v2638_v46 = vsel %vm7072_vm13, %v2403_v61, %v5847_v50  ;;  %v6097_v20 = vpop.xlane.xlu1 %1519  ;;  %v1487_v40 = vpop.xlane.xlu0 %1486  ;;  %v4664_v50 = vld [vmem:[%s6882_s5 + $0x38] sm:$0xff]   ;;  %v2437_v44 = vsel %vm2356_vm3, %v2436_v19, %v2432_v29  ;;  %vm7074_vm13 = vcmask 1042434  }
 0x425   : > { %4503 = vmatpush3.bf16.msra.mxu0 %v4664_v50 }
 0x428   : > { %v1728_v56 = vpop.xlane.xlu1 %1727  ;;  %v6107_v17 = vpop.xlane.xlu0 %1528 }
 0x429   : > { %v2441_v8 = vrot.slane %v1728_v56, %v5828_v16 }
 0x42b   : > { %v2442_v42 = vsel %vm2363_vm9, %v2441_v8, %v2437_v44 }
 0x42c   : > { %v6117_v41 = vsel %vm7074_vm13, %v2442_v42, %v2638_v46  ;;  %v6119_v4 = vpop.xlane.xlu1 %1769  ;;  %v6121_v21 = vpop.xlane.xlu0 %1549  ;;  %vm7083_vm13 = vcmask 261312  }
 0x42d   : > { %7075 = vst [vmem:[#allocation75_spill] sm:$0xff] %v6117_v41  ;;  %v1620_v41 = vmul.f32 0.03125, %v6049_v35  ;;  %vm7084_vm0 = vmmov %vm7083_vm13 }
 0x430   : > { %v6123_v10 = vpop.xlane.xlu1 %1772  ;;  %v6125_v14 = vpop.xlane.xlu0 %1736 }
 0x434   : > { %v6127_v22 = vpop.xlane.xlu1 %1775  ;;  %v1490_v61 = vpop.xlane.xlu0 %1489 }
 0x435   : > { %v1622_v18 = vmul.f32 0.03125, %v1490_v61 }
 0x438   : > { %v1475_v3 = vpop.xlane.xlu1 %1474  ;;  %v6129_v53 = vpop.xlane.xlu0 %1531 }
 0x439   : > { %v1617_v44 = vmul.f32 0.03125, %v1475_v3  ;;  %v1627_v3 = vmul.f32 0.03125, %v5941_v26  ;;  %v1630_v26 = vmul.f32 0.03125, %v6036_v23 }
 0x43b   : > { %v2047_v43 = vrot.slane %v1617_v44, %v5716_v60  ;;  %v1628_v44 = vmul.f32 0.03125, %v5966_v13 }
 0x43c   : > { %v6131_v31 = vpop.xlane.xlu1 %1525  ;;  %v6133_v59 = vpop.xlane.xlu0 %1781 }
 0x43d   : > { %7076 = vst [vmem:[#allocation76_spill] sm:$0xff] %v6133_v59  ;;  %v2100_v48 = vrot.slane %v1628_v44, %v5765_v47 }
 0x440   : > { %v6135_v46 = vpop.xlane.xlu1 %1730  ;;  %v1493_v29 = vpop.xlane.xlu0 %1492 }
 0x441   : > { %v1623_v13 = vmul.f32 0.03125, %v1493_v29  ;;  %v1631_v29 = vmul.f32 0.03125, %v5993_v62 }
 0x443   : > { %v2076_v61 = vrot.slane %v1623_v13, %v5776_v7  ;;  %v2115_v62 = vrot.slane %v1631_v29, %v5776_v7 }
 0x444   : > { %v6137_v19 = vpop.xlane.xlu1 %1546  ;;  %v6139_v56 = vpop.xlane.xlu0 %1534 }
 0x448   : > { %v6141_v50 = vpop.xlane.xlu1 %1552  ;;  %v6143_v8 = vpop.xlane.xlu0 %1742 }
 0x449   : > { %7077 = vst [vmem:[#allocation77_spill] sm:$0xff] %v6143_v8 }
 0x44c   : > { %v6145_v42 = vpop.xlane.xlu1 %1739  ;;  %v6147_v1 = vpop.xlane.xlu0 %1784 }
 0x44d   : > { %7078 = vst [vmem:[#allocation78_spill] sm:$0xff] %v6147_v1  ;;  %v2052_v1 = vsel %vm1922_vm1, %v2051_v45, %v2047_v43  ;;  %v2095_v45 = vrot.slane %v1627_v3, %v5742_v38  ;;  %v2061_v43 = vrot.slane %v1620_v41, %v5765_v47  ;;  %v1632_v41 = vmul.f32 0.03125, %v6097_v20 }
 0x44e   : > { %v2057_v35 = vsel %vm7082_vm12, %v2056_v28, %v2052_v1  ;;  %v2091_v1 = vsel %vm1922_vm1, %v2090_v0, %v2086_v34 }
 0x44f   : > { %v2062_v23 = vsel %vm7083_vm13, %v2061_v43, %v2057_v35  ;;  %v2096_v58 = vsel %vm7082_vm12, %v2095_v45, %v2091_v1  ;;  %v2120_v45 = vrot.slane %v1632_v41, %v5820_v24  ;;  %vm7087_vm12 = vcmask 1043459  }
 0x450   : > { %v6152_v12 = vpop.xlane.xlu1 %1778  ;;  %v6154_v52 = vpop.xlane.xlu0 %1805  ;;  %v2101_v44 = vsel %vm7084_vm0, %v2100_v48, %v2096_v58  ;;  %vm7085_vm0 = vcmask 458112  }
 0x451   : > { %7079 = vst [vmem:[#allocation79_spill] sm:$0xff] %v6152_v12  ;;  %7080 = vst [vmem:[#allocation80_spill] sm:$0xff] %v6154_v52  ;;  %v1621_v52 = vmul.f32 0.03125, %v1487_v40  ;;  %v2110_v40 = vrot.slane %v1630_v26, %v5762_v63  ;;  %v2106_v34 = vsel %vm6978_vm14, %v2105_v27, %v2101_v44  ;;  %v2071_v26 = vrot.slane %v1622_v18, %v5762_v63 }
 0x452   : > { %vm7086_vm13 = vmmov %vm7085_vm0 }
 0x453   : > { %v2066_v3 = vrot.slane %v1621_v52, %v5746_v25  ;;  %v2111_v52 = vsel %vm1950_vm10, %v2110_v40, %v2106_v34 }
 0x454   : > { %v6164_v59 = vpop.xlane.xlu1 %1555  ;;  %v6166_v8 = vpop.xlane.xlu0 %1558  ;;  %v2116_v27 = vsel %vm7086_vm13, %v2115_v62, %v2111_v52  ;;  %v2489_v62 = vrot.slane %v5947_v6, %v5771_v54  ;;  %v1635_v6 = vmul.f32 0.03125, %v6107_v17  ;;  %v2450_v17 = vrot.slane %v6081_v15, %v5771_v54 }
 0x455   : > { %7081 = vst [vmem:[#allocation81_spill] sm:$0xff] %v6166_v8  ;;  %v2067_v28 = vsel %vm6978_vm14, %v2066_v3, %v2062_v23  ;;  %v2121_v1 = vsel %vm1964_vm5, %v2120_v45, %v2116_v27  ;;  %vm7088_vm14 = vcmask 1044484   ;;  %v2460_v15 = vrot.slane %v6145_v42, %v5791_v5 }
 0x456   : > { %v2072_v43 = vsel %vm1950_vm10, %v2071_v26, %v2067_v28  ;;  %vm7093_vm13 = vcmask 195712  }
 0x457   : > { %v2077_v48 = vsel %vm7085_vm0, %v2076_v61, %v2072_v43  ;;  %vm7092_vm0 = vcmask 851712  }
 0x458   : > { %v6176_v12 = vpop.xlane.xlu1 %1802  ;;  %v6178_v8 = vpop.xlane.xlu0 %1808 }
 0x45c   : > { %v1496_v39 = vpop.xlane.xlu1 %1495  ;;  %v6191_v35 = vpop.xlane.xlu0 %1540 }
 0x45d   : > { %v1624_v20 = vmul.f32 0.03125, %v1496_v39 }
 0x45f   : > { %v2081_v0 = vrot.slane %v1624_v20, %v5820_v24  ;;  %v2485_v20 = vrot.slane %v5987_v51, %v5725_v57  ;;  %v2494_v51 = vrot.slane %v5977_v30, %v5749_v55  ;;  %v2504_v30 = vrot.slane %v6007_v49, %v5785_v36 }
 0x460   : > { %v6201_v13 = vpop.xlane.xlu1 %1537  ;;  %v6203_v23 = vpop.xlane.xlu0 %1748  ;;  %v1643_v49 = vmul.f32 0.03125, %v6141_v50  ;;  %v2519_v50 = vrot.slane %v6127_v22, %v5828_v16 }
 0x461   : > { %v2082_v18 = vsel %vm1964_vm5, %v2081_v0, %v2077_v48  ;;  %v2490_v43 = vsel %vm2321_vm8, %v2489_v62, %v2485_v20  ;;  %v2499_v0 = vrot.slane %v6062_v37, %v5791_v5  ;;  %v1634_v48 = vmul.f32 0.03125, %v6131_v31 }
 0x462   : > { %v2241_v40 = vsel %vm7087_vm12, %v2082_v18, %v6045_v32  ;;  %v2446_v37 = vrot.slane %v6135_v46, %v5725_v57  ;;  %v2514_v46 = vrot.slane %v6123_v10, %v5825_v33 }
 0x463   : > { %v6211_v41 = vsel %vm7088_vm14, %v2121_v1, %v2241_v40  ;;  %v1633_v1 = vmul.f32 0.03125, %v6064_v2  ;;  %v2495_v40 = vsel %vm2328_vm6, %v2494_v51, %v2490_v43  ;;  %vm7091_vm14 = vcmask 786112  }
 0x464   : > { %7089 = vst [vmem:[#allocation82_spill] sm:$0xff] %v6211_v41  ;;  %v6213_v3 = vpop.xlane.xlu1 %1745  ;;  %v6215_v58 = vpop.xlane.xlu0 %1790  ;;  %v2500_v20 = vsel %vm7091_vm14, %v2499_v0, %v2495_v40  ;;  %v2129_v62 = vrot.slane %v1634_v48, %v5719_v9  ;;  %v2509_v43 = vrot.slane %v6119_v4, %v5807_v11  ;;  %v1642_v0 = vmul.f32 0.03125, %v6121_v21  ;;  %vm7094_vm12 = vmmov %vm7091_vm14 }
 0x465   : > { %v2125_v2 = vrot.slane %v1633_v1, %v5716_v60  ;;  %v1641_v48 = vmul.f32 0.03125, %v6137_v19  ;;  %v2134_v51 = vrot.slane %v1635_v6, %v5742_v38  ;;  %v2505_v40 = vsel %vm7092_vm0, %v2504_v30, %v2500_v20  ;;  %vm7100_vm0 = vmmov %vm7093_vm13 }
 0x466   : > { %v1636_v1 = vmul.f32 0.03125, %v6129_v53  ;;  %v2510_v19 = vsel %vm2349_vm2, %v2509_v43, %v2505_v40  ;;  %v2455_v6 = vrot.slane %v6125_v14, %v5749_v55  ;;  %v1644_v53 = vmul.f32 0.03125, %v6164_v59  ;;  %v7095_v59 = vld [vmem:[#allocation79_spill] sm:$0xff] }
 0x467   : > { %v2130_v4 = vsel %vm1922_vm1, %v2129_v62, %v2125_v2  ;;  %v2168_v20 = vrot.slane %v1642_v0, %v5719_v9  ;;  %v2515_v62 = vsel %vm2356_vm3, %v2514_v46, %v2510_v19  ;;  %v2164_v42 = vrot.slane %v1641_v48, %v5716_v60  ;;  %v7096_v0 = vld [vmem:[#allocation81_spill] sm:$0xff] }
 0x468   : > { %v6217_v29 = vpop.xlane.xlu1 %1787  ;;  %v6219_v44 = vpop.xlane.xlu0 %1564  ;;  %v1637_v30 = vmul.f32 0.03125, %v6139_v56  ;;  %v2173_v2 = vrot.slane %v1643_v49, %v5742_v38  ;;  %v2139_v14 = vrot.slane %v1636_v1, %v5765_v47  ;;  %v1645_v40 = vmul.f32 0.03125, %v7096_v0  ;;  %v7097_v56 = vld [vmem:[#allocation77_spill] sm:$0xff] }
 0x469   : > { %v2465_v49 = vrot.slane %v7097_v56, %v5785_v36  ;;  %v1638_v1 = vmul.f32 0.03125, %v6201_v13  ;;  %v2169_v19 = vsel %vm1922_vm1, %v2168_v20, %v2164_v42  ;;  %vm7099_vm14 = vcmask 261312  }
 0x46a   : > { %v2183_v56 = vrot.slane %v1645_v40, %v5746_v25  ;;  %v2563_v20 = vrot.slane %v6176_v12, %v5725_v57  ;;  %v2538_v40 = vrot.slane %v6217_v29, %v5791_v5 }
 0x46c   : > { %v6221_v28 = vpop.xlane.xlu1 %1561  ;;  %v6223_v61 = vpop.xlane.xlu0 %1751 }
 0x46d   : > { %v1646_v42 = vmul.f32 0.03125, %v6221_v28  ;;  %v2480_v12 = vrot.slane %v6223_v61, %v5828_v16 }
 0x46f   : > { %v2188_v29 = vrot.slane %v1646_v42, %v5762_v63 }
 0x470   : > { %v6225_v39 = vpop.xlane.xlu1 %1811  ;;  %v6227_v34 = vpop.xlane.xlu0 %1793 }
 0x474   : > { %v6229_v32 = vpop.xlane.xlu1 %1543  ;;  %v6231_v26 = vpop.xlane.xlu0 %1796 }
 0x478   : > { %v6235_v52 = vpop.xlane.xlu1 %1814  ;;  %v6237_v45 = vpop.xlane.xlu0 %1799 }
 0x479   : > { %7090 = vst [vmem:[#allocation83_spill] sm:$0xff] %v6237_v45  ;;  %v2451_v45 = vsel %vm2321_vm8, %v2450_v17, %v2446_v37  ;;  %v2135_v37 = vsel %vm7093_vm13, %v2134_v51, %v2130_v4  ;;  %v2524_v17 = vrot.slane %v7095_v59, %v5725_v57  ;;  %v6308_v51 = vsel %vm2363_vm9, %v2519_v50, %v2515_v62  ;;  %v7098_v4 = vld [vmem:[#allocation76_spill] sm:$0xff]  ;;  %v7101_v59 = vld [vmem:[#allocation78_spill] sm:$0xff] }
 0x47a   : > { %v2456_v43 = vsel %vm2328_vm6, %v2455_v6, %v2451_v45  ;;  %v2178_v45 = vrot.slane %v1644_v53, %v5765_v47  ;;  %v2140_v6 = vsel %vm7099_vm14, %v2139_v14, %v2135_v37  ;;  %v2144_v50 = vrot.slane %v1637_v30, %v5746_v25  ;;  %v7103_v30 = vld [vmem:[#allocation80_spill] sm:$0xff] }
 0x47b   : > { %v2461_v22 = vsel %vm7094_vm12, %v2460_v15, %v2456_v43  ;;  %v2528_v15 = vrot.slane %v7098_v4, %v5771_v54  ;;  %v2470_v43 = vrot.slane %v6213_v3, %v5807_v11  ;;  %v2174_v62 = vsel %vm7100_vm0, %v2173_v2, %v2169_v19  ;;  %vm7104_vm12 = vmmov %vm7099_vm14 }
 0x47c   : > { %v6245_v27 = vpop.xlane.xlu1 %1567  ;;  %v6247_v18 = vpop.xlane.xlu0 %1570  ;;  %v2533_v0 = vrot.slane %v7101_v59, %v5749_v55  ;;  %vm7102_vm13 = vcmask 851712   ;;  %v2567_v2 = vrot.slane %v7103_v30, %v5771_v54  ;;  %v2179_v14 = vsel %vm7104_vm12, %v2178_v45, %v2174_v62 }
 0x47d   : > { %v2466_v53 = vsel %vm7102_vm13, %v2465_v49, %v2461_v22  ;;  %v2529_v13 = vsel %vm2321_vm8, %v2528_v15, %v2524_v17  ;;  %v1639_v4 = vmul.f32 0.03125, %v6191_v35  ;;  %v2149_v22 = vrot.slane %v1638_v1, %v5762_v63 }
 0x47e   : > { %v2471_v17 = vsel %vm2349_vm2, %v2470_v43, %v2466_v53  ;;  %vm7105_vm14 = vcmask 326912   ;;  %v2572_v15 = vrot.slane %v6178_v8, %v5749_v55  ;;  %v2475_v45 = vrot.slane %v6203_v23, %v5825_v33 }
 0x47f   : > { %v2145_v49 = vsel %vm7105_vm14, %v2144_v50, %v2140_v6  ;;  %v2534_v35 = vsel %vm2328_vm6, %v2533_v0, %v2529_v13  ;;  %vm7106_vm0 = vmmov %vm7105_vm14  ;;  %v2568_v19 = vsel %vm2321_vm8, %v2567_v2, %v2563_v20  ;;  %v1649_v43 = vmul.f32 0.03125, %v6247_v18 }
 0x480   : > { %v6258_v31 = vpop.xlane.xlu1 %1817  ;;  %v6260_v41 = vpop.xlane.xlu0 %1576  ;;  %v2184_v1 = vsel %vm7106_vm0, %v2183_v56, %v2179_v14  ;;  %v2154_v6 = vrot.slane %v1639_v4, %v5776_v7  ;;  %v2150_v8 = vsel %vm1950_vm10, %v2149_v22, %v2145_v49  ;;  %v1647_v50 = vmul.f32 0.03125, %v6219_v44  ;;  %v7109_v22 = vld [vmem:[#allocation75_spill] sm:$0xff] }
 0x481   : > { %v2476_v23 = vsel %vm2356_vm3, %v2475_v45, %v2471_v17  ;;  %vm7107_vm13 = vcmask 786112   ;;  %v2573_v18 = vsel %vm2328_vm6, %v2572_v15, %v2568_v19  ;;  %v2543_v56 = vrot.slane %v6215_v58, %v5785_v36 }
 0x482   : > { %v2539_v59 = vsel %vm7107_vm13, %v2538_v40, %v2534_v35  ;;  %v2481_v0 = vsel %vm2363_vm9, %v2480_v12, %v2476_v23  ;;  %v2577_v20 = vrot.slane %v6225_v39, %v5791_v5  ;;  %v1651_v42 = vmul.f32 0.03125, %v6260_v41 }
 0x483   : > { %v2189_v44 = vsel %vm1950_vm10, %v2188_v29, %v2184_v1  ;;  %vm7108_vm12 = vcmask 458112   ;;  %v2193_v4 = vrot.slane %v1647_v50, %v5776_v7  ;;  %vm7110_vm14 = vcmask 1043459  }
 0x484   : > { %v6281_v21 = vpop.xlane.xlu1 %1820  ;;  %v6283_v10 = vpop.xlane.xlu0 %1829  ;;  %v2155_v30 = vsel %vm7108_vm12, %v2154_v6, %v2150_v8  ;;  %v2640_v58 = vsel %vm7110_vm14, %v2481_v0, %v7109_v22  ;;  %vm7111_vm0 = vcmask 851712   ;;  %v1640_v17 = vmul.f32 0.03125, %v6229_v32 }
 0x485   : > { %v2544_v39 = vsel %vm7111_vm0, %v2543_v56, %v2539_v59  ;;  %v2578_v12 = vsel %vm7107_vm13, %v2577_v20, %v2573_v18  ;;  %v2212_v49 = vrot.slane %v1651_v42, %v5742_v38  ;;  %v1648_v32 = vmul.f32 0.03125, %v6245_v27  ;;  %vm7115_vm14 = vmmov %vm7111_vm0 }
 0x486   : > { %v2159_v19 = vrot.slane %v1640_v17, %v5820_v24  ;;  %v2592_v27 = vrot.slane %v6281_v21, %v5825_v33  ;;  %vm7116_vm0 = vcmask 326912  }
 0x487   : > { %v2198_v8 = vrot.slane %v1648_v32, %v5820_v24 }
 0x488   : > { %v6303_v46 = vpop.xlane.xlu1 %1823  ;;  %v6305_v48 = vpop.xlane.xlu0 %1582  ;;  %v2160_v42 = vsel %vm1964_vm5, %v2159_v19, %v2155_v30 }
 0x489   : > { %v1653_v15 = vmul.f32 0.03125, %v6305_v48 }
 0x48c   : > { %v1574_v37 = vpop.xlane.xlu1 %1573  ;;  %v6330_v3 = vpop.xlane.xlu0 %1832 }
 0x48d   : > { %v1650_v28 = vmul.f32 0.03125, %v1574_v37  ;;  %v2548_v37 = vrot.slane %v6227_v34, %v5807_v11  ;;  %v2606_v34 = vrot.slane %v6283_v10, %v5771_v54  ;;  %v2611_v1 = vrot.slane %v6330_v3, %v5749_v55  ;;  %v7114_v3 = vld [vmem:[#allocation83_spill] sm:$0xff] }
 0x48e   : > { %v2558_v6 = vrot.slane %v7114_v3, %v5828_v16 }
 0x48f   : > { %v2207_v53 = vrot.slane %v1650_v28, %v5719_v9  ;;  %v2203_v9 = vrot.slane %v1649_v43, %v5716_v60  ;;  %v2194_v28 = vsel %vm7108_vm12, %v2193_v4, %v2189_v44  ;;  %v2549_v45 = vsel %vm2349_vm2, %v2548_v37, %v2544_v39  ;;  %v7121_v39 = vld [vmem:[#allocation82_spill] sm:$0xff] }
 0x490   : > { %v1580_v61 = vpop.xlane.xlu1 %1579  ;;  %v6352_v62 = vpop.xlane.xlu0 %1835  ;;  %v2222_v43 = vrot.slane %v1653_v15, %v5746_v25  ;;  %v2199_v44 = vsel %vm1964_vm5, %v2198_v8, %v2194_v28  ;;  %v4214_v28 = vld [vmem:[%s6883_s6] ss:$0 sm:$0xff] }
 0x491   : > { %v1652_v13 = vmul.f32 0.03125, %v1580_v61  ;;  %v2208_v40 = vsel %vm1922_vm1, %v2207_v53, %v2203_v9  ;;  %vm7112_vm1 = vcmask 195712   ;;  %v2616_v21 = vrot.slane %v6352_v62, %v5791_v5 }
 0x492   : > { %v2213_v38 = vsel %vm7112_vm1, %v2212_v49, %v2208_v40  ;;  %vm7122_vm1 = vcmask 1045509  }
 0x493   : > { %v2217_v60 = vrot.slane %v1652_v13, %v5765_v47  ;;  %v2582_v47 = vrot.slane %v6235_v52, %v5785_v36 }
 0x494   : > { %v1827_v2 = vpop.xlane.xlu1 %1826  ;;  %v1589_v14 = vpop.xlane.xlu0 %1588 }
 0x495   : > { %v2602_v41 = vrot.slane %v1827_v2, %v5725_v57  ;;  %v2553_v57 = vrot.slane %v6231_v26, %v5825_v33  ;;  %v2587_v26 = vrot.slane %v6258_v31, %v5807_v11  ;;  %v1655_v61 = vmul.f32 0.03125, %v1589_v14 }
 0x496   : > { %v2597_v31 = vrot.slane %v6303_v46, %v5828_v16  ;;  %v2583_v25 = vsel %vm7115_vm14, %v2582_v47, %v2578_v12  ;;  %v7128_v47 = vld [vmem:[#allocation5_spill] sm:$0xff] }
 0x497   : > { %v2607_v54 = vsel %vm2321_vm8, %v2606_v34, %v2602_v41  ;;  %vm7113_vm8 = vcmask 261312   ;;  %v2588_v53 = vsel %vm2349_vm2, %v2587_v26, %v2583_v25  ;;  %v2554_v56 = vsel %vm2356_vm3, %v2553_v57, %v2549_v45 }
 0x498   : > { %v1586_v10 = vpop.xlane.xlu1 %1585  ;;  %v1839_v35 = vpop.xlane.xlu0 %1838  ;;  %v2218_v29 = vsel %vm7113_vm8, %v2217_v60, %v2213_v38  ;;  %v2612_v52 = vsel %vm2328_vm6, %v2611_v1, %v2607_v54  ;;  %vm7117_vm6 = vmmov %vm7107_vm13  ;;  %v2593_v5 = vsel %vm2356_vm3, %v2592_v27, %v2588_v53  ;;  %v2232_v62 = vrot.slane %v1655_v61, %v5776_v7  ;;  %v7129_v27 = vld [vmem:[#allocation10_spill] sm:$0xff] }
 0x499   : > { %v1654_v48 = vmul.f32 0.03125, %v1586_v10  ;;  %v2223_v59 = vsel %vm7116_vm0, %v2222_v43, %v2218_v29  ;;  %v2621_v0 = vrot.slane %v1839_v35, %v5785_v36  ;;  %v2617_v18 = vsel %vm7117_vm6, %v2616_v21, %v2612_v52  ;;  %vm7119_vm13 = vmmov %vm7108_vm12 }
 0x49a   : > { %v2559_v36 = vsel %vm2363_vm9, %v2558_v6, %v2554_v56  ;;  %v2598_v37 = vsel %vm2363_vm9, %v2597_v31, %v2593_v5  ;;  %vm7120_vm12 = vcmask 1044484   ;;  %v2243_v41 = vsel %vm7122_vm1, %v2160_v42, %v7121_v39  ;;  %vm7123_vm8 = vmmov %vm7122_vm1 }
 0x49b   : > { %v2227_v55 = vrot.slane %v1654_v48, %v5762_v63  ;;  %vm7124_vm0 = vcmask 1046534   ;;  %v2838_v1 = vsub.s32 2, %v7128_v47  ;;  %v2978_v19 = vsub.s32 6, %v7128_v47 }
 0x49c   : > { %v1592_v50 = vpop.xlane.xlu1 %1591  ;;  %v1842_v23 = vpop.xlane.xlu0 %1841  ;;  %v2244_v40 = vsel %vm7124_vm0, %v2199_v44, %v2243_v41  ;;  %vm7125_vm6 = vmmov %vm7124_vm0  ;;  %v2908_v43 = vsub.s32 4, %v7128_v47  ;;  %v2873_v61 = vsub.s32 3, %v7128_v47  ;;  %v3013_v3 = vsub.s32 7, %v7128_v47 }
 0x49d   : > { %v1656_v63 = vmul.f32 0.03125, %v1592_v50  ;;  %v2228_v13 = vsel %vm1950_vm10, %v2227_v55, %v2223_v59  ;;  %v2626_v46 = vrot.slane %v1842_v23, %v5807_v11  ;;  %vm7118_vm10 = vmmov %vm7115_vm14  ;;  %vm2646_vm14 = vcmask 523264   ;;  %v7130_v59 = vld [vmem:[#allocation25_spill] sm:$0xff] }
 0x49e   : > { %v2622_v11 = vsel %vm7118_vm10, %v2621_v0, %v2617_v18  ;;  %v2233_v14 = vsel %vm7119_vm13, %v2232_v62, %v2228_v13  ;;  %vm7126_vm10 = vcmask 1047559   ;;  %v6458_v8 = vsub.s32 1, %v7128_v47 }
 0x49f   : > { %v2237_v20 = vrot.slane %v1656_v63, %v5820_v24  ;;  %v2641_v24 = vsel %vm7120_vm12, %v6308_v51, %v2640_v58  ;;  %v2627_v22 = vsel %vm2349_vm2, %v2626_v46, %v2622_v11  ;;  %vm7127_vm13 = vmmov %vm7126_vm10  ;;  %v2943_v21 = vsub.s32 5, %v7128_v47  ;;  %v7131_v63 = vld [vmem:[#allocation19_spill] sm:$0xff]  ;;  %v4770_v47 = vld [vmem:[%s6886_s9 + $0x1f0] ss:$8 sps:$4 sm:$0xff]  }
 0x4a0   : > { %v1848_v9 = vpop.xlane.xlu1 %1847  ;;  %v1845_v2 = vpop.xlane.xlu0 %1844  ;;  %v2642_v17 = vsel %vm7123_vm8, %v2559_v36, %v2641_v24  ;;  %v4910_v56 = vmov 1.0   ;;  %v7134_v36 = vld [vmem:[#allocation43_spill] sm:$0xff]  ;;  %v7137_v24 = vld [vmem:[#allocation13_spill] sm:$0xff] }
 0x4a1   : > { %v2636_v4 = vrot.slane %v1848_v9, %v5828_v16  ;;  %v2631_v7 = vrot.slane %v1845_v2, %v5825_v33  ;;  %v2238_v30 = vsel %vm1964_vm5, %v2237_v20, %v2233_v14  ;;  %v2643_v16 = vsel %vm7125_vm6, %v2598_v37, %v2642_v17  ;;  %4224 = vmatprep.mubr.msk.f32.mxu1 %vm5154_vm4, %v4910_v56  ;;  %v7135_v37 = vld [vmem:[#allocation39_spill] sm:$0xff]  ;;  %v7138_v17 = vld [vmem:[#allocation58_spill] sm:$0xff] }
 0x4a2   : > { %v2245_v51 = vsel %vm7126_vm10, %v2238_v30, %v2244_v40  ;;  %v7139_v40 = vld [vmem:[#allocation47_spill] sm:$0xff]  ;;  %vm7198_vm4 = vcmask 261120  }
 0x4a3   : > { %v2632_v34 = vsel %vm2356_vm3, %v2631_v7, %v2627_v22 }
 0x4a4   : > { %v2637_v33 = vsel %vm2363_vm9, %v2636_v4, %v2632_v34  ;;  %v7136_v4 = vld [vmem:[#allocation11_spill] sm:$0xff] }
 0x4a5   : > { %v2644_v58 = vsel %vm7127_vm13, %v2637_v33, %v2643_v16 }
 0x4a6   : > { %v2647_v60 = vsel %vm2646_vm14, %v2245_v51, %v2644_v58 }
 0x4a7   : > { %v2648_v12 = vpack.c.bf16 %v2647_v60, %v2647_v60  ;;  %v7140_v60 = vld [vmem:[#allocation21_spill] sm:$0xff] }
 0x4a9   : > { %4505 = vmatmul.mubr.bf16.vlgmr.msra.gmra.mrb[16].mxu0 %v2648_v12 }
 0x4aa   : > { %4226 = vmatprep.mubr.msk.f32.mxu0 %vm5252_vm11, %v4910_v56 }
 0x57c   : > { %v2754_v49 = vpop.f32.mrb[16].mxu0 }
 0x57d   : > { %v2755_v15 = vadd.f32 %v4214_v28, %v2754_v49  ;;  %v4506_v45 = vpop.f32.mrb[17].mxu0  ;;  %v7141_v28 = vld [vmem:[#allocation27_spill] sm:$0xff] }
 0x57e   : > { %v2757_v57 = vpop.f32.mrb[18].mxu0 }
 0x57f   : > { %v4223_v32 = vmul.f32 -1.442695, %v2755_v15  ;;  %v4507_v54 = vpop.f32.mrb[19].mxu0 }
 0x581   : > { %4825 = vpow2.f32 %v4223_v32  ;;  %v7142_v32 = vld [vmem:[#allocation44_spill] sm:$0xff] }
 0x58b   : > { %v4826_v10 = vpop.eup %4825 }
 0x58c   : > { %v2763_v35 = vadd.f32 1.0, %v4826_v10  ;;  %v7143_v10 = vld [vmem:[#allocation45_spill] sm:$0xff] }
 0x58e   : > { %4827 = vrcp.f32 %v2763_v35 }
 0x598   : > { %v4828_v38 = vpop.eup %4827 }
 0x599   : > { %v2839_v48 = vrot.slane %v4828_v38, %v2838_v1  ;;  %v2979_v26 = vrot.slane %v4828_v38, %v2978_v19  ;;  %v2769_v29 = vrot.slane %v4828_v38, %v7129_v27  ;;  %v2909_v52 = vrot.slane %v4828_v38, %v2908_v43  ;;  %v7145_v43 = vld [vmem:[#allocation16_spill] sm:$0xff] }
 0x59a   : > { %v2874_v55 = vrot.slane %v4828_v38, %v2873_v61  ;;  %v3014_v6 = vrot.slane %v4828_v38, %v3013_v3  ;;  %v2804_v31 = vrot.slane %v4828_v38, %v6458_v8  ;;  %v2944_v50 = vrot.slane %v4828_v38, %v2943_v21 }
 0x59b   : > { %2845 = vbcast.lane.b32.xlu1 %v2839_v48, 264  ;;  %2841 = vbcast.lane.b32.xlu0 %v2839_v48, 256 }
 0x59f   : > { %2981 = vbcast.lane.b32.xlu1 %v2979_v26, 256  ;;  %2771 = vbcast.lane.b32.xlu0 %v2769_v29, 256 }
 0x5a3   : > { %2985 = vbcast.lane.b32.xlu1 %v2979_v26, 264  ;;  %2911 = vbcast.lane.b32.xlu0 %v2909_v52, 256 }
 0x5a7   : > { %2775 = vbcast.lane.b32.xlu1 %v2769_v29, 264  ;;  %2849 = vbcast.lane.b32.xlu0 %v2839_v48, 272 }
 0x5ab   : > { %2915 = vbcast.lane.b32.xlu1 %v2909_v52, 264  ;;  %2989 = vbcast.lane.b32.xlu0 %v2979_v26, 272 }
 0x5af   : > { %2853 = vbcast.lane.b32.xlu1 %v2839_v48, 280  ;;  %2779 = vbcast.lane.b32.xlu0 %v2769_v29, 272 }
 0x5b3   : > { %2993 = vbcast.lane.b32.xlu1 %v2979_v26, 280  ;;  %2919 = vbcast.lane.b32.xlu0 %v2909_v52, 272 }
 0x5b7   : > { %2783 = vbcast.lane.b32.xlu1 %v2769_v29, 280  ;;  %2857 = vbcast.lane.b32.xlu0 %v2839_v48, 288 }
 0x5bb   : > { %2923 = vbcast.lane.b32.xlu1 %v2909_v52, 280  ;;  %2997 = vbcast.lane.b32.xlu0 %v2979_v26, 288 }
 0x5bf   : > { %2861 = vbcast.lane.b32.xlu1 %v2839_v48, 296  ;;  %2787 = vbcast.lane.b32.xlu0 %v2769_v29, 288 }
 0x5c3   : > { %3001 = vbcast.lane.b32.xlu1 %v2979_v26, 296  ;;  %2927 = vbcast.lane.b32.xlu0 %v2909_v52, 288 }
 0x5c7   : > { %2791 = vbcast.lane.b32.xlu1 %v2769_v29, 296  ;;  %2865 = vbcast.lane.b32.xlu0 %v2839_v48, 304 }
 0x5cb   : > { %2931 = vbcast.lane.b32.xlu1 %v2909_v52, 296  ;;  %3005 = vbcast.lane.b32.xlu0 %v2979_v26, 304 }
 0x5cf   : > { %2869 = vbcast.lane.b32.xlu1 %v2839_v48, 312  ;;  %2795 = vbcast.lane.b32.xlu0 %v2769_v29, 304 }
 0x5d3   : > { %3009 = vbcast.lane.b32.xlu1 %v2979_v26, 312  ;;  %2935 = vbcast.lane.b32.xlu0 %v2909_v52, 304  ;;  %v7144_v26 = vld [vmem:[#allocation14_spill] sm:$0xff] }
 0x5d7   : > { %2799 = vbcast.lane.b32.xlu1 %v2769_v29, 312  ;;  %2876 = vbcast.lane.b32.xlu0 %v2874_v55, 256 }
 0x5db   : > { %2939 = vbcast.lane.b32.xlu1 %v2909_v52, 312  ;;  %3016 = vbcast.lane.b32.xlu0 %v3014_v6, 256 }
 0x5df   : > { %2880 = vbcast.lane.b32.xlu1 %v2874_v55, 264  ;;  %2806 = vbcast.lane.b32.xlu0 %v2804_v31, 256 }
 0x5e3   : > { %3020 = vbcast.lane.b32.xlu1 %v3014_v6, 264  ;;  %2946 = vbcast.lane.b32.xlu0 %v2944_v50, 256 }
 0x5e7   : > { %2810 = vbcast.lane.b32.xlu1 %v2804_v31, 264  ;;  %2884 = vbcast.lane.b32.xlu0 %v2874_v55, 272 }
 0x5eb   : > { %2950 = vbcast.lane.b32.xlu1 %v2944_v50, 264  ;;  %3024 = vbcast.lane.b32.xlu0 %v3014_v6, 272 }
 0x5ef   : > { %2888 = vbcast.lane.b32.xlu1 %v2874_v55, 280  ;;  %2814 = vbcast.lane.b32.xlu0 %v2804_v31, 272 }
 0x5f3   : > { %3028 = vbcast.lane.b32.xlu1 %v3014_v6, 280  ;;  %2954 = vbcast.lane.b32.xlu0 %v2944_v50, 272 }
 0x5f7   : > { %2818 = vbcast.lane.b32.xlu1 %v2804_v31, 280  ;;  %2892 = vbcast.lane.b32.xlu0 %v2874_v55, 288 }
 0x5fb   : > { %2958 = vbcast.lane.b32.xlu1 %v2944_v50, 280  ;;  %3032 = vbcast.lane.b32.xlu0 %v3014_v6, 288 }
 0x5ff   : > { %2896 = vbcast.lane.b32.xlu1 %v2874_v55, 296  ;;  %2822 = vbcast.lane.b32.xlu0 %v2804_v31, 288 }
 0x603   : > { %3036 = vbcast.lane.b32.xlu1 %v3014_v6, 296  ;;  %2962 = vbcast.lane.b32.xlu0 %v2944_v50, 288 }
 0x607   : > { %2826 = vbcast.lane.b32.xlu1 %v2804_v31, 296  ;;  %2900 = vbcast.lane.b32.xlu0 %v2874_v55, 304 }
 0x60b   : > { %2966 = vbcast.lane.b32.xlu1 %v2944_v50, 296  ;;  %3040 = vbcast.lane.b32.xlu0 %v3014_v6, 304 }
 0x60d   : > { %v2846_v23 = vpop.permute.xlu1 %2845  ;;  %v2842_v25 = vpop.permute.xlu0 %2841 }
 0x60e   : > { %v3063_v0 = vmul.f32 %v2846_v23, %v7130_v59  ;;  %v3062_v53 = vmul.f32 %v2842_v25, %v7131_v63  ;;  %v7148_v63 = vld [vmem:[#allocation30_spill] sm:$0xff] }
 0x60f   : > { %2904 = vbcast.lane.b32.xlu1 %v2874_v55, 312  ;;  %2830 = vbcast.lane.b32.xlu0 %v2804_v31, 304 }
 0x610   : > { %v4508_v13 = vpack.c.bf16 %v3063_v0, %v3062_v53 }
 0x611   : > { %v2982_v18 = vpop.permute.xlu1 %2981  ;;  %v2772_v46 = vpop.permute.xlu0 %2771 }
 0x612   : > { %4509 = vmatprep.subr.bf16.mxu1 %v4508_v13  ;;  %v3094_v44 = vmul.f32 %v2982_v18, %v7134_v36  ;;  %v3046_v7 = vmul.f32 %v2772_v46, %v7136_v4  ;;  %v7149_v13 = vld [vmem:[#allocation32_spill] sm:$0xff]  ;;  %v7151_v36 = vld [vmem:[#allocation50_spill] sm:$0xff]  ;;  %v7153_v4 = vld [vmem:[#allocation15_spill] sm:$0xff] }
 0x613   : > { %3044 = vbcast.lane.b32.xlu1 %v3014_v6, 312  ;;  %2970 = vbcast.lane.b32.xlu0 %v2944_v50, 304 }
 0x615   : > { %v2986_v20 = vpop.permute.xlu1 %2985  ;;  %v2912_v42 = vpop.permute.xlu0 %2911 }
 0x616   : > { %v3095_v9 = vmul.f32 %v2986_v20, %v7135_v37  ;;  %v3078_v34 = vmul.f32 %v2912_v42, %v7138_v17  ;;  %v7150_v20 = vld [vmem:[#allocation46_spill] sm:$0xff]  ;;  %v7155_v17 = vld [vmem:[#allocation65_spill] sm:$0xff] }
 0x617   : > { %2834 = vbcast.lane.b32.xlu1 %v2804_v31, 312  ;;  %v7146_v31 = vld [vmem:[#allocation61_spill] sm:$0xff] }
 0x618   : > { %v4540_v2 = vpack.c.bf16 %v3095_v9, %v3094_v44 }
 0x619   : > { %v2776_v11 = vpop.permute.xlu1 %2775  ;;  %v2850_v14 = vpop.permute.xlu0 %2849 }
 0x61a   : > { %v3047_v30 = vmul.f32 %v2776_v11, %v7137_v24  ;;  %4541 = vmatprep.subr.bf16.mxu0 %v4540_v2  ;;  %v3064_v12 = vmul.f32 %v2850_v14, %v7140_v60  ;;  %v7152_v11 = vld [vmem:[#allocation12_spill] sm:$0xff]  ;;  %v7157_v60 = vld [vmem:[#allocation35_spill] sm:$0xff] }
 0x61b   : > { %2974 = vbcast.lane.b32.xlu1 %v2944_v50, 312  ;;  %v7147_v50 = vld [vmem:[#allocation62_spill] sm:$0xff] }
 0x61c   : > { %v4510_v22 = vpack.c.bf16 %v3047_v30, %v3046_v7 }
 0x61d   : > { %v2916_v39 = vpop.permute.xlu1 %2915  ;;  %v2990_v41 = vpop.permute.xlu0 %2989 }
 0x61e   : > { %v3079_v16 = vmul.f32 %v2916_v39, %v7139_v40  ;;  %4511 = vmatpush3.bf16.msra.mxu1 %v4510_v22  ;;  %v3096_v54 = vmul.f32 %v2990_v41, %v7142_v32  ;;  %v7154_v39 = vld [vmem:[#allocation64_spill] sm:$0xff]  ;;  %v7159_v32 = vld [vmem:[#allocation51_spill] sm:$0xff] }
 0x620   : > { %v4542_v33 = vpack.c.bf16 %v3079_v16, %v3078_v34 }
 0x621   : > { %v2854_v51 = vpop.permute.xlu1 %2853  ;;  %v2780_v58 = vpop.permute.xlu0 %2779 }
 0x622   : > { %v3065_v49 = vmul.f32 %v2854_v51, %v7141_v28  ;;  %4543 = vmatpush3.bf16.msra.mxu0 %v4542_v33  ;;  %v3048_v29 = vmul.f32 %v2780_v58, %v7144_v26  ;;  %v7156_v51 = vld [vmem:[#allocation33_spill] sm:$0xff]  ;;  %v7161_v26 = vld [vmem:[#allocation18_spill] sm:$0xff] }
 0x624   : > { %v4512_v15 = vpack.c.bf16 %v3065_v49, %v3064_v12 }
 0x625   : > { %v2994_v45 = vpop.permute.xlu1 %2993  ;;  %v2920_v57 = vpop.permute.xlu0 %2919 }
 0x626   : > { %v3097_v35 = vmul.f32 %v2994_v45, %v7143_v10  ;;  %4513 = vmatprep.subr.bf16.mxu1 %v4512_v15  ;;  %v3080_v21 = vmul.f32 %v2920_v57, %v7146_v31  ;;  %v7158_v45 = vld [vmem:[#allocation49_spill] sm:$0xff]  ;;  %v7163_v31 = vld [vmem:[#allocation67_spill] sm:$0xff] }
 0x628   : > { %v4544_v38 = vpack.c.bf16 %v3097_v35, %v3096_v54 }
 0x629   : > { %v2784_v48 = vpop.permute.xlu1 %2783  ;;  %v2858_v19 = vpop.permute.xlu0 %2857 }
 0x62a   : > { %v3049_v52 = vmul.f32 %v2784_v48, %v7145_v43  ;;  %4545 = vmatprep.subr.bf16.mxu0 %v4544_v38  ;;  %v3066_v53 = vmul.f32 %v2858_v19, %v7148_v63  ;;  %v7160_v48 = vld [vmem:[#allocation17_spill] sm:$0xff]  ;;  %v7165_v63 = vld [vmem:[#allocation34_spill] sm:$0xff] }
 0x62c   : > { %v4514_v55 = vpack.c.bf16 %v3049_v52, %v3048_v29 }
 0x62d   : > { %v2924_v3 = vpop.permute.xlu1 %2923  ;;  %v2998_v6 = vpop.permute.xlu0 %2997 }
 0x62e   : > { %v3081_v23 = vmul.f32 %v2924_v3, %v7147_v50  ;;  %4515 = vmatpush3.bf16.msra.mxu1 %v4514_v55  ;;  %v3098_v42 = vmul.f32 %v2998_v6, %v7150_v20  ;;  %v7162_v3 = vld [vmem:[#allocation63_spill] sm:$0xff]  ;;  %v7167_v20 = vld [vmem:[#allocation54_spill] sm:$0xff] }
 0x630   : > { %v4546_v25 = vpack.c.bf16 %v3081_v23, %v3080_v21 }
 0x631   : > { %v2862_v59 = vpop.permute.xlu1 %2861  ;;  %v2788_v0 = vpop.permute.xlu0 %2787 }
 0x632   : > { %v3067_v18 = vmul.f32 %v2862_v59, %v7149_v13  ;;  %4547 = vmatpush3.bf16.msra.mxu0 %v4546_v25  ;;  %v3050_v14 = vmul.f32 %v2788_v0, %v7152_v11  ;;  %v7164_v59 = vld [vmem:[#allocation41_spill] sm:$0xff]  ;;  %v7169_v11 = vld [vmem:[#allocation22_spill] sm:$0xff] }
 0x634   : > { %v4516_v46 = vpack.c.bf16 %v3067_v18, %v3066_v53 }
 0x635   : > { %v3002_v5 = vpop.permute.xlu1 %3001  ;;  %v2928_v62 = vpop.permute.xlu0 %2927 }
 0x636   : > { %v3099_v44 = vmul.f32 %v3002_v5, %v7151_v36  ;;  %4517 = vmatprep.subr.bf16.mxu1 %v4516_v46  ;;  %v3082_v41 = vmul.f32 %v2928_v62, %v7154_v39  ;;  %v7166_v5 = vld [vmem:[#allocation52_spill] sm:$0xff]  ;;  %v7171_v39 = vld [vmem:[#allocation70_spill] sm:$0xff] }
 0x638   : > { %v4548_v37 = vpack.c.bf16 %v3099_v44, %v3098_v42 }
 0x639   : > { %v2792_v9 = vpop.permute.xlu1 %2791  ;;  %v2866_v2 = vpop.permute.xlu0 %2865 }
 0x63a   : > { %v3051_v7 = vmul.f32 %v2792_v9, %v7153_v4  ;;  %4549 = vmatprep.subr.bf16.mxu0 %v4548_v37  ;;  %v3068_v58 = vmul.f32 %v2866_v2, %v7156_v51  ;;  %v7168_v9 = vld [vmem:[#allocation20_spill] sm:$0xff]  ;;  %v7173_v51 = vld [vmem:[#allocation37_spill] sm:$0xff] }
 0x63c   : > { %v4518_v24 = vpack.c.bf16 %v3051_v7, %v3050_v14 }
 0x63d   : > { %v2932_v30 = vpop.permute.xlu1 %2931  ;;  %v3006_v22 = vpop.permute.xlu0 %3005 }
 0x63e   : > { %v3083_v34 = vmul.f32 %v2932_v30, %v7155_v17  ;;  %4519 = vmatpush3.bf16.msra.mxu1 %v4518_v24  ;;  %v3100_v57 = vmul.f32 %v3006_v22, %v7158_v45  ;;  %v7170_v30 = vld [vmem:[#allocation66_spill] sm:$0xff]  ;;  %v7175_v45 = vld [vmem:[#allocation56_spill] sm:$0xff] }
 0x640   : > { %v4550_v40 = vpack.c.bf16 %v3083_v34, %v3082_v41 }
 0x641   : > { %v2870_v16 = vpop.permute.xlu1 %2869  ;;  %v2796_v33 = vpop.permute.xlu0 %2795 }
 0x642   : > { %v3069_v12 = vmul.f32 %v2870_v16, %v7157_v60  ;;  %4551 = vmatpush3.bf16.msra.mxu0 %v4550_v40  ;;  %v3052_v19 = vmul.f32 %v2796_v33, %v7160_v48  ;;  %v7172_v16 = vld [vmem:[#allocation36_spill] sm:$0xff]  ;;  %v7177_v48 = vld [vmem:[#allocation26_spill] sm:$0xff] }
 0x644   : > { %v4520_v28 = vpack.c.bf16 %v3069_v12, %v3068_v58 }
 0x645   : > { %v3010_v49 = vpop.permute.xlu1 %3009  ;;  %v2936_v15 = vpop.permute.xlu0 %2935 }
 0x646   : > { %v3101_v54 = vmul.f32 %v3010_v49, %v7159_v32  ;;  %4521 = vmatprep.subr.bf16.mxu1 %v4520_v28  ;;  %v3084_v6 = vmul.f32 %v2936_v15, %v7162_v3  ;;  %v7174_v49 = vld [vmem:[#allocation53_spill] sm:$0xff] }
 0x647   : > { %v7179_v3 = vld [vmem:[#allocation69_spill] sm:$0xff] }
 0x648   : > { %v4552_v10 = vpack.c.bf16 %v3101_v54, %v3100_v57 }
 0x649   : > { %v2800_v35 = vpop.permute.xlu1 %2799  ;;  %v2877_v38 = vpop.permute.xlu0 %2876 }
 0x64a   : > { %v3053_v29 = vmul.f32 %v2800_v35, %v7161_v26  ;;  %4553 = vmatprep.subr.bf16.mxu0 %v4552_v10  ;;  %v3070_v0 = vmul.f32 %v2877_v38, %v7164_v59  ;;  %v7176_v35 = vld [vmem:[#allocation23_spill] sm:$0xff]  ;;  %v7181_v59 = vld [vmem:[#allocation40_spill] sm:$0xff] }
 0x64c   : > { %v4522_v43 = vpack.c.bf16 %v3053_v29, %v3052_v19 }
 0x64d   : > { %v2940_v52 = vpop.permute.xlu1 %2939  ;;  %v3017_v55 = vpop.permute.xlu0 %3016 }
 0x64e   : > { %v3085_v21 = vmul.f32 %v2940_v52, %v7163_v31  ;;  %4523 = vmatpush3.bf16.msra.mxu1 %v4522_v43  ;;  %v3102_v62 = vmul.f32 %v3017_v55, %v7166_v5  ;;  %v7178_v52 = vld [vmem:[#allocation68_spill] sm:$0xff]  ;;  %v7183_v5 = vld [vmem:[#allocation59_spill] sm:$0xff] }
 0x650   : > { %v4554_v50 = vpack.c.bf16 %v3085_v21, %v3084_v6 }
 0x651   : > { %v2881_v23 = vpop.permute.xlu1 %2880  ;;  %v2807_v25 = vpop.permute.xlu0 %2806 }
 0x652   : > { %v3071_v53 = vmul.f32 %v2881_v23, %v7165_v63  ;;  %4555 = vmatpush3.bf16.msra.mxu0 %v4554_v50  ;;  %v3054_v2 = vmul.f32 %v2807_v25, %v7168_v9  ;;  %v7180_v23 = vld [vmem:[#allocation38_spill] sm:$0xff]  ;;  %v7185_v9 = vld [vmem:[#allocation28_spill] sm:$0xff] }
 0x654   : > { %v4524_v13 = vpack.c.bf16 %v3071_v53, %v3070_v0 }
 0x655   : > { %v3021_v18 = vpop.permute.xlu1 %3020  ;;  %v2947_v46 = vpop.permute.xlu0 %2946 }
 0x656   : > { %v3103_v42 = vmul.f32 %v3021_v18, %v7167_v20  ;;  %4525 = vmatprep.subr.bf16.mxu1 %v4524_v13  ;;  %v3086_v22 = vmul.f32 %v2947_v46, %v7170_v30  ;;  %v7182_v18 = vld [vmem:[#allocation55_spill] sm:$0xff] }
 0x658   : > { %v4556_v36 = vpack.c.bf16 %v3103_v42, %v3102_v62 }
 0x659   : > { %v2811_v44 = vpop.permute.xlu1 %2810  ;;  %v2885_v37 = vpop.permute.xlu0 %2884 }
 0x65a   : > { %v3055_v14 = vmul.f32 %v2811_v44, %v7169_v11  ;;  %4557 = vmatprep.subr.bf16.mxu0 %v4556_v36  ;;  %v3072_v33 = vmul.f32 %v2885_v37, %v7172_v16  ;;  %v7184_v44 = vld [vmem:[#allocation24_spill] sm:$0xff] }
 0x65c   : > { %v4526_v4 = vpack.c.bf16 %v3055_v14, %v3054_v2 }
 0x65d   : > { %v2951_v7 = vpop.permute.xlu1 %2950  ;;  %v3025_v24 = vpop.permute.xlu0 %3024 }
 0x65e   : > { %v3087_v41 = vmul.f32 %v2951_v7, %v7171_v39  ;;  %4527 = vmatpush3.bf16.msra.mxu1 %v4526_v4  ;;  %v3104_v15 = vmul.f32 %v3025_v24, %v7174_v49  ;;  %v7186_v4 = vld [vmem:[#allocation71_spill] sm:$0xff]  ;;  %v7187_v24 = vld [vmem:[#allocation73_spill] sm:$0xff] }
 0x660   : > { %v4558_v17 = vpack.c.bf16 %v3087_v41, %v3086_v22 }
 0x661   : > { %v2889_v34 = vpop.permute.xlu1 %2888  ;;  %v2815_v40 = vpop.permute.xlu0 %2814 }
 0x662   : > { %v3073_v58 = vmul.f32 %v2889_v34, %v7173_v51  ;;  %4559 = vmatpush3.bf16.msra.mxu0 %v4558_v17  ;;  %v3056_v38 = vmul.f32 %v2815_v40, %v7176_v35  ;;  %v7188_v17 = vld [vmem:[#allocation42_spill] sm:$0xff]  ;;  %v7189_v40 = vld [vmem:[#allocation48_spill] sm:$0xff] }
 0x664   : > { %v4528_v60 = vpack.c.bf16 %v3073_v58, %v3072_v33 }
 0x665   : > { %v3029_v12 = vpop.permute.xlu1 %3028  ;;  %v2955_v28 = vpop.permute.xlu0 %2954 }
 0x666   : > { %v3105_v57 = vmul.f32 %v3029_v12, %v7175_v45  ;;  %4529 = vmatprep.subr.bf16.mxu1 %v4528_v60  ;;  %v3088_v55 = vmul.f32 %v2955_v28, %v7178_v52  ;;  %v7190_v60 = vld [vmem:[#allocation57_spill] sm:$0xff]  ;;  %v7191_v28 = vld [vmem:[#allocation60_spill] sm:$0xff] }
 0x668   : > { %v4560_v32 = vpack.c.bf16 %v3105_v57, %v3104_v15  ;;  %v7192_v57 = vld [vmem:[#allocation29_spill] sm:$0xff] }
 0x669   : > { %v2819_v54 = vpop.permute.xlu1 %2818  ;;  %v2893_v10 = vpop.permute.xlu0 %2892 }
 0x66a   : > { %v3057_v19 = vmul.f32 %v2819_v54, %v7177_v48  ;;  %4561 = vmatprep.subr.bf16.mxu0 %v4560_v32  ;;  %v3074_v25 = vmul.f32 %v2893_v10, %v7180_v23  ;;  %v7193_v54 = vld [vmem:[#allocation31_spill] sm:$0xff]  ;;  %v4673_v23 = vld [vmem:[%s6884_s7 + $0xc] ss:$16 sps:$4 sm:$0xff]  }
 0x66c   : > { %v4530_v26 = vpack.c.bf16 %v3057_v19, %v3056_v38  ;;  %v7194_v19 = vld [vmem:[#allocation72_spill] sm:$0xff] }
 0x66d   : > { %v2959_v29 = vpop.permute.xlu1 %2958  ;;  %v3033_v43 = vpop.permute.xlu0 %3032 }
 0x66e   : > { %v3089_v6 = vmul.f32 %v2959_v29, %v7179_v3  ;;  %4531 = vmatpush3.bf16.msra.mxu1 %v4530_v26  ;;  %v3106_v46 = vmul.f32 %v3033_v43, %v7182_v18  ;;  %v7195_v29 = vld [vmem:[#allocation74_spill] sm:$0xff] }
 0x66f   : > { %v4780_v3 = vld [vmem:[%s6888_s11 + $0x18] sm:$0xff]  }
 0x670   : > { %v4562_v31 = vpack.c.bf16 %v3089_v6, %v3088_v55  ;;  %v4665_v6 = vld [vmem:[%s6884_s7] ss:$16 sps:$4 sm:$0xff]   ;;  %v4779_v55 = vld [vmem:[%s6888_s11 + $0x58] sm:$0xff]  }
 0x671   : > { %v2897_v21 = vpop.permute.xlu1 %2896  ;;  %v2823_v50 = vpop.permute.xlu0 %2822 }
 0x672   : > { %v3075_v0 = vmul.f32 %v2897_v21, %v7181_v59  ;;  %4563 = vmatpush3.bf16.msra.mxu0 %v4562_v31  ;;  %v3058_v37 = vmul.f32 %v2823_v50, %v7184_v44  ;;  %v4667_v31 = vld [vmem:[%s6884_s7 + $0x4] ss:$16 sps:$4 sm:$0xff]   ;;  %v4911_v50 = vmov 0   ;;  %v4677_v44 = vld [vmem:[%s6886_s9] ss:$8 sps:$4 sm:$0xff]  }
 0x673   : > { %v4670_v21 = vld [vmem:[%s6884_s7 + $0x24] ss:$16 sps:$4 sm:$0xff]  }
 0x674   : > { %v4532_v63 = vpack.c.bf16 %v3075_v0, %v3074_v25 }
 0x675   : > { %v3037_v53 = vpop.permute.xlu1 %3036  ;;  %v2963_v13 = vpop.permute.xlu0 %2962 }
 0x676   : > { %v3107_v62 = vmul.f32 %v3037_v53, %v7183_v5  ;;  %4533 = vmatprep.subr.bf16.mxu1 %v4532_v63  ;;  %v3090_v7 = vmul.f32 %v2963_v13, %v7186_v4  ;;  %v4671_v5 = vld [vmem:[%s6884_s7 + $0x8] ss:$16 sps:$4 sm:$0xff]  }
 0x677   : > { %v4686_v4 = vld [vmem:[%s6886_s9 + $0x30] ss:$8 sps:$4 sm:$0xff]  }
 0x678   : > { %v4564_v20 = vpack.c.bf16 %v3107_v62, %v3106_v46 }
 0x679   : > { %v2827_v42 = vpop.permute.xlu1 %2826  ;;  %v2901_v36 = vpop.permute.xlu0 %2900 }
 0x67a   : > { %v3059_v2 = vmul.f32 %v2827_v42, %v7185_v9  ;;  %4565 = vmatprep.subr.bf16.mxu0 %v4564_v20  ;;  %v3076_v34 = vmul.f32 %v2901_v36, %v7188_v17  ;;  %v4676_v20 = vld [vmem:[%s6884_s7 + $0x2c] ss:$16 sps:$4 sm:$0xff]   ;;  %v4674_v42 = vld [vmem:[%s6884_s7 + $0x28] ss:$16 sps:$4 sm:$0xff]  }
 0x67b   : > { %v4679_v36 = vld [vmem:[%s6886_s9 + $0x4] ss:$8 sps:$4 sm:$0xff]   ;;  %v4680_v9 = vld [vmem:[%s6886_s9 + $0x10] ss:$8 sps:$4 sm:$0xff]   ;;  %v4700_v17 = vld [vmem:[%s6886_s9 + $0x74] ss:$8 sps:$4 sm:$0xff]  }
 0x67c   : > { %v4534_v11 = vpack.c.bf16 %v3059_v2, %v3058_v37  ;;  %v4682_v37 = vld [vmem:[%s6886_s9 + $0x14] ss:$8 sps:$4 sm:$0xff]   ;;  %v4685_v2 = vld [vmem:[%s6886_s9 + $0x24] ss:$8 sps:$4 sm:$0xff]  }
 0x67d   : > { %v2967_v14 = vpop.permute.xlu1 %2966  ;;  %v3041_v22 = vpop.permute.xlu0 %3040 }
 0x67e   : > { %v3091_v30 = vmul.f32 %v2967_v14, %v7187_v24  ;;  %4535 = vmatpush3.bf16.msra.mxu1 %v4534_v11  ;;  %v3108_v12 = vmul.f32 %v3041_v22, %v7190_v60  ;;  %v4683_v11 = vld [vmem:[%s6886_s9 + $0x20] ss:$8 sps:$4 sm:$0xff]   ;;  %v4688_v14 = vld [vmem:[%s6886_s9 + $0x34] ss:$8 sps:$4 sm:$0xff]   ;;  %v4692_v22 = vld [vmem:[%s6886_s9 + $0x50] ss:$8 sps:$4 sm:$0xff]  }
 0x67f   : > { %v4689_v24 = vld [vmem:[%s6886_s9 + $0x40] ss:$8 sps:$4 sm:$0xff]  }
 0x680   : > { %v4566_v39 = vpack.c.bf16 %v3091_v30, %v3090_v7  ;;  %v4691_v7 = vld [vmem:[%s6886_s9 + $0x44] ss:$8 sps:$4 sm:$0xff]   ;;  %v4694_v30 = vld [vmem:[%s6886_s9 + $0x54] ss:$8 sps:$4 sm:$0xff]   ;;  %v4707_v60 = vld [vmem:[%s6886_s9 + $0xa0] ss:$8 sps:$4 sm:$0xff]  }
 0x681   : > { %v2905_v41 = vpop.permute.xlu1 %2904  ;;  %v2831_v51 = vpop.permute.xlu0 %2830 }
 0x682   : > { %v3077_v16 = vmul.f32 %v2905_v41, %v7189_v40  ;;  %4567 = vmatpush3.bf16.msra.mxu0 %v4566_v39  ;;  %v3060_v32 = vmul.f32 %v2831_v51, %v7192_v57  ;;  %v4697_v39 = vld [vmem:[%s6886_s9 + $0x64] ss:$8 sps:$4 sm:$0xff]   ;;  %v4695_v41 = vld [vmem:[%s6886_s9 + $0x60] ss:$8 sps:$4 sm:$0xff]   ;;  %v4704_v51 = vld [vmem:[%s6886_s9 + $0x90] ss:$8 sps:$4 sm:$0xff]  }
 0x683   : > { %v4703_v40 = vld [vmem:[%s6886_s9 + $0x84] ss:$8 sps:$4 sm:$0xff]   ;;  %v4716_v57 = vld [vmem:[%s6886_s9 + $0xd0] ss:$8 sps:$4 sm:$0xff]  }
 0x684   : > { %v4536_v33 = vpack.c.bf16 %v3077_v16, %v3076_v34  ;;  %v4698_v34 = vld [vmem:[%s6886_s9 + $0x70] ss:$8 sps:$4 sm:$0xff]   ;;  %v4701_v16 = vld [vmem:[%s6886_s9 + $0x80] ss:$8 sps:$4 sm:$0xff]  }
 0x685   : > { %v3045_v58 = vpop.permute.xlu1 %3044  ;;  %v2971_v35 = vpop.permute.xlu0 %2970 }
 0x686   : > { %v3109_v49 = vmul.f32 %v3045_v58, %v7191_v28  ;;  %4537 = vmatprep.subr.bf16.mxu1 %v4536_v33  ;;  %v3092_v26 = vmul.f32 %v2971_v35, %v7194_v19  ;;  %v4706_v33 = vld [vmem:[%s6886_s9 + $0x94] ss:$8 sps:$4 sm:$0xff]   ;;  %v4709_v58 = vld [vmem:[%s6886_s9 + $0xa4] ss:$8 sps:$4 sm:$0xff]   ;;  %v4710_v28 = vld [vmem:[%s6886_s9 + $0xb0] ss:$8 sps:$4 sm:$0xff]  }
 0x687   : > { %v4722_v35 = vld [vmem:[%s6886_s9 + $0xf0] ss:$8 sps:$4 sm:$0xff]   ;;  %v4774_v19 = vld [vmem:[%s6888_s11] sm:$0xff]  }
 0x688   : > { %v4568_v15 = vpack.c.bf16 %v3109_v49, %v3108_v12  ;;  %v4712_v12 = vld [vmem:[%s6886_s9 + $0xb4] ss:$8 sps:$4 sm:$0xff]   ;;  %v4715_v49 = vld [vmem:[%s6886_s9 + $0xc4] ss:$8 sps:$4 sm:$0xff]  }
 0x689   : > { %v2835_v45 = vpop.permute.xlu1 %2834 }
 0x68a   : > { %v3061_v10 = vmul.f32 %v2835_v45, %v7193_v54  ;;  %4569 = vmatprep.subr.bf16.mxu0 %v4568_v15  ;;  %v4713_v15 = vld [vmem:[%s6886_s9 + $0xc0] ss:$8 sps:$4 sm:$0xff]   ;;  %v4718_v45 = vld [vmem:[%s6886_s9 + $0xd4] ss:$8 sps:$4 sm:$0xff]   ;;  %v4721_v54 = vld [vmem:[%s6886_s9 + $0xe4] ss:$8 sps:$4 sm:$0xff]  }
 0x68c   : > { %v4538_v38 = vpack.c.bf16 %v3061_v10, %v3060_v32  ;;  %v4719_v32 = vld [vmem:[%s6886_s9 + $0xe0] ss:$8 sps:$4 sm:$0xff]   ;;  %v4724_v10 = vld [vmem:[%s6886_s9 + $0xf4] ss:$8 sps:$4 sm:$0xff]  }
 0x68d   : > { %v2975_v48 = vpop.permute.xlu1 %2974 }
 0x68e   : > { %v3093_v43 = vmul.f32 %v2975_v48, %v7195_v29  ;;  %4539 = vmatpush3.bf16.msra.mxu1 %v4538_v38  ;;  %v4727_v38 = vld [vmem:[%s6886_s9 + $0x104] ss:$8 sps:$4 sm:$0xff]  }
 0x68f   : > { %3329 = vmatprep.subr.bf16.mxu1 %v4667_v31  ;;  %v4773_v48 = vld [vmem:[%s6888_s11 + $0x40] sm:$0xff]   ;;  %v4776_v29 = vld [vmem:[%s6888_s11 + $0x8] sm:$0xff]  }
 0x690   : > { %v4570_v52 = vpack.c.bf16 %v3093_v43, %v3092_v26  ;;  %v4775_v26 = vld [vmem:[%s6888_s11 + $0x48] sm:$0xff]   ;;  %v4777_v43 = vld [vmem:[%s6888_s11 + $0x50] sm:$0xff]   ;;  %v4782_v31 = vld [vmem:[%s6888_s11 + $0x20] sm:$0xff]  }
 0x691   : > { %4225 = vmatmul.mubr.msk.f32.vlgmr.msra.gmra.mrb[0].mxu1 %vm5166_vm7, %v4910_v56  ;;  %vm7199_vm7 = vmmov %vm7198_vm4 }
 0x692   : > { %4571 = vmatpush3.bf16.msra.mxu0 %v4570_v52  ;;  %3361 = vmatprep.mubr.bf16.mxu1 %v4911_v50  ;;  %v4778_v52 = vld [vmem:[%s6888_s11 + $0x10] sm:$0xff]  }
 0x693   : > { %3330 = vmatpush1.bf16.msra.mxu1 %v4665_v6  ;;  %4452 = vmatprep.subr.bf16.mxu0 %v4773_v48  ;;  %v4781_v6 = vld [vmem:[%s6888_s11 + $0x60] sm:$0xff]  }
 0x694   : > { %3331 = vmatprep.subr.bf16.mxu1 %v4670_v21  ;;  %v4783_v21 = vld [vmem:[%s6888_s11 + $0x68] sm:$0xff]  }
 0x695   : > { %4227 = vmatmul.mubr.msk.f32.vlgmr.msra.gmra.mrb[20].mxu0 %vm5265_vm15, %v4910_v56  ;;  %v4668_v56 = vld [vmem:[%s6884_s7 + $0x20] ss:$16 sps:$4 sm:$0xff]  }
 0x696   : > { %4453 = vmatpush3.bf16.msra.mxu0 %v4774_v19  ;;  %v4769_v19 = vld [vmem:[%s6886_s9 + $0x1e4] ss:$8 sps:$4 sm:$0xff]  }
 0x697   : > { %3332 = vmatpush1.bf16.msra.mxu1 %v4668_v56  ;;  %4454 = vmatprep.subr.bf16.mxu0 %v4775_v26  ;;  %v6702_v56 = vld [vmem:[%s6885_s8] sm:$0xf] }
 0x698   : > { %3370 = vmatprep.subr.bf16.mxu1 %v4673_v23  ;;  %v3269_v23 = vrot.slane %v6702_v56, %v7129_v27  ;;  %v3277_v48 = vrot.slane %v6702_v56, %v2838_v1  ;;  %v4767_v26 = vld [vmem:[%s6886_s9 + $0x1e0] ss:$8 sps:$4 sm:$0xff]  }
 0x69a   : > { %4455 = vmatpush3.bf16.msra.mxu0 %v4776_v29 }
 0x69b   : > { %4456 = vmatprep.subr.bf16.mxu0 %v4777_v43  ;;  %v4772_v43 = vld [vmem:[%s6886_s9 + $0x1f4] ss:$8 sps:$4 sm:$0xff]  }
 0x69e   : > { %4457 = vmatpush3.bf16.msra.mxu0 %v4778_v52 }
 0x69f   : > { %4458 = vmatprep.subr.bf16.mxu0 %v4779_v55  ;;  %v4785_v55 = vld [vmem:[%s6888_s11 + $0x70] sm:$0xff]  }
 0x6a2   : > { %4459 = vmatpush3.bf16.msra.mxu0 %v4780_v3  ;;  %v4786_v3 = vld [vmem:[%s6888_s11 + $0x30] sm:$0xff]  }
 0x6a3   : > { %4460 = vmatprep.subr.bf16.mxu0 %v4781_v6  ;;  %v4787_v6 = vld [vmem:[%s6888_s11 + $0x78] sm:$0xff]  }
 0x6a6   : > { %4461 = vmatpush3.bf16.msra.mxu0 %v4782_v31  ;;  %v4788_v31 = vld [vmem:[%s6888_s11 + $0x38] sm:$0xff]  }
 0x6a7   : > { %4462 = vmatprep.subr.bf16.mxu0 %v4783_v21  ;;  %v3483_v21 = vld [vmem:[%s6887_s10] sm:$0x3] }
 0x764   : > { %v4414_v25 = vpop.f32.mrb[0].mxu1 }
 0x765   : > { %v4415_v59 = vpop.f32.mrb[1].mxu1 }
 0x766   : > { %v4416_v0 = vadd.f32 %v4415_v59, %v4414_v25  ;;  %v3273_v25 = vrot.slane %v6702_v56, %v6458_v8 }
 0x768   : > { %v4449_v63 = vpop.f32.mrb[20].mxu0 }
 0x769   : > { %v4450_v53 = vpop.f32.mrb[21].mxu0 }
 0x76a   : > { %v4451_v13 = vadd.f32 %v4450_v53, %v4449_v63 }
 0x76c   : > { %v3251_v18 = vadd.f32 %v4451_v13, %v4416_v0 }
 0x76e   : > { %v3254_v46 = vmul.f32 0.015625, %v3251_v18 }
 0x770   : > { %v3255_v62 = vpack.c.bf16 %v3254_v46, %v3254_v46 }
 0x772   : > { %4236 = vmatmul.mubr.msk.bf16.vlgmr.msra.gmra.mrb[4].mxu1 %vm7198_vm4, %v3255_v62 }
 0x773   : > { %3371 = vmatpush1.bf16.msra.mxu1 %v4671_v5  ;;  %3402 = vmatprep.mubr.bf16.mxu1 %v4911_v50  ;;  %v4784_v50 = vld [vmem:[%s6888_s11 + $0x28] sm:$0xff]  }
 0x774   : > { %3372 = vmatprep.subr.bf16.mxu1 %v4676_v20  ;;  %4463 = vmatpush3.bf16.msra.mxu0 %v4784_v50  ;;  %v4725_v20 = vld [vmem:[%s6886_s9 + $0x100] ss:$8 sps:$4 sm:$0xff]   ;;  %v3488_v50 = vrot.slane %v3483_v21, %v7129_v27 }
 0x775   : > { %4464 = vmatprep.subr.bf16.mxu0 %v4785_v55  ;;  %v4302_v27 = vld [vmem:[%s6889_s12] ss:$0 sm:$0xff] }
 0x777   : > { %3373 = vmatpush1.bf16.msra.mxu1 %v4674_v42  ;;  %v3281_v42 = vrot.slane %v6702_v56, %v2873_v61  ;;  %v4733_v61 = vld [vmem:[%s6886_s9 + $0x124] ss:$8 sps:$4 sm:$0xff]   ;;  %v3492_v56 = vrot.slane %v3483_v21, %v6458_v8 }
 0x778   : > { %3815 = vmatprep.subr.bf16.mxu1 %v4679_v36  ;;  %4465 = vmatpush3.bf16.msra.mxu0 %v4786_v3 }
 0x779   : > { %4466 = vmatprep.subr.bf16.mxu0 %v4787_v6 }
 0x77a   : > { %4237 = vmatmul.mubr.msk.bf16.vlgmr.msra.gmra.mrb[8].mxu1 %vm7199_vm7, %v3255_v62 }
 0x77b   : > { %3816 = vmatpush1.bf16.msra.mxu1 %v4677_v44  ;;  %v4730_v44 = vld [vmem:[%s6886_s9 + $0x114] ss:$8 sps:$4 sm:$0xff]  }
 0x77c   : > { %3817 = vmatprep.subr.bf16.mxu1 %v4682_v37  ;;  %4467 = vmatpush3.bf16.msra.mxu0 %v4788_v31 }
 0x77f   : > { %3818 = vmatpush1.bf16.msra.mxu1 %v4680_v9 }
 0x780   : > { %3819 = vmatprep.subr.bf16.mxu1 %v4685_v2 }
 0x783   : > { %3820 = vmatpush1.bf16.msra.mxu1 %v4683_v11 }
 0x784   : > { %3821 = vmatprep.subr.bf16.mxu1 %v4688_v14  ;;  %v4728_v14 = vld [vmem:[%s6886_s9 + $0x110] ss:$8 sps:$4 sm:$0xff]  }
 0x787   : > { %3822 = vmatpush1.bf16.msra.mxu1 %v4686_v4 }
 0x788   : > { %3823 = vmatprep.subr.bf16.mxu1 %v4691_v7 }
 0x78b   : > { %3824 = vmatpush1.bf16.msra.mxu1 %v4689_v24 }
 0x78c   : > { %3825 = vmatprep.subr.bf16.mxu1 %v4694_v30  ;;  %v4731_v30 = vld [vmem:[%s6886_s9 + $0x120] ss:$8 sps:$4 sm:$0xff]  }
 0x78f   : > { %3826 = vmatpush1.bf16.msra.mxu1 %v4692_v22  ;;  %v4736_v22 = vld [vmem:[%s6886_s9 + $0x134] ss:$8 sps:$4 sm:$0xff]  }
 0x790   : > { %3827 = vmatprep.subr.bf16.mxu1 %v4697_v39  ;;  %v4734_v39 = vld [vmem:[%s6886_s9 + $0x130] ss:$8 sps:$4 sm:$0xff]  }
 0x793   : > { %3828 = vmatpush1.bf16.msra.mxu1 %v4695_v41  ;;  %v4739_v41 = vld [vmem:[%s6886_s9 + $0x144] ss:$8 sps:$4 sm:$0xff]  }
 0x794   : > { %3829 = vmatprep.subr.bf16.mxu1 %v4700_v17  ;;  %v4737_v17 = vld [vmem:[%s6886_s9 + $0x140] ss:$8 sps:$4 sm:$0xff]  }
 0x797   : > { %3830 = vmatpush1.bf16.msra.mxu1 %v4698_v34  ;;  %v4742_v34 = vld [vmem:[%s6886_s9 + $0x154] ss:$8 sps:$4 sm:$0xff]  }
 0x798   : > { %3831 = vmatprep.subr.bf16.mxu1 %v4703_v40  ;;  %v4740_v40 = vld [vmem:[%s6886_s9 + $0x150] ss:$8 sps:$4 sm:$0xff]  }
 0x79b   : > { %3832 = vmatpush1.bf16.msra.mxu1 %v4701_v16  ;;  %v4745_v16 = vld [vmem:[%s6886_s9 + $0x164] ss:$8 sps:$4 sm:$0xff]  }
 0x79c   : > { %3833 = vmatprep.subr.bf16.mxu1 %v4706_v33  ;;  %v4743_v33 = vld [vmem:[%s6886_s9 + $0x160] ss:$8 sps:$4 sm:$0xff]  }
 0x79f   : > { %3834 = vmatpush1.bf16.msra.mxu1 %v4704_v51  ;;  %v4748_v51 = vld [vmem:[%s6886_s9 + $0x174] ss:$8 sps:$4 sm:$0xff]  }
 0x7a0   : > { %3835 = vmatprep.subr.bf16.mxu1 %v4709_v58  ;;  %v4746_v58 = vld [vmem:[%s6886_s9 + $0x170] ss:$8 sps:$4 sm:$0xff]  }
 0x7a3   : > { %3836 = vmatpush1.bf16.msra.mxu1 %v4707_v60  ;;  %v4751_v60 = vld [vmem:[%s6886_s9 + $0x184] ss:$8 sps:$4 sm:$0xff]  }
 0x7a4   : > { %3837 = vmatprep.subr.bf16.mxu1 %v4712_v12  ;;  %v4749_v12 = vld [vmem:[%s6886_s9 + $0x180] ss:$8 sps:$4 sm:$0xff]  }
 0x7a7   : > { %3838 = vmatpush1.bf16.msra.mxu1 %v4710_v28  ;;  %v4754_v28 = vld [vmem:[%s6886_s9 + $0x194] ss:$8 sps:$4 sm:$0xff]  }
 0x7a8   : > { %3839 = vmatprep.subr.bf16.mxu1 %v4715_v49  ;;  %v4752_v49 = vld [vmem:[%s6886_s9 + $0x190] ss:$8 sps:$4 sm:$0xff]  }
 0x7ab   : > { %3840 = vmatpush1.bf16.msra.mxu1 %v4713_v15  ;;  %v4757_v15 = vld [vmem:[%s6886_s9 + $0x1a4] ss:$8 sps:$4 sm:$0xff]  }
 0x7ac   : > { %3841 = vmatprep.subr.bf16.mxu1 %v4718_v45  ;;  %v4755_v45 = vld [vmem:[%s6886_s9 + $0x1a0] ss:$8 sps:$4 sm:$0xff]  }
 0x7af   : > { %3842 = vmatpush1.bf16.msra.mxu1 %v4716_v57  ;;  %v4760_v57 = vld [vmem:[%s6886_s9 + $0x1b4] ss:$8 sps:$4 sm:$0xff]  }
 0x7b0   : > { %3843 = vmatprep.subr.bf16.mxu1 %v4721_v54  ;;  %v4763_v54 = vld [vmem:[%s6886_s9 + $0x1c4] ss:$8 sps:$4 sm:$0xff]  }
 0x7b3   : > { %3844 = vmatpush1.bf16.msra.mxu1 %v4719_v32  ;;  %v4758_v32 = vld [vmem:[%s6886_s9 + $0x1b0] ss:$8 sps:$4 sm:$0xff]  }
 0x7b4   : > { %3845 = vmatprep.subr.bf16.mxu1 %v4724_v10  ;;  %v4761_v10 = vld [vmem:[%s6886_s9 + $0x1c0] ss:$8 sps:$4 sm:$0xff]  }
 0x7b7   : > { %3846 = vmatpush1.bf16.msra.mxu1 %v4722_v35  ;;  %v4766_v35 = vld [vmem:[%s6886_s9 + $0x1d4] ss:$8 sps:$4 sm:$0xff]  }
 0x7b8   : > { %3856 = vmatprep.subr.bf16.mxu1 %v4727_v38  ;;  %v4764_v38 = vld [vmem:[%s6886_s9 + $0x1d0] ss:$8 sps:$4 sm:$0xff]  }
 0x845   : > { %v3363_v59 = vpop.f32.mrb[4].mxu1 }
 0x846   : > { %v3364_v0 = vadd.f32 %v3363_v59, %v3269_v23  ;;  %v3365_v63 = vpop.f32.mrb[5].mxu1 }
 0x847   : > { %v3366_v53 = vadd.f32 %v3365_v63, %v3273_v25  ;;  %v3367_v13 = vpop.f32.mrb[6].mxu1 }
 0x848   : > { %v3411_v18 = vmax.f32 %v3364_v0, 0.0  ;;  %v3368_v46 = vpop.f32.mrb[7].mxu1 }
 0x849   : > { %v3412_v5 = vmax.f32 %v3366_v53, 0.0 }
 0x84a   : > { %v3415_v36 = vpack.c.bf16 %v3411_v18, %v3411_v18 }
 0x84b   : > { %v3416_v62 = vpack.c.bf16 %v3412_v5, %v3412_v5 }
 0x84d   : > { %v6717_v37 = vpop.f32.mrb[8].mxu1  ;;  %3847 = vmatprep.mubr.bf16.mxu1 %v3416_v62 }
 0x84e   : > { %v3406_v9 = vpop.f32.mrb[9].mxu1  ;;  %3848 = vmatmul.mubr.bf16.vlgmr.msra.gmra.mrb[12].mxu1 %v3415_v36  ;;  %v3405_v29 = vadd.f32 %v6717_v37, %v3277_v48 }
 0x84f   : > { %v3407_v2 = vadd.f32 %v3406_v9, %v3281_v42  ;;  %3857 = vmatpush1.bf16.msra.mxu1 %v4725_v20  ;;  %v3408_v11 = vpop.f32.mrb[10].mxu1 }
 0x850   : > { %v3409_v4 = vpop.f32.mrb[11].mxu1  ;;  %3858 = vmatprep.subr.bf16.mxu1 %v4730_v44  ;;  %v3413_v1 = vmax.f32 %v3405_v29, 0.0 }
 0x851   : > { %v3414_v7 = vmax.f32 %v3407_v2, 0.0 }
 0x852   : > { %v3417_v52 = vpack.c.bf16 %v3413_v1, %v3413_v1 }
 0x853   : > { %v3418_v24 = vpack.c.bf16 %v3414_v7, %v3414_v7  ;;  %3859 = vmatpush1.bf16.msra.mxu1 %v4728_v14 }
 0x854   : > { %3860 = vmatprep.subr.bf16.mxu1 %v4733_v61 }
 0x855   : > { %3888 = vmatprep.mubr.bf16.mxu1 %v3418_v24 }
 0x857   : > { %3861 = vmatpush1.bf16.msra.mxu1 %v4731_v30 }
 0x858   : > { %3862 = vmatprep.subr.bf16.mxu1 %v4736_v22 }
 0x85b   : > { %3863 = vmatpush1.bf16.msra.mxu1 %v4734_v39 }
 0x85c   : > { %3864 = vmatprep.subr.bf16.mxu1 %v4739_v41 }
 0x85f   : > { %3865 = vmatpush1.bf16.msra.mxu1 %v4737_v17 }
 0x860   : > { %3866 = vmatprep.subr.bf16.mxu1 %v4742_v34 }
 0x863   : > { %3867 = vmatpush1.bf16.msra.mxu1 %v4740_v40 }
 0x864   : > { %3868 = vmatprep.subr.bf16.mxu1 %v4745_v16 }
 0x867   : > { %3869 = vmatpush1.bf16.msra.mxu1 %v4743_v33 }
 0x868   : > { %3870 = vmatprep.subr.bf16.mxu1 %v4748_v51 }
 0x86b   : > { %3871 = vmatpush1.bf16.msra.mxu1 %v4746_v58 }
 0x86c   : > { %3872 = vmatprep.subr.bf16.mxu1 %v4751_v60 }
 0x86f   : > { %3873 = vmatpush1.bf16.msra.mxu1 %v4749_v12 }
 0x870   : > { %3874 = vmatprep.subr.bf16.mxu1 %v4754_v28 }
 0x873   : > { %3875 = vmatpush1.bf16.msra.mxu1 %v4752_v49 }
 0x874   : > { %3876 = vmatprep.subr.bf16.mxu1 %v4757_v15 }
 0x877   : > { %3877 = vmatpush1.bf16.msra.mxu1 %v4755_v45 }
 0x878   : > { %3878 = vmatprep.subr.bf16.mxu1 %v4760_v57 }
 0x87b   : > { %3879 = vmatpush1.bf16.msra.mxu1 %v4758_v32 }
 0x87c   : > { %3880 = vmatprep.subr.bf16.mxu1 %v4763_v54 }
 0x87f   : > { %3881 = vmatpush1.bf16.msra.mxu1 %v4761_v10 }
 0x880   : > { %3882 = vmatprep.subr.bf16.mxu1 %v4766_v35 }
 0x883   : > { %3883 = vmatpush1.bf16.msra.mxu1 %v4764_v38 }
 0x884   : > { %3884 = vmatprep.subr.bf16.mxu1 %v4769_v19 }
 0x887   : > { %3885 = vmatpush1.bf16.msra.mxu1 %v4767_v26 }
 0x888   : > { %3886 = vmatprep.subr.bf16.mxu1 %v4772_v43 }
 0x88b   : > { %3887 = vmatpush1.bf16.msra.mxu1 %v4770_v47 }
 0x88e   : > { %3889 = vmatmul.mubr.bf16.vlgmr.msra.gmra.mrb[12].mxu1 %v3417_v52 }
 0x961   : > { %v3890_v23 = vpop.f32.mrb[12].mxu1 }
 0x962   : > { %v4572_v25 = vadd.f32 %v3890_v23, %v3488_v50  ;;  %v3892_v59 = vpop.f32.mrb[13].mxu1 }
 0x963   : > { %v4573_v0 = vadd.f32 %v3892_v59, %v3492_v56  ;;  %v3894_v63 = vpop.f32.mrb[14].mxu1 }
 0x964   : > { %v3897_v53 = vmax.f32 %v4572_v25, 0.0  ;;  %v3895_v13 = vpop.f32.mrb[15].mxu1 }
 0x965   : > { %v3898_v18 = vmax.f32 %v4573_v0, 0.0 }
 0x966   : > { %v3899_v5 = vpack.c.bf16 %v3897_v53, %v3897_v53 }
 0x967   : > { %v3900_v46 = vpack.c.bf16 %v3898_v18, %v3898_v18 }
 0x969   : > { %4068 = vmatprep.mubr.bf16.mxu0 %v3900_v46 }
 0x96a   : > { %4069 = vmatmul.mubr.bf16.vlgmr.msra.gmra.mrb[24].mxu0 %v3899_v5 }
 0xa3d   : > { %v4468_v62 = vpop.f32.mrb[24].mxu0 }
 0xa3e   : > { %v4469_v20 = vpop.f32.mrb[25].mxu0 }
 0xa3f   : > { %v4470_v8 = vadd.f32 %v4469_v20, %v4468_v62  ;;  %v4471_v42 = vpop.f32.mrb[26].mxu0 }
 0xa40   : > { %v4472_v36 = vpop.f32.mrb[27].mxu0 }
 0xa41   : > { %v4071_v44 = vadd.f32 %v4470_v8, %v4302_v27 }
 0xa43   : > { %4076 = vmax.xlane.f32.xlu0 %v4071_v44 }
 0xad0   : > { %v4077_v37 = vpop.xlane.xlu0 %4076 }
 0xad1   : > { %v4078_v9 = vsub.f32 %v4071_v44, %v4077_v37 }
 0xad3   : > { %v4079_v2 = vmul.f32 1.442695, %v4078_v9 }
 0xad5   : > { %4829 = vpow2.f32 %v4079_v2 }
 0xadf   : > { %v4830_v11 = vpop.eup %4829 }
 0xae0   : > { %4081 = vadd.xlane.f32.xlu1 %v4830_v11 }
 0xb6d   : > { %v4082_v14 = vpop.xlane.xlu1 %4081 }
 0xb6e   : > { %4831 = vrcp.f32 %v4082_v14 }
 0xb78   : > { %v4832_v4 = vpop.eup %4831 }
 0xb79   : > { %v4084_v61 = vmul.f32 %v4832_v4, %v4830_v11 }
 0xb7b   : > { %4085 = vst [vmem:[%s436_s24] sm:$0xff] %v4084_v61 }
 0xb7c   : > { %4855 = shalt.err (!%p4852_p3)
}
 0xb7d   : > { %s4856_s15 = scalar_lea.hbm %s6835_s23, 128  ;;  %s4860_s21 = scalar_lea.hbm %s6890_s13, 256 }
 0xb7e   : > { %p4857_p4 = scmp.ne.s32.totalorder %s6835_s23, %s4856_s15  ;;  %p4861_p9 = scmp.lt.u32.totalorder %s6835_s23, %s6890_s13 }
 0xb7f   : > { %p4862_p10 = scmp.lt.u32.totalorder %s4860_s21, %s4856_s15  ;;  %p4864_p12 = scmp.lt.u32.totalorder %s4856_s15, %s6835_s23 }
 0xb80   : > { %p4858_p7 = pnand %p4857_p4, %p5021_p5 }
 0xb81   : > { %p4863_p11 = por %p4862_p10, %p4861_p9 }
 0xb82   : > { %p4859_p8 = pneg %p4858_p7 }
 0xb83   : > { %p4865_p13 = por %p4864_p12, %p4863_p11 }
 0xb85   : > { %p4866_p0 = pnand %p4865_p13, %p4859_p8 }
 0xb87   : > { %4869 = shalt.err (!%p4866_p0)
}
 0xb88   : > { %4578 = dma.vmem_to_hbm [thread:$0]  (%p5021_p5), %s6837_s20, 128, %s6835_s23, %s4087_s1  }
 0xb89 PF: > { %p4584_p1 = scmp.ge.s32.totalorder %s4904_s28, 2  ;;  %s4112_s2 = sand.u32 1, %s4892_s25  }
 0xb8a   : > { %s4113_s30 = scalar_lea.sflag [#allocation3], %s4112_s2 }
 0xb8b   : > { %p4581_p2 = pnand %p4584_p1, %p5025_p6 }
 0xb8d   : > { %4887 = dma.done.wait (!%p4581_p2), %s4113_s30, 128  }
 0xb8e   : > { %4889 = vsyncadd (!%p4581_p2), %s4113_s30, 4294967168  ;;  %p23_p3 = scmp.ge.s32.totalorder %s5008_s14, 4   ;;  %s7200_s25 = smov %s4896_s26 }
 0xb8f   : > { %s7201_s26 = smov %s4900_s27  ;;  %s7202_s27 = smov %s5019_s17 }
 0xb90   : > { %s7203_s28 = smov %s5008_s14  ;;  %25 = sbr.rel (!%p23_p3) target bundleno = 7 (0x7), region = 107 }
 0xb97   :  { %4118 = vsyncpa [#allocation3], 1 }
 0xb98   :  { %4120 = vsyncpa [#allocation3 + $0x1], 1 }

// kernel: tpu_custom_call.1
= control target key start
LH: loop header
LB: loop body
LE: loop exit
PB: predicated region body
PF: predicated region fallthrough
CT: control target
= control target key end

     0   :  { %s6877_s0 = inlined_call_operand.vmem [shape: bf16[16,64,32], index: 0, kind: input, shape index: {}]   ;;  %s6878_s1 = inlined_call_operand.vmem [shape: bf16[32,4], index: 1, kind: input, shape index: {}]   ;;  %s6879_s2 = inlined_call_operand.vmem [shape: f32[1,4], index: 2, kind: input, shape index: {}]   ;;  %s6880_s3 = inlined_call_operand.vmem [shape: bf16[4,32], index: 3, kind: input, shape index: {}]   ;;  %s6881_s4 = inlined_call_operand.vmem [shape: f32[1,32], index: 4, kind: input, shape index: {}]   ;;  %s6882_s5 = inlined_call_operand.vmem [shape: bf16[128,64], index: 5, kind: input, shape index: {}]   ;;  %s6883_s6 = inlined_call_operand.vmem [shape: f32[1,64], index: 6, kind: input, shape index: {}]   ;;  %s6884_s7 = inlined_call_operand.vmem [shape: bf16[32,512], index: 7, kind: input, shape index: {}]   ;;  %s6885_s8 = inlined_call_operand.vmem [shape: f32[1,512], index: 8, kind: input, shape index: {}]   ;;  %s6886_s9 = inlined_call_operand.vmem [shape: bf16[512,256], index: 9, kind: input, shape index: {}]   ;;  %s6887_s10 = inlined_call_operand.vmem [shape: f32[1,256], index: 10, kind: input, shape index: {}]   ;;  %s6888_s11 = inlined_call_operand.vmem [shape: bf16[256,128], index: 11, kind: input, shape index: {}]   ;;  %s6889_s12 = inlined_call_operand.vmem [shape: f32[1,128], index: 12, kind: input, shape index: {}]   ;;  %s6890_s13 = inlined_call_operand.hbm [shape: f32[16,128], index: 13, kind: output, shape index: {}]  }
   0x1   :  { %6979 = sst [smem:[#allocation84_spill]] %s6877_s0 }
   0x2   :  { %6980 = sst [smem:[#allocation85_spill]] %s6878_s1 }
   0x3   :  { %6981 = sst [smem:[#allocation86_spill]] %s6879_s2 }
   0x4   :  { %18 = vsyncpa [#allocation3], 0 }
   0x5   :  { %20 = vsyncpa [#allocation3 + $0x1], 0  ;;  %s4983_s25 = smov 0   ;;  %s4985_s26 = smov 0  }
   0x6   :  { %s4987_s27 = smov 0   ;;  %s4989_s28 = smov 0  }
   0x7 LB: > { %s5004_s29 = sadd.s32 4294967295, %s4904_s28   ;;  %s4159_s30 = sadd.s32 4294967294, %s4904_s28   ;;  %s4904_s28 = sphi %s4989_s28, %s7203_s28   ;;  %s4900_s27 = sphi %s4987_s27, %s7202_s27   ;;  %s4896_s26 = sphi %s4985_s26, %s7201_s26   ;;  %s4892_s25 = sphi %s4983_s25, %s7200_s25  }
   0x8   : > { %s5008_s14 = sadd.s32 1, %s4904_s28   ;;  %s311_s15 = sadd.s32 1, %s4900_s27 }
   0x9   : > { %s308_s16 = ssub.s32 %s4904_s28, %s5008_s14  ;;  %p321_p0 = scmp.ne.s32.totalorder %s4900_s27, %s4896_s26 }
   0xa   : > { %p309_p1 = scmp.eq.s32.totalorder %s308_s16, 0  ;;  %p322_p2 = scmp.eq.s32.totalorder %s5004_s29, 1 }
   0xb   : > { %p327_p3 = scmp.ne.s32.totalorder %s4896_s26, %s4892_s25  ;;  %p328_p4 = scmp.eq.s32.totalorder %s4159_s30, 1 }
   0xc   : > { %s5019_s17 = scalar_select %p309_p1, %s4900_s27, %s311_s15  }
   0xd   : > { %p5021_p5 = por %p322_p2, %p321_p0  ;;  %p5025_p6 = por %p328_p4, %p327_p3 }
   0xe   : > { %p4162_p7 = scmp.ge.s32.totalorder %s4904_s28, 1  ;;  %p392_p8 = scmp.lt.s32.totalorder %s4904_s28, 3 }
  0x10   : > { %p393_p9 = pnand %p4162_p7, %p392_p8 }
  0x12   : > { %396 = sbr.rel (%p393_p9) target bundleno = 2953 (0xb89), region = 72 }
  0x19   : > { %s4164_s20 = sshll.u32 %s5004_s29, 3  ;;  %s6984_s0 = sld [smem:[#allocation84_spill]]  ;;  %vm6977_vm0 = vcmask 261120   ;;  %v510_v5 = vlaneseq  ;;  %v6986_v53 = vmov 0  ;;  %v4906_v55 = vmov 1.0|1.0  }
  0x1a   : > { %p438_p10 = scmp.lt.s32.totalorder %s4164_s20, 15  ;;  %v6989_v56 = vmov 0  ;;  %s6998_s1 = sld [smem:[#allocation85_spill]] }
  0x1b   : > { %v5077_v17 = vand.u32 127, %v510_v5  ;;  %v5098_v27 = vshrl.u32 %v510_v5, 7  ;;  %s6999_s2 = sld [smem:[#allocation86_spill]]  ;;  %s434_s15 = sand.u32 1, %s4896_s26  }
  0x1c   : > { %s7205_s20 = smov (!%p438_p10, %s4164_s20), 15  ;;  %s4320_s16 = sshll.u32 %s5004_s29, 7 }
  0x1d   : > { %s4323_s21 = sshll.u32 %s7205_s20, 5  ;;  %6985 = vst [vmem:[#allocation5_spill] sm:$0xff] %v5098_v27  ;;  %v514_v28 = vadd.s32 128, %v5077_v17  ;;  %v5121_v36 = vmul.u32 64, %v5098_v27  ;;  %s6835_s23 = scalar_lea.hbm %s6890_s13, %s4320_s16 }
  0x1e   : > { %s4912_s29 = smov [#allocation2]  }
  0x1f   : > { %s5035_s24 = scalar_lea.vmem %s6984_s0, %s4323_s21  ;;  %v519_v42 = vsub.s32 %v514_v28, %v5121_v36  ;;  %v518_v45 = vsub.s32 %v5077_v17, %v5121_v36  ;;  %s4163_s0 = sshll.u32 %s434_s15, 3 }
  0x20   : > { %v5038_v0 = vld [vmem:[%s5035_s24 + $0x40] sm:$0xff]   ;;  %v5044_v2 = vld [vmem:[%s5035_s24 + $0x48] sm:$0xff]   ;;  %v5050_v4 = vld [vmem:[%s5035_s24 + $0x50] sm:$0xff]  }
  0x21   : > { %v5041_v1 = vld [vmem:[%s5035_s24] sm:$0xff]   ;;  %v5047_v3 = vld [vmem:[%s5035_s24 + $0x8] sm:$0xff]   ;;  %4324 = vmatprep.subr.bf16.mxu0 %v5038_v0  ;;  %v868_v6 = vsel %vm6977_vm0, %v5038_v0, 4286644096  ;;  %v5058_v8 = vld [vmem:[%s5035_s24 + $0x10] sm:$0xff]   ;;  %vm523_vm1 = vcmp.ge.s32.totalorder %v519_v42, 0 }
  0x22   : > { %v818_v7 = vsel %vm6977_vm0, %v5041_v1, 4286644096  ;;  %4325 = vmatpush3.bf16.msra.mxu0 %v5041_v1  ;;  %v871_v9 = vsel %vm6977_vm0, %v5044_v2, 4286644096  ;;  %v5064_v10 = vld [vmem:[%s5035_s24 + $0x58] sm:$0xff]   ;;  %v5075_v16 = vld [vmem:[%s5035_s24 + $0x60] sm:$0xff]  }
  0x23   : > { %4326 = vmatprep.subr.bf16.mxu0 %v5044_v2  ;;  %v873_v11 = vmax.bf16 %v871_v9, %v868_v6  ;;  %v821_v12 = vsel %vm6977_vm0, %v5047_v3, 4286644096  ;;  %v5070_v13 = vld [vmem:[%s5035_s24 + $0x18] sm:$0xff]   ;;  %v875_v15 = vsel %vm6977_vm0, %v5050_v4, 4286644096  ;;  %v5083_v20 = vld [vmem:[%s5035_s24 + $0x20] sm:$0xff]  }
  0x24   : > { %v823_v14 = vmax.bf16 %v821_v12, %v818_v7  ;;  %v825_v19 = vsel %vm6977_vm0, %v5058_v8, 4286644096  ;;  %v879_v22 = vsel %vm6977_vm0, %v5064_v10, 4286644096  ;;  %v5089_v23 = vld [vmem:[%s5035_s24 + $0x68] sm:$0xff]   ;;  %v5106_v31 = vld [vmem:[%s5035_s24 + $0x70] sm:$0xff]  }
  0x25   : > { %v877_v18 = vmax.bf16 %v875_v15, %v873_v11  ;;  %v829_v25 = vsel %vm6977_vm0, %v5070_v13, 4286644096  ;;  %v5096_v26 = vld [vmem:[%s5035_s24 + $0x28] sm:$0xff]   ;;  %v893_v30 = vsel %vm6977_vm0, %v5075_v16, 4286644096  ;;  %v5110_v32 = vld [vmem:[%s5035_s24 + $0x30] sm:$0xff]  }
  0x26   : > { %4327 = vmatpush3.bf16.msra.mxu0 %v5047_v3  ;;  %v827_v21 = vmax.bf16 %v825_v19, %v823_v14  ;;  %v843_v33 = vsel %vm6977_vm0, %v5083_v20, 4286644096  ;;  %v896_v34 = vsel %vm6977_vm0, %v5089_v23, 4286644096  ;;  %v5118_v35 = vld [vmem:[%s5035_s24 + $0x78] sm:$0xff]   ;;  %v5142_v48 = vld [vmem:[%s5035_s24 + $0xc0] sm:$0xff]  }
  0x27   : > { %4328 = vmatprep.subr.bf16.mxu0 %v5050_v4  ;;  %v5091_v24 = vmax.bf16 %v879_v22, %v877_v18  ;;  %v898_v37 = vmax.bf16 %v896_v34, %v893_v30  ;;  %v846_v38 = vsel %vm6977_vm0, %v5096_v26, 4286644096  ;;  %v5127_v39 = vld [vmem:[%s5035_s24 + $0x38] sm:$0xff]   ;;  %v900_v41 = vsel %vm6977_vm0, %v5106_v31, 4286644096  ;;  %v5149_v51 = vld [vmem:[%s5035_s24 + $0xc8] sm:$0xff]  }
  0x28   : > { %v5101_v29 = vmax.bf16 %v829_v25, %v827_v21  ;;  %v848_v40 = vmax.bf16 %v846_v38, %v843_v33  ;;  %v850_v44 = vsel %vm6977_vm0, %v5110_v32, 4286644096  ;;  %v904_v47 = vsel %vm6977_vm0, %v5118_v35, 4286644096  ;;  %v5159_v54 = vld [vmem:[%s5035_s24 + $0x80] sm:$0xff]   ;;  %v5171_v57 = vld [vmem:[%s5035_s24 + $0x88] sm:$0xff]  }
  0x29   : > { %v902_v43 = vmax.bf16 %v900_v41, %v898_v37  ;;  %v854_v50 = vsel %vm6977_vm0, %v5127_v39, 4286644096  ;;  %vm527_vm2 = vcmp.lt.s32.totalorder %v519_v42, 64  ;;  %vm522_vm3 = vcmp.ge.s32.totalorder %v518_v45, 0  ;;  %v5174_v58 = vld [vmem:[%s5035_s24 + $0xd0] sm:$0xff]   ;;  %v5184_v61 = vld [vmem:[%s5035_s24 + $0xd8] sm:$0xff]  }
  0x2a   : > { %4329 = vmatpush3.bf16.msra.mxu0 %v5058_v8  ;;  %v852_v46 = vmax.bf16 %v850_v44, %v848_v40  ;;  %vm5154_vm4 = vmand %vm523_vm1, %vm527_vm2  ;;  %vm526_vm6 = vcmp.lt.s32.totalorder %v518_v45, 64  ;;  %v968_v59 = vsel %vm6977_vm0, %v5142_v48, 4286644096  ;;  %v482_v60 = vld [vmem:[%s5035_s24 + $0x90] sm:$0xff]   ;;  %v971_v62 = vsel %vm6977_vm0, %v5149_v51, 4286644096 }
  0x2b   : > { %4330 = vmatprep.subr.bf16.mxu0 %v5064_v10  ;;  %v5144_v49 = vmax.bf16 %v904_v47, %v902_v43  ;;  %v6987_v53 = vsel %vm5154_vm4, 4294967295, %v6986_v53  ;;  %vm4199_vm5 = vmpackc.low %vm5154_vm4, %vm5154_vm4  ;;  %v918_v63 = vsel %vm6977_vm0, %v5159_v54, 4286644096  ;;  %v973_v5 = vmax.bf16 %v971_v62, %v968_v59  ;;  %v5193_v6 = vld [vmem:[%s5035_s24 + $0x98] sm:$0xff]   ;;  %v5196_v7 = vld [vmem:[%s5035_s24 + $0xe0] sm:$0xff]  }
  0x2c   : > { %v5152_v52 = vmax.bf16 %v854_v50, %v852_v46  ;;  %6988 = vst [vmem:[#allocation6_spill] sm:$0xff] %v6987_v53  ;;  %4200 = vmatprep.mubr.msk.bf16.mxu0 %vm4199_vm5, %v4906_v55  ;;  %vm5166_vm7 = vmand %vm522_vm3, %vm526_vm6  ;;  %v921_v9 = vsel %vm6977_vm0, %v5171_v57, 4286644096  ;;  %v975_v11 = vsel %vm6977_vm0, %v5174_v58, 4286644096  ;;  %v5204_v15 = vld [vmem:[%s5035_s24 + $0xe8] sm:$0xff]  }
  0x2d   : > { %v6990_v56 = vsel %vm5166_vm7, 4294967295, %v6989_v56  ;;  %vm4201_vm8 = vmpackc.low %vm5166_vm7, %vm5166_vm7  ;;  %v923_v12 = vmax.bf16 %v921_v9, %v918_v63  ;;  %v977_v14 = vmax.bf16 %v975_v11, %v973_v5  ;;  %v925_v18 = vsel %vm6977_vm0, %v482_v60, 4286644096  ;;  %v486_v21 = vld [vmem:[%s5035_s24 + $0xa0] sm:$0xff]   ;;  %v488_v28 = vld [vmem:[%s5035_s24 + $0xa8] sm:$0xff]  }
  0x2e   : > { %4331 = vmatpush3.bf16.msra.mxu0 %v5070_v13  ;;  %6991 = vst [vmem:[#allocation7_spill] sm:$0xff] %v6990_v56  ;;  %v979_v19 = vsel %vm6977_vm0, %v5184_v61, 4286644096  ;;  %v516_v30 = vadd.s32 384, %v5077_v17  ;;  %v929_v33 = vsel %vm6977_vm0, %v5193_v6, 4286644096 }
  0x2f   : > { %4332 = vmatprep.subr.bf16.mxu0 %v5075_v16  ;;  %v927_v22 = vmax.bf16 %v925_v18, %v923_v12  ;;  %v5217_v25 = vmax.bf16 %v979_v19, %v977_v14  ;;  %v993_v34 = vsel %vm6977_vm0, %v5196_v7, 4286644096  ;;  %v5227_v37 = vld [vmem:[%s5035_s24 + $0xf0] sm:$0xff]   ;;  %v996_v40 = vsel %vm6977_vm0, %v5204_v15, 4286644096  ;;  %v5237_v42 = vld [vmem:[%s5035_s24 + $0xf8] sm:$0xff]  }
  0x30   : > { %v490_v41 = vld [vmem:[%s5035_s24 + $0xb0] sm:$0xff]   ;;  %v943_v43 = vsel %vm6977_vm0, %v486_v21, 4286644096  ;;  %v998_v44 = vmax.bf16 %v996_v40, %v993_v34  ;;  %v492_v45 = vld [vmem:[%s5035_s24 + $0xb8] sm:$0xff]   ;;  %v946_v46 = vsel %vm6977_vm0, %v488_v28, 4286644096  ;;  %v521_v50 = vsub.s32 %v516_v30, %v5121_v36 }
  0x31   : > { %v5230_v38 = vmax.bf16 %v929_v33, %v927_v22  ;;  %v1000_v47 = vsel %vm6977_vm0, %v5227_v37, 4286644096  ;;  %v948_v59 = vmax.bf16 %v946_v46, %v943_v43  ;;  %v950_v63 = vsel %vm6977_vm0, %v490_v41, 4286644096 }
  0x32   : > { %4333 = vmatpush3.bf16.msra.mxu0 %v5083_v20  ;;  %v1002_v62 = vmax.bf16 %v1000_v47, %v998_v44  ;;  %v1004_v9 = vsel %vm6977_vm0, %v5237_v42, 4286644096  ;;  %vm525_vm9 = vcmp.ge.s32.totalorder %v521_v50, 0  ;;  %vm529_vm10 = vcmp.lt.s32.totalorder %v521_v50, 64 }
  0x33   : > { %4334 = vmatprep.subr.bf16.mxu0 %v5089_v23  ;;  %v952_v5 = vmax.bf16 %v950_v63, %v948_v59  ;;  %v954_v11 = vsel %vm6977_vm0, %v492_v45, 4286644096  ;;  %vm5252_vm11 = vmand %vm525_vm9, %vm529_vm10  ;;  %v6992_v12 = vmov 0  ;;  %v515_v14 = vadd.s32 256, %v5077_v17 }
  0x34   : > { %v6993_v12 = vsel %vm5252_vm11, 4294967295, %v6992_v12  ;;  %vm4203_vm12 = vmpackc.low %vm5252_vm11, %vm5252_vm11  ;;  %v6995_v22 = vmov 0  ;;  %v858_v30 = vunpack.i.h.bf16 %v5152_v52  ;;  %v882_v33 = vunpack.i.l.bf16 %v5091_v24 }
  0x35   : > { %6994 = vst [vmem:[#allocation8_spill] sm:$0xff] %v6993_v12  ;;  %v956_v18 = vmax.bf16 %v954_v11, %v952_v5  ;;  %v520_v19 = vsub.s32 %v515_v14, %v5121_v36  ;;  %v832_v36 = vunpack.i.l.bf16 %v5101_v29  ;;  %v883_v34 = vunpack.i.h.bf16 %v5091_v24 }
  0x36   : > { %4335 = vmatpush3.bf16.msra.mxu0 %v5096_v26  ;;  %v907_v40 = vunpack.i.l.bf16 %v5144_v49  ;;  %v932_v59 = vunpack.i.l.bf16 %v5230_v38  ;;  %v982_v24 = vunpack.i.l.bf16 %v5217_v25  ;;  %vm6937_vm2 = vcmask 1041409  }
  0x37   : > { %4336 = vmatprep.subr.bf16.mxu0 %v5106_v31  ;;  %vm524_vm13 = vcmp.ge.s32.totalorder %v520_v19, 0  ;;  %vm528_vm14 = vcmp.lt.s32.totalorder %v520_v19, 64  ;;  %v957_v11 = vunpack.i.l.bf16 %v956_v18  ;;  %v958_v14 = vunpack.i.h.bf16 %v956_v18 }
  0x38   : > { %vm5265_vm15 = vmand %vm524_vm13, %vm528_vm14  ;;  %vm6936_vm3 = vcmask 1042434   ;;  %vm6933_vm5 = vcmask 1043459   ;;  %vm6930_vm6 = vcmask 1044484   ;;  %vm6925_vm9 = vcmask 1046534  }
  0x39   : > { %v6996_v22 = vsel %vm5265_vm15, 4294967295, %v6995_v22  ;;  %vm4205_vm1 = vmpackc.low %vm5265_vm15, %vm5265_vm15  ;;  %vm6924_vm10 = vcmask 1047559   ;;  %vm1131_vm13 = vcmask 1041408   ;;  %vm1127_vm14 = vcmask 31744  }
  0x3a   : > { %4337 = vmatpush3.bf16.msra.mxu0 %v5110_v32  ;;  %6997 = vst [vmem:[#allocation9_spill] sm:$0xff] %v6996_v22 }
  0x3b   : > { %4338 = vmatprep.subr.bf16.mxu0 %v5118_v35 }
  0x3e   : > { %4339 = vmatpush3.bf16.msra.mxu0 %v5127_v39 }
  0x3f   : > { %4346 = vmatprep.subr.bf16.mxu0 %v5142_v48 }
  0x41   : > { %4202 = vmatmul.mubr.msk.bf16.vlgmr.msra.gmra.mrb[0].mxu0 %vm4201_vm8, %v4906_v55  ;;  %vm6928_vm8 = vcmask 1045509  }
  0x42   : > { %4347 = vmatpush3.bf16.msra.mxu0 %v5159_v54  ;;  %4204 = vmatprep.mubr.msk.bf16.mxu0 %vm4203_vm12, %v4906_v55  ;;  %vm4908_vm12 = vmmov 0  }
  0x43   : > { %4348 = vmatprep.subr.bf16.mxu0 %v5149_v51 }
  0x46   : > { %4349 = vmatpush3.bf16.msra.mxu0 %v5171_v57 }
  0x47   : > { %4350 = vmatprep.subr.bf16.mxu0 %v5174_v58 }
  0x4a   : > { %4351 = vmatpush3.bf16.msra.mxu0 %v482_v60  ;;  %v1006_v60 = vmax.bf16 %v1004_v9, %v1002_v62  ;;  %v983_v9 = vunpack.i.h.bf16 %v5217_v25 }
  0x4b   : > { %4352 = vmatprep.subr.bf16.mxu0 %v5184_v61 }
  0x4e   : > { %4353 = vmatpush3.bf16.msra.mxu0 %v5193_v6 }
  0x4f   : > { %4354 = vmatprep.subr.bf16.mxu0 %v5196_v7 }
  0x52   : > { %4355 = vmatpush3.bf16.msra.mxu0 %v486_v21  ;;  %v833_v21 = vunpack.i.h.bf16 %v5101_v29 }
  0x53   : > { %4356 = vmatprep.subr.bf16.mxu0 %v5204_v15 }
  0x54   : > { %v834_v43 = vmax.f32 %v832_v36, %v833_v21 }
  0x56   : > { %4357 = vmatpush3.bf16.msra.mxu0 %v488_v28  ;;  %v857_v28 = vunpack.i.l.bf16 %v5152_v52  ;;  %v835_v46 = vrot.slane %v834_v43, 4  ;;  %v933_v52 = vunpack.i.h.bf16 %v5230_v38 }
  0x57   : > { %4358 = vmatprep.subr.bf16.mxu0 %v5227_v37 }
  0x58   : > { %v859_v44 = vmax.f32 %v857_v28, %v858_v30  ;;  %v836_v62 = vmax.f32 %v834_v43, %v835_v46  ;;  %v934_v19 = vmax.f32 %v932_v59, %v933_v52  ;;  %v1007_v28 = vunpack.i.l.bf16 %v1006_v60 }
  0x59   : > { %v1008_v30 = vunpack.i.h.bf16 %v1006_v60 }
  0x5a   : > { %4359 = vmatpush3.bf16.msra.mxu0 %v490_v41  ;;  %v908_v41 = vunpack.i.h.bf16 %v5144_v49  ;;  %v860_v47 = vrot.slane %v859_v44, 4  ;;  %v837_v36 = vrot.slane %v836_v62, 2  ;;  %v935_v38 = vrot.slane %v934_v19, 4 }
  0x5b   : > { %4360 = vmatprep.subr.bf16.mxu0 %v5237_v42 }
  0x5c   : > { %v861_v63 = vmax.f32 %v859_v44, %v860_v47  ;;  %v838_v43 = vmax.f32 %v836_v62, %v837_v36 }
  0x5e   : > { %4361 = vmatpush3.bf16.msra.mxu0 %v492_v45  ;;  %v884_v45 = vmax.f32 %v882_v33, %v883_v34  ;;  %v862_v21 = vrot.slane %v861_v63, 2  ;;  %v984_v34 = vmax.f32 %v982_v24, %v983_v9 }
  0x60   : > { %v885_v50 = vrot.slane %v884_v45, 4  ;;  %v863_v44 = vmax.f32 %v861_v63, %v862_v21  ;;  %v985_v47 = vrot.slane %v984_v34, 4 }
  0x61   : > { %4206 = vmatmul.mubr.msk.bf16.vlgmr.msra.gmra.mrb[4].mxu0 %vm4205_vm1, %v4906_v55  ;;  %v909_v55 = vmax.f32 %v907_v40, %v908_v41  ;;  %v959_v41 = vmax.f32 %v957_v11, %v958_v14  ;;  %vm1922_vm1 = vcmask 130112  }
  0x62   : > { %v886_v5 = vmax.f32 %v884_v45, %v885_v50  ;;  %v1009_v45 = vmax.f32 %v1007_v28, %v1008_v30  ;;  %v864_v18 = vrot.slane %v863_v44, 1  ;;  %v986_v22 = vmax.f32 %v984_v34, %v985_v47 }
  0x63   : > { %v910_v29 = vrot.slane %v909_v55, 4  ;;  %v960_v25 = vrot.slane %v959_v41, 4 }
  0x64   : > { %v887_v33 = vrot.slane %v886_v5, 2  ;;  %v1010_v59 = vrot.slane %v1009_v45, 4  ;;  %v865_v9 = vmax.f32 %v863_v44, %v864_v18  ;;  %v987_v62 = vrot.slane %v986_v22, 2 }
  0x65   : > { %v911_v49 = vmax.f32 %v909_v55, %v910_v29  ;;  %v936_v55 = vmax.f32 %v934_v19, %v935_v38  ;;  %v839_v29 = vrot.slane %v838_v43, 1  ;;  %v961_v60 = vmax.f32 %v959_v41, %v960_v25 }
  0x66   : > { %v888_v46 = vmax.f32 %v886_v5, %v887_v33  ;;  %v1011_v11 = vmax.f32 %v1009_v45, %v1010_v59  ;;  %v988_v30 = vmax.f32 %v986_v22, %v987_v62 }
  0x67   : > { %v912_v40 = vrot.slane %v911_v49, 2  ;;  %v937_v12 = vrot.slane %v936_v55, 2  ;;  %v840_v24 = vmax.f32 %v838_v43, %v839_v29  ;;  %v962_v36 = vrot.slane %v961_v60, 2 }
  0x68   : > { %v889_v52 = vrot.slane %v888_v46, 1  ;;  %v1012_v28 = vrot.slane %v1011_v11, 2  ;;  %v989_v45 = vrot.slane %v988_v30, 1 }
  0x69   : > { %v913_v50 = vmax.f32 %v911_v49, %v912_v40  ;;  %v938_v5 = vmax.f32 %v936_v55, %v937_v12  ;;  %v841_v21 = vpack.i.bf16 %v840_v24, %v840_v24  ;;  %v866_v49 = vpack.i.bf16 %v865_v9, %v865_v9  ;;  %v4655_v24 = vld [vmem:[%s6998_s1] sm:$0xff]  }
  0x6a   : > { %v890_v14 = vmax.f32 %v888_v46, %v889_v52  ;;  %v963_v40 = vmax.f32 %v961_v60, %v962_v36  ;;  %v1013_v25 = vmax.f32 %v1011_v11, %v1012_v28  ;;  %v990_v12 = vmax.f32 %v988_v30, %v989_v45  ;;  %v4656_v28 = vld [vmem:[%s6998_s1 + $0x8] sm:$0xff]   ;;  %s4087_s1 = scalar_lea.sflag [#allocation3], %s434_s15 }
  0x6b   : > { %v914_v56 = vrot.slane %v913_v50, 1  ;;  %v939_v38 = vrot.slane %v938_v5, 1  ;;  %v1017_v34 = vunpack.c.l.bf16 %v841_v21  ;;  %v1018_v47 = vunpack.c.l.bf16 %v866_v49 }
  0x6c   : > { %v891_v19 = vpack.i.bf16 %v890_v14, %v890_v14  ;;  %v964_v41 = vrot.slane %v963_v40, 1  ;;  %v991_v59 = vpack.i.bf16 %v990_v12, %v990_v12  ;;  %v6894_v21 = vmov 0.0   ;;  %v4207_v12 = vld [vmem:[%s6999_s2] ss:$0 sm:$0xff] }
  0x6d   : > { %v915_v63 = vmax.f32 %v913_v50, %v914_v56  ;;  %v940_v44 = vmax.f32 %v938_v5, %v939_v38  ;;  %v1014_v56 = vrot.slane %v1013_v25, 1  ;;  %v1034_v22 = vsel %vm6937_vm2, %v1018_v47, %v1017_v34  ;;  %4474 = vmatprep.subr.bf16.mxu0 %v6894_v21  ;;  %4478 = vmatprep.mubr.msk.bf16.mxu0 %vm4908_vm12, %v6894_v21 }
  0x6e   : > { %v1019_v43 = vunpack.c.l.bf16 %v891_v19  ;;  %v965_v29 = vmax.f32 %v963_v40, %v964_v41  ;;  %v1023_v62 = vunpack.c.l.bf16 %v991_v59  ;;  %4475 = vmatpush3.bf16.msra.mxu0 %v4655_v24  ;;  %vm2349_vm2 = vcmask 917312  }
  0x6f   : > { %v916_v33 = vpack.i.bf16 %v915_v63, %v915_v63  ;;  %v941_v50 = vpack.i.bf16 %v940_v44, %v940_v44  ;;  %v1015_v18 = vmax.f32 %v1013_v25, %v1014_v56  ;;  %4476 = vmatprep.subr.bf16.mxu0 %v6894_v21  ;;  %v1119_v56 = vld [vmem:[%s6880_s3] sm:$0x3] }
  0x70   : > { %v966_v55 = vpack.i.bf16 %v965_v29, %v965_v29  ;;  %v1036_v60 = vsel %vm6936_vm3, %v1019_v43, %v1034_v22  ;;  %vm6939_vm3 = vcmask 851712  }
  0x71   : > { %v1020_v46 = vunpack.c.l.bf16 %v916_v33  ;;  %v1021_v52 = vunpack.c.l.bf16 %v941_v50  ;;  %v1016_v9 = vpack.i.bf16 %v1015_v18, %v1015_v18  ;;  %v1133_v50 = vsel %vm1131_vm13, %v1119_v56, 0 }
  0x72   : > { %v1022_v11 = vunpack.c.l.bf16 %v966_v55  ;;  %4477 = vmatpush3.bf16.msra.mxu0 %v4656_v28  ;;  %v1183_v56 = vunpack.c.l.bf16 %v5041_v1  ;;  %vm6953_vm13 = vcmask 261312  }
  0x73   : > { %v1038_v14 = vsel %vm6933_vm5, %v1020_v46, %v1036_v60  ;;  %v1024_v36 = vunpack.c.l.bf16 %v1016_v9  ;;  %4482 = vmatprep.subr.bf16.mxu0 %v6894_v21  ;;  %vm6938_vm5 = vcmask 786112  }
  0x74   : > { %v1040_v63 = vsel %vm6930_vm6, %v1021_v52, %v1038_v14  ;;  %v4211_v14 = vld [vmem:[%s6881_s4] ss:$0 sm:$0xff]  ;;  %vm2328_vm6 = vcmask 720512  }
  0x75   : > { %v1042_v5 = vsel %vm6928_vm8, %v1022_v11, %v1040_v63  ;;  %vm2321_vm8 = vcmask 654912  }
  0x76   : > { %v1044_v49 = vsel %vm6925_vm9, %v1023_v62, %v1042_v5  ;;  %vm6940_vm9 = vcmask 458112  }
  0x77   : > { %v1046_v19 = vsel %vm6924_vm10, %v1024_v36, %v1044_v49  ;;  %vm1950_vm10 = vcmask 392512  }
 0x114   : > { %v4340_v30 = vpop.f32.mrb[0].mxu0 }
 0x115   : > { %v4341_v33 = vpop.f32.mrb[1].mxu0 }
 0x116   : > { %v4342_v40 = vadd.f32 %v4341_v33, %v4340_v30  ;;  %v4343_v38 = vpop.f32.mrb[2].mxu0 }
 0x117   : > { %v4344_v34 = vpop.f32.mrb[3].mxu0  ;;  %v4909_v38 = vmov 1966171168  }
 0x118   : > { %v1250_v34 = vunpack.c.l.s4 %v4909_v38 }
 0x134   : > { %v4362_v47 = vpop.f32.mrb[4].mxu0 }
 0x135   : > { %v4363_v41 = vpop.f32.mrb[5].mxu0 }
 0x136   : > { %v4364_v25 = vadd.f32 %v4363_v41, %v4362_v47  ;;  %v4365_v43 = vpop.f32.mrb[6].mxu0  ;;  %v1251_v47 = vunpack.c.0.s8 %v1250_v34 }
 0x137   : > { %v4366_v44 = vpop.f32.mrb[7].mxu0 }
 0x138   : > { %v809_v45 = vadd.f32 %v4364_v25, %v4342_v40  ;;  %v5319_v41 = vsub.s32 %v1251_v47, %v5098_v27 }
 0x13a   : > { %v814_v46 = vmul.f32 0.015625, %v809_v45  ;;  %v5323_v45 = vsub.s32 0, %v5098_v27 }
 0x13c   : > { %v1048_v29 = vpack.c.bf16 %v1046_v19, %v814_v46  ;;  %7000 = vst [vmem:[#allocation10_spill] sm:$0xff] %v5323_v45 }
 0x13e   : > { %4479 = vmatmul.mubr.msk.bf16.vlgmr.msra.gmra.mrb[8].mxu0 %vm6977_vm0, %v1048_v29 }
 0x13f   : > { %4484 = vmatprep.mubr.msk.bf16.mxu0 %vm4908_vm12, %v6894_v21  ;;  %4483 = vmatpush3.bf16.msra.mxu0 %v1133_v50  ;;  %v1187_v50 = vunpack.c.l.bf16 %v5058_v8 }
 0x140   : > { %4488 = vmatprep.subr.bf16.mxu0 %v6894_v21 }
 0x211   : > { %v1109_v55 = vpop.f32.mrb[8].mxu0 }
 0x212   : > { %v1110_v18 = vadd.f32 %v4207_v12, %v1109_v55  ;;  %v4480_v22 = vpop.f32.mrb[9].mxu0 }
 0x213   : > { %v1112_v59 = vpop.f32.mrb[10].mxu0  ;;  %v1185_v22 = vunpack.c.l.bf16 %v5047_v3 }
 0x214   : > { %v1113_v52 = vadd.f32 %v4207_v12, %v1112_v59  ;;  %v4481_v60 = vpop.f32.mrb[11].mxu0  ;;  %v1116_v24 = vmax.f32 %v1110_v18, 0.0  ;;  %v1184_v18 = vunpack.c.h.bf16 %v5041_v1  ;;  %v1199_v1 = vunpack.c.l.bf16 %v5038_v0 }
 0x215   : > { %v1188_v60 = vunpack.c.h.bf16 %v5058_v8  ;;  %v1191_v8 = vunpack.c.l.bf16 %v5083_v20 }
 0x216   : > { %v1117_v9 = vmax.f32 %v1113_v52, 0.0  ;;  %v1186_v52 = vunpack.c.h.bf16 %v5047_v3  ;;  %v1190_v3 = vunpack.c.h.bf16 %v5070_v13 }
 0x218   : > { %v1118_v11 = vpack.c.bf16 %v1117_v9, %v1116_v24 }
 0x21a   : > { %4485 = vmatmul.mubr.msk.bf16.vlgmr.msra.gmra.mrb[12].mxu0 %vm1127_vm14, %v1118_v11  ;;  %v1189_v11 = vunpack.c.l.bf16 %v5070_v13  ;;  %v1193_v13 = vunpack.c.l.bf16 %v5096_v26  ;;  %vm6978_vm14 = vcmask 326912  }
 0x21b   : > { %4504 = vmatprep.mubr.msk.bf16.mxu0 %vm4908_vm12, %v6894_v21  ;;  %v1239_v21 = vunpack.c.l.bf16 %v5196_v7  ;;  %vm6954_vm12 = vcmask 195712  }
 0x2ed   : > { %v1169_v62 = vpop.f32.mrb[12].mxu0 }
 0x2ee   : > { %v4486_v63 = vpop.f32.mrb[13].mxu0  ;;  %v1170_v5 = vadd.f32 %v4211_v14, %v1169_v62 }
 0x2ef   : > { %v1172_v36 = vpop.f32.mrb[14].mxu0 }
 0x2f0   : > { %v1173_v49 = vadd.f32 %v4211_v14, %v1172_v36  ;;  %v4487_v28 = vpop.f32.mrb[15].mxu0  ;;  %v1201_v36 = vunpack.c.l.bf16 %v5044_v2 }
 0x2f2   : > { %v1176_v19 = vadd.f32 %v1173_v49, %v1170_v5 }
 0x2f4   : > { %v4213_v30 = vmul.f32 -1.442695, %v1176_v19  ;;  %v1192_v19 = vunpack.c.h.bf16 %v5083_v20  ;;  %v1194_v20 = vunpack.c.h.bf16 %v5096_v26 }
 0x2f6   : > { %4821 = vpow2.f32 %v4213_v30 }
 0x300   : > { %v4822_v33 = vpop.eup %4821 }
 0x301   : > { %v1180_v40 = vadd.f32 1.0, %v4822_v33 }
 0x303   : > { %4823 = vrcp.f32 %v1180_v40 }
 0x30d   : > { %v4824_v25 = vpop.eup %4823 }
 0x30e   : > { %v1248_v43 = vcombine.high %v4824_v25, %v4824_v25  ;;  %v1255_v44 = vrot.slane %v4824_v25, %v5319_v41  ;;  %v1200_v25 = vunpack.c.h.bf16 %v5038_v0 }
 0x310   : > { %v5326_v46 = vrot.slane %v1248_v43, %v5319_v41  ;;  %v1271_v29 = vrot.slane %v1255_v44, %v5319_v41  ;;  %v1263_v12 = vcombine.high %v1255_v44, %v1255_v44  ;;  %v1195_v43 = vunpack.c.l.bf16 %v5110_v32 }
 0x312   : > { %v1264_v55 = vcombine.high %v5326_v46, %v5326_v46  ;;  %v1300_v59 = vrot.slane %v1271_v29, %v5323_v45  ;;  %v1293_v9 = vcombine.high %v1271_v29, %v1271_v29  ;;  %v1285_v14 = vrot.slane %v1263_v12, %v5319_v41 }
 0x314   : > { %v5339_v24 = vrot.slane %v1264_v55, %v5319_v41  ;;  %v5343_v62 = vmul.f32 %v1300_v59, %v1183_v56  ;;  %v5345_v63 = vmul.f32 %v1300_v59, %v1187_v50  ;;  %v5355_v28 = vmul.f32 %v1300_v59, %v1184_v18 }
 0x315   : > { %v1308_v30 = vrot.slane %v1293_v9, %v5323_v45  ;;  %v5359_v33 = vmul.f32 %v1300_v59, %v1185_v22  ;;  %v5361_v40 = vmul.f32 %v1300_v59, %v1188_v60  ;;  %v1304_v38 = vrot.slane %v1285_v14, %v5323_v45 }
 0x316   : > { %7001 = vst [vmem:[#allocation11_spill] sm:$0xff] %v5343_v62  ;;  %7002 = vst [vmem:[#allocation12_spill] sm:$0xff] %v5345_v63  ;;  %v1657_v5 = vsel %vm6977_vm0, %v5343_v62, -inf  ;;  %v1401_v49 = vsel %vm6977_vm0, %v5343_v62, 0.0  ;;  %v5365_v34 = vmul.f32 %v1300_v59, %v1186_v52  ;;  %v5367_v47 = vmul.f32 %v1300_v59, %v1189_v11 }
 0x317   : > { %7003 = vst [vmem:[#allocation13_spill] sm:$0xff] %v5355_v28  ;;  %1658 = vmax.xlane.f32.xlu1 %v1657_v5  ;;  %1402 = vadd.xlane.f32.xlu0 %v1401_v49  ;;  %7004 = vst [vmem:[#allocation14_spill] sm:$0xff] %v5359_v33  ;;  %v5372_v44 = vmul.f32 %v1300_v59, %v1190_v3  ;;  %v1413_v29 = vsel %vm6977_vm0, %v5345_v63, 0.0  ;;  %v1404_v56 = vsel %vm6977_vm0, %v5355_v28, 0.0  ;;  %v1202_v50 = vunpack.c.h.bf16 %v5044_v2 }
 0x318   : > { %7005 = vst [vmem:[#allocation15_spill] sm:$0xff] %v5361_v40  ;;  %7006 = vst [vmem:[#allocation16_spill] sm:$0xff] %v5365_v34  ;;  %v5379_v12 = vmul.f32 %v1308_v30, %v1199_v1  ;;  %v5381_v55 = vmul.f32 %v1304_v38, %v1191_v8  ;;  %v5383_v0 = vmul.f32 %v1308_v30, %v1201_v36  ;;  %v1196_v22 = vunpack.c.h.bf16 %v5110_v32 }
 0x319   : > { %7007 = vst [vmem:[#allocation17_spill] sm:$0xff] %v5367_v47  ;;  %7008 = vst [vmem:[#allocation18_spill] sm:$0xff] %v5372_v44  ;;  %v5385_v26 = vmul.f32 %v1304_v38, %v1192_v19  ;;  %v5387_v18 = vmul.f32 %v1304_v38, %v1193_v13  ;;  %v5390_v59 = vmul.f32 %v1304_v38, %v1195_v43  ;;  %v1197_v2 = vunpack.c.l.bf16 %v5127_v39 }
 0x31a   : > { %7009 = vst [vmem:[#allocation19_spill] sm:$0xff] %v5379_v12  ;;  %7010 = vst [vmem:[#allocation20_spill] sm:$0xff] %v5381_v55  ;;  %v5392_v52 = vmul.f32 %v1308_v30, %v1200_v25  ;;  %v5394_v60 = vmul.f32 %v1304_v38, %v1194_v20  ;;  %v1663_v9 = vsel %vm6977_vm0, %v5359_v33, -inf  ;;  %v1407_v11 = vsel %vm6977_vm0, %v5359_v33, 0.0 }
 0x31b   : > { %1414 = vadd.xlane.f32.xlu1 %v1413_v29  ;;  %1405 = vadd.xlane.f32.xlu0 %v1404_v56  ;;  %7011 = vst [vmem:[#allocation21_spill] sm:$0xff] %v5383_v0  ;;  %7012 = vst [vmem:[#allocation22_spill] sm:$0xff] %v5385_v26  ;;  %v1203_v1 = vunpack.c.l.bf16 %v5050_v4  ;;  %v5402_v36 = vmul.f32 %v1308_v30, %v1202_v50  ;;  %v1204_v32 = vunpack.c.h.bf16 %v5050_v4  ;;  %v1198_v3 = vunpack.c.h.bf16 %v5127_v39 }
 0x31c   : > { %7013 = vst [vmem:[#allocation23_spill] sm:$0xff] %v5387_v18  ;;  %7014 = vst [vmem:[#allocation24_spill] sm:$0xff] %v5390_v59  ;;  %v1295_v8 = vcombine.high %v1285_v14, %v1285_v14  ;;  %v5406_v5 = vmul.f32 %v1304_v38, %v1196_v22  ;;  %v1416_v49 = vsel %vm6977_vm0, %v5361_v40, 0.0  ;;  %v1410_v19 = vsel %vm6977_vm0, %v5365_v34, 0.0 }
 0x31d   : > { %7015 = vst [vmem:[#allocation25_spill] sm:$0xff] %v5392_v52  ;;  %7016 = vst [vmem:[#allocation26_spill] sm:$0xff] %v5394_v60  ;;  %v5412_v13 = vmul.f32 %v1304_v38, %v1197_v2  ;;  %v5414_v25 = vmul.f32 %v1308_v30, %v1203_v1  ;;  %v1205_v20 = vunpack.c.l.bf16 %v5064_v10  ;;  %v1206_v4 = vunpack.c.h.bf16 %v5064_v10 }
 0x31e   : > { %7017 = vst [vmem:[#allocation27_spill] sm:$0xff] %v5402_v36  ;;  %7018 = vst [vmem:[#allocation28_spill] sm:$0xff] %v5406_v5  ;;  %v1208_v39 = vunpack.c.h.bf16 %v5075_v16  ;;  %v1278_v14 = vrot.slane %v5326_v46, %v5319_v41  ;;  %v1209_v43 = vunpack.c.l.bf16 %v5089_v23  ;;  %v5423_v29 = vrot.slane %v1295_v8, %v5323_v45 }
 0x31f   : > { %1664 = vmax.xlane.f32.xlu1 %v1663_v9  ;;  %1408 = vadd.xlane.f32.xlu0 %v1407_v11  ;;  %7019 = vst [vmem:[#allocation29_spill] sm:$0xff] %v5412_v13  ;;  %7020 = vst [vmem:[#allocation30_spill] sm:$0xff] %v5414_v25  ;;  %v5425_v56 = vmul.f32 %v1304_v38, %v1198_v3  ;;  %v5427_v50 = vmul.f32 %v1308_v30, %v1204_v32  ;;  %v1419_v22 = vsel %vm6977_vm0, %v5367_v47, 0.0 }
 0x320   : > { %v1660_v10 = vsel %vm6977_vm0, %v5355_v28, -inf  ;;  %v1210_v16 = vunpack.c.h.bf16 %v5089_v23  ;;  %v1294_v41 = vcombine.high %v1278_v14, %v1278_v14  ;;  %v5434_v46 = vmul.f32 %v1308_v30, %v1205_v20 }
 0x321   : > { %7021 = vst [vmem:[#allocation31_spill] sm:$0xff] %v5425_v56  ;;  %7022 = vst [vmem:[#allocation32_spill] sm:$0xff] %v5427_v50  ;;  %v5437_v2 = vmul.f32 %v5423_v29, %v1208_v39  ;;  %v5439_v38 = vmul.f32 %v1308_v30, %v1206_v4  ;;  %v5442_v9 = vmul.f32 %v5423_v29, %v1209_v43  ;;  %v1211_v11 = vunpack.c.l.bf16 %v5106_v31  ;;  %v4833_v4 = vld [vmem:[%s5035_s24 + $0x60] sm:$0xff]  }
 0x322   : > { %7023 = vst [vmem:[#allocation33_spill] sm:$0xff] %v5434_v46  ;;  %v1669_v1 = vsel %vm6977_vm0, %v5345_v63, -inf  ;;  %v1666_v23 = vsel %vm6977_vm0, %v5365_v34, -inf  ;;  %v1232_v32 = vunpack.c.h.bf16 %v5142_v48  ;;  %v5451_v3 = vrot.slane %v1294_v41, %v5323_v45 }
 0x323   : > { %1417 = vadd.xlane.f32.xlu1 %v1416_v49  ;;  %1411 = vadd.xlane.f32.xlu0 %v1410_v19  ;;  %7024 = vst [vmem:[#allocation34_spill] sm:$0xff] %v5437_v2  ;;  %7025 = vst [vmem:[#allocation35_spill] sm:$0xff] %v5439_v38  ;;  %v5454_v30 = vmul.f32 %v5423_v29, %v1210_v16  ;;  %v1212_v8 = vunpack.c.h.bf16 %v5106_v31  ;;  %v1422_v49 = vsel %vm6977_vm0, %v5372_v44, 0.0  ;;  %v1672_v19 = vsel %vm6977_vm0, %v5361_v40, -inf }
 0x324   : > { %7026 = vst [vmem:[#allocation36_spill] sm:$0xff] %v5442_v9  ;;  %v5462_v20 = vmul.f32 %v5423_v29, %v1211_v11  ;;  %v1207_v39 = vunpack.c.l.bf16 %v4833_v4  ;;  %v5466_v43 = vmul.f32 %v5451_v3, %v1232_v32  ;;  %v1678_v31 = vsel %vm6977_vm0, %v5372_v44, -inf }
 0x325   : > { %7027 = vst [vmem:[#allocation37_spill] sm:$0xff] %v5454_v30  ;;  %v1213_v41 = vunpack.c.l.bf16 %v5118_v35  ;;  %v1231_v11 = vunpack.c.l.bf16 %v5142_v48  ;;  %v1233_v32 = vunpack.c.l.bf16 %v5149_v51  ;;  %v1428_v35 = vsel %vm6977_vm0, %v5385_v26, 0.0 }
 0x326   : > { %7028 = vst [vmem:[#allocation38_spill] sm:$0xff] %v5462_v20  ;;  %7029 = vst [vmem:[#allocation39_spill] sm:$0xff] %v5466_v43  ;;  %v5476_v16 = vmul.f32 %v5423_v29, %v1207_v39  ;;  %v1235_v4 = vunpack.c.l.bf16 %v5174_v58  ;;  %v1241_v44 = vunpack.c.l.bf16 %v5204_v15 }
 0x327   : > { %1420 = vadd.xlane.f32.xlu1 %v1419_v22  ;;  %1661 = vmax.xlane.f32.xlu0 %v1660_v10  ;;  %v1675_v22 = vsel %vm6977_vm0, %v5367_v47, -inf  ;;  %v5473_v10 = vmul.f32 %v5423_v29, %v1212_v8  ;;  %v5486_v8 = vmul.f32 %v5423_v29, %v1213_v41  ;;  %v5493_v48 = vmul.f32 %v5451_v3, %v1231_v11 }
 0x328   : > { %7031 = vst [vmem:[#allocation41_spill] sm:$0xff] %v5476_v16  ;;  %v5498_v39 = vmul.f32 %v5451_v3, %v1233_v32  ;;  %v1431_v41 = vsel %vm6977_vm0, %v5387_v18, 0.0  ;;  %v1216_v11 = vunpack.c.h.bf16 %v5159_v54  ;;  %v5513_v32 = vmul.f32 %v5451_v3, %v1235_v4 }
 0x329   : > { %7030 = vst [vmem:[#allocation40_spill] sm:$0xff] %v5473_v10  ;;  %7032 = vst [vmem:[#allocation42_spill] sm:$0xff] %v5486_v8  ;;  %v1434_v47 = vsel %vm6977_vm0, %v5394_v60, 0.0 }
 0x32a   : > { %7033 = vst [vmem:[#allocation43_spill] sm:$0xff] %v5493_v48  ;;  %7034 = vst [vmem:[#allocation44_spill] sm:$0xff] %v5498_v39 }
 0x32b   : > { %1670 = vmax.xlane.f32.xlu1 %v1669_v1  ;;  %1667 = vmax.xlane.f32.xlu0 %v1666_v23  ;;  %v1449_v1 = vsel %vm6977_vm0, %v5379_v12, 0.0  ;;  %v1425_v23 = vsel %vm6977_vm0, %v5381_v55, 0.0  ;;  %7036 = vst [vmem:[#allocation46_spill] sm:$0xff] %v5513_v32 }
 0x32f   : > { %1423 = vadd.xlane.f32.xlu1 %v1422_v49  ;;  %1673 = vmax.xlane.f32.xlu0 %v1672_v19  ;;  %v1455_v49 = vsel %vm6977_vm0, %v5383_v0, 0.0  ;;  %v1234_v19 = vunpack.c.h.bf16 %v5149_v51 }
 0x333   : > { %1676 = vmax.xlane.f32.xlu1 %v1675_v22  ;;  %1679 = vmax.xlane.f32.xlu0 %v1678_v31  ;;  %v5501_v22 = vrot.slane %v1278_v14, %v5323_v45  ;;  %v1684_v31 = vsel %vm6977_vm0, %v5385_v26, -inf  ;;  %v1296_v14 = vcombine.high %v5339_v24, %v5339_v24 }
 0x335   : > { %v1328_v26 = vrot.slane %v1296_v14, %v5323_v45  ;;  %v1243_v14 = vunpack.c.l.bf16 %v5227_v37 }
 0x337   : > { %1450 = vadd.xlane.f32.xlu0 %v1449_v1  ;;  %1426 = vadd.xlane.f32.xlu1 %v1425_v23  ;;  %v4834_v1 = vld [vmem:[%s5035_s24 + $0x78] sm:$0xff]   ;;  %v5510_v23 = vmul.f32 %v5451_v3, %v1234_v19  ;;  %v1236_v19 = vunpack.c.h.bf16 %v5174_v58 }
 0x338   : > { %v1214_v51 = vunpack.c.h.bf16 %v4834_v1  ;;  %v1238_v1 = vunpack.c.h.bf16 %v5184_v61 }
 0x339   : > { %7035 = vst [vmem:[#allocation45_spill] sm:$0xff] %v5510_v23 }
 0x33a   : > { %v5527_v4 = vmul.f32 %v5423_v29, %v1214_v51  ;;  %v1240_v29 = vunpack.c.h.bf16 %v5196_v7  ;;  %v1242_v51 = vunpack.c.h.bf16 %v5204_v15  ;;  %v5549_v40 = vmul.f32 %v5451_v3, %v1238_v1 }
 0x33b   : > { %1456 = vadd.xlane.f32.xlu0 %v1455_v49  ;;  %1429 = vadd.xlane.f32.xlu1 %v1428_v35  ;;  %v1237_v49 = vunpack.c.l.bf16 %v5184_v61  ;;  %v1437_v35 = vsel %vm6977_vm0, %v5390_v59, 0.0  ;;  %v5542_v61 = vmul.f32 %v5451_v3, %v1236_v19  ;;  %v1681_v7 = vsel %vm6977_vm0, %v5381_v55, -inf }
 0x33c   : > { %7038 = vst [vmem:[#allocation48_spill] sm:$0xff] %v5527_v4  ;;  %7041 = vst [vmem:[#allocation51_spill] sm:$0xff] %v5549_v40  ;;  %v1215_v19 = vunpack.c.l.bf16 %v5159_v54  ;;  %v5558_v15 = vmul.f32 %v1328_v26, %v1241_v44  ;;  %v1458_v55 = vsel %vm6977_vm0, %v5402_v36, 0.0  ;;  %v1708_v54 = vsel %vm6977_vm0, %v5392_v52, -inf }
 0x33d   : > { %v5538_v58 = vmul.f32 %v5451_v3, %v1237_v49  ;;  %7040 = vst [vmem:[#allocation50_spill] sm:$0xff] %v5542_v61  ;;  %v5551_v49 = vmul.f32 %v1328_v26, %v1239_v21  ;;  %v5563_v3 = vmul.f32 %v1328_v26, %v1243_v14  ;;  %v5565_v21 = vmul.f32 %v1328_v26, %v1242_v51 }
 0x33e   : > { %7043 = vst [vmem:[#allocation53_spill] sm:$0xff] %v5558_v15  ;;  %v5574_v44 = vmul.f32 %v5501_v22, %v1215_v19  ;;  %v1440_v51 = vsel %vm6977_vm0, %v5406_v5, 0.0  ;;  %v1693_v19 = vsel %vm6977_vm0, %v5390_v59, -inf  ;;  %v1732_v59 = vsel %vm6977_vm0, %v5437_v2, -inf }
 0x33f   : > { %1685 = vmax.xlane.f32.xlu0 %v1684_v31  ;;  %1432 = vadd.xlane.f32.xlu1 %v1431_v41  ;;  %v1452_v31 = vsel %vm6977_vm0, %v5392_v52, 0.0  ;;  %v5523_v41 = vmul.f32 %v5501_v22, %v1216_v11  ;;  %7039 = vst [vmem:[#allocation49_spill] sm:$0xff] %v5538_v58  ;;  %7042 = vst [vmem:[#allocation52_spill] sm:$0xff] %v5551_v49 }
 0x340   : > { %7045 = vst [vmem:[#allocation55_spill] sm:$0xff] %v5563_v3  ;;  %7046 = vst [vmem:[#allocation56_spill] sm:$0xff] %v5565_v21  ;;  %v1497_v14 = vsel %vm6977_vm0, %v5574_v44, 0.0 }
 0x341   : > { %7037 = vst [vmem:[#allocation47_spill] sm:$0xff] %v5523_v41  ;;  %v1500_v11 = vsel %vm6977_vm0, %v5523_v41, 0.0  ;;  %7048 = vst [vmem:[#allocation58_spill] sm:$0xff] %v5574_v44 }
 0x343   : > { %1438 = vadd.xlane.f32.xlu0 %v1437_v35  ;;  %1453 = vadd.xlane.f32.xlu1 %v1452_v31  ;;  %v1244_v35 = vunpack.c.h.bf16 %v5227_v37  ;;  %v1245_v31 = vunpack.c.l.bf16 %v5237_v42  ;;  %v5561_v37 = vmul.f32 %v1328_v26, %v1240_v29 }
 0x345   : > { %7044 = vst [vmem:[#allocation54_spill] sm:$0xff] %v5561_v37  ;;  %v5567_v1 = vmul.f32 %v1328_v26, %v1245_v31  ;;  %v1711_v31 = vsel %vm6977_vm0, %v5383_v0, -inf }
 0x347   : > { %1435 = vadd.xlane.f32.xlu1 %v1434_v47  ;;  %1501 = vadd.xlane.f32.xlu0 %v1500_v11  ;;  %v1687_v47 = vsel %vm6977_vm0, %v5387_v18, -inf  ;;  %v1246_v11 = vunpack.c.h.bf16 %v5237_v42  ;;  %7047 = vst [vmem:[#allocation57_spill] sm:$0xff] %v5567_v1  ;;  %v5576_v42 = vmul.f32 %v1328_v26, %v1244_v35  ;;  %v1705_v35 = vsel %vm6977_vm0, %v5379_v12, -inf }
 0x349   : > { %7049 = vst [vmem:[#allocation59_spill] sm:$0xff] %v5576_v42  ;;  %v5578_v29 = vmul.f32 %v1328_v26, %v1246_v11  ;;  %v1443_v26 = vsel %vm6977_vm0, %v5412_v13, 0.0 }
 0x34b   : > { %1682 = vmax.xlane.f32.xlu1 %v1681_v7  ;;  %1688 = vmax.xlane.f32.xlu0 %v1687_v47  ;;  %7050 = vst [vmem:[#allocation60_spill] sm:$0xff] %v5578_v29  ;;  %v1461_v7 = vsel %vm6977_vm0, %v5414_v25, 0.0 }
 0x34f   : > { %1459 = vadd.xlane.f32.xlu1 %v1458_v55  ;;  %1709 = vmax.xlane.f32.xlu0 %v1708_v54  ;;  %v1217_v55 = vunpack.c.l.bf16 %v5171_v57  ;;  %v1756_v57 = vsel %vm6977_vm0, %v5523_v41, -inf  ;;  %v1690_v54 = vsel %vm6977_vm0, %v5394_v60, -inf }
 0x351   : > { %v5594_v47 = vmul.f32 %v5501_v22, %v1217_v55 }
 0x353   : > { %1441 = vadd.xlane.f32.xlu0 %v1440_v51  ;;  %1498 = vadd.xlane.f32.xlu1 %v1497_v14  ;;  %7051 = vst [vmem:[#allocation61_spill] sm:$0xff] %v5594_v47  ;;  %v1503_v11 = vsel %vm6977_vm0, %v5594_v47, 0.0  ;;  %v4835_v51 = vld [vmem:[%s5035_s24 + $0x88] sm:$0xff]  }
 0x354   : > { %v1218_v14 = vunpack.c.h.bf16 %v4835_v51  ;;  %v1753_v51 = vsel %vm6977_vm0, %v5574_v44, -inf }
 0x356   : > { %v5610_v55 = vmul.f32 %v5501_v22, %v1218_v14 }
 0x357   : > { %1712 = vmax.xlane.f32.xlu0 %v1711_v31  ;;  %1706 = vmax.xlane.f32.xlu1 %v1705_v35  ;;  %v1446_v31 = vsel %vm6977_vm0, %v5425_v56, 0.0  ;;  %v1464_v35 = vsel %vm6977_vm0, %v5427_v50, 0.0 }
 0x358   : > { %7052 = vst [vmem:[#allocation62_spill] sm:$0xff] %v5610_v55 }
 0x35b   : > { %1444 = vadd.xlane.f32.xlu0 %v1443_v26  ;;  %1462 = vadd.xlane.f32.xlu1 %v1461_v7  ;;  %v1717_v26 = vsel %vm6977_vm0, %v5414_v25, -inf  ;;  %v1506_v7 = vsel %vm6977_vm0, %v5610_v55, 0.0 }
 0x35f   : > { %1694 = vmax.xlane.f32.xlu0 %v1693_v19  ;;  %1504 = vadd.xlane.f32.xlu1 %v1503_v11  ;;  %v1759_v19 = vsel %vm6977_vm0, %v5594_v47, -inf  ;;  %v1714_v11 = vsel %vm6977_vm0, %v5402_v36, -inf }
 0x363   : > { %1757 = vmax.xlane.f32.xlu0 %v1756_v57  ;;  %1691 = vmax.xlane.f32.xlu1 %v1690_v54  ;;  %v1221_v57 = vunpack.c.l.bf16 %v5193_v6  ;;  %v1699_v54 = vsel %vm6977_vm0, %v5412_v13, -inf  ;;  %v1467_v6 = vsel %vm6977_vm0, %v5434_v46, 0.0 }
 0x365   : > { %v5626_v14 = vmul.f32 %v5501_v22, %v1221_v57 }
 0x367   : > { %1447 = vadd.xlane.f32.xlu0 %v1446_v31  ;;  %1465 = vadd.xlane.f32.xlu1 %v1464_v35  ;;  %7053 = vst [vmem:[#allocation63_spill] sm:$0xff] %v5626_v14  ;;  %v4836_v31 = vld [vmem:[%s5035_s24 + $0x90] sm:$0xff]  }
 0x368   : > { %v1219_v35 = vunpack.c.l.bf16 %v4836_v31 }
 0x36b   : > { %1718 = vmax.xlane.f32.xlu0 %v1717_v26  ;;  %1507 = vadd.xlane.f32.xlu1 %v1506_v7  ;;  %v1515_v26 = vsel %vm6977_vm0, %v5626_v14, 0.0  ;;  %v5634_v7 = vmul.f32 %v5501_v22, %v1219_v35  ;;  %v1476_v35 = vsel %vm6977_vm0, %v5437_v2, 0.0  ;;  %v1924_v2 = vadd.s32 4294967280, %v5077_v17 }
 0x36d   : > { %7054 = vst [vmem:[#allocation64_spill] sm:$0xff] %v5634_v7  ;;  %v1765_v57 = vsel %vm6977_vm0, %v5634_v7, -inf }
 0x36f   : > { %1760 = vmax.xlane.f32.xlu0 %v1759_v19  ;;  %1715 = vmax.xlane.f32.xlu1 %v1714_v11  ;;  %v1723_v19 = vsel %vm6977_vm0, %v5434_v46, -inf  ;;  %v1509_v11 = vsel %vm6977_vm0, %v5634_v7, 0.0  ;;  %v1945_v7 = vadd.s32 4294967256, %v5077_v17 }
 0x373   : > { %1700 = vmax.xlane.f32.xlu0 %v1699_v54  ;;  %1754 = vmax.xlane.f32.xlu1 %v1753_v51  ;;  %v1696_v54 = vsel %vm6977_vm0, %v5406_v5, -inf  ;;  %v1220_v51 = vunpack.c.h.bf16 %v4836_v31  ;;  %v1479_v31 = vsel %vm6977_vm0, %v5442_v9, 0.0 }
 0x377   : > { %1516 = vadd.xlane.f32.xlu0 %v1515_v26  ;;  %1468 = vadd.xlane.f32.xlu1 %v1467_v6  ;;  %v1470_v26 = vsel %vm6977_vm0, %v5439_v38, 0.0  ;;  %v5649_v6 = vmul.f32 %v5501_v22, %v1220_v51  ;;  %v1482_v51 = vsel %vm6977_vm0, %v5454_v30, 0.0 }
 0x379   : > { %7055 = vst [vmem:[#allocation65_spill] sm:$0xff] %v5649_v6 }
 0x37b   : > { %1724 = vmax.xlane.f32.xlu0 %v1723_v19  ;;  %1510 = vadd.xlane.f32.xlu1 %v1509_v11  ;;  %v5653_v19 = vrot.slane %v5339_v24, %v5323_v45  ;;  %v1512_v11 = vsel %vm6977_vm0, %v5649_v6, 0.0  ;;  %v1720_v24 = vsel %vm6977_vm0, %v5427_v50, -inf  ;;  %v1931_v50 = vadd.s32 4294967272, %v5077_v17 }
 0x37f   : > { %1766 = vmax.xlane.f32.xlu0 %v1765_v57  ;;  %1697 = vmax.xlane.f32.xlu1 %v1696_v54  ;;  %v5660_v57 = vld [vmem:[%s5035_s24 + $0xa0] sm:$0xff]  }
 0x380   : > { %v1223_v54 = vunpack.c.l.bf16 %v5660_v57 }
 0x383   : > { %1477 = vadd.xlane.f32.xlu0 %v1476_v35  ;;  %1471 = vadd.xlane.f32.xlu1 %v1470_v26  ;;  %v5668_v35 = vmul.f32 %v5653_v19, %v1223_v54  ;;  %v1762_v26 = vsel %vm6977_vm0, %v5610_v55, -inf }
 0x385   : > { %7056 = vst [vmem:[#allocation66_spill] sm:$0xff] %v5668_v35  ;;  %v1521_v13 = vsel %vm6977_vm0, %v5668_v35, 0.0 }
 0x387   : > { %1480 = vadd.xlane.f32.xlu0 %v1479_v31  ;;  %1513 = vadd.xlane.f32.xlu1 %v1512_v11  ;;  %v4838_v31 = vld [vmem:[%s5035_s24 + $0x98] sm:$0xff]   ;;  %v1702_v11 = vsel %vm6977_vm0, %v5425_v56, -inf  ;;  %v2311_v56 = vadd.s32 4294967232, %v5077_v17 }
 0x388   : > { %v1222_v5 = vunpack.c.h.bf16 %v4838_v31  ;;  %v1726_v31 = vsel %vm6977_vm0, %v5439_v38, -inf }
 0x38a   : > { %v5680_v54 = vmul.f32 %v5501_v22, %v1222_v5  ;;  %v1548_v22 = vsel %vm6977_vm0, %v5466_v43, 0.0 }
 0x38b   : > { %1483 = vadd.xlane.f32.xlu0 %v1482_v51  ;;  %1721 = vmax.xlane.f32.xlu1 %v1720_v24  ;;  %v4839_v51 = vld [vmem:[%s5035_s24 + $0xa8] sm:$0xff]  }
 0x38c   : > { %7057 = vst [vmem:[#allocation67_spill] sm:$0xff] %v5680_v54  ;;  %v1225_v24 = vunpack.c.l.bf16 %v4839_v51  ;;  %v1518_v60 = vsel %vm6977_vm0, %v5680_v54, 0.0 }
 0x38f   : > { %1763 = vmax.xlane.f32.xlu1 %v1762_v26  ;;  %1522 = vadd.xlane.f32.xlu0 %v1521_v13  ;;  %v1485_v26 = vsel %vm6977_vm0, %v5462_v20, 0.0  ;;  %v5688_v13 = vmul.f32 %v5653_v19, %v1225_v24  ;;  %v1226_v24 = vunpack.c.h.bf16 %v4839_v51  ;;  %v1224_v51 = vunpack.c.h.bf16 %v5660_v57 }
 0x390   : > { %v5725_v57 = vsub.s32 %v2311_v56, %v5098_v27 }
 0x391   : > { %7058 = vst [vmem:[#allocation68_spill] sm:$0xff] %v5688_v13  ;;  %v1527_v5 = vsel %vm6977_vm0, %v5688_v13, 0.0  ;;  %v5711_v18 = vmul.f32 %v5653_v19, %v1226_v24  ;;  %v2323_v24 = vadd.s32 4294967216, %v5077_v17 }
 0x393   : > { %1703 = vmax.xlane.f32.xlu1 %v1702_v11  ;;  %1733 = vmax.xlane.f32.xlu0 %v1732_v59  ;;  %v1768_v59 = vsel %vm6977_vm0, %v5649_v6, -inf  ;;  %v1735_v11 = vsel %vm6977_vm0, %v5442_v9, -inf  ;;  %7059 = vst [vmem:[#allocation69_spill] sm:$0xff] %v5711_v18  ;;  %v5728_v6 = vld [vmem:[%s5035_s24 + $0xb0] sm:$0xff]   ;;  %v5749_v55 = vsub.s32 %v2323_v24, %v5098_v27  ;;  %v1729_v24 = vsel %vm6977_vm0, %v5476_v16, -inf }
 0x397   : > { %1519 = vadd.xlane.f32.xlu1 %v1518_v60  ;;  %1486 = vadd.xlane.f32.xlu0 %v1485_v26  ;;  %v1771_v60 = vsel %vm6977_vm0, %v5626_v14, -inf  ;;  %v1917_v26 = vadd.s32 4294967288, %v5077_v17 }
 0x399   : > { %v5719_v9 = vsub.s32 %v1917_v26, %v5098_v27  ;;  %v1473_v26 = vsel %vm6977_vm0, %v5476_v16, 0.0  ;;  %v2330_v16 = vadd.s32 4294967208, %v5077_v17 }
 0x39b   : > { %1727 = vmax.xlane.f32.xlu1 %v1726_v31  ;;  %1528 = vadd.xlane.f32.xlu0 %v1527_v5 }
 0x39f   : > { %1769 = vmax.xlane.f32.xlu1 %v1768_v59  ;;  %1549 = vadd.xlane.f32.xlu0 %v1548_v22  ;;  %v1774_v59 = vsel %vm6977_vm0, %v5680_v54, -inf  ;;  %v1488_v22 = vsel %vm6977_vm0, %v5473_v10, 0.0  ;;  %v1938_v54 = vadd.s32 4294967264, %v5077_v17 }
 0x3a1   : > { %v5746_v25 = vsub.s32 %v1938_v54, %v5098_v27 }
 0x3a3   : > { %1772 = vmax.xlane.f32.xlu1 %v1771_v60  ;;  %1736 = vmax.xlane.f32.xlu0 %v1735_v11  ;;  %v5716_v60 = vsub.s32 %v5077_v17, %v5098_v27 }
 0x3a4   : > { %v5703_v31 = vpop.xlane.xlu1 %1658  ;;  %v1403_v5 = vpop.xlane.xlu0 %1402 }
 0x3a5   : > { %v1593_v11 = vmul.f32 0.03125, %v1403_v5  ;;  %v1227_v5 = vunpack.c.l.bf16 %v5728_v6 }
 0x3a7   : > { %1775 = vmax.xlane.f32.xlu1 %v1774_v59  ;;  %1489 = vadd.xlane.f32.xlu0 %v1488_v22  ;;  %v1530_v59 = vsel %vm6977_vm0, %v5711_v18, 0.0  ;;  %v5736_v22 = vmul.f32 %v5653_v19, %v1224_v51  ;;  %v1916_v56 = vrot.slane %v1593_v11, %v5716_v60 }
 0x3a8   : > { %v1415_v14 = vpop.xlane.xlu1 %1414  ;;  %v1406_v38 = vpop.xlane.xlu0 %1405 }
 0x3a9   : > { %v1594_v46 = vmul.f32 0.03125, %v1406_v38  ;;  %7060 = vst [vmem:[#allocation70_spill] sm:$0xff] %v5736_v22  ;;  %v5742_v38 = vsub.s32 %v1924_v2, %v5098_v27  ;;  %v1524_v2 = vsel %vm6977_vm0, %v5736_v22, 0.0  ;;  %v1780_v54 = vsel %vm6977_vm0, %v5736_v22, -inf }
 0x3aa   : > { %v1597_v33 = vmul.f32 0.03125, %v1415_v14  ;;  %v5779_v14 = vmul.f32 %v5653_v19, %v1227_v5  ;;  %v5791_v5 = vsub.s32 %v2330_v16, %v5098_v27 }
 0x3ab   : > { %v1921_v63 = vrot.slane %v1594_v46, %v5719_v9  ;;  %1474 = vadd.xlane.f32.xlu1 %v1473_v26  ;;  %1531 = vadd.xlane.f32.xlu0 %v1530_v59  ;;  %v2316_v26 = vadd.s32 4294967224, %v5077_v17  ;;  %v1952_v59 = vadd.s32 4294967248, %v5077_v17 }
 0x3ac   : > { %v1665_v51 = vpop.xlane.xlu1 %1664  ;;  %v1409_v47 = vpop.xlane.xlu0 %1408  ;;  %7061 = vst [vmem:[#allocation71_spill] sm:$0xff] %v5779_v14 }
 0x3ad   : > { %v1923_v11 = vsel %vm1922_vm1, %v1921_v63, %v1916_v56  ;;  %v1595_v46 = vmul.f32 0.03125, %v1409_v47  ;;  %v5762_v63 = vsub.s32 %v1945_v7, %v5098_v27  ;;  %v5765_v47 = vsub.s32 %v1931_v50, %v5098_v27 }
 0x3ae   : > { %v2337_v56 = vadd.s32 4294967200, %v5077_v17  ;;  %v1491_v50 = vsel %vm6977_vm0, %v5486_v8, 0.0  ;;  %v5776_v7 = vsub.s32 %v1952_v59, %v5098_v27  ;;  %v2327_v28 = vrot.slane %v1665_v51, %v5749_v55 }
 0x3af   : > { %v1928_v34 = vrot.slane %v1595_v46, %v5742_v38  ;;  %1525 = vadd.xlane.f32.xlu1 %v1524_v2  ;;  %1781 = vmax.xlane.f32.xlu0 %v1780_v54  ;;  %v5771_v54 = vsub.s32 %v2316_v26, %v5098_v27 }
 0x3b0   : > { %v1418_v36 = vpop.xlane.xlu1 %1417  ;;  %v1412_v22 = vpop.xlane.xlu0 %1411 }
 0x3b1   : > { %v1930_v0 = vsel %vm6954_vm12, %v1928_v34, %v1923_v11  ;;  %v1598_v46 = vmul.f32 0.03125, %v1418_v36  ;;  %v1596_v2 = vmul.f32 0.03125, %v1412_v22  ;;  %v1545_v34 = vsel %vm6977_vm0, %v5493_v48, 0.0 }
 0x3b2   : > { %v5785_v36 = vsub.s32 %v2337_v56, %v5098_v27  ;;  %v2315_v22 = vrot.slane %v5703_v31, %v5725_v57  ;;  %v1942_v11 = vrot.slane %v1597_v33, %v5746_v25  ;;  %v1533_v33 = vsel %vm6977_vm0, %v5779_v14, 0.0 }
 0x3b3   : > { %v1935_v41 = vrot.slane %v1596_v2, %v5765_v47  ;;  %1730 = vmax.xlane.f32.xlu1 %v1729_v24  ;;  %1492 = vadd.xlane.f32.xlu0 %v1491_v50  ;;  %v2344_v24 = vadd.s32 4294967192, %v5077_v17  ;;  %v1949_v2 = vrot.slane %v1598_v46, %v5762_v63 }
 0x3b4   : > { %v1421_v26 = vpop.xlane.xlu1 %1420  ;;  %v1662_v59 = vpop.xlane.xlu0 %1661 }
 0x3b5   : > { %v1937_v50 = vsel %vm6953_vm13, %v1935_v41, %v1930_v0  ;;  %v1599_v44 = vmul.f32 0.03125, %v1421_v26  ;;  %v2320_v56 = vrot.slane %v1662_v59, %v5771_v54  ;;  %v1959_v0 = vadd.s32 4294967240, %v5077_v17 }
 0x3b6   : > { %v1944_v31 = vsel %vm6978_vm14, %v1942_v11, %v1937_v50  ;;  %v5807_v11 = vsub.s32 %v2344_v24, %v5098_v27  ;;  %v2351_v26 = vadd.s32 4294967184, %v5077_v17 }
 0x3b7   : > { %v1951_v16 = vsel %vm1950_vm10, %v1949_v2, %v1944_v31  ;;  %v1956_v62 = vrot.slane %v1599_v44, %v5776_v7  ;;  %v2322_v53 = vsel %vm2321_vm8, %v2320_v56, %v2315_v22  ;;  %1546 = vadd.xlane.f32.xlu1 %v1545_v34  ;;  %1534 = vadd.xlane.f32.xlu0 %v1533_v33  ;;  %v2358_v34 = vadd.s32 4294967176, %v5077_v17 }
 0x3b8   : > { %v1671_v41 = vpop.xlane.xlu1 %1670  ;;  %v2329_v46 = vsel %vm2328_vm6, %v2327_v28, %v2322_v53  ;;  %v1668_v51 = vpop.xlane.xlu0 %1667  ;;  %v1551_v2 = vsel %vm6977_vm0, %v5498_v39, 0.0  ;;  %v1741_v53 = vsel %vm6977_vm0, %v5462_v20, -inf  ;;  %v5820_v24 = vsub.s32 %v1959_v0, %v5098_v27 }
 0x3b9   : > { %v1958_v59 = vsel %vm6940_vm9, %v1956_v62, %v1951_v16  ;;  %v2341_v44 = vrot.slane %v1671_v41, %v5785_v36  ;;  %v2334_v22 = vrot.slane %v1668_v51, %v5791_v5  ;;  %v5825_v33 = vsub.s32 %v2351_v26, %v5098_v27 }
 0x3ba   : > { %v5828_v16 = vsub.s32 %v2358_v34, %v5098_v27  ;;  %v1738_v41 = vsel %vm6977_vm0, %v5454_v30, -inf  ;;  %v1783_v0 = vsel %vm6977_vm0, %v5688_v13, -inf  ;;  %vm2363_vm9 = vcmask 1048512  }
 0x3bb   : > { %v2336_v28 = vsel %vm6938_vm5, %v2334_v22, %v2329_v46  ;;  %1552 = vadd.xlane.f32.xlu1 %v1551_v2  ;;  %1742 = vmax.xlane.f32.xlu0 %v1741_v53  ;;  %vm1964_vm5 = vcmask 523712   ;;  %v1777_v53 = vsel %vm6977_vm0, %v5668_v35, -inf  ;;  %v1494_v13 = vsel %vm6977_vm0, %v5527_v4, 0.0 }
 0x3bc   : > { %v1424_v62 = vpop.xlane.xlu1 %1423  ;;  %v2343_v50 = vsel %vm6939_vm3, %v2341_v44, %v2336_v28  ;;  %v1674_v56 = vpop.xlane.xlu0 %1673  ;;  %vm2356_vm3 = vcmask 982912   ;;  %v1804_v28 = vsel %vm6977_vm0, %v5466_v43, -inf  ;;  %v1747_v35 = vsel %vm6977_vm0, %v5486_v8, -inf }
 0x3bd   : > { %v1600_v31 = vmul.f32 0.03125, %v1424_v62  ;;  %v2348_v17 = vrot.slane %v1674_v56, %v5807_v11  ;;  %v1789_v8 = vsel %vm6977_vm0, %v5779_v14, -inf  ;;  %v1786_v14 = vsel %vm6977_vm0, %v5711_v18, -inf }
 0x3bf   : > { %v1963_v46 = vrot.slane %v1600_v31, %v5820_v24  ;;  %v2350_v51 = vsel %vm2349_vm2, %v2348_v17, %v2343_v50  ;;  %1739 = vmax.xlane.f32.xlu1 %v1738_v41  ;;  %1784 = vmax.xlane.f32.xlu0 %v1783_v0  ;;  %v1554_v31 = vsel %vm6977_vm0, %v5510_v23, 0.0  ;;  %v1557_v17 = vsel %vm6977_vm0, %v5513_v32, 0.0  ;;  %v5854_v41 = vld [vmem:[%s5035_s24 + $0xb8] sm:$0xff]   ;;  %s436_s24 = scalar_lea.vmem [#allocation2], %s4163_s0  ;;  %s4846_s0 = sshll.u32 %s4912_s29, 4  ;;  %s4847_s0 = int_to_ptr.vmem [resolvable:$false] %s4846_s0 }
 0x3c0   : > { %v1677_v44 = vpop.xlane.xlu1 %1676  ;;  %v1680_v26 = vpop.xlane.xlu0 %1679  ;;  %v1229_v0 = vunpack.c.l.bf16 %v5854_v41  ;;  %s4100_s20 = sshll.u32 %s436_s24, 4  ;;  %s4848_s2 = scalar_lea.vmem %s4847_s0, 256  ;;  %s6837_s20 = int_to_ptr.vmem [resolvable:$true] %s4100_s20 }
 0x3c1   : > { %v5837_v22 = vsel %vm1964_vm5, %v1963_v46, %v1958_v59  ;;  %v2355_v34 = vrot.slane %v1677_v44, %v5825_v33  ;;  %v2362_v2 = vrot.slane %v1680_v26, %v5828_v16  ;;  %s4842_s30 = scalar_lea.vmem %s6837_s20, 128  ;;  %p4849_p0 = scmp.lt.s32.totalorder %s6837_s20, %s4847_s0 }
 0x3c2   : > { %p4843_p11 = scmp.ne.s32.totalorder %s6837_s20, %s4842_s30  ;;  %p4850_p1 = scmp.lt.s32.totalorder %s4848_s2, %s4842_s30 }
 0x3c3   : > { %v2357_v62 = vsel %vm2356_vm3, %v2355_v34, %v2350_v51  ;;  %1778 = vmax.xlane.f32.xlu1 %v1777_v53  ;;  %1805 = vmax.xlane.f32.xlu0 %v1804_v28  ;;  %v1801_v34 = vsel %vm6977_vm0, %v5493_v48, -inf  ;;  %v5862_v53 = vmul.f32 %v5653_v19, %v1229_v0  ;;  %v1228_v28 = vunpack.c.h.bf16 %v5728_v6 }
 0x3c4   : > { %v5847_v50 = vsel %vm2363_vm9, %v2362_v2, %v2357_v62  ;;  %v1451_v59 = vpop.xlane.xlu0 %1450  ;;  %v1427_v56 = vpop.xlane.xlu1 %1426  ;;  %v1807_v2 = vsel %vm6977_vm0, %v5498_v39, -inf  ;;  %p4844_p12 = pnand %p4843_p11, %p5021_p5  ;;  %p4851_p2 = por %p4850_p1, %p4849_p0 }
 0x3c5   : > { %v1601_v46 = vmul.f32 0.03125, %v1427_v56  ;;  %7062 = vst [vmem:[#allocation72_spill] sm:$0xff] %v5862_v53  ;;  %v1539_v0 = vsel %vm6977_vm0, %v5862_v53, 0.0  ;;  %v5873_v30 = vmul.f32 %v5653_v19, %v1228_v28  ;;  %v1609_v6 = vmul.f32 0.03125, %v1451_v59 }
 0x3c6   : > { %p4845_p13 = pneg %p4844_p12 }
 0x3c7   : > { %1555 = vadd.xlane.f32.xlu1 %v1554_v31  ;;  %1558 = vadd.xlane.f32.xlu0 %v1557_v17  ;;  %v1969_v62 = vrot.slane %v1601_v46, %v5716_v60  ;;  %7063 = vst [vmem:[#allocation73_spill] sm:$0xff] %v5873_v30  ;;  %v2008_v28 = vrot.slane %v1609_v6, %v5716_v60 }
 0x3c8   : > { %v1457_v51 = vpop.xlane.xlu0 %1456  ;;  %v1430_v44 = vpop.xlane.xlu1 %1429  ;;  %p4852_p3 = pnand %p4851_p2, %p4845_p13 }
 0x3c9   : > { %v1602_v26 = vmul.f32 0.03125, %v1430_v44 }
 0x3cb   : > { %v1973_v56 = vrot.slane %v1602_v26, %v5719_v9  ;;  %1802 = vmax.xlane.f32.xlu1 %v1801_v34  ;;  %1808 = vmax.xlane.f32.xlu0 %v1807_v2  ;;  %v1611_v26 = vmul.f32 0.03125, %v1457_v51 }
 0x3cc   : > { %v1686_v31 = vpop.xlane.xlu0 %1685  ;;  %v1433_v17 = vpop.xlane.xlu1 %1432 }
 0x3cd   : > { %v1974_v44 = vsel %vm1922_vm1, %v1973_v56, %v1969_v62  ;;  %v1603_v20 = vmul.f32 0.03125, %v1433_v17  ;;  %v1536_v17 = vsel %vm6977_vm0, %v5873_v30, 0.0 }
 0x3cf   : > { %v1978_v46 = vrot.slane %v1603_v20, %v5742_v38  ;;  %1495 = vadd.xlane.f32.xlu1 %v1494_v13  ;;  %1540 = vadd.xlane.f32.xlu0 %v1539_v0  ;;  %v2017_v20 = vrot.slane %v1611_v26, %v5742_v38 }
 0x3d0   : > { %v1439_v34 = vpop.xlane.xlu0 %1438  ;;  %v1454_v2 = vpop.xlane.xlu1 %1453 }
 0x3d1   : > { %v1979_v62 = vsel %vm6954_vm12, %v1978_v46, %v1974_v44  ;;  %v1610_v56 = vmul.f32 0.03125, %v1454_v2  ;;  %v1605_v13 = vmul.f32 0.03125, %v1439_v34  ;;  %v1744_v2 = vsel %vm6977_vm0, %v5473_v10, -inf }
 0x3d3   : > { %v2012_v59 = vrot.slane %v1610_v56, %v5719_v9  ;;  %1537 = vadd.xlane.f32.xlu1 %v1536_v17  ;;  %1748 = vmax.xlane.f32.xlu0 %v1747_v35  ;;  %v1988_v35 = vrot.slane %v1605_v13, %v5746_v25  ;;  %v2372_v17 = vrot.slane %v1686_v31, %v5771_v54 }
 0x3d4   : > { %v1436_v51 = vpop.xlane.xlu1 %1435  ;;  %v5884_v0 = vpop.xlane.xlu0 %1501 }
 0x3d5   : > { %v2013_v44 = vsel %vm1922_vm1, %v2012_v59, %v2008_v28  ;;  %v1604_v46 = vmul.f32 0.03125, %v1436_v51 }
 0x3d6   : > { %v2018_v6 = vsel %vm6954_vm12, %v2017_v20, %v2013_v44  ;;  %v1563_v20 = vsel %vm6977_vm0, %v5538_v58, 0.0  ;;  %vm7066_vm12 = vcmask 1041409  }
 0x3d7   : > { %v1983_v56 = vrot.slane %v1604_v46, %v5765_v47  ;;  %1745 = vmax.xlane.f32.xlu1 %v1744_v2  ;;  %1790 = vmax.xlane.f32.xlu0 %v1789_v8  ;;  %v1560_v2 = vsel %vm6977_vm0, %v5542_v61, 0.0 }
 0x3d8   : > { %v1683_v26 = vpop.xlane.xlu1 %1682  ;;  %v1689_v34 = vpop.xlane.xlu0 %1688 }
 0x3d9   : > { %v1984_v28 = vsel %vm6953_vm13, %v1983_v56, %v1979_v62  ;;  %v2368_v59 = vrot.slane %v1683_v26, %v5725_v57  ;;  %v2377_v51 = vrot.slane %v1689_v34, %v5749_v55  ;;  %v1750_v56 = vsel %vm6977_vm0, %v5527_v4, -inf }
 0x3da   : > { %v1989_v8 = vsel %vm6978_vm14, %v1988_v35, %v1984_v28  ;;  %v1230_v26 = vunpack.c.h.bf16 %v5854_v41  ;;  %v1810_v28 = vsel %vm6977_vm0, %v5510_v23, -inf }
 0x3db   : > { %v2373_v13 = vsel %vm2321_vm8, %v2372_v17, %v2368_v59  ;;  %1787 = vmax.xlane.f32.xlu1 %v1786_v14  ;;  %1564 = vadd.xlane.f32.xlu0 %v1563_v20  ;;  %v1792_v59 = vsel %vm6977_vm0, %v5873_v30, -inf  ;;  %v1828_v30 = vsel %vm6977_vm0, %v5561_v37, -inf }
 0x3dc   : > { %v5905_v31 = vsel %vm2328_vm6, %v2377_v51, %v2373_v13  ;;  %v1460_v62 = vpop.xlane.xlu1 %1459  ;;  %v5907_v44 = vpop.xlane.xlu0 %1709  ;;  %v5925_v51 = vmul.f32 %v5653_v19, %v1230_v26  ;;  %v1813_v19 = vsel %vm6977_vm0, %v5513_v32, -inf }
 0x3dd   : > { %v1612_v46 = vmul.f32 0.03125, %v1460_v62 }
 0x3de   : > { %7064 = vst [vmem:[#allocation74_spill] sm:$0xff] %v5925_v51  ;;  %v1542_v13 = vsel %vm6977_vm0, %v5925_v51, 0.0 }
 0x3df   : > { %v2022_v35 = vrot.slane %v1612_v46, %v5765_v47  ;;  %1561 = vadd.xlane.f32.xlu1 %v1560_v2  ;;  %1751 = vmax.xlane.f32.xlu0 %v1750_v56  ;;  %v1798_v2 = vsel %vm6977_vm0, %v5925_v51, -inf }
 0x3e0   : > { %v1442_v14 = vpop.xlane.xlu0 %1441  ;;  %v5915_v34 = vpop.xlane.xlu1 %1498 }
 0x3e1   : > { %v5918_v17 = vsel %vm6953_vm13, %v2022_v35, %v2018_v6  ;;  %v1795_v6 = vsel %vm6977_vm0, %v5862_v53, -inf  ;;  %v1566_v35 = vsel %vm6977_vm0, %v5549_v40, 0.0  ;;  %vm7065_vm13 = vcmask 458112  }
 0x3e2   : > { %v1625_v27 = vmul.f32 0.03125, %v5915_v34 }
 0x3e3   : > { %1811 = vmax.xlane.f32.xlu1 %v1810_v28  ;;  %1793 = vmax.xlane.f32.xlu0 %v1792_v59  ;;  %v1569_v28 = vsel %vm6977_vm0, %v5551_v49, 0.0  ;;  %v1606_v59 = vmul.f32 0.03125, %v1442_v14 }
 0x3e4   : > { %v5927_v41 = vpop.xlane.xlu0 %1712  ;;  %v5929_v20 = vpop.xlane.xlu1 %1706  ;;  %v2086_v34 = vrot.slane %v1625_v27, %v5716_v60 }
 0x3e5   : > { %v1993_v51 = vrot.slane %v1606_v59, %v5762_v63 }
 0x3e7   : > { %1543 = vadd.xlane.f32.xlu1 %v1542_v13  ;;  %1796 = vmax.xlane.f32.xlu0 %v1795_v6  ;;  %v1994_v10 = vsel %vm1950_vm10, %v1993_v51, %v1989_v8  ;;  %v1581_v8 = vsel %vm6977_vm0, %v5563_v3, 0.0 }
 0x3e8   : > { %v1445_v62 = vpop.xlane.xlu0 %1444  ;;  %v1463_v46 = vpop.xlane.xlu1 %1462 }
 0x3e9   : > { %v1607_v13 = vmul.f32 0.03125, %v1445_v62  ;;  %v1819_v62 = vsel %vm6977_vm0, %v5538_v58, -inf  ;;  %v1822_v58 = vsel %vm6977_vm0, %v5549_v40, -inf }
 0x3eb   : > { %1814 = vmax.xlane.f32.xlu1 %v1813_v19  ;;  %1799 = vmax.xlane.f32.xlu0 %v1798_v2  ;;  %v1816_v19 = vsel %vm6977_vm0, %v5542_v61, -inf  ;;  %v1575_v2 = vsel %vm6977_vm0, %v5558_v15, 0.0  ;;  %v1998_v4 = vrot.slane %v1607_v13, %v5776_v7  ;;  %v1840_v61 = vsel %vm6977_vm0, %v5576_v42, -inf }
 0x3ec   : > { %v5939_v56 = vpop.xlane.xlu0 %1694  ;;  %v5941_v26 = vpop.xlane.xlu1 %1504 }
 0x3ed   : > { %v1999_v59 = vsel %vm7065_vm13, %v1998_v4, %v1994_v10  ;;  %v1572_v4 = vsel %vm6977_vm0, %v5561_v37, 0.0 }
 0x3ef   : > { %1567 = vadd.xlane.f32.xlu1 %v1566_v35  ;;  %1570 = vadd.xlane.f32.xlu0 %v1569_v28 }
 0x3f0   : > { %v5947_v6 = vpop.xlane.xlu0 %1757  ;;  %v5949_v53 = vpop.xlane.xlu1 %1691 }
 0x3f3   : > { %1817 = vmax.xlane.f32.xlu1 %v1816_v19  ;;  %1576 = vadd.xlane.f32.xlu0 %v1575_v2 }
 0x3f4   : > { %v1448_v14 = vpop.xlane.xlu0 %1447  ;;  %v1466_v35 = vpop.xlane.xlu1 %1465 }
 0x3f5   : > { %v1608_v28 = vmul.f32 0.03125, %v1448_v14 }
 0x3f7   : > { %v2003_v18 = vrot.slane %v1608_v28, %v5820_v24  ;;  %1820 = vmax.xlane.f32.xlu1 %v1819_v62  ;;  %1829 = vmax.xlane.f32.xlu0 %v1828_v30  ;;  %v1834_v28 = vsel %vm6977_vm0, %v5565_v21, -inf }
 0x3f8   : > { %v5964_v19 = vpop.xlane.xlu0 %1718  ;;  %v5966_v13 = vpop.xlane.xlu1 %1507 }
 0x3f9   : > { %v2004_v2 = vsel %vm1964_vm5, %v2003_v18, %v1999_v59  ;;  %v1831_v18 = vsel %vm6977_vm0, %v5558_v15, -inf  ;;  %v1613_v15 = vmul.f32 0.03125, %v1463_v46  ;;  %v1590_v46 = vsel %vm6977_vm0, %v5578_v29, 0.0 }
 0x3fa   : > { %v5971_v14 = vsel %vm7066_vm12, %v2004_v2, %v5837_v22  ;;  %v1825_v2 = vsel %vm6977_vm0, %v5551_v49, -inf  ;;  %vm7068_vm12 = vmmov %vm7065_vm13  ;;  %vm7069_vm13 = vcmask 1042434  }
 0x3fb   : > { %1823 = vmax.xlane.f32.xlu1 %v1822_v58  ;;  %1582 = vadd.xlane.f32.xlu0 %v1581_v8  ;;  %v1578_v58 = vsel %vm6977_vm0, %v5565_v21, 0.0  ;;  %v1587_v8 = vsel %vm6977_vm0, %v5567_v1, 0.0  ;;  %v1614_v21 = vmul.f32 0.03125, %v1466_v35 }
 0x3fc   : > { %v5977_v30 = vpop.xlane.xlu0 %1760  ;;  %v5979_v10 = vpop.xlane.xlu1 %1715 }
 0x3fd   : > { %v2032_v35 = vrot.slane %v1614_v21, %v5762_v63  ;;  %v1846_v21 = vsel %vm6977_vm0, %v5578_v29, -inf }
 0x3ff   : > { %1573 = vadd.xlane.f32.xlu1 %v1572_v4  ;;  %1832 = vmax.xlane.f32.xlu0 %v1831_v18 }
 0x400   : > { %v5985_v22 = vpop.xlane.xlu0 %1700  ;;  %v5987_v51 = vpop.xlane.xlu1 %1754 }
 0x403   : > { %1579 = vadd.xlane.f32.xlu1 %v1578_v58  ;;  %1835 = vmax.xlane.f32.xlu0 %v1834_v28  ;;  %v1584_v58 = vsel %vm6977_vm0, %v5576_v42, 0.0  ;;  %v1837_v28 = vsel %vm6977_vm0, %v5563_v3, -inf  ;;  %v7067_v3 = vmov 0.0  }
 0x404   : > { %v5993_v62 = vpop.xlane.xlu0 %1516  ;;  %v1469_v59 = vpop.xlane.xlu1 %1468 }
 0x405   : > { %v1615_v37 = vmul.f32 0.03125, %v1469_v59 }
 0x407   : > { %1826 = vmax.xlane.f32.xlu1 %v1825_v2  ;;  %1588 = vadd.xlane.f32.xlu0 %v1587_v8  ;;  %v4657_v2 = vld [vmem:[%s6882_s5] sm:$0xff]   ;;  %v2027_v8 = vrot.slane %v1613_v15, %v5746_v25  ;;  %v2037_v59 = vrot.slane %v1615_v37, %v5776_v7  ;;  %v4658_v15 = vld [vmem:[%s6882_s5 + $0x8] sm:$0xff]  }
 0x408   : > { %v5999_v4 = vpop.xlane.xlu0 %1724  ;;  %v6001_v18 = vpop.xlane.xlu1 %1510  ;;  %4489 = vmatpush3.bf16.msra.mxu0 %v4657_v2 }
 0x409   : > { %4490 = vmatprep.subr.bf16.mxu0 %v7067_v3  ;;  %v2028_v42 = vsel %vm6978_vm14, %v2027_v8, %v5918_v17  ;;  %v4659_v8 = vld [vmem:[%s6882_s5 + $0x10] sm:$0xff]  }
 0x40a   : > { %v2033_v37 = vsel %vm1950_vm10, %v2032_v35, %v2028_v42  ;;  %v2382_v42 = vrot.slane %v5949_v53, %v5791_v5  ;;  %v2387_v53 = vrot.slane %v5939_v56, %v5785_v36 }
 0x40b   : > { %1585 = vadd.xlane.f32.xlu1 %v1584_v58  ;;  %1838 = vmax.xlane.f32.xlu0 %v1837_v28 }
 0x40c   : > { %v6007_v49 = vpop.xlane.xlu0 %1766  ;;  %v1698_v40 = vpop.xlane.xlu1 %1697  ;;  %4491 = vmatpush3.bf16.msra.mxu0 %v4658_v15  ;;  %v4660_v15 = vld [vmem:[%s6882_s5 + $0x18] sm:$0xff]  }
 0x40d   : > { %4492 = vmatprep.subr.bf16.mxu0 %v7067_v3 }
 0x40f   : > { %1591 = vadd.xlane.f32.xlu1 %v1590_v46  ;;  %1841 = vmax.xlane.f32.xlu0 %v1840_v61  ;;  %v1843_v61 = vsel %vm6977_vm0, %v5567_v1, -inf  ;;  %v2038_v46 = vsel %vm7068_vm12, %v2037_v59, %v2033_v37  ;;  %vm7070_vm12 = vcmask 786112  }
 0x410   : > { %v6019_v58 = vpop.xlane.xlu0 %1477  ;;  %v1472_v28 = vpop.xlane.xlu1 %1471  ;;  %4493 = vmatpush3.bf16.msra.mxu0 %v4659_v8 }
 0x411   : > { %v1616_v32 = vmul.f32 0.03125, %v1472_v28  ;;  %4494 = vmatprep.subr.bf16.mxu0 %v7067_v3  ;;  %v1618_v39 = vmul.f32 0.03125, %v6019_v58  ;;  %v1626_v58 = vmul.f32 0.03125, %v5884_v0 }
 0x413   : > { %v2042_v2 = vrot.slane %v1616_v32, %v5820_v24  ;;  %1847 = vmax.xlane.f32.xlu1 %v1846_v21  ;;  %1844 = vmax.xlane.f32.xlu0 %v1843_v61  ;;  %v2407_v21 = vrot.slane %v5929_v20, %v5725_v57  ;;  %v2392_v61 = vrot.slane %v1698_v40, %v5807_v11  ;;  %v4661_v20 = vld [vmem:[%s6882_s5 + $0x20] sm:$0xff]  }
 0x414   : > { %v6034_v28 = vpop.xlane.xlu0 %1480  ;;  %v6036_v23 = vpop.xlane.xlu1 %1513  ;;  %4495 = vmatpush3.bf16.msra.mxu0 %v4660_v15  ;;  %v2416_v40 = vrot.slane %v5927_v41, %v5749_v55  ;;  %v2051_v45 = vrot.slane %v1618_v39, %v5719_v9  ;;  %v1629_v39 = vmul.f32 0.03125, %v6001_v18  ;;  %v2090_v0 = vrot.slane %v1626_v58, %v5719_v9 }
 0x415   : > { %v2043_v17 = vsel %vm1964_vm5, %v2042_v2, %v2038_v46  ;;  %v2411_v46 = vrot.slane %v5907_v44, %v5771_v54  ;;  %4496 = vmatprep.subr.bf16.mxu0 %v7067_v3  ;;  %v2397_v44 = vrot.slane %v5985_v22, %v5825_v33  ;;  %v1619_v48 = vmul.f32 0.03125, %v6034_v28 }
 0x416   : > { %v6045_v32 = vsel %vm7069_vm13, %v2043_v17, %v5971_v14  ;;  %v2383_v14 = vsel %vm7070_vm12, %v2382_v42, %v5905_v31  ;;  %vm7071_vm13 = vcmask 851712   ;;  %v2421_v17 = vrot.slane %v5979_v10, %v5791_v5  ;;  %v4662_v10 = vld [vmem:[%s6882_s5 + $0x28] sm:$0xff]  }
 0x417   : > { %v2388_v31 = vsel %vm7071_vm13, %v2387_v53, %v2383_v14  ;;  %v2412_v56 = vsel %vm2321_vm8, %v2411_v46, %v2407_v21  ;;  %v2426_v53 = vrot.slane %v5964_v19, %v5785_v36  ;;  %vm7072_vm13 = vcmask 1041409  }
 0x418   : > { %v6049_v35 = vpop.xlane.xlu0 %1483  ;;  %v1722_v59 = vpop.xlane.xlu1 %1721  ;;  %v2393_v8 = vsel %vm2349_vm2, %v2392_v61, %v2388_v31  ;;  %4497 = vmatpush3.bf16.msra.mxu0 %v4661_v20  ;;  %v2417_v41 = vsel %vm2328_vm6, %v2416_v40, %v2412_v56  ;;  %v4663_v31 = vld [vmem:[%s6882_s5 + $0x30] sm:$0xff]   ;;  %v2436_v19 = vrot.slane %v5999_v4, %v5825_v33  ;;  %v2056_v28 = vrot.slane %v1619_v48, %v5742_v38 }
 0x419   : > { %4498 = vmatprep.subr.bf16.mxu0 %v7067_v3  ;;  %v2398_v21 = vsel %vm2356_vm3, %v2397_v44, %v2393_v8  ;;  %v2422_v14 = vsel %vm7070_vm12, %v2421_v17, %v2417_v41  ;;  %v2431_v22 = vrot.slane %v1722_v59, %v5807_v11  ;;  %vm7073_vm12 = vcmask 851712  }
 0x41a   : > { %v2427_v59 = vsel %vm7073_vm12, %v2426_v53, %v2422_v14  ;;  %vm7082_vm12 = vcmask 195712   ;;  %v2105_v27 = vrot.slane %v1629_v39, %v5746_v25 }
 0x41c   : > { %v6062_v37 = vpop.xlane.xlu1 %1763  ;;  %v6064_v2 = vpop.xlane.xlu0 %1522  ;;  %4499 = vmatpush3.bf16.msra.mxu0 %v4662_v10 }
 0x41d   : > { %4500 = vmatprep.subr.bf16.mxu0 %v7067_v3 }
 0x420   : > { %v1704_v42 = vpop.xlane.xlu1 %1703  ;;  %v6081_v15 = vpop.xlane.xlu0 %1733  ;;  %4501 = vmatpush3.bf16.msra.mxu0 %v4663_v31 }
 0x421   : > { %v2402_v29 = vrot.slane %v1704_v42, %v5828_v16  ;;  %4502 = vmatprep.subr.bf16.mxu0 %v7067_v3 }
 0x423   : > { %v2403_v61 = vsel %vm2363_vm9, %v2402_v29, %v2398_v21  ;;  %v2432_v29 = vsel %vm2349_vm2, %v2431_v22, %v2427_v59 }
 0x424   : > { %v2638_v46 = vsel %vm7072_vm13, %v2403_v61, %v5847_v50  ;;  %v6097_v20 = vpop.xlane.xlu1 %1519  ;;  %v1487_v40 = vpop.xlane.xlu0 %1486  ;;  %v4664_v50 = vld [vmem:[%s6882_s5 + $0x38] sm:$0xff]   ;;  %v2437_v44 = vsel %vm2356_vm3, %v2436_v19, %v2432_v29  ;;  %vm7074_vm13 = vcmask 1042434  }
 0x425   : > { %4503 = vmatpush3.bf16.msra.mxu0 %v4664_v50 }
 0x428   : > { %v1728_v56 = vpop.xlane.xlu1 %1727  ;;  %v6107_v17 = vpop.xlane.xlu0 %1528 }
 0x429   : > { %v2441_v8 = vrot.slane %v1728_v56, %v5828_v16 }
 0x42b   : > { %v2442_v42 = vsel %vm2363_vm9, %v2441_v8, %v2437_v44 }
 0x42c   : > { %v6117_v41 = vsel %vm7074_vm13, %v2442_v42, %v2638_v46  ;;  %v6119_v4 = vpop.xlane.xlu1 %1769  ;;  %v6121_v21 = vpop.xlane.xlu0 %1549  ;;  %vm7083_vm13 = vcmask 261312  }
 0x42d   : > { %7075 = vst [vmem:[#allocation75_spill] sm:$0xff] %v6117_v41  ;;  %v1620_v41 = vmul.f32 0.03125, %v6049_v35  ;;  %vm7084_vm0 = vmmov %vm7083_vm13 }
 0x430   : > { %v6123_v10 = vpop.xlane.xlu1 %1772  ;;  %v6125_v14 = vpop.xlane.xlu0 %1736 }
 0x434   : > { %v6127_v22 = vpop.xlane.xlu1 %1775  ;;  %v1490_v61 = vpop.xlane.xlu0 %1489 }
 0x435   : > { %v1622_v18 = vmul.f32 0.03125, %v1490_v61 }
 0x438   : > { %v1475_v3 = vpop.xlane.xlu1 %1474  ;;  %v6129_v53 = vpop.xlane.xlu0 %1531 }
 0x439   : > { %v1617_v44 = vmul.f32 0.03125, %v1475_v3  ;;  %v1627_v3 = vmul.f32 0.03125, %v5941_v26  ;;  %v1630_v26 = vmul.f32 0.03125, %v6036_v23 }
 0x43b   : > { %v2047_v43 = vrot.slane %v1617_v44, %v5716_v60  ;;  %v1628_v44 = vmul.f32 0.03125, %v5966_v13 }
 0x43c   : > { %v6131_v31 = vpop.xlane.xlu1 %1525  ;;  %v6133_v59 = vpop.xlane.xlu0 %1781 }
 0x43d   : > { %7076 = vst [vmem:[#allocation76_spill] sm:$0xff] %v6133_v59  ;;  %v2100_v48 = vrot.slane %v1628_v44, %v5765_v47 }
 0x440   : > { %v6135_v46 = vpop.xlane.xlu1 %1730  ;;  %v1493_v29 = vpop.xlane.xlu0 %1492 }
 0x441   : > { %v1623_v13 = vmul.f32 0.03125, %v1493_v29  ;;  %v1631_v29 = vmul.f32 0.03125, %v5993_v62 }
 0x443   : > { %v2076_v61 = vrot.slane %v1623_v13, %v5776_v7  ;;  %v2115_v62 = vrot.slane %v1631_v29, %v5776_v7 }
 0x444   : > { %v6137_v19 = vpop.xlane.xlu1 %1546  ;;  %v6139_v56 = vpop.xlane.xlu0 %1534 }
 0x448   : > { %v6141_v50 = vpop.xlane.xlu1 %1552  ;;  %v6143_v8 = vpop.xlane.xlu0 %1742 }
 0x449   : > { %7077 = vst [vmem:[#allocation77_spill] sm:$0xff] %v6143_v8 }
 0x44c   : > { %v6145_v42 = vpop.xlane.xlu1 %1739  ;;  %v6147_v1 = vpop.xlane.xlu0 %1784 }
 0x44d   : > { %7078 = vst [vmem:[#allocation78_spill] sm:$0xff] %v6147_v1  ;;  %v2052_v1 = vsel %vm1922_vm1, %v2051_v45, %v2047_v43  ;;  %v2095_v45 = vrot.slane %v1627_v3, %v5742_v38  ;;  %v2061_v43 = vrot.slane %v1620_v41, %v5765_v47  ;;  %v1632_v41 = vmul.f32 0.03125, %v6097_v20 }
 0x44e   : > { %v2057_v35 = vsel %vm7082_vm12, %v2056_v28, %v2052_v1  ;;  %v2091_v1 = vsel %vm1922_vm1, %v2090_v0, %v2086_v34 }
 0x44f   : > { %v2062_v23 = vsel %vm7083_vm13, %v2061_v43, %v2057_v35  ;;  %v2096_v58 = vsel %vm7082_vm12, %v2095_v45, %v2091_v1  ;;  %v2120_v45 = vrot.slane %v1632_v41, %v5820_v24  ;;  %vm7087_vm12 = vcmask 1043459  }
 0x450   : > { %v6152_v12 = vpop.xlane.xlu1 %1778  ;;  %v6154_v52 = vpop.xlane.xlu0 %1805  ;;  %v2101_v44 = vsel %vm7084_vm0, %v2100_v48, %v2096_v58  ;;  %vm7085_vm0 = vcmask 458112  }
 0x451   : > { %7079 = vst [vmem:[#allocation79_spill] sm:$0xff] %v6152_v12  ;;  %7080 = vst [vmem:[#allocation80_spill] sm:$0xff] %v6154_v52  ;;  %v1621_v52 = vmul.f32 0.03125, %v1487_v40  ;;  %v2110_v40 = vrot.slane %v1630_v26, %v5762_v63  ;;  %v2106_v34 = vsel %vm6978_vm14, %v2105_v27, %v2101_v44  ;;  %v2071_v26 = vrot.slane %v1622_v18, %v5762_v63 }
 0x452   : > { %vm7086_vm13 = vmmov %vm7085_vm0 }
 0x453   : > { %v2066_v3 = vrot.slane %v1621_v52, %v5746_v25  ;;  %v2111_v52 = vsel %vm1950_vm10, %v2110_v40, %v2106_v34 }
 0x454   : > { %v6164_v59 = vpop.xlane.xlu1 %1555  ;;  %v6166_v8 = vpop.xlane.xlu0 %1558  ;;  %v2116_v27 = vsel %vm7086_vm13, %v2115_v62, %v2111_v52  ;;  %v2489_v62 = vrot.slane %v5947_v6, %v5771_v54  ;;  %v1635_v6 = vmul.f32 0.03125, %v6107_v17  ;;  %v2450_v17 = vrot.slane %v6081_v15, %v5771_v54 }
 0x455   : > { %7081 = vst [vmem:[#allocation81_spill] sm:$0xff] %v6166_v8  ;;  %v2067_v28 = vsel %vm6978_vm14, %v2066_v3, %v2062_v23  ;;  %v2121_v1 = vsel %vm1964_vm5, %v2120_v45, %v2116_v27  ;;  %vm7088_vm14 = vcmask 1044484   ;;  %v2460_v15 = vrot.slane %v6145_v42, %v5791_v5 }
 0x456   : > { %v2072_v43 = vsel %vm1950_vm10, %v2071_v26, %v2067_v28  ;;  %vm7093_vm13 = vcmask 195712  }
 0x457   : > { %v2077_v48 = vsel %vm7085_vm0, %v2076_v61, %v2072_v43  ;;  %vm7092_vm0 = vcmask 851712  }
 0x458   : > { %v6176_v12 = vpop.xlane.xlu1 %1802  ;;  %v6178_v8 = vpop.xlane.xlu0 %1808 }
 0x45c   : > { %v1496_v39 = vpop.xlane.xlu1 %1495  ;;  %v6191_v35 = vpop.xlane.xlu0 %1540 }
 0x45d   : > { %v1624_v20 = vmul.f32 0.03125, %v1496_v39 }
 0x45f   : > { %v2081_v0 = vrot.slane %v1624_v20, %v5820_v24  ;;  %v2485_v20 = vrot.slane %v5987_v51, %v5725_v57  ;;  %v2494_v51 = vrot.slane %v5977_v30, %v5749_v55  ;;  %v2504_v30 = vrot.slane %v6007_v49, %v5785_v36 }
 0x460   : > { %v6201_v13 = vpop.xlane.xlu1 %1537  ;;  %v6203_v23 = vpop.xlane.xlu0 %1748  ;;  %v1643_v49 = vmul.f32 0.03125, %v6141_v50  ;;  %v2519_v50 = vrot.slane %v6127_v22, %v5828_v16 }
 0x461   : > { %v2082_v18 = vsel %vm1964_vm5, %v2081_v0, %v2077_v48  ;;  %v2490_v43 = vsel %vm2321_vm8, %v2489_v62, %v2485_v20  ;;  %v2499_v0 = vrot.slane %v6062_v37, %v5791_v5  ;;  %v1634_v48 = vmul.f32 0.03125, %v6131_v31 }
 0x462   : > { %v2241_v40 = vsel %vm7087_vm12, %v2082_v18, %v6045_v32  ;;  %v2446_v37 = vrot.slane %v6135_v46, %v5725_v57  ;;  %v2514_v46 = vrot.slane %v6123_v10, %v5825_v33 }
 0x463   : > { %v6211_v41 = vsel %vm7088_vm14, %v2121_v1, %v2241_v40  ;;  %v1633_v1 = vmul.f32 0.03125, %v6064_v2  ;;  %v2495_v40 = vsel %vm2328_vm6, %v2494_v51, %v2490_v43  ;;  %vm7091_vm14 = vcmask 786112  }
 0x464   : > { %7089 = vst [vmem:[#allocation82_spill] sm:$0xff] %v6211_v41  ;;  %v6213_v3 = vpop.xlane.xlu1 %1745  ;;  %v6215_v58 = vpop.xlane.xlu0 %1790  ;;  %v2500_v20 = vsel %vm7091_vm14, %v2499_v0, %v2495_v40  ;;  %v2129_v62 = vrot.slane %v1634_v48, %v5719_v9  ;;  %v2509_v43 = vrot.slane %v6119_v4, %v5807_v11  ;;  %v1642_v0 = vmul.f32 0.03125, %v6121_v21  ;;  %vm7094_vm12 = vmmov %vm7091_vm14 }
 0x465   : > { %v2125_v2 = vrot.slane %v1633_v1, %v5716_v60  ;;  %v1641_v48 = vmul.f32 0.03125, %v6137_v19  ;;  %v2134_v51 = vrot.slane %v1635_v6, %v5742_v38  ;;  %v2505_v40 = vsel %vm7092_vm0, %v2504_v30, %v2500_v20  ;;  %vm7100_vm0 = vmmov %vm7093_vm13 }
 0x466   : > { %v1636_v1 = vmul.f32 0.03125, %v6129_v53  ;;  %v2510_v19 = vsel %vm2349_vm2, %v2509_v43, %v2505_v40  ;;  %v2455_v6 = vrot.slane %v6125_v14, %v5749_v55  ;;  %v1644_v53 = vmul.f32 0.03125, %v6164_v59  ;;  %v7095_v59 = vld [vmem:[#allocation79_spill] sm:$0xff] }
 0x467   : > { %v2130_v4 = vsel %vm1922_vm1, %v2129_v62, %v2125_v2  ;;  %v2168_v20 = vrot.slane %v1642_v0, %v5719_v9  ;;  %v2515_v62 = vsel %vm2356_vm3, %v2514_v46, %v2510_v19  ;;  %v2164_v42 = vrot.slane %v1641_v48, %v5716_v60  ;;  %v7096_v0 = vld [vmem:[#allocation81_spill] sm:$0xff] }
 0x468   : > { %v6217_v29 = vpop.xlane.xlu1 %1787  ;;  %v6219_v44 = vpop.xlane.xlu0 %1564  ;;  %v1637_v30 = vmul.f32 0.03125, %v6139_v56  ;;  %v2173_v2 = vrot.slane %v1643_v49, %v5742_v38  ;;  %v2139_v14 = vrot.slane %v1636_v1, %v5765_v47  ;;  %v1645_v40 = vmul.f32 0.03125, %v7096_v0  ;;  %v7097_v56 = vld [vmem:[#allocation77_spill] sm:$0xff] }
 0x469   : > { %v2465_v49 = vrot.slane %v7097_v56, %v5785_v36  ;;  %v1638_v1 = vmul.f32 0.03125, %v6201_v13  ;;  %v2169_v19 = vsel %vm1922_vm1, %v2168_v20, %v2164_v42  ;;  %vm7099_vm14 = vcmask 261312  }
 0x46a   : > { %v2183_v56 = vrot.slane %v1645_v40, %v5746_v25  ;;  %v2563_v20 = vrot.slane %v6176_v12, %v5725_v57  ;;  %v2538_v40 = vrot.slane %v6217_v29, %v5791_v5 }
 0x46c   : > { %v6221_v28 = vpop.xlane.xlu1 %1561  ;;  %v6223_v61 = vpop.xlane.xlu0 %1751 }
 0x46d   : > { %v1646_v42 = vmul.f32 0.03125, %v6221_v28  ;;  %v2480_v12 = vrot.slane %v6223_v61, %v5828_v16 }
 0x46f   : > { %v2188_v29 = vrot.slane %v1646_v42, %v5762_v63 }
 0x470   : > { %v6225_v39 = vpop.xlane.xlu1 %1811  ;;  %v6227_v34 = vpop.xlane.xlu0 %1793 }
 0x474   : > { %v6229_v32 = vpop.xlane.xlu1 %1543  ;;  %v6231_v26 = vpop.xlane.xlu0 %1796 }
 0x478   : > { %v6235_v52 = vpop.xlane.xlu1 %1814  ;;  %v6237_v45 = vpop.xlane.xlu0 %1799 }
 0x479   : > { %7090 = vst [vmem:[#allocation83_spill] sm:$0xff] %v6237_v45  ;;  %v2451_v45 = vsel %vm2321_vm8, %v2450_v17, %v2446_v37  ;;  %v2135_v37 = vsel %vm7093_vm13, %v2134_v51, %v2130_v4  ;;  %v2524_v17 = vrot.slane %v7095_v59, %v5725_v57  ;;  %v6308_v51 = vsel %vm2363_vm9, %v2519_v50, %v2515_v62  ;;  %v7098_v4 = vld [vmem:[#allocation76_spill] sm:$0xff]  ;;  %v7101_v59 = vld [vmem:[#allocation78_spill] sm:$0xff] }
 0x47a   : > { %v2456_v43 = vsel %vm2328_vm6, %v2455_v6, %v2451_v45  ;;  %v2178_v45 = vrot.slane %v1644_v53, %v5765_v47  ;;  %v2140_v6 = vsel %vm7099_vm14, %v2139_v14, %v2135_v37  ;;  %v2144_v50 = vrot.slane %v1637_v30, %v5746_v25  ;;  %v7103_v30 = vld [vmem:[#allocation80_spill] sm:$0xff] }
 0x47b   : > { %v2461_v22 = vsel %vm7094_vm12, %v2460_v15, %v2456_v43  ;;  %v2528_v15 = vrot.slane %v7098_v4, %v5771_v54  ;;  %v2470_v43 = vrot.slane %v6213_v3, %v5807_v11  ;;  %v2174_v62 = vsel %vm7100_vm0, %v2173_v2, %v2169_v19  ;;  %vm7104_vm12 = vmmov %vm7099_vm14 }
 0x47c   : > { %v6245_v27 = vpop.xlane.xlu1 %1567  ;;  %v6247_v18 = vpop.xlane.xlu0 %1570  ;;  %v2533_v0 = vrot.slane %v7101_v59, %v5749_v55  ;;  %vm7102_vm13 = vcmask 851712   ;;  %v2567_v2 = vrot.slane %v7103_v30, %v5771_v54  ;;  %v2179_v14 = vsel %vm7104_vm12, %v2178_v45, %v2174_v62 }
 0x47d   : > { %v2466_v53 = vsel %vm7102_vm13, %v2465_v49, %v2461_v22  ;;  %v2529_v13 = vsel %vm2321_vm8, %v2528_v15, %v2524_v17  ;;  %v1639_v4 = vmul.f32 0.03125, %v6191_v35  ;;  %v2149_v22 = vrot.slane %v1638_v1, %v5762_v63 }
 0x47e   : > { %v2471_v17 = vsel %vm2349_vm2, %v2470_v43, %v2466_v53  ;;  %vm7105_vm14 = vcmask 326912   ;;  %v2572_v15 = vrot.slane %v6178_v8, %v5749_v55  ;;  %v2475_v45 = vrot.slane %v6203_v23, %v5825_v33 }
 0x47f   : > { %v2145_v49 = vsel %vm7105_vm14, %v2144_v50, %v2140_v6  ;;  %v2534_v35 = vsel %vm2328_vm6, %v2533_v0, %v2529_v13  ;;  %vm7106_vm0 = vmmov %vm7105_vm14  ;;  %v2568_v19 = vsel %vm2321_vm8, %v2567_v2, %v2563_v20  ;;  %v1649_v43 = vmul.f32 0.03125, %v6247_v18 }
 0x480   : > { %v6258_v31 = vpop.xlane.xlu1 %1817  ;;  %v6260_v41 = vpop.xlane.xlu0 %1576  ;;  %v2184_v1 = vsel %vm7106_vm0, %v2183_v56, %v2179_v14  ;;  %v2154_v6 = vrot.slane %v1639_v4, %v5776_v7  ;;  %v2150_v8 = vsel %vm1950_vm10, %v2149_v22, %v2145_v49  ;;  %v1647_v50 = vmul.f32 0.03125, %v6219_v44  ;;  %v7109_v22 = vld [vmem:[#allocation75_spill] sm:$0xff] }
 0x481   : > { %v2476_v23 = vsel %vm2356_vm3, %v2475_v45, %v2471_v17  ;;  %vm7107_vm13 = vcmask 786112   ;;  %v2573_v18 = vsel %vm2328_vm6, %v2572_v15, %v2568_v19  ;;  %v2543_v56 = vrot.slane %v6215_v58, %v5785_v36 }
 0x482   : > { %v2539_v59 = vsel %vm7107_vm13, %v2538_v40, %v2534_v35  ;;  %v2481_v0 = vsel %vm2363_vm9, %v2480_v12, %v2476_v23  ;;  %v2577_v20 = vrot.slane %v6225_v39, %v5791_v5  ;;  %v1651_v42 = vmul.f32 0.03125, %v6260_v41 }
 0x483   : > { %v2189_v44 = vsel %vm1950_vm10, %v2188_v29, %v2184_v1  ;;  %vm7108_vm12 = vcmask 458112   ;;  %v2193_v4 = vrot.slane %v1647_v50, %v5776_v7  ;;  %vm7110_vm14 = vcmask 1043459  }
 0x484   : > { %v6281_v21 = vpop.xlane.xlu1 %1820  ;;  %v6283_v10 = vpop.xlane.xlu0 %1829  ;;  %v2155_v30 = vsel %vm7108_vm12, %v2154_v6, %v2150_v8  ;;  %v2640_v58 = vsel %vm7110_vm14, %v2481_v0, %v7109_v22  ;;  %vm7111_vm0 = vcmask 851712   ;;  %v1640_v17 = vmul.f32 0.03125, %v6229_v32 }
 0x485   : > { %v2544_v39 = vsel %vm7111_vm0, %v2543_v56, %v2539_v59  ;;  %v2578_v12 = vsel %vm7107_vm13, %v2577_v20, %v2573_v18  ;;  %v2212_v49 = vrot.slane %v1651_v42, %v5742_v38  ;;  %v1648_v32 = vmul.f32 0.03125, %v6245_v27  ;;  %vm7115_vm14 = vmmov %vm7111_vm0 }
 0x486   : > { %v2159_v19 = vrot.slane %v1640_v17, %v5820_v24  ;;  %v2592_v27 = vrot.slane %v6281_v21, %v5825_v33  ;;  %vm7116_vm0 = vcmask 326912  }
 0x487   : > { %v2198_v8 = vrot.slane %v1648_v32, %v5820_v24 }
 0x488   : > { %v6303_v46 = vpop.xlane.xlu1 %1823  ;;  %v6305_v48 = vpop.xlane.xlu0 %1582  ;;  %v2160_v42 = vsel %vm1964_vm5, %v2159_v19, %v2155_v30 }
 0x489   : > { %v1653_v15 = vmul.f32 0.03125, %v6305_v48 }
 0x48c   : > { %v1574_v37 = vpop.xlane.xlu1 %1573  ;;  %v6330_v3 = vpop.xlane.xlu0 %1832 }
 0x48d   : > { %v1650_v28 = vmul.f32 0.03125, %v1574_v37  ;;  %v2548_v37 = vrot.slane %v6227_v34, %v5807_v11  ;;  %v2606_v34 = vrot.slane %v6283_v10, %v5771_v54  ;;  %v2611_v1 = vrot.slane %v6330_v3, %v5749_v55  ;;  %v7114_v3 = vld [vmem:[#allocation83_spill] sm:$0xff] }
 0x48e   : > { %v2558_v6 = vrot.slane %v7114_v3, %v5828_v16 }
 0x48f   : > { %v2207_v53 = vrot.slane %v1650_v28, %v5719_v9  ;;  %v2203_v9 = vrot.slane %v1649_v43, %v5716_v60  ;;  %v2194_v28 = vsel %vm7108_vm12, %v2193_v4, %v2189_v44  ;;  %v2549_v45 = vsel %vm2349_vm2, %v2548_v37, %v2544_v39  ;;  %v7121_v39 = vld [vmem:[#allocation82_spill] sm:$0xff] }
 0x490   : > { %v1580_v61 = vpop.xlane.xlu1 %1579  ;;  %v6352_v62 = vpop.xlane.xlu0 %1835  ;;  %v2222_v43 = vrot.slane %v1653_v15, %v5746_v25  ;;  %v2199_v44 = vsel %vm1964_vm5, %v2198_v8, %v2194_v28  ;;  %v4214_v28 = vld [vmem:[%s6883_s6] ss:$0 sm:$0xff] }
 0x491   : > { %v1652_v13 = vmul.f32 0.03125, %v1580_v61  ;;  %v2208_v40 = vsel %vm1922_vm1, %v2207_v53, %v2203_v9  ;;  %vm7112_vm1 = vcmask 195712   ;;  %v2616_v21 = vrot.slane %v6352_v62, %v5791_v5 }
 0x492   : > { %v2213_v38 = vsel %vm7112_vm1, %v2212_v49, %v2208_v40  ;;  %vm7122_vm1 = vcmask 1045509  }
 0x493   : > { %v2217_v60 = vrot.slane %v1652_v13, %v5765_v47  ;;  %v2582_v47 = vrot.slane %v6235_v52, %v5785_v36 }
 0x494   : > { %v1827_v2 = vpop.xlane.xlu1 %1826  ;;  %v1589_v14 = vpop.xlane.xlu0 %1588 }
 0x495   : > { %v2602_v41 = vrot.slane %v1827_v2, %v5725_v57  ;;  %v2553_v57 = vrot.slane %v6231_v26, %v5825_v33  ;;  %v2587_v26 = vrot.slane %v6258_v31, %v5807_v11  ;;  %v1655_v61 = vmul.f32 0.03125, %v1589_v14 }
 0x496   : > { %v2597_v31 = vrot.slane %v6303_v46, %v5828_v16  ;;  %v2583_v25 = vsel %vm7115_vm14, %v2582_v47, %v2578_v12  ;;  %v7128_v47 = vld [vmem:[#allocation5_spill] sm:$0xff] }
 0x497   : > { %v2607_v54 = vsel %vm2321_vm8, %v2606_v34, %v2602_v41  ;;  %vm7113_vm8 = vcmask 261312   ;;  %v2588_v53 = vsel %vm2349_vm2, %v2587_v26, %v2583_v25  ;;  %v2554_v56 = vsel %vm2356_vm3, %v2553_v57, %v2549_v45 }
 0x498   : > { %v1586_v10 = vpop.xlane.xlu1 %1585  ;;  %v1839_v35 = vpop.xlane.xlu0 %1838  ;;  %v2218_v29 = vsel %vm7113_vm8, %v2217_v60, %v2213_v38  ;;  %v2612_v52 = vsel %vm2328_vm6, %v2611_v1, %v2607_v54  ;;  %vm7117_vm6 = vmmov %vm7107_vm13  ;;  %v2593_v5 = vsel %vm2356_vm3, %v2592_v27, %v2588_v53  ;;  %v2232_v62 = vrot.slane %v1655_v61, %v5776_v7  ;;  %v7129_v27 = vld [vmem:[#allocation10_spill] sm:$0xff] }
 0x499   : > { %v1654_v48 = vmul.f32 0.03125, %v1586_v10  ;;  %v2223_v59 = vsel %vm7116_vm0, %v2222_v43, %v2218_v29  ;;  %v2621_v0 = vrot.slane %v1839_v35, %v5785_v36  ;;  %v2617_v18 = vsel %vm7117_vm6, %v2616_v21, %v2612_v52  ;;  %vm7119_vm13 = vmmov %vm7108_vm12 }
 0x49a   : > { %v2559_v36 = vsel %vm2363_vm9, %v2558_v6, %v2554_v56  ;;  %v2598_v37 = vsel %vm2363_vm9, %v2597_v31, %v2593_v5  ;;  %vm7120_vm12 = vcmask 1044484   ;;  %v2243_v41 = vsel %vm7122_vm1, %v2160_v42, %v7121_v39  ;;  %vm7123_vm8 = vmmov %vm7122_vm1 }
 0x49b   : > { %v2227_v55 = vrot.slane %v1654_v48, %v5762_v63  ;;  %vm7124_vm0 = vcmask 1046534   ;;  %v2838_v1 = vsub.s32 2, %v7128_v47  ;;  %v2978_v19 = vsub.s32 6, %v7128_v47 }
 0x49c   : > { %v1592_v50 = vpop.xlane.xlu1 %1591  ;;  %v1842_v23 = vpop.xlane.xlu0 %1841  ;;  %v2244_v40 = vsel %vm7124_vm0, %v2199_v44, %v2243_v41  ;;  %vm7125_vm6 = vmmov %vm7124_vm0  ;;  %v2908_v43 = vsub.s32 4, %v7128_v47  ;;  %v2873_v61 = vsub.s32 3, %v7128_v47  ;;  %v3013_v3 = vsub.s32 7, %v7128_v47 }
 0x49d   : > { %v1656_v63 = vmul.f32 0.03125, %v1592_v50  ;;  %v2228_v13 = vsel %vm1950_vm10, %v2227_v55, %v2223_v59  ;;  %v2626_v46 = vrot.slane %v1842_v23, %v5807_v11  ;;  %vm7118_vm10 = vmmov %vm7115_vm14  ;;  %vm2646_vm14 = vcmask 523264   ;;  %v7130_v59 = vld [vmem:[#allocation25_spill] sm:$0xff] }
 0x49e   : > { %v2622_v11 = vsel %vm7118_vm10, %v2621_v0, %v2617_v18  ;;  %v2233_v14 = vsel %vm7119_vm13, %v2232_v62, %v2228_v13  ;;  %vm7126_vm10 = vcmask 1047559   ;;  %v6458_v8 = vsub.s32 1, %v7128_v47 }
 0x49f   : > { %v2237_v20 = vrot.slane %v1656_v63, %v5820_v24  ;;  %v2641_v24 = vsel %vm7120_vm12, %v6308_v51, %v2640_v58  ;;  %v2627_v22 = vsel %vm2349_vm2, %v2626_v46, %v2622_v11  ;;  %vm7127_vm13 = vmmov %vm7126_vm10  ;;  %v2943_v21 = vsub.s32 5, %v7128_v47  ;;  %v7131_v63 = vld [vmem:[#allocation19_spill] sm:$0xff]  ;;  %v4770_v47 = vld [vmem:[%s6886_s9 + $0x1f0] ss:$8 sps:$4 sm:$0xff]  }
 0x4a0   : > { %v1848_v9 = vpop.xlane.xlu1 %1847  ;;  %v1845_v2 = vpop.xlane.xlu0 %1844  ;;  %v2642_v17 = vsel %vm7123_vm8, %v2559_v36, %v2641_v24  ;;  %v4910_v56 = vmov 1.0   ;;  %v7134_v36 = vld [vmem:[#allocation43_spill] sm:$0xff]  ;;  %v7137_v24 = vld [vmem:[#allocation13_spill] sm:$0xff] }
 0x4a1   : > { %v2636_v4 = vrot.slane %v1848_v9, %v5828_v16  ;;  %v2631_v7 = vrot.slane %v1845_v2, %v5825_v33  ;;  %v2238_v30 = vsel %vm1964_vm5, %v2237_v20, %v2233_v14  ;;  %v2643_v16 = vsel %vm7125_vm6, %v2598_v37, %v2642_v17  ;;  %4224 = vmatprep.mubr.msk.f32.mxu1 %vm5154_vm4, %v4910_v56  ;;  %v7135_v37 = vld [vmem:[#allocation39_spill] sm:$0xff]  ;;  %v7138_v17 = vld [vmem:[#allocation58_spill] sm:$0xff] }
 0x4a2   : > { %v2245_v51 = vsel %vm7126_vm10, %v2238_v30, %v2244_v40  ;;  %v7139_v40 = vld [vmem:[#allocation47_spill] sm:$0xff]  ;;  %vm7198_vm4 = vcmask 261120  }
 0x4a3   : > { %v2632_v34 = vsel %vm2356_vm3, %v2631_v7, %v2627_v22 }
 0x4a4   : > { %v2637_v33 = vsel %vm2363_vm9, %v2636_v4, %v2632_v34  ;;  %v7136_v4 = vld [vmem:[#allocation11_spill] sm:$0xff] }
 0x4a5   : > { %v2644_v58 = vsel %vm7127_vm13, %v2637_v33, %v2643_v16 }
 0x4a6   : > { %v2647_v60 = vsel %vm2646_vm14, %v2245_v51, %v2644_v58 }
 0x4a7   : > { %v2648_v12 = vpack.c.bf16 %v2647_v60, %v2647_v60  ;;  %v7140_v60 = vld [vmem:[#allocation21_spill] sm:$0xff] }
 0x4a9   : > { %4505 = vmatmul.mubr.bf16.vlgmr.msra.gmra.mrb[16].mxu0 %v2648_v12 }
 0x4aa   : > { %4226 = vmatprep.mubr.msk.f32.mxu0 %vm5252_vm11, %v4910_v56 }
 0x57c   : > { %v2754_v49 = vpop.f32.mrb[16].mxu0 }
 0x57d   : > { %v2755_v15 = vadd.f32 %v4214_v28, %v2754_v49  ;;  %v4506_v45 = vpop.f32.mrb[17].mxu0  ;;  %v7141_v28 = vld [vmem:[#allocation27_spill] sm:$0xff] }
 0x57e   : > { %v2757_v57 = vpop.f32.mrb[18].mxu0 }
 0x57f   : > { %v4223_v32 = vmul.f32 -1.442695, %v2755_v15  ;;  %v4507_v54 = vpop.f32.mrb[19].mxu0 }
 0x581   : > { %4825 = vpow2.f32 %v4223_v32  ;;  %v7142_v32 = vld [vmem:[#allocation44_spill] sm:$0xff] }
 0x58b   : > { %v4826_v10 = vpop.eup %4825 }
 0x58c   : > { %v2763_v35 = vadd.f32 1.0, %v4826_v10  ;;  %v7143_v10 = vld [vmem:[#allocation45_spill] sm:$0xff] }
 0x58e   : > { %4827 = vrcp.f32 %v2763_v35 }
 0x598   : > { %v4828_v38 = vpop.eup %4827 }
 0x599   : > { %v2839_v48 = vrot.slane %v4828_v38, %v2838_v1  ;;  %v2979_v26 = vrot.slane %v4828_v38, %v2978_v19  ;;  %v2769_v29 = vrot.slane %v4828_v38, %v7129_v27  ;;  %v2909_v52 = vrot.slane %v4828_v38, %v2908_v43  ;;  %v7145_v43 = vld [vmem:[#allocation16_spill] sm:$0xff] }
 0x59a   : > { %v2874_v55 = vrot.slane %v4828_v38, %v2873_v61  ;;  %v3014_v6 = vrot.slane %v4828_v38, %v3013_v3  ;;  %v2804_v31 = vrot.slane %v4828_v38, %v6458_v8  ;;  %v2944_v50 = vrot.slane %v4828_v38, %v2943_v21 }
 0x59b   : > { %2845 = vbcast.lane.b32.xlu1 %v2839_v48, 264  ;;  %2841 = vbcast.lane.b32.xlu0 %v2839_v48, 256 }
 0x59f   : > { %2981 = vbcast.lane.b32.xlu1 %v2979_v26, 256  ;;  %2771 = vbcast.lane.b32.xlu0 %v2769_v29, 256 }
 0x5a3   : > { %2985 = vbcast.lane.b32.xlu1 %v2979_v26, 264  ;;  %2911 = vbcast.lane.b32.xlu0 %v2909_v52, 256 }
 0x5a7   : > { %2775 = vbcast.lane.b32.xlu1 %v2769_v29, 264  ;;  %2849 = vbcast.lane.b32.xlu0 %v2839_v48, 272 }
 0x5ab   : > { %2915 = vbcast.lane.b32.xlu1 %v2909_v52, 264  ;;  %2989 = vbcast.lane.b32.xlu0 %v2979_v26, 272 }
 0x5af   : > { %2853 = vbcast.lane.b32.xlu1 %v2839_v48, 280  ;;  %2779 = vbcast.lane.b32.xlu0 %v2769_v29, 272 }
 0x5b3   : > { %2993 = vbcast.lane.b32.xlu1 %v2979_v26, 280  ;;  %2919 = vbcast.lane.b32.xlu0 %v2909_v52, 272 }
 0x5b7   : > { %2783 = vbcast.lane.b32.xlu1 %v2769_v29, 280  ;;  %2857 = vbcast.lane.b32.xlu0 %v2839_v48, 288 }
 0x5bb   : > { %2923 = vbcast.lane.b32.xlu1 %v2909_v52, 280  ;;  %2997 = vbcast.lane.b32.xlu0 %v2979_v26, 288 }
 0x5bf   : > { %2861 = vbcast.lane.b32.xlu1 %v2839_v48, 296  ;;  %2787 = vbcast.lane.b32.xlu0 %v2769_v29, 288 }
 0x5c3   : > { %3001 = vbcast.lane.b32.xlu1 %v2979_v26, 296  ;;  %2927 = vbcast.lane.b32.xlu0 %v2909_v52, 288 }
 0x5c7   : > { %2791 = vbcast.lane.b32.xlu1 %v2769_v29, 296  ;;  %2865 = vbcast.lane.b32.xlu0 %v2839_v48, 304 }
 0x5cb   : > { %2931 = vbcast.lane.b32.xlu1 %v2909_v52, 296  ;;  %3005 = vbcast.lane.b32.xlu0 %v2979_v26, 304 }
 0x5cf   : > { %2869 = vbcast.lane.b32.xlu1 %v2839_v48, 312  ;;  %2795 = vbcast.lane.b32.xlu0 %v2769_v29, 304 }
 0x5d3   : > { %3009 = vbcast.lane.b32.xlu1 %v2979_v26, 312  ;;  %2935 = vbcast.lane.b32.xlu0 %v2909_v52, 304  ;;  %v7144_v26 = vld [vmem:[#allocation14_spill] sm:$0xff] }
 0x5d7   : > { %2799 = vbcast.lane.b32.xlu1 %v2769_v29, 312  ;;  %2876 = vbcast.lane.b32.xlu0 %v2874_v55, 256 }
 0x5db   : > { %2939 = vbcast.lane.b32.xlu1 %v2909_v52, 312  ;;  %3016 = vbcast.lane.b32.xlu0 %v3014_v6, 256 }
 0x5df   : > { %2880 = vbcast.lane.b32.xlu1 %v2874_v55, 264  ;;  %2806 = vbcast.lane.b32.xlu0 %v2804_v31, 256 }
 0x5e3   : > { %3020 = vbcast.lane.b32.xlu1 %v3014_v6, 264  ;;  %2946 = vbcast.lane.b32.xlu0 %v2944_v50, 256 }
 0x5e7   : > { %2810 = vbcast.lane.b32.xlu1 %v2804_v31, 264  ;;  %2884 = vbcast.lane.b32.xlu0 %v2874_v55, 272 }
 0x5eb   : > { %2950 = vbcast.lane.b32.xlu1 %v2944_v50, 264  ;;  %3024 = vbcast.lane.b32.xlu0 %v3014_v6, 272 }
 0x5ef   : > { %2888 = vbcast.lane.b32.xlu1 %v2874_v55, 280  ;;  %2814 = vbcast.lane.b32.xlu0 %v2804_v31, 272 }
 0x5f3   : > { %3028 = vbcast.lane.b32.xlu1 %v3014_v6, 280  ;;  %2954 = vbcast.lane.b32.xlu0 %v2944_v50, 272 }
 0x5f7   : > { %2818 = vbcast.lane.b32.xlu1 %v2804_v31, 280  ;;  %2892 = vbcast.lane.b32.xlu0 %v2874_v55, 288 }
 0x5fb   : > { %2958 = vbcast.lane.b32.xlu1 %v2944_v50, 280  ;;  %3032 = vbcast.lane.b32.xlu0 %v3014_v6, 288 }
 0x5ff   : > { %2896 = vbcast.lane.b32.xlu1 %v2874_v55, 296  ;;  %2822 = vbcast.lane.b32.xlu0 %v2804_v31, 288 }
 0x603   : > { %3036 = vbcast.lane.b32.xlu1 %v3014_v6, 296  ;;  %2962 = vbcast.lane.b32.xlu0 %v2944_v50, 288 }
 0x607   : > { %2826 = vbcast.lane.b32.xlu1 %v2804_v31, 296  ;;  %2900 = vbcast.lane.b32.xlu0 %v2874_v55, 304 }
 0x60b   : > { %2966 = vbcast.lane.b32.xlu1 %v2944_v50, 296  ;;  %3040 = vbcast.lane.b32.xlu0 %v3014_v6, 304 }
 0x60d   : > { %v2846_v23 = vpop.permute.xlu1 %2845  ;;  %v2842_v25 = vpop.permute.xlu0 %2841 }
 0x60e   : > { %v3063_v0 = vmul.f32 %v2846_v23, %v7130_v59  ;;  %v3062_v53 = vmul.f32 %v2842_v25, %v7131_v63  ;;  %v7148_v63 = vld [vmem:[#allocation30_spill] sm:$0xff] }
 0x60f   : > { %2904 = vbcast.lane.b32.xlu1 %v2874_v55, 312  ;;  %2830 = vbcast.lane.b32.xlu0 %v2804_v31, 304 }
 0x610   : > { %v4508_v13 = vpack.c.bf16 %v3063_v0, %v3062_v53 }
 0x611   : > { %v2982_v18 = vpop.permute.xlu1 %2981  ;;  %v2772_v46 = vpop.permute.xlu0 %2771 }
 0x612   : > { %4509 = vmatprep.subr.bf16.mxu1 %v4508_v13  ;;  %v3094_v44 = vmul.f32 %v2982_v18, %v7134_v36  ;;  %v3046_v7 = vmul.f32 %v2772_v46, %v7136_v4  ;;  %v7149_v13 = vld [vmem:[#allocation32_spill] sm:$0xff]  ;;  %v7151_v36 = vld [vmem:[#allocation50_spill] sm:$0xff]  ;;  %v7153_v4 = vld [vmem:[#allocation15_spill] sm:$0xff] }
 0x613   : > { %3044 = vbcast.lane.b32.xlu1 %v3014_v6, 312  ;;  %2970 = vbcast.lane.b32.xlu0 %v2944_v50, 304 }
 0x615   : > { %v2986_v20 = vpop.permute.xlu1 %2985  ;;  %v2912_v42 = vpop.permute.xlu0 %2911 }
 0x616   : > { %v3095_v9 = vmul.f32 %v2986_v20, %v7135_v37  ;;  %v3078_v34 = vmul.f32 %v2912_v42, %v7138_v17  ;;  %v7150_v20 = vld [vmem:[#allocation46_spill] sm:$0xff]  ;;  %v7155_v17 = vld [vmem:[#allocation65_spill] sm:$0xff] }
 0x617   : > { %2834 = vbcast.lane.b32.xlu1 %v2804_v31, 312  ;;  %v7146_v31 = vld [vmem:[#allocation61_spill] sm:$0xff] }
 0x618   : > { %v4540_v2 = vpack.c.bf16 %v3095_v9, %v3094_v44 }
 0x619   : > { %v2776_v11 = vpop.permute.xlu1 %2775  ;;  %v2850_v14 = vpop.permute.xlu0 %2849 }
 0x61a   : > { %v3047_v30 = vmul.f32 %v2776_v11, %v7137_v24  ;;  %4541 = vmatprep.subr.bf16.mxu0 %v4540_v2  ;;  %v3064_v12 = vmul.f32 %v2850_v14, %v7140_v60  ;;  %v7152_v11 = vld [vmem:[#allocation12_spill] sm:$0xff]  ;;  %v7157_v60 = vld [vmem:[#allocation35_spill] sm:$0xff] }
 0x61b   : > { %2974 = vbcast.lane.b32.xlu1 %v2944_v50, 312  ;;  %v7147_v50 = vld [vmem:[#allocation62_spill] sm:$0xff] }
 0x61c   : > { %v4510_v22 = vpack.c.bf16 %v3047_v30, %v3046_v7 }
 0x61d   : > { %v2916_v39 = vpop.permute.xlu1 %2915  ;;  %v2990_v41 = vpop.permute.xlu0 %2989 }
 0x61e   : > { %v3079_v16 = vmul.f32 %v2916_v39, %v7139_v40  ;;  %4511 = vmatpush3.bf16.msra.mxu1 %v4510_v22  ;;  %v3096_v54 = vmul.f32 %v2990_v41, %v7142_v32  ;;  %v7154_v39 = vld [vmem:[#allocation64_spill] sm:$0xff]  ;;  %v7159_v32 = vld [vmem:[#allocation51_spill] sm:$0xff] }
 0x620   : > { %v4542_v33 = vpack.c.bf16 %v3079_v16, %v3078_v34 }
 0x621   : > { %v2854_v51 = vpop.permute.xlu1 %2853  ;;  %v2780_v58 = vpop.permute.xlu0 %2779 }
 0x622   : > { %v3065_v49 = vmul.f32 %v2854_v51, %v7141_v28  ;;  %4543 = vmatpush3.bf16.msra.mxu0 %v4542_v33  ;;  %v3048_v29 = vmul.f32 %v2780_v58, %v7144_v26  ;;  %v7156_v51 = vld [vmem:[#allocation33_spill] sm:$0xff]  ;;  %v7161_v26 = vld [vmem:[#allocation18_spill] sm:$0xff] }
 0x624   : > { %v4512_v15 = vpack.c.bf16 %v3065_v49, %v3064_v12 }
 0x625   : > { %v2994_v45 = vpop.permute.xlu1 %2993  ;;  %v2920_v57 = vpop.permute.xlu0 %2919 }
 0x626   : > { %v3097_v35 = vmul.f32 %v2994_v45, %v7143_v10  ;;  %4513 = vmatprep.subr.bf16.mxu1 %v4512_v15  ;;  %v3080_v21 = vmul.f32 %v2920_v57, %v7146_v31  ;;  %v7158_v45 = vld [vmem:[#allocation49_spill] sm:$0xff]  ;;  %v7163_v31 = vld [vmem:[#allocation67_spill] sm:$0xff] }
 0x628   : > { %v4544_v38 = vpack.c.bf16 %v3097_v35, %v3096_v54 }
 0x629   : > { %v2784_v48 = vpop.permute.xlu1 %2783  ;;  %v2858_v19 = vpop.permute.xlu0 %2857 }
 0x62a   : > { %v3049_v52 = vmul.f32 %v2784_v48, %v7145_v43  ;;  %4545 = vmatprep.subr.bf16.mxu0 %v4544_v38  ;;  %v3066_v53 = vmul.f32 %v2858_v19, %v7148_v63  ;;  %v7160_v48 = vld [vmem:[#allocation17_spill] sm:$0xff]  ;;  %v7165_v63 = vld [vmem:[#allocation34_spill] sm:$0xff] }
 0x62c   : > { %v4514_v55 = vpack.c.bf16 %v3049_v52, %v3048_v29 }
 0x62d   : > { %v2924_v3 = vpop.permute.xlu1 %2923  ;;  %v2998_v6 = vpop.permute.xlu0 %2997 }
 0x62e   : > { %v3081_v23 = vmul.f32 %v2924_v3, %v7147_v50  ;;  %4515 = vmatpush3.bf16.msra.mxu1 %v4514_v55  ;;  %v3098_v42 = vmul.f32 %v2998_v6, %v7150_v20  ;;  %v7162_v3 = vld [vmem:[#allocation63_spill] sm:$0xff]  ;;  %v7167_v20 = vld [vmem:[#allocation54_spill] sm:$0xff] }
 0x630   : > { %v4546_v25 = vpack.c.bf16 %v3081_v23, %v3080_v21 }
 0x631   : > { %v2862_v59 = vpop.permute.xlu1 %2861  ;;  %v2788_v0 = vpop.permute.xlu0 %2787 }
 0x632   : > { %v3067_v18 = vmul.f32 %v2862_v59, %v7149_v13  ;;  %4547 = vmatpush3.bf16.msra.mxu0 %v4546_v25  ;;  %v3050_v14 = vmul.f32 %v2788_v0, %v7152_v11  ;;  %v7164_v59 = vld [vmem:[#allocation41_spill] sm:$0xff]  ;;  %v7169_v11 = vld [vmem:[#allocation22_spill] sm:$0xff] }
 0x634   : > { %v4516_v46 = vpack.c.bf16 %v3067_v18, %v3066_v53 }
 0x635   : > { %v3002_v5 = vpop.permute.xlu1 %3001  ;;  %v2928_v62 = vpop.permute.xlu0 %2927 }
 0x636   : > { %v3099_v44 = vmul.f32 %v3002_v5, %v7151_v36  ;;  %4517 = vmatprep.subr.bf16.mxu1 %v4516_v46  ;;  %v3082_v41 = vmul.f32 %v2928_v62, %v7154_v39  ;;  %v7166_v5 = vld [vmem:[#allocation52_spill] sm:$0xff]  ;;  %v7171_v39 = vld [vmem:[#allocation70_spill] sm:$0xff] }
 0x638   : > { %v4548_v37 = vpack.c.bf16 %v3099_v44, %v3098_v42 }
 0x639   : > { %v2792_v9 = vpop.permute.xlu1 %2791  ;;  %v2866_v2 = vpop.permute.xlu0 %2865 }
 0x63a   : > { %v3051_v7 = vmul.f32 %v2792_v9, %v7153_v4  ;;  %4549 = vmatprep.subr.bf16.mxu0 %v4548_v37  ;;  %v3068_v58 = vmul.f32 %v2866_v2, %v7156_v51  ;;  %v7168_v9 = vld [vmem:[#allocation20_spill] sm:$0xff]  ;;  %v7173_v51 = vld [vmem:[#allocation37_spill] sm:$0xff] }
 0x63c   : > { %v4518_v24 = vpack.c.bf16 %v3051_v7, %v3050_v14 }
 0x63d   : > { %v2932_v30 = vpop.permute.xlu1 %2931  ;;  %v3006_v22 = vpop.permute.xlu0 %3005 }
 0x63e   : > { %v3083_v34 = vmul.f32 %v2932_v30, %v7155_v17  ;;  %4519 = vmatpush3.bf16.msra.mxu1 %v4518_v24  ;;  %v3100_v57 = vmul.f32 %v3006_v22, %v7158_v45  ;;  %v7170_v30 = vld [vmem:[#allocation66_spill] sm:$0xff]  ;;  %v7175_v45 = vld [vmem:[#allocation56_spill] sm:$0xff] }
 0x640   : > { %v4550_v40 = vpack.c.bf16 %v3083_v34, %v3082_v41 }
 0x641   : > { %v2870_v16 = vpop.permute.xlu1 %2869  ;;  %v2796_v33 = vpop.permute.xlu0 %2795 }
 0x642   : > { %v3069_v12 = vmul.f32 %v2870_v16, %v7157_v60  ;;  %4551 = vmatpush3.bf16.msra.mxu0 %v4550_v40  ;;  %v3052_v19 = vmul.f32 %v2796_v33, %v7160_v48  ;;  %v7172_v16 = vld [vmem:[#allocation36_spill] sm:$0xff]  ;;  %v7177_v48 = vld [vmem:[#allocation26_spill] sm:$0xff] }
 0x644   : > { %v4520_v28 = vpack.c.bf16 %v3069_v12, %v3068_v58 }
 0x645   : > { %v3010_v49 = vpop.permute.xlu1 %3009  ;;  %v2936_v15 = vpop.permute.xlu0 %2935 }
 0x646   : > { %v3101_v54 = vmul.f32 %v3010_v49, %v7159_v32  ;;  %4521 = vmatprep.subr.bf16.mxu1 %v4520_v28  ;;  %v3084_v6 = vmul.f32 %v2936_v15, %v7162_v3  ;;  %v7174_v49 = vld [vmem:[#allocation53_spill] sm:$0xff] }
 0x647   : > { %v7179_v3 = vld [vmem:[#allocation69_spill] sm:$0xff] }
 0x648   : > { %v4552_v10 = vpack.c.bf16 %v3101_v54, %v3100_v57 }
 0x649   : > { %v2800_v35 = vpop.permute.xlu1 %2799  ;;  %v2877_v38 = vpop.permute.xlu0 %2876 }
 0x64a   : > { %v3053_v29 = vmul.f32 %v2800_v35, %v7161_v26  ;;  %4553 = vmatprep.subr.bf16.mxu0 %v4552_v10  ;;  %v3070_v0 = vmul.f32 %v2877_v38, %v7164_v59  ;;  %v7176_v35 = vld [vmem:[#allocation23_spill] sm:$0xff]  ;;  %v7181_v59 = vld [vmem:[#allocation40_spill] sm:$0xff] }
 0x64c   : > { %v4522_v43 = vpack.c.bf16 %v3053_v29, %v3052_v19 }
 0x64d   : > { %v2940_v52 = vpop.permute.xlu1 %2939  ;;  %v3017_v55 = vpop.permute.xlu0 %3016 }
 0x64e   : > { %v3085_v21 = vmul.f32 %v2940_v52, %v7163_v31  ;;  %4523 = vmatpush3.bf16.msra.mxu1 %v4522_v43  ;;  %v3102_v62 = vmul.f32 %v3017_v55, %v7166_v5  ;;  %v7178_v52 = vld [vmem:[#allocation68_spill] sm:$0xff]  ;;  %v7183_v5 = vld [vmem:[#allocation59_spill] sm:$0xff] }
 0x650   : > { %v4554_v50 = vpack.c.bf16 %v3085_v21, %v3084_v6 }
 0x651   : > { %v2881_v23 = vpop.permute.xlu1 %2880  ;;  %v2807_v25 = vpop.permute.xlu0 %2806 }
 0x652   : > { %v3071_v53 = vmul.f32 %v2881_v23, %v7165_v63  ;;  %4555 = vmatpush3.bf16.msra.mxu0 %v4554_v50  ;;  %v3054_v2 = vmul.f32 %v2807_v25, %v7168_v9  ;;  %v7180_v23 = vld [vmem:[#allocation38_spill] sm:$0xff]  ;;  %v7185_v9 = vld [vmem:[#allocation28_spill] sm:$0xff] }
 0x654   : > { %v4524_v13 = vpack.c.bf16 %v3071_v53, %v3070_v0 }
 0x655   : > { %v3021_v18 = vpop.permute.xlu1 %3020  ;;  %v2947_v46 = vpop.permute.xlu0 %2946 }
 0x656   : > { %v3103_v42 = vmul.f32 %v3021_v18, %v7167_v20  ;;  %4525 = vmatprep.subr.bf16.mxu1 %v4524_v13  ;;  %v3086_v22 = vmul.f32 %v2947_v46, %v7170_v30  ;;  %v7182_v18 = vld [vmem:[#allocation55_spill] sm:$0xff] }
 0x658   : > { %v4556_v36 = vpack.c.bf16 %v3103_v42, %v3102_v62 }
 0x659   : > { %v2811_v44 = vpop.permute.xlu1 %2810  ;;  %v2885_v37 = vpop.permute.xlu0 %2884 }
 0x65a   : > { %v3055_v14 = vmul.f32 %v2811_v44, %v7169_v11  ;;  %4557 = vmatprep.subr.bf16.mxu0 %v4556_v36  ;;  %v3072_v33 = vmul.f32 %v2885_v37, %v7172_v16  ;;  %v7184_v44 = vld [vmem:[#allocation24_spill] sm:$0xff] }
 0x65c   : > { %v4526_v4 = vpack.c.bf16 %v3055_v14, %v3054_v2 }
 0x65d   : > { %v2951_v7 = vpop.permute.xlu1 %2950  ;;  %v3025_v24 = vpop.permute.xlu0 %3024 }
 0x65e   : > { %v3087_v41 = vmul.f32 %v2951_v7, %v7171_v39  ;;  %4527 = vmatpush3.bf16.msra.mxu1 %v4526_v4  ;;  %v3104_v15 = vmul.f32 %v3025_v24, %v7174_v49  ;;  %v7186_v4 = vld [vmem:[#allocation71_spill] sm:$0xff]  ;;  %v7187_v24 = vld [vmem:[#allocation73_spill] sm:$0xff] }
 0x660   : > { %v4558_v17 = vpack.c.bf16 %v3087_v41, %v3086_v22 }
 0x661   : > { %v2889_v34 = vpop.permute.xlu1 %2888  ;;  %v2815_v40 = vpop.permute.xlu0 %2814 }
 0x662   : > { %v3073_v58 = vmul.f32 %v2889_v34, %v7173_v51  ;;  %4559 = vmatpush3.bf16.msra.mxu0 %v4558_v17  ;;  %v3056_v38 = vmul.f32 %v2815_v40, %v7176_v35  ;;  %v7188_v17 = vld [vmem:[#allocation42_spill] sm:$0xff]  ;;  %v7189_v40 = vld [vmem:[#allocation48_spill] sm:$0xff] }
 0x664   : > { %v4528_v60 = vpack.c.bf16 %v3073_v58, %v3072_v33 }
 0x665   : > { %v3029_v12 = vpop.permute.xlu1 %3028  ;;  %v2955_v28 = vpop.permute.xlu0 %2954 }
 0x666   : > { %v3105_v57 = vmul.f32 %v3029_v12, %v7175_v45  ;;  %4529 = vmatprep.subr.bf16.mxu1 %v4528_v60  ;;  %v3088_v55 = vmul.f32 %v2955_v28, %v7178_v52  ;;  %v7190_v60 = vld [vmem:[#allocation57_spill] sm:$0xff]  ;;  %v7191_v28 = vld [vmem:[#allocation60_spill] sm:$0xff] }
 0x668   : > { %v4560_v32 = vpack.c.bf16 %v3105_v57, %v3104_v15  ;;  %v7192_v57 = vld [vmem:[#allocation29_spill] sm:$0xff] }
 0x669   : > { %v2819_v54 = vpop.permute.xlu1 %2818  ;;  %v2893_v10 = vpop.permute.xlu0 %2892 }
 0x66a   : > { %v3057_v19 = vmul.f32 %v2819_v54, %v7177_v48  ;;  %4561 = vmatprep.subr.bf16.mxu0 %v4560_v32  ;;  %v3074_v25 = vmul.f32 %v2893_v10, %v7180_v23  ;;  %v7193_v54 = vld [vmem:[#allocation31_spill] sm:$0xff]  ;;  %v4673_v23 = vld [vmem:[%s6884_s7 + $0xc] ss:$16 sps:$4 sm:$0xff]  }
 0x66c   : > { %v4530_v26 = vpack.c.bf16 %v3057_v19, %v3056_v38  ;;  %v7194_v19 = vld [vmem:[#allocation72_spill] sm:$0xff] }
 0x66d   : > { %v2959_v29 = vpop.permute.xlu1 %2958  ;;  %v3033_v43 = vpop.permute.xlu0 %3032 }
 0x66e   : > { %v3089_v6 = vmul.f32 %v2959_v29, %v7179_v3  ;;  %4531 = vmatpush3.bf16.msra.mxu1 %v4530_v26  ;;  %v3106_v46 = vmul.f32 %v3033_v43, %v7182_v18  ;;  %v7195_v29 = vld [vmem:[#allocation74_spill] sm:$0xff] }
 0x66f   : > { %v4780_v3 = vld [vmem:[%s6888_s11 + $0x18] sm:$0xff]  }
 0x670   : > { %v4562_v31 = vpack.c.bf16 %v3089_v6, %v3088_v55  ;;  %v4665_v6 = vld [vmem:[%s6884_s7] ss:$16 sps:$4 sm:$0xff]   ;;  %v4779_v55 = vld [vmem:[%s6888_s11 + $0x58] sm:$0xff]  }
 0x671   : > { %v2897_v21 = vpop.permute.xlu1 %2896  ;;  %v2823_v50 = vpop.permute.xlu0 %2822 }
 0x672   : > { %v3075_v0 = vmul.f32 %v2897_v21, %v7181_v59  ;;  %4563 = vmatpush3.bf16.msra.mxu0 %v4562_v31  ;;  %v3058_v37 = vmul.f32 %v2823_v50, %v7184_v44  ;;  %v4667_v31 = vld [vmem:[%s6884_s7 + $0x4] ss:$16 sps:$4 sm:$0xff]   ;;  %v4911_v50 = vmov 0   ;;  %v4677_v44 = vld [vmem:[%s6886_s9] ss:$8 sps:$4 sm:$0xff]  }
 0x673   : > { %v4670_v21 = vld [vmem:[%s6884_s7 + $0x24] ss:$16 sps:$4 sm:$0xff]  }
 0x674   : > { %v4532_v63 = vpack.c.bf16 %v3075_v0, %v3074_v25 }
 0x675   : > { %v3037_v53 = vpop.permute.xlu1 %3036  ;;  %v2963_v13 = vpop.permute.xlu0 %2962 }
 0x676   : > { %v3107_v62 = vmul.f32 %v3037_v53, %v7183_v5  ;;  %4533 = vmatprep.subr.bf16.mxu1 %v4532_v63  ;;  %v3090_v7 = vmul.f32 %v2963_v13, %v7186_v4  ;;  %v4671_v5 = vld [vmem:[%s6884_s7 + $0x8] ss:$16 sps:$4 sm:$0xff]  }
 0x677   : > { %v4686_v4 = vld [vmem:[%s6886_s9 + $0x30] ss:$8 sps:$4 sm:$0xff]  }
 0x678   : > { %v4564_v20 = vpack.c.bf16 %v3107_v62, %v3106_v46 }
 0x679   : > { %v2827_v42 = vpop.permute.xlu1 %2826  ;;  %v2901_v36 = vpop.permute.xlu0 %2900 }
 0x67a   : > { %v3059_v2 = vmul.f32 %v2827_v42, %v7185_v9  ;;  %4565 = vmatprep.subr.bf16.mxu0 %v4564_v20  ;;  %v3076_v34 = vmul.f32 %v2901_v36, %v7188_v17  ;;  %v4676_v20 = vld [vmem:[%s6884_s7 + $0x2c] ss:$16 sps:$4 sm:$0xff]   ;;  %v4674_v42 = vld [vmem:[%s6884_s7 + $0x28] ss:$16 sps:$4 sm:$0xff]  }
 0x67b   : > { %v4679_v36 = vld [vmem:[%s6886_s9 + $0x4] ss:$8 sps:$4 sm:$0xff]   ;;  %v4680_v9 = vld [vmem:[%s6886_s9 + $0x10] ss:$8 sps:$4 sm:$0xff]   ;;  %v4700_v17 = vld [vmem:[%s6886_s9 + $0x74] ss:$8 sps:$4 sm:$0xff]  }
 0x67c   : > { %v4534_v11 = vpack.c.bf16 %v3059_v2, %v3058_v37  ;;  %v4682_v37 = vld [vmem:[%s6886_s9 + $0x14] ss:$8 sps:$4 sm:$0xff]   ;;  %v4685_v2 = vld [vmem:[%s6886_s9 + $0x24] ss:$8 sps:$4 sm:$0xff]  }
 0x67d   : > { %v2967_v14 = vpop.permute.xlu1 %2966  ;;  %v3041_v22 = vpop.permute.xlu0 %3040 }
 0x67e   : > { %v3091_v30 = vmul.f32 %v2967_v14, %v7187_v24  ;;  %4535 = vmatpush3.bf16.msra.mxu1 %v4534_v11  ;;  %v3108_v12 = vmul.f32 %v3041_v22, %v7190_v60  ;;  %v4683_v11 = vld [vmem:[%s6886_s9 + $0x20] ss:$8 sps:$4 sm:$0xff]   ;;  %v4688_v14 = vld [vmem:[%s6886_s9 + $0x34] ss:$8 sps:$4 sm:$0xff]   ;;  %v4692_v22 = vld [vmem:[%s6886_s9 + $0x50] ss:$8 sps:$4 sm:$0xff]  }
 0x67f   : > { %v4689_v24 = vld [vmem:[%s6886_s9 + $0x40] ss:$8 sps:$4 sm:$0xff]  }
 0x680   : > { %v4566_v39 = vpack.c.bf16 %v3091_v30, %v3090_v7  ;;  %v4691_v7 = vld [vmem:[%s6886_s9 + $0x44] ss:$8 sps:$4 sm:$0xff]   ;;  %v4694_v30 = vld [vmem:[%s6886_s9 + $0x54] ss:$8 sps:$4 sm:$0xff]   ;;  %v4707_v60 = vld [vmem:[%s6886_s9 + $0xa0] ss:$8 sps:$4 sm:$0xff]  }
 0x681   : > { %v2905_v41 = vpop.permute.xlu1 %2904  ;;  %v2831_v51 = vpop.permute.xlu0 %2830 }
 0x682   : > { %v3077_v16 = vmul.f32 %v2905_v41, %v7189_v40  ;;  %4567 = vmatpush3.bf16.msra.mxu0 %v4566_v39  ;;  %v3060_v32 = vmul.f32 %v2831_v51, %v7192_v57  ;;  %v4697_v39 = vld [vmem:[%s6886_s9 + $0x64] ss:$8 sps:$4 sm:$0xff]   ;;  %v4695_v41 = vld [vmem:[%s6886_s9 + $0x60] ss:$8 sps:$4 sm:$0xff]   ;;  %v4704_v51 = vld [vmem:[%s6886_s9 + $0x90] ss:$8 sps:$4 sm:$0xff]  }
 0x683   : > { %v4703_v40 = vld [vmem:[%s6886_s9 + $0x84] ss:$8 sps:$4 sm:$0xff]   ;;  %v4716_v57 = vld [vmem:[%s6886_s9 + $0xd0] ss:$8 sps:$4 sm:$0xff]  }
 0x684   : > { %v4536_v33 = vpack.c.bf16 %v3077_v16, %v3076_v34  ;;  %v4698_v34 = vld [vmem:[%s6886_s9 + $0x70] ss:$8 sps:$4 sm:$0xff]   ;;  %v4701_v16 = vld [vmem:[%s6886_s9 + $0x80] ss:$8 sps:$4 sm:$0xff]  }
 0x685   : > { %v3045_v58 = vpop.permute.xlu1 %3044  ;;  %v2971_v35 = vpop.permute.xlu0 %2970 }
 0x686   : > { %v3109_v49 = vmul.f32 %v3045_v58, %v7191_v28  ;;  %4537 = vmatprep.subr.bf16.mxu1 %v4536_v33  ;;  %v3092_v26 = vmul.f32 %v2971_v35, %v7194_v19  ;;  %v4706_v33 = vld [vmem:[%s6886_s9 + $0x94] ss:$8 sps:$4 sm:$0xff]   ;;  %v4709_v58 = vld [vmem:[%s6886_s9 + $0xa4] ss:$8 sps:$4 sm:$0xff]   ;;  %v4710_v28 = vld [vmem:[%s6886_s9 + $0xb0] ss:$8 sps:$4 sm:$0xff]  }
 0x687   : > { %v4722_v35 = vld [vmem:[%s6886_s9 + $0xf0] ss:$8 sps:$4 sm:$0xff]   ;;  %v4774_v19 = vld [vmem:[%s6888_s11] sm:$0xff]  }
 0x688   : > { %v4568_v15 = vpack.c.bf16 %v3109_v49, %v3108_v12  ;;  %v4712_v12 = vld [vmem:[%s6886_s9 + $0xb4] ss:$8 sps:$4 sm:$0xff]   ;;  %v4715_v49 = vld [vmem:[%s6886_s9 + $0xc4] ss:$8 sps:$4 sm:$0xff]  }
 0x689   : > { %v2835_v45 = vpop.permute.xlu1 %2834 }
 0x68a   : > { %v3061_v10 = vmul.f32 %v2835_v45, %v7193_v54  ;;  %4569 = vmatprep.subr.bf16.mxu0 %v4568_v15  ;;  %v4713_v15 = vld [vmem:[%s6886_s9 + $0xc0] ss:$8 sps:$4 sm:$0xff]   ;;  %v4718_v45 = vld [vmem:[%s6886_s9 + $0xd4] ss:$8 sps:$4 sm:$0xff]   ;;  %v4721_v54 = vld [vmem:[%s6886_s9 + $0xe4] ss:$8 sps:$4 sm:$0xff]  }
 0x68c   : > { %v4538_v38 = vpack.c.bf16 %v3061_v10, %v3060_v32  ;;  %v4719_v32 = vld [vmem:[%s6886_s9 + $0xe0] ss:$8 sps:$4 sm:$0xff]   ;;  %v4724_v10 = vld [vmem:[%s6886_s9 + $0xf4] ss:$8 sps:$4 sm:$0xff]  }
 0x68d   : > { %v2975_v48 = vpop.permute.xlu1 %2974 }
 0x68e   : > { %v3093_v43 = vmul.f32 %v2975_v48, %v7195_v29  ;;  %4539 = vmatpush3.bf16.msra.mxu1 %v4538_v38  ;;  %v4727_v38 = vld [vmem:[%s6886_s9 + $0x104] ss:$8 sps:$4 sm:$0xff]  }
 0x68f   : > { %3329 = vmatprep.subr.bf16.mxu1 %v4667_v31  ;;  %v4773_v48 = vld [vmem:[%s6888_s11 + $0x40] sm:$0xff]   ;;  %v4776_v29 = vld [vmem:[%s6888_s11 + $0x8] sm:$0xff]  }
 0x690   : > { %v4570_v52 = vpack.c.bf16 %v3093_v43, %v3092_v26  ;;  %v4775_v26 = vld [vmem:[%s6888_s11 + $0x48] sm:$0xff]   ;;  %v4777_v43 = vld [vmem:[%s6888_s11 + $0x50] sm:$0xff]   ;;  %v4782_v31 = vld [vmem:[%s6888_s11 + $0x20] sm:$0xff]  }
 0x691   : > { %4225 = vmatmul.mubr.msk.f32.vlgmr.msra.gmra.mrb[0].mxu1 %vm5166_vm7, %v4910_v56  ;;  %vm7199_vm7 = vmmov %vm7198_vm4 }
 0x692   : > { %4571 = vmatpush3.bf16.msra.mxu0 %v4570_v52  ;;  %3361 = vmatprep.mubr.bf16.mxu1 %v4911_v50  ;;  %v4778_v52 = vld [vmem:[%s6888_s11 + $0x10] sm:$0xff]  }
 0x693   : > { %3330 = vmatpush1.bf16.msra.mxu1 %v4665_v6  ;;  %4452 = vmatprep.subr.bf16.mxu0 %v4773_v48  ;;  %v4781_v6 = vld [vmem:[%s6888_s11 + $0x60] sm:$0xff]  }
 0x694   : > { %3331 = vmatprep.subr.bf16.mxu1 %v4670_v21  ;;  %v4783_v21 = vld [vmem:[%s6888_s11 + $0x68] sm:$0xff]  }
 0x695   : > { %4227 = vmatmul.mubr.msk.f32.vlgmr.msra.gmra.mrb[20].mxu0 %vm5265_vm15, %v4910_v56  ;;  %v4668_v56 = vld [vmem:[%s6884_s7 + $0x20] ss:$16 sps:$4 sm:$0xff]  }
 0x696   : > { %4453 = vmatpush3.bf16.msra.mxu0 %v4774_v19  ;;  %v4769_v19 = vld [vmem:[%s6886_s9 + $0x1e4] ss:$8 sps:$4 sm:$0xff]  }
 0x697   : > { %3332 = vmatpush1.bf16.msra.mxu1 %v4668_v56  ;;  %4454 = vmatprep.subr.bf16.mxu0 %v4775_v26  ;;  %v6702_v56 = vld [vmem:[%s6885_s8] sm:$0xf] }
 0x698   : > { %3370 = vmatprep.subr.bf16.mxu1 %v4673_v23  ;;  %v3269_v23 = vrot.slane %v6702_v56, %v7129_v27  ;;  %v3277_v48 = vrot.slane %v6702_v56, %v2838_v1  ;;  %v4767_v26 = vld [vmem:[%s6886_s9 + $0x1e0] ss:$8 sps:$4 sm:$0xff]  }
 0x69a   : > { %4455 = vmatpush3.bf16.msra.mxu0 %v4776_v29 }
 0x69b   : > { %4456 = vmatprep.subr.bf16.mxu0 %v4777_v43  ;;  %v4772_v43 = vld [vmem:[%s6886_s9 + $0x1f4] ss:$8 sps:$4 sm:$0xff]  }
 0x69e   : > { %4457 = vmatpush3.bf16.msra.mxu0 %v4778_v52 }
 0x69f   : > { %4458 = vmatprep.subr.bf16.mxu0 %v4779_v55  ;;  %v4785_v55 = vld [vmem:[%s6888_s11 + $0x70] sm:$0xff]  }
 0x6a2   : > { %4459 = vmatpush3.bf16.msra.mxu0 %v4780_v3  ;;  %v4786_v3 = vld [vmem:[%s6888_s11 + $0x30] sm:$0xff]  }
 0x6a3   : > { %4460 = vmatprep.subr.bf16.mxu0 %v4781_v6  ;;  %v4787_v6 = vld [vmem:[%s6888_s11 + $0x78] sm:$0xff]  }
 0x6a6   : > { %4461 = vmatpush3.bf16.msra.mxu0 %v4782_v31  ;;  %v4788_v31 = vld [vmem:[%s6888_s11 + $0x38] sm:$0xff]  }
 0x6a7   : > { %4462 = vmatprep.subr.bf16.mxu0 %v4783_v21  ;;  %v3483_v21 = vld [vmem:[%s6887_s10] sm:$0x3] }
 0x764   : > { %v4414_v25 = vpop.f32.mrb[0].mxu1 }
 0x765   : > { %v4415_v59 = vpop.f32.mrb[1].mxu1 }
 0x766   : > { %v4416_v0 = vadd.f32 %v4415_v59, %v4414_v25  ;;  %v3273_v25 = vrot.slane %v6702_v56, %v6458_v8 }
 0x768   : > { %v4449_v63 = vpop.f32.mrb[20].mxu0 }
 0x769   : > { %v4450_v53 = vpop.f32.mrb[21].mxu0 }
 0x76a   : > { %v4451_v13 = vadd.f32 %v4450_v53, %v4449_v63 }
 0x76c   : > { %v3251_v18 = vadd.f32 %v4451_v13, %v4416_v0 }
 0x76e   : > { %v3254_v46 = vmul.f32 0.015625, %v3251_v18 }
 0x770   : > { %v3255_v62 = vpack.c.bf16 %v3254_v46, %v3254_v46 }
 0x772   : > { %4236 = vmatmul.mubr.msk.bf16.vlgmr.msra.gmra.mrb[4].mxu1 %vm7198_vm4, %v3255_v62 }
 0x773   : > { %3371 = vmatpush1.bf16.msra.mxu1 %v4671_v5  ;;  %3402 = vmatprep.mubr.bf16.mxu1 %v4911_v50  ;;  %v4784_v50 = vld [vmem:[%s6888_s11 + $0x28] sm:$0xff]  }
 0x774   : > { %3372 = vmatprep.subr.bf16.mxu1 %v4676_v20  ;;  %4463 = vmatpush3.bf16.msra.mxu0 %v4784_v50  ;;  %v4725_v20 = vld [vmem:[%s6886_s9 + $0x100] ss:$8 sps:$4 sm:$0xff]   ;;  %v3488_v50 = vrot.slane %v3483_v21, %v7129_v27 }
 0x775   : > { %4464 = vmatprep.subr.bf16.mxu0 %v4785_v55  ;;  %v4302_v27 = vld [vmem:[%s6889_s12] ss:$0 sm:$0xff] }
 0x777   : > { %3373 = vmatpush1.bf16.msra.mxu1 %v4674_v42  ;;  %v3281_v42 = vrot.slane %v6702_v56, %v2873_v61  ;;  %v4733_v61 = vld [vmem:[%s6886_s9 + $0x124] ss:$8 sps:$4 sm:$0xff]   ;;  %v3492_v56 = vrot.slane %v3483_v21, %v6458_v8 }
 0x778   : > { %3815 = vmatprep.subr.bf16.mxu1 %v4679_v36  ;;  %4465 = vmatpush3.bf16.msra.mxu0 %v4786_v3 }
 0x779   : > { %4466 = vmatprep.subr.bf16.mxu0 %v4787_v6 }
 0x77a   : > { %4237 = vmatmul.mubr.msk.bf16.vlgmr.msra.gmra.mrb[8].mxu1 %vm7199_vm7, %v3255_v62 }
 0x77b   : > { %3816 = vmatpush1.bf16.msra.mxu1 %v4677_v44  ;;  %v4730_v44 = vld [vmem:[%s6886_s9 + $0x114] ss:$8 sps:$4 sm:$0xff]  }
 0x77c   : > { %3817 = vmatprep.subr.bf16.mxu1 %v4682_v37  ;;  %4467 = vmatpush3.bf16.msra.mxu0 %v4788_v31 }
 0x77f   : > { %3818 = vmatpush1.bf16.msra.mxu1 %v4680_v9 }
 0x780   : > { %3819 = vmatprep.subr.bf16.mxu1 %v4685_v2 }
 0x783   : > { %3820 = vmatpush1.bf16.msra.mxu1 %v4683_v11 }
 0x784   : > { %3821 = vmatprep.subr.bf16.mxu1 %v4688_v14  ;;  %v4728_v14 = vld [vmem:[%s6886_s9 + $0x110] ss:$8 sps:$4 sm:$0xff]  }
 0x787   : > { %3822 = vmatpush1.bf16.msra.mxu1 %v4686_v4 }
 0x788   : > { %3823 = vmatprep.subr.bf16.mxu1 %v4691_v7 }
 0x78b   : > { %3824 = vmatpush1.bf16.msra.mxu1 %v4689_v24 }
 0x78c   : > { %3825 = vmatprep.subr.bf16.mxu1 %v4694_v30  ;;  %v4731_v30 = vld [vmem:[%s6886_s9 + $0x120] ss:$8 sps:$4 sm:$0xff]  }
 0x78f   : > { %3826 = vmatpush1.bf16.msra.mxu1 %v4692_v22  ;;  %v4736_v22 = vld [vmem:[%s6886_s9 + $0x134] ss:$8 sps:$4 sm:$0xff]  }
 0x790   : > { %3827 = vmatprep.subr.bf16.mxu1 %v4697_v39  ;;  %v4734_v39 = vld [vmem:[%s6886_s9 + $0x130] ss:$8 sps:$4 sm:$0xff]  }
 0x793   : > { %3828 = vmatpush1.bf16.msra.mxu1 %v4695_v41  ;;  %v4739_v41 = vld [vmem:[%s6886_s9 + $0x144] ss:$8 sps:$4 sm:$0xff]  }
 0x794   : > { %3829 = vmatprep.subr.bf16.mxu1 %v4700_v17  ;;  %v4737_v17 = vld [vmem:[%s6886_s9 + $0x140] ss:$8 sps:$4 sm:$0xff]  }
 0x797   : > { %3830 = vmatpush1.bf16.msra.mxu1 %v4698_v34  ;;  %v4742_v34 = vld [vmem:[%s6886_s9 + $0x154] ss:$8 sps:$4 sm:$0xff]  }
 0x798   : > { %3831 = vmatprep.subr.bf16.mxu1 %v4703_v40  ;;  %v4740_v40 = vld [vmem:[%s6886_s9 + $0x150] ss:$8 sps:$4 sm:$0xff]  }
 0x79b   : > { %3832 = vmatpush1.bf16.msra.mxu1 %v4701_v16  ;;  %v4745_v16 = vld [vmem:[%s6886_s9 + $0x164] ss:$8 sps:$4 sm:$0xff]  }
 0x79c   : > { %3833 = vmatprep.subr.bf16.mxu1 %v4706_v33  ;;  %v4743_v33 = vld [vmem:[%s6886_s9 + $0x160] ss:$8 sps:$4 sm:$0xff]  }
 0x79f   : > { %3834 = vmatpush1.bf16.msra.mxu1 %v4704_v51  ;;  %v4748_v51 = vld [vmem:[%s6886_s9 + $0x174] ss:$8 sps:$4 sm:$0xff]  }
 0x7a0   : > { %3835 = vmatprep.subr.bf16.mxu1 %v4709_v58  ;;  %v4746_v58 = vld [vmem:[%s6886_s9 + $0x170] ss:$8 sps:$4 sm:$0xff]  }
 0x7a3   : > { %3836 = vmatpush1.bf16.msra.mxu1 %v4707_v60  ;;  %v4751_v60 = vld [vmem:[%s6886_s9 + $0x184] ss:$8 sps:$4 sm:$0xff]  }
 0x7a4   : > { %3837 = vmatprep.subr.bf16.mxu1 %v4712_v12  ;;  %v4749_v12 = vld [vmem:[%s6886_s9 + $0x180] ss:$8 sps:$4 sm:$0xff]  }
 0x7a7   : > { %3838 = vmatpush1.bf16.msra.mxu1 %v4710_v28  ;;  %v4754_v28 = vld [vmem:[%s6886_s9 + $0x194] ss:$8 sps:$4 sm:$0xff]  }
 0x7a8   : > { %3839 = vmatprep.subr.bf16.mxu1 %v4715_v49  ;;  %v4752_v49 = vld [vmem:[%s6886_s9 + $0x190] ss:$8 sps:$4 sm:$0xff]  }
 0x7ab   : > { %3840 = vmatpush1.bf16.msra.mxu1 %v4713_v15  ;;  %v4757_v15 = vld [vmem:[%s6886_s9 + $0x1a4] ss:$8 sps:$4 sm:$0xff]  }
 0x7ac   : > { %3841 = vmatprep.subr.bf16.mxu1 %v4718_v45  ;;  %v4755_v45 = vld [vmem:[%s6886_s9 + $0x1a0] ss:$8 sps:$4 sm:$0xff]  }
 0x7af   : > { %3842 = vmatpush1.bf16.msra.mxu1 %v4716_v57  ;;  %v4760_v57 = vld [vmem:[%s6886_s9 + $0x1b4] ss:$8 sps:$4 sm:$0xff]  }
 0x7b0   : > { %3843 = vmatprep.subr.bf16.mxu1 %v4721_v54  ;;  %v4763_v54 = vld [vmem:[%s6886_s9 + $0x1c4] ss:$8 sps:$4 sm:$0xff]  }
 0x7b3   : > { %3844 = vmatpush1.bf16.msra.mxu1 %v4719_v32  ;;  %v4758_v32 = vld [vmem:[%s6886_s9 + $0x1b0] ss:$8 sps:$4 sm:$0xff]  }
 0x7b4   : > { %3845 = vmatprep.subr.bf16.mxu1 %v4724_v10  ;;  %v4761_v10 = vld [vmem:[%s6886_s9 + $0x1c0] ss:$8 sps:$4 sm:$0xff]  }
 0x7b7   : > { %3846 = vmatpush1.bf16.msra.mxu1 %v4722_v35  ;;  %v4766_v35 = vld [vmem:[%s6886_s9 + $0x1d4] ss:$8 sps:$4 sm:$0xff]  }
 0x7b8   : > { %3856 = vmatprep.subr.bf16.mxu1 %v4727_v38  ;;  %v4764_v38 = vld [vmem:[%s6886_s9 + $0x1d0] ss:$8 sps:$4 sm:$0xff]  }
 0x845   : > { %v3363_v59 = vpop.f32.mrb[4].mxu1 }
 0x846   : > { %v3364_v0 = vadd.f32 %v3363_v59, %v3269_v23  ;;  %v3365_v63 = vpop.f32.mrb[5].mxu1 }
 0x847   : > { %v3366_v53 = vadd.f32 %v3365_v63, %v3273_v25  ;;  %v3367_v13 = vpop.f32.mrb[6].mxu1 }
 0x848   : > { %v3411_v18 = vmax.f32 %v3364_v0, 0.0  ;;  %v3368_v46 = vpop.f32.mrb[7].mxu1 }
 0x849   : > { %v3412_v5 = vmax.f32 %v3366_v53, 0.0 }
 0x84a   : > { %v3415_v36 = vpack.c.bf16 %v3411_v18, %v3411_v18 }
 0x84b   : > { %v3416_v62 = vpack.c.bf16 %v3412_v5, %v3412_v5 }
 0x84d   : > { %v6717_v37 = vpop.f32.mrb[8].mxu1  ;;  %3847 = vmatprep.mubr.bf16.mxu1 %v3416_v62 }
 0x84e   : > { %v3406_v9 = vpop.f32.mrb[9].mxu1  ;;  %3848 = vmatmul.mubr.bf16.vlgmr.msra.gmra.mrb[12].mxu1 %v3415_v36  ;;  %v3405_v29 = vadd.f32 %v6717_v37, %v3277_v48 }
 0x84f   : > { %v3407_v2 = vadd.f32 %v3406_v9, %v3281_v42  ;;  %3857 = vmatpush1.bf16.msra.mxu1 %v4725_v20  ;;  %v3408_v11 = vpop.f32.mrb[10].mxu1 }
 0x850   : > { %v3409_v4 = vpop.f32.mrb[11].mxu1  ;;  %3858 = vmatprep.subr.bf16.mxu1 %v4730_v44  ;;  %v3413_v1 = vmax.f32 %v3405_v29, 0.0 }
 0x851   : > { %v3414_v7 = vmax.f32 %v3407_v2, 0.0 }
 0x852   : > { %v3417_v52 = vpack.c.bf16 %v3413_v1, %v3413_v1 }
 0x853   : > { %v3418_v24 = vpack.c.bf16 %v3414_v7, %v3414_v7  ;;  %3859 = vmatpush1.bf16.msra.mxu1 %v4728_v14 }
 0x854   : > { %3860 = vmatprep.subr.bf16.mxu1 %v4733_v61 }
 0x855   : > { %3888 = vmatprep.mubr.bf16.mxu1 %v3418_v24 }
 0x857   : > { %3861 = vmatpush1.bf16.msra.mxu1 %v4731_v30 }
 0x858   : > { %3862 = vmatprep.subr.bf16.mxu1 %v4736_v22 }
 0x85b   : > { %3863 = vmatpush1.bf16.msra.mxu1 %v4734_v39 }
 0x85c   : > { %3864 = vmatprep.subr.bf16.mxu1 %v4739_v41 }
 0x85f   : > { %3865 = vmatpush1.bf16.msra.mxu1 %v4737_v17 }
 0x860   : > { %3866 = vmatprep.subr.bf16.mxu1 %v4742_v34 }
 0x863   : > { %3867 = vmatpush1.bf16.msra.mxu1 %v4740_v40 }
 0x864   : > { %3868 = vmatprep.subr.bf16.mxu1 %v4745_v16 }
 0x867   : > { %3869 = vmatpush1.bf16.msra.mxu1 %v4743_v33 }
 0x868   : > { %3870 = vmatprep.subr.bf16.mxu1 %v4748_v51 }
 0x86b   : > { %3871 = vmatpush1.bf16.msra.mxu1 %v4746_v58 }
 0x86c   : > { %3872 = vmatprep.subr.bf16.mxu1 %v4751_v60 }
 0x86f   : > { %3873 = vmatpush1.bf16.msra.mxu1 %v4749_v12 }
 0x870   : > { %3874 = vmatprep.subr.bf16.mxu1 %v4754_v28 }
 0x873   : > { %3875 = vmatpush1.bf16.msra.mxu1 %v4752_v49 }
 0x874   : > { %3876 = vmatprep.subr.bf16.mxu1 %v4757_v15 }
 0x877   : > { %3877 = vmatpush1.bf16.msra.mxu1 %v4755_v45 }
 0x878   : > { %3878 = vmatprep.subr.bf16.mxu1 %v4760_v57 }
 0x87b   : > { %3879 = vmatpush1.bf16.msra.mxu1 %v4758_v32 }
 0x87c   : > { %3880 = vmatprep.subr.bf16.mxu1 %v4763_v54 }
 0x87f   : > { %3881 = vmatpush1.bf16.msra.mxu1 %v4761_v10 }
 0x880   : > { %3882 = vmatprep.subr.bf16.mxu1 %v4766_v35 }
 0x883   : > { %3883 = vmatpush1.bf16.msra.mxu1 %v4764_v38 }
 0x884   : > { %3884 = vmatprep.subr.bf16.mxu1 %v4769_v19 }
 0x887   : > { %3885 = vmatpush1.bf16.msra.mxu1 %v4767_v26 }
 0x888   : > { %3886 = vmatprep.subr.bf16.mxu1 %v4772_v43 }
 0x88b   : > { %3887 = vmatpush1.bf16.msra.mxu1 %v4770_v47 }
 0x88e   : > { %3889 = vmatmul.mubr.bf16.vlgmr.msra.gmra.mrb[12].mxu1 %v3417_v52 }
 0x961   : > { %v3890_v23 = vpop.f32.mrb[12].mxu1 }
 0x962   : > { %v4572_v25 = vadd.f32 %v3890_v23, %v3488_v50  ;;  %v3892_v59 = vpop.f32.mrb[13].mxu1 }
 0x963   : > { %v4573_v0 = vadd.f32 %v3892_v59, %v3492_v56  ;;  %v3894_v63 = vpop.f32.mrb[14].mxu1 }
 0x964   : > { %v3897_v53 = vmax.f32 %v4572_v25, 0.0  ;;  %v3895_v13 = vpop.f32.mrb[15].mxu1 }
 0x965   : > { %v3898_v18 = vmax.f32 %v4573_v0, 0.0 }
 0x966   : > { %v3899_v5 = vpack.c.bf16 %v3897_v53, %v3897_v53 }
 0x967   : > { %v3900_v46 = vpack.c.bf16 %v3898_v18, %v3898_v18 }
 0x969   : > { %4068 = vmatprep.mubr.bf16.mxu0 %v3900_v46 }
 0x96a   : > { %4069 = vmatmul.mubr.bf16.vlgmr.msra.gmra.mrb[24].mxu0 %v3899_v5 }
 0xa3d   : > { %v4468_v62 = vpop.f32.mrb[24].mxu0 }
 0xa3e   : > { %v4469_v20 = vpop.f32.mrb[25].mxu0 }
 0xa3f   : > { %v4470_v8 = vadd.f32 %v4469_v20, %v4468_v62  ;;  %v4471_v42 = vpop.f32.mrb[26].mxu0 }
 0xa40   : > { %v4472_v36 = vpop.f32.mrb[27].mxu0 }
 0xa41   : > { %v4071_v44 = vadd.f32 %v4470_v8, %v4302_v27 }
 0xa43   : > { %4076 = vmax.xlane.f32.xlu0 %v4071_v44 }
 0xad0   : > { %v4077_v37 = vpop.xlane.xlu0 %4076 }
 0xad1   : > { %v4078_v9 = vsub.f32 %v4071_v44, %v4077_v37 }
 0xad3   : > { %v4079_v2 = vmul.f32 1.442695, %v4078_v9 }
 0xad5   : > { %4829 = vpow2.f32 %v4079_v2 }
 0xadf   : > { %v4830_v11 = vpop.eup %4829 }
 0xae0   : > { %4081 = vadd.xlane.f32.xlu1 %v4830_v11 }
 0xb6d   : > { %v4082_v14 = vpop.xlane.xlu1 %4081 }
 0xb6e   : > { %4831 = vrcp.f32 %v4082_v14 }
 0xb78   : > { %v4832_v4 = vpop.eup %4831 }
 0xb79   : > { %v4084_v61 = vmul.f32 %v4832_v4, %v4830_v11 }
 0xb7b   : > { %4085 = vst [vmem:[%s436_s24] sm:$0xff] %v4084_v61 }
 0xb7c   : > { %4855 = shalt.err (!%p4852_p3)
}
 0xb7d   : > { %s4856_s15 = scalar_lea.hbm %s6835_s23, 128  ;;  %s4860_s21 = scalar_lea.hbm %s6890_s13, 256 }
 0xb7e   : > { %p4857_p4 = scmp.ne.s32.totalorder %s6835_s23, %s4856_s15  ;;  %p4861_p9 = scmp.lt.u32.totalorder %s6835_s23, %s6890_s13 }
 0xb7f   : > { %p4862_p10 = scmp.lt.u32.totalorder %s4860_s21, %s4856_s15  ;;  %p4864_p12 = scmp.lt.u32.totalorder %s4856_s15, %s6835_s23 }
 0xb80   : > { %p4858_p7 = pnand %p4857_p4, %p5021_p5 }
 0xb81   : > { %p4863_p11 = por %p4862_p10, %p4861_p9 }
 0xb82   : > { %p4859_p8 = pneg %p4858_p7 }
 0xb83   : > { %p4865_p13 = por %p4864_p12, %p4863_p11 }
 0xb85   : > { %p4866_p0 = pnand %p4865_p13, %p4859_p8 }
 0xb87   : > { %4869 = shalt.err (!%p4866_p0)
}
 0xb88   : > { %4578 = dma.vmem_to_hbm [thread:$0]  (%p5021_p5), %s6837_s20, 128, %s6835_s23, %s4087_s1  }
 0xb89 PF: > { %p4584_p1 = scmp.ge.s32.totalorder %s4904_s28, 2  ;;  %s4112_s2 = sand.u32 1, %s4892_s25  }
 0xb8a   : > { %s4113_s30 = scalar_lea.sflag [#allocation3], %s4112_s2 }
 0xb8b   : > { %p4581_p2 = pnand %p4584_p1, %p5025_p6 }
 0xb8d   : > { %4887 = dma.done.wait (!%p4581_p2), %s4113_s30, 128  }
 0xb8e   : > { %4889 = vsyncadd (!%p4581_p2), %s4113_s30, 4294967168  ;;  %p23_p3 = scmp.ge.s32.totalorder %s5008_s14, 4   ;;  %s7200_s25 = smov %s4896_s26 }
 0xb8f   : > { %s7201_s26 = smov %s4900_s27  ;;  %s7202_s27 = smov %s5019_s17 }
 0xb90   : > { %s7203_s28 = smov %s5008_s14  ;;  %25 = sbr.rel (!%p23_p3) target bundleno = 7 (0x7), region = 107 }
 0xb97   :  { %4118 = vsyncpa [#allocation3], 1 }
 0xb98   :  { %4120 = vsyncpa [#allocation3 + $0x1], 1 }

</bundles_post_ra>
